<compile_context>
chip_gen: v5e
topology: v5e:2x2
jax: 0.10.0
libtpu: 0.0.40
codegen_flags: <defaults>
</compile_context>

<pallas_src>
import functools

import jax
import jax.numpy as jnp
from jax import lax
from jax.experimental import pallas as pl
from jax.experimental.pallas import tpu as pltpu

F32 = jnp.float32
LN_EPS = 1e-5


# ----------------------------------------------------------------------------
# jnp helpers used inside kernels
# ----------------------------------------------------------------------------
def _layernorm(x, g, b):
    # x: [L, C], g/b: [1, C]
    mu = jnp.mean(x, axis=-1, keepdims=True)
    var = jnp.mean((x - mu) ** 2, axis=-1, keepdims=True)
    return (x - mu) * lax.rsqrt(var + LN_EPS) * g + b


def _attention(x, maskf, aw, ab, inv_temp):
    # single-head scaled-dot-product attention.
    # x: [L, H]; maskf: [L, L] (1.0 = masked); aw: [4, H, H] (q,k,v,fc); ab: [4, H]
    q = jnp.dot(x, aw[0], preferred_element_type=F32) + ab[0:1]
    k = jnp.dot(x, aw[1], preferred_element_type=F32) + ab[1:2]
    v = jnp.dot(x, aw[2], preferred_element_type=F32) + ab[2:3]
    # q @ k^T without an explicit transpose (contract last dims).
    scores = lax.dot_general(q, k, (((1,), (1,)), ((), ())),
                             preferred_element_type=F32) * inv_temp
    scores = jnp.where(maskf > 0.5, -1e9, scores)
    scores = scores - jnp.max(scores, axis=-1, keepdims=True)
    p = jnp.exp(scores)
    attn = p / jnp.sum(p, axis=-1, keepdims=True)
    out = jnp.dot(attn, v, preferred_element_type=F32)
    return jnp.dot(out, aw[3], preferred_element_type=F32) + ab[3:4]


def _conv1d_cl(x, w_col, b_row, K):
    # channels-last 'same' 1-D conv via in-kernel im2col -> one MXU matmul.
    # x: [L, Cin]; w_col: [K*Cin, Cout]; b_row: [1, Cout]
    L, C = x.shape
    pad = K // 2
    z = jnp.zeros((pad, C), F32)
    xp = jnp.concatenate([z, x, z], axis=0)                       # [L+K-1, C]
    patches = jnp.concatenate([xp[k:k + L] for k in range(K)], axis=-1)  # [L, K*C]
    return jnp.dot(patches, w_col, preferred_element_type=F32) + b_row


# ----------------------------------------------------------------------------
# Pallas kernels
# ----------------------------------------------------------------------------
def linear_kernel(x_ref, w_ref, b_ref, out_ref):
    out_ref[...] = (jnp.dot(x_ref[...], w_ref[...],
                            preferred_element_type=F32) + b_ref[...])


def context_block_kernel(x_ref, add_e_ref, add_h_ref, mask_ref,
                         aw_ref, ab_ref, lng_ref, lnb_ref, fw_ref, fb_ref,
                         out_ref, *, inv_temp):
    # context_predictor: (bert + emotion + history) -> attn -> LN -> Linear/ReLU -> LN
    x = x_ref[0] + add_e_ref[0] + add_h_ref[0]                    # [L, H]
    aw = aw_ref[...]
    ab = ab_ref[...]
    lng = lng_ref[...]
    lnb = lnb_ref[...]
    fw = fw_ref[...]
    fb = fb_ref[...]
    att = _attention(x, mask_ref[0], aw, ab, inv_temp)
    h = _layernorm(x + att, lng[0:1], lnb[0:1])
    ff = jnp.maximum(jnp.dot(h, fw[0], preferred_element_type=F32) + fb[0:1], 0.0)
    out_ref[0] = _layernorm(h + ff, lng[1:2], lnb[1:2])


def emotion_block_kernel(x_ref, add_e_ref, add_sb_ref, add_sp_ref, mask_ref,
                         aw_ref, ab_ref, lng_ref, lnb_ref, fw_ref, fb_ref,
                         ow_ref, ob_ref, out_ref, *, inv_temp):
    # emotion_predictor: (ctx + sbert + prev_emotion + speaker) -> attn -> LN ->
    #                    Linear/ReLU x2 -> LN -> out_linear
    x = x_ref[0] + add_e_ref[0] + add_sb_ref[0] + add_sp_ref[0]   # [L, H]
    aw = aw_ref[...]
    ab = ab_ref[...]
    lng = lng_ref[...]
    lnb = lnb_ref[...]
    fw = fw_ref[...]
    fb = fb_ref[...]
    att = _attention(x, mask_ref[0], aw, ab, inv_temp)
    h = _layernorm(x + att, lng[0:1], lnb[0:1])
    ff = jnp.maximum(jnp.dot(h, fw[0], preferred_element_type=F32) + fb[0:1], 0.0)
    ff = jnp.maximum(jnp.dot(ff, fw[1], preferred_element_type=F32) + fb[1:2], 0.0)
    h2 = _layernorm(h + ff, lng[1:2], lnb[1:2])
    out_ref[0] = jnp.dot(h2, ow_ref[...], preferred_element_type=F32) + ob_ref[...]


def varpred_kernel(x_ref, mask_ref, c1w_ref, c1b_ref, ln1_ref,
                   c2w_ref, c2b_ref, ln2_ref, lw_ref, lb_ref,
                   logd_ref, *, K):
    # VariancePredictor: conv-ReLU-LN, conv-ReLU-LN, linear(->1), masked_fill(0)
    x = x_ref[0]                                                  # [L, H]
    h = jnp.maximum(_conv1d_cl(x, c1w_ref[...], c1b_ref[...], K), 0.0)
    ln1 = ln1_ref[...]
    h = _layernorm(h, ln1[0:1], ln1[1:2])
    h = jnp.maximum(_conv1d_cl(h, c2w_ref[...], c2b_ref[...], K), 0.0)
    ln2 = ln2_ref[...]
    h = _layernorm(h, ln2[0:1], ln2[1:2])
    d = jnp.dot(h, lw_ref[...], preferred_element_type=F32) + lb_ref[...]   # [L, 1]
    logd_ref[0] = d * (1.0 - mask_ref[0])


def mixer_kernel(ctx_ref, emo_ref, bert_ref, mask_ref,
                 c0aw_ref, c0ab_ref, c0bw_ref, c0bb_ref,
                 c1aw_ref, c1ab_ref, c1bw_ref, c1bb_ref,
                 ow_ref, ob_ref, out_ref, *, K):
    # conv_mixer on X = context + emotion + bert (fused add):
    #   out = out_linear(X + conv1(X + conv0(X))) masked_fill 0
    x = ctx_ref[0] + emo_ref[0] + bert_ref[0]                     # [L, H]
    a = jnp.maximum(_conv1d_cl(x, c0aw_ref[...], c0ab_ref[...], K), 0.0)
    a = jnp.maximum(_conv1d_cl(a, c0bw_ref[...], c0bb_ref[...], K), 0.0)
    y = x + a
    c = jnp.maximum(_conv1d_cl(y, c1aw_ref[...], c1ab_ref[...], K), 0.0)
    c = jnp.maximum(_conv1d_cl(c, c1bw_ref[...], c1bb_ref[...], K), 0.0)
    z = x + c
    out = jnp.dot(z, ow_ref[...], preferred_element_type=F32) + ob_ref[...]
    out_ref[0] = out * (1.0 - mask_ref[0])


# ----------------------------------------------------------------------------
# pallas_call wrappers
# ----------------------------------------------------------------------------
def _full_spec(shape):
    n = len(shape)
    return pl.BlockSpec(tuple(shape), lambda *_: (0,) * n)


def _batch_spec(shape):
    n = len(shape)
    return pl.BlockSpec((1,) + tuple(shape[1:]), lambda i: (i,) + (0,) * (n - 1))


def linear_pl(x, w_t, b_row):
    N, Din = x.shape
    Dout = w_t.shape[1]
    return pl.pallas_call(
        linear_kernel,
        out_shape=jax.ShapeDtypeStruct((N, Dout), F32),
        grid=(1,),
        in_specs=[_full_spec((N, Din)), _full_spec((Din, Dout)),
                  _full_spec((1, Dout))],
        out_specs=_full_spec((N, Dout)),
        compiler_params=pltpu.CompilerParams(dimension_semantics=("arbitrary",)),
    )(x, w_t, b_row)


def context_block(x, add_e, add_h, attn_mask, lp):
    b, L, H = x.shape
    kern = functools.partial(context_block_kernel, inv_temp=1.0 / float(H) ** 0.5)
    return pl.pallas_call(
        kern,
        out_shape=jax.ShapeDtypeStruct((b, L, H), F32),
        grid=(b,),
        in_specs=[
            _batch_spec((b, L, H)), _batch_spec((b, L, H)), _batch_spec((b, L, H)),
            _batch_spec((b, L, L)),
            _full_spec(lp["aw"].shape), _full_spec(lp["ab"].shape),
            _full_spec(lp["lng"].shape), _full_spec(lp["lnb"].shape),
            _full_spec(lp["fw"].shape), _full_spec(lp["fb"].shape),
        ],
        out_specs=_batch_spec((b, L, H)),
        compiler_params=pltpu.CompilerParams(dimension_semantics=("parallel",)),
    )(x, add_e, add_h, attn_mask,
      lp["aw"], lp["ab"], lp["lng"], lp["lnb"], lp["fw"], lp["fb"])


def emotion_block(x, add_e, add_sb, add_sp, attn_mask, lp):
    b, L, H = x.shape
    kern = functools.partial(emotion_block_kernel, inv_temp=1.0 / float(H) ** 0.5)
    return pl.pallas_call(
        kern,
        out_shape=jax.ShapeDtypeStruct((b, L, H), F32),
        grid=(b,),
        in_specs=[
            _batch_spec((b, L, H)), _batch_spec((b, L, H)),
            _batch_spec((b, 1, H)), _batch_spec((b, 1, H)),
            _batch_spec((b, L, L)),
            _full_spec(lp["aw"].shape), _full_spec(lp["ab"].shape),
            _full_spec(lp["lng"].shape), _full_spec(lp["lnb"].shape),
            _full_spec(lp["fw"].shape), _full_spec(lp["fb"].shape),
            _full_spec(lp["ow"].shape), _full_spec(lp["ob"].shape),
        ],
        out_specs=_batch_spec((b, L, H)),
        compiler_params=pltpu.CompilerParams(dimension_semantics=("parallel",)),
    )(x, add_e, add_sb, add_sp, attn_mask,
      lp["aw"], lp["ab"], lp["lng"], lp["lnb"], lp["fw"], lp["fb"],
      lp["ow"], lp["ob"])


def varpred_block(x, mask_col, vp):
    b, L, H = x.shape
    K = vp["c1w"].shape[0] // H
    kern = functools.partial(varpred_kernel, K=K)
    return pl.pallas_call(
        kern,
        out_shape=jax.ShapeDtypeStruct((b, L, 1), F32),
        grid=(b,),
        in_specs=[
            _batch_spec((b, L, H)), _batch_spec((b, L, 1)),
            _full_spec(vp["c1w"].shape), _full_spec(vp["c1b"].shape),
            _full_spec(vp["ln1"].shape),
            _full_spec(vp["c2w"].shape), _full_spec(vp["c2b"].shape),
            _full_spec(vp["ln2"].shape),
            _full_spec(vp["lw"].shape), _full_spec(vp["lb"].shape),
        ],
        out_specs=_batch_spec((b, L, 1)),
        compiler_params=pltpu.CompilerParams(dimension_semantics=("parallel",)),
    )(x, mask_col, vp["c1w"], vp["c1b"], vp["ln1"],
      vp["c2w"], vp["c2b"], vp["ln2"], vp["lw"], vp["lb"])


def mixer_block(ctx, emo, bert_p, mask_col, mx):
    b, L, H = ctx.shape
    K = mx["c0aw"].shape[0] // H
    kern = functools.partial(mixer_kernel, K=K)
    weight_keys = ("c0aw", "c0ab", "c0bw", "c0bb",
                   "c1aw", "c1ab", "c1bw", "c1bb", "ow", "ob")
    return pl.pallas_call(
        kern,
        out_shape=jax.ShapeDtypeStruct((b, L, H), F32),
        grid=(b,),
        in_specs=([_batch_spec((b, L, H))] * 3 + [_batch_spec((b, L, 1))]
                  + [_full_spec(mx[k].shape) for k in weight_keys]),
        out_specs=_batch_spec((b, L, H)),
        compiler_params=pltpu.CompilerParams(dimension_semantics=("parallel",)),
    )(ctx, emo, bert_p, mask_col, *[mx[k] for k in weight_keys])


# ----------------------------------------------------------------------------
# parameter init (torch layouts) and conversion to kernel layouts
# ----------------------------------------------------------------------------
def init_params(key, cfg):
    H, Tin, Sin = cfg["hidden"], cfg["text_in"], cfg["sbert_in"]
    HL, K, F = cfg["hist_length"], cfg["kernel"], cfg["filter"]
    keys = iter(jax.random.split(key, 256))

    def nrm(shape, s=0.1):
        return jax.random.normal(next(keys), shape, F32) * s

    def attn():
        return {"wq": nrm((H, H)), "bq": nrm((H,), 0.02),
                "wk": nrm((H, H)), "bk": nrm((H,), 0.02),
                "wv": nrm((H, H)), "bv": nrm((H,), 0.02),
                "wo": nrm((H, H)), "bo": nrm((H,), 0.02)}

    def ln(dim):
        return 1.0 + nrm((dim,), 0.02), nrm((dim,), 0.02)

    ctx, emo = [], []
    for _ in range(HL + 1):
        g1, b1 = ln(H)
        g2, b2 = ln(H)
        ctx.append({"attn": attn(),
                    "ln1_g": g1, "ln1_b": b1, "ln2_g": g2, "ln2_b": b2,
                    "lin_w": nrm((H, H)), "lin_b": nrm((H,), 0.02)})
        g1, b1 = ln(H)
        g2, b2 = ln(H)
        emo.append({"attn": attn(),
                    "ln1_g": g1, "ln1_b": b1, "ln2_g": g2, "ln2_b": b2,
                    "lin1_w": nrm((H, H)), "lin1_b": nrm((H,), 0.02),
                    "lin2_w": nrm((H, H)), "lin2_b": nrm((H,), 0.02),
                    "out_w": nrm((H, H)), "out_b": nrm((H,), 0.02)})

    vg1, vb1 = ln(F)
    vg2, vb2 = ln(F)
    return {
        "bert_linear": {"w": nrm((H, Tin)), "b": nrm((H,), 0.02)},
        "sbert_linear": {"w": nrm((H, Sin)), "b": nrm((H,), 0.02)},
        "speaker_linear": {"w": nrm((H, H)), "b": nrm((H,), 0.02)},
        "context": ctx, "emotion": emo,
        "varpred": {"c1_w": nrm((F, H, K)), "c1_b": nrm((F,), 0.02),
                    "ln1_g": vg1, "ln1_b": vb1,
                    "c2_w": nrm((F, F, K)), "c2_b": nrm((F,), 0.02),
                    "ln2_g": vg2, "ln2_b": vb2,
                    "lin_w": nrm((1, F)), "lin_b": nrm((1,), 0.02)},
        "mixer": {"c0a_w": nrm((F, H, K)), "c0a_b": nrm((F,), 0.02),
                  "c0b_w": nrm((H, F, K)), "c0b_b": nrm((H,), 0.02),
                  "c1a_w": nrm((F, H, K)), "c1a_b": nrm((F,), 0.02),
                  "c1b_w": nrm((H, F, K)), "c1b_b": nrm((H,), 0.02),
                  "out_w": nrm((H, H, 1)), "out_b": nrm((H,), 0.02)},
    }


def _prep_attn(ap):
    aw = jnp.stack([ap["wq"].T, ap["wk"].T, ap["wv"].T, ap["wo"].T])   # [4, H, H]
    ab = jnp.stack([ap["bq"], ap["bk"], ap["bv"], ap["bo"]])           # [4, H]
    return aw, ab


def _conv_w_col(w):
    # torch Conv1d weight [Cout, Cin, K] -> im2col layout [K*Cin, Cout]
    cout, cin, k = w.shape
    return jnp.transpose(w, (2, 1, 0)).reshape(k * cin, cout)


def prep_params(p):
    q = {
        "bert_w": p["bert_linear"]["w"].T, "bert_b": p["bert_linear"]["b"][None],
        "sbert_w": p["sbert_linear"]["w"].T, "sbert_b": p["sbert_linear"]["b"][None],
        "spk_w": p["speaker_linear"]["w"].T, "spk_b": p["speaker_linear"]["b"][None],
    }
    ctx = []
    for cp in p["context"]:
        aw, ab = _prep_attn(cp["attn"])
        ctx.append({"aw": aw, "ab": ab,
                    "lng": jnp.stack([cp["ln1_g"], cp["ln2_g"]]),
                    "lnb": jnp.stack([cp["ln1_b"], cp["ln2_b"]]),
                    "fw": cp["lin_w"].T[None], "fb": cp["lin_b"][None]})
    emo = []
    for ep in p["emotion"]:
        aw, ab = _prep_attn(ep["attn"])
        emo.append({"aw": aw, "ab": ab,
                    "lng": jnp.stack([ep["ln1_g"], ep["ln2_g"]]),
                    "lnb": jnp.stack([ep["ln1_b"], ep["ln2_b"]]),
                    "fw": jnp.stack([ep["lin1_w"].T, ep["lin2_w"].T]),
                    "fb": jnp.stack([ep["lin1_b"], ep["lin2_b"]]),
                    "ow": ep["out_w"].T, "ob": ep["out_b"][None]})
    vp = p["varpred"]
    q["vp"] = {"c1w": _conv_w_col(vp["c1_w"]), "c1b": vp["c1_b"][None],
               "ln1": jnp.stack([vp["ln1_g"], vp["ln1_b"]]),
               "c2w": _conv_w_col(vp["c2_w"]), "c2b": vp["c2_b"][None],
               "ln2": jnp.stack([vp["ln2_g"], vp["ln2_b"]]),
               "lw": vp["lin_w"].T, "lb": vp["lin_b"][None]}
    mx = p["mixer"]
    q["mx"] = {"c0aw": _conv_w_col(mx["c0a_w"]), "c0ab": mx["c0a_b"][None],
               "c0bw": _conv_w_col(mx["c0b_w"]), "c0bb": mx["c0b_b"][None],
               "c1aw": _conv_w_col(mx["c1a_w"]), "c1ab": mx["c1a_b"][None],
               "c1bw": _conv_w_col(mx["c1b_w"]), "c1bb": mx["c1b_b"][None],
               "ow": mx["out_w"][:, :, 0].T, "ob": mx["out_b"][None]}
    q["context"] = ctx
    q["emotion"] = emo
    return q


# ----------------------------------------------------------------------------
# full forward
# ----------------------------------------------------------------------------
def history_dialogue_forward(q, h_bert, h_sbert, bert, sbert, bert_mask,
                             h_speaker_emb, n_speaker_emb,
                             h_speaker_seq, n_speaker_id, token_target=None):
    b, HL, L, Tin = h_bert.shape
    H = q["bert_w"].shape[1]
    Sin = h_sbert.shape[-1]

    # ---- shared projections, batched into one matmul kernel each ----
    bert_all = linear_pl(jnp.concatenate([h_bert.reshape(b * HL * L, Tin),
                                          bert.reshape(b * L, Tin)], axis=0),
                         q["bert_w"], q["bert_b"])
    h_bert_p = bert_all[:b * HL * L].reshape(b, HL, L, H)
    bert_p = bert_all[b * HL * L:].reshape(b, L, H)

    sbert_all = linear_pl(jnp.concatenate([h_sbert.reshape(b * HL, Sin), sbert],
                                          axis=0), q["sbert_w"], q["sbert_b"])
    h_sbert_p = sbert_all[:b * HL].reshape(b, HL, H)
    sbert_p = sbert_all[b * HL:]

    spk_all = linear_pl(jnp.concatenate([h_speaker_emb.reshape(b * HL, H),
                                         n_speaker_emb], axis=0),
                        q["spk_w"], q["spk_b"])
    h_spk_p = spk_all[:b * HL].reshape(b, HL, H)
    n_spk_p = spk_all[b * HL:]

    maskf = bert_mask.astype(F32)                        # [b, L]  1.0 = padded
    attn_mask = maskf[:, :, None] * maskf[:, None, :]    # [b, L, L]  product mask (as in module)
    mask_col = maskf[:, :, None]                         # [b, L, 1]
    zseq = jnp.zeros((b, L, H), F32)

    emotion_emb = None
    context_emb0 = None
    context_emb1 = None
    for i in range(HL):
        spk = h_speaker_seq[i]
        if spk not in (0, 1):
            continue
        prev_ctx = context_emb0 if spk == 0 else context_emb1
        ctx = context_block(h_bert_p[:, i],
                            emotion_emb if emotion_emb is not None else zseq,
                            prev_ctx if prev_ctx is not None else zseq,
                            attn_mask, q["context"][i])
        emotion_emb = emotion_block(ctx,
                                    emotion_emb if emotion_emb is not None else zseq,
                                    h_sbert_p[:, i:i + 1], h_spk_p[:, i:i + 1],
                                    attn_mask, q["emotion"][i])
        if spk == 0:
            context_emb0 = ctx
        else:
            context_emb1 = ctx

    prev_ctx = context_emb0 if n_speaker_id == 0 else context_emb1
    context_emb = context_block(bert_p,
                                emotion_emb if emotion_emb is not None else zseq,
                                prev_ctx if prev_ctx is not None else zseq,
                                attn_mask, q["context"][HL])
    emotion_emb = emotion_block(context_emb,
                                emotion_emb if emotion_emb is not None else zseq,
                                sbert_p[:, None, :], n_spk_p[:, None, :],
                                attn_mask, q["emotion"][HL])

    # token duration predictor (operates on projected bert, masked inside kernel)
    log_d = varpred_block(bert_p, mask_col, q["vp"])[..., 0]      # [b, L]
    if token_target is None:
        t_round = jnp.maximum(jnp.round(jnp.exp(log_d) - 1.0), 0.0)
    else:
        t_round = token_target

    # conv_mixer on (context_emb + emotion_emb + bert) — the sum is fused in-kernel
    fusion = mixer_block(context_emb, emotion_emb, bert_p, mask_col, q["mx"])
    return fusion, log_d, t_round


# ----------------------------------------------------------------------------
if __name__ == "__main__":
    cfg = dict(text_in=48, sbert_in=40, hidden=32, hist_length=2,
               filter=32, kernel=3)
    b, L = 2, 8
    H, HL = cfg["hidden"], cfg["hist_length"]

    key = jax.random.PRNGKey(0)
    kp, kd = jax.random.split(key)
    params = init_params(kp, cfg)
    q = prep_params(params)

    dks = jax.random.split(kd, 8)
    h_bert = jax.random.normal(dks[0], (b, HL, L, cfg["text_in"]), F32)
    h_sbert = jax.random.normal(dks[1], (b, HL, cfg["sbert_in"]), F32)
    bert = jax.random.normal(dks[2], (b, L, cfg["text_in"]), F32)
    sbert = jax.random.normal(dks[3], (b, cfg["sbert_in"]), F32)
    h_speaker_emb = jax.random.normal(dks[4], (b, HL, H), F32)
    n_speaker_emb = jax.random.normal(dks[5], (b, H), F32)

    lengths = jnp.array([L, L - 3], jnp.int32)
    bert_mask = jnp.arange(L)[None, :] >= lengths[:, None]        # True = padded
    h_speaker_seq = (0, 1)   # h_speaker[0][i] scalars, static (host-level branching)
    n_speaker_id = 0         # n_speaker[0], static

    fwd = jax.jit(history_dialogue_forward,
                  static_argnames=("h_speaker_seq", "n_speaker_id"))
    fusion, log_d, t_round = fwd(q, h_bert, h_sbert, bert, sbert, bert_mask,
                                 h_speaker_emb, n_speaker_emb,
                                 h_speaker_seq=h_speaker_seq,
                                 n_speaker_id=n_speaker_id)
    fusion = jax.block_until_ready(fusion)
    log_d = jax.block_until_ready(log_d)
    t_round = jax.block_until_ready(t_round)

    assert fusion.shape == (b, L, H)
    assert log_d.shape == (b, L)
    assert t_round.shape == (b, L)
    assert bool(jnp.all(jnp.isfinite(fusion)))
    # masked positions of the mixer output must be exactly zero
    assert float(jnp.abs(fusion[1, L - 1]).max()) == 0.0
    print("KERNEL_OK")
</pallas_src>

<mosaic_0001>
module attributes {stable_mosaic.version = 11 : i64} {
  func.func @linear_kernel(%arg0: i32, %arg1: memref<48x48xf32, #tpu.memory_space<vmem>>, %arg2: memref<48x32xf32, #tpu.memory_space<vmem>>, %arg3: memref<1x32xf32, #tpu.memory_space<vmem>>, %arg4: memref<48x32xf32, #tpu.memory_space<vmem>>) attributes {dimension_semantics = [#tpu.dimension_semantics<arbitrary>], iteration_bounds = array<i64: 1>, scalar_prefetch = 0 : i64, scratch_operands = 0 : i64, tpu.core_type = #tpu.core_type<tc>, window_params = [{pipeline_mode = #tpu.pipeline_mode<synchronous>, transform_indices = @transform_0, window_bounds = array<i64: 48, 48>}, {pipeline_mode = #tpu.pipeline_mode<synchronous>, transform_indices = @transform_1, window_bounds = array<i64: 48, 32>}, {pipeline_mode = #tpu.pipeline_mode<synchronous>, transform_indices = @transform_2, window_bounds = array<i64: 1, 32>}, {pipeline_mode = #tpu.pipeline_mode<synchronous>, transform_indices = @transform_3, window_bounds = array<i64: 48, 32>}]} {
    %c0 = arith.constant 0 : index
    %c0_0 = arith.constant 0 : index
    %0 = vector.load %arg1[%c0, %c0_0] : memref<48x48xf32, #tpu.memory_space<vmem>>, vector<48x48xf32>
    %c0_1 = arith.constant 0 : index
    %c0_2 = arith.constant 0 : index
    %1 = vector.load %arg2[%c0_1, %c0_2] : memref<48x32xf32, #tpu.memory_space<vmem>>, vector<48x32xf32>
    %cst = arith.constant dense<0.000000e+00> : vector<48x32xf32>
    %2 = tpu.matmul %0, %1, %cst {dimension_numbers = #tpu.dot_dimension_numbers<[1], [0], [0], [1], [0, 0, 1, 1], [], []>} : vector<48x48xf32>, vector<48x32xf32>, vector<48x32xf32> -> vector<48x32xf32>
    %c0_3 = arith.constant 0 : index
    %c0_4 = arith.constant 0 : index
    %3 = vector.load %arg3[%c0_3, %c0_4] : memref<1x32xf32, #tpu.memory_space<vmem>>, vector<1x32xf32>
    %4 = vector.broadcast %3 : vector<1x32xf32> to vector<48x32xf32>
    %5 = arith.addf %2, %4 : vector<48x32xf32>
    %c0_5 = arith.constant 0 : index
    %c0_6 = arith.constant 0 : index
    %6 = vector.load %arg4[%c0_5, %c0_6] : memref<48x32xf32, #tpu.memory_space<vmem>>, vector<48x32xf32>
    tpu.vector_store %arg4[%c0_5, %c0_6], %5 {strides = array<i32>} : memref<48x32xf32, #tpu.memory_space<vmem>>, vector<48x32xf32>,
    return
  }
  func.func @transform_0(%arg0: i32) -> (i32, i32) {
    %c0_i32 = arith.constant 0 : i32
    %c0_i32_0 = arith.constant 0 : i32
    %c0_i32_1 = arith.constant 0 : i32
    return %c0_i32, %c0_i32_0 : i32, i32
  }
  func.func @transform_1(%arg0: i32) -> (i32, i32) {
    %c0_i32 = arith.constant 0 : i32
    %c0_i32_0 = arith.constant 0 : i32
    %c0_i32_1 = arith.constant 0 : i32
    return %c0_i32, %c0_i32_0 : i32, i32
  }
  func.func @transform_2(%arg0: i32) -> (i32, i32) {
    %c0_i32 = arith.constant 0 : i32
    %c0_i32_0 = arith.constant 0 : i32
    %c0_i32_1 = arith.constant 0 : i32
    return %c0_i32, %c0_i32_0 : i32, i32
  }
  func.func @transform_3(%arg0: i32) -> (i32, i32) {
    %c0_i32 = arith.constant 0 : i32
    %c0_i32_0 = arith.constant 0 : i32
    %c0_i32_1 = arith.constant 0 : i32
    return %c0_i32, %c0_i32_0 : i32, i32
  }
}

module attributes {stable_mosaic.version = 11 : i64} {
  func.func @linear_kernel(%arg0: i32, %arg1: memref<6x40xf32, #tpu.memory_space<vmem>>, %arg2: memref<40x32xf32, #tpu.memory_space<vmem>>, %arg3: memref<1x32xf32, #tpu.memory_space<vmem>>, %arg4: memref<6x32xf32, #tpu.memory_space<vmem>>) attributes {dimension_semantics = [#tpu.dimension_semantics<arbitrary>], iteration_bounds = array<i64: 1>, scalar_prefetch = 0 : i64, scratch_operands = 0 : i64, tpu.core_type = #tpu.core_type<tc>, window_params = [{pipeline_mode = #tpu.pipeline_mode<synchronous>, transform_indices = @transform_0, window_bounds = array<i64: 6, 40>}, {pipeline_mode = #tpu.pipeline_mode<synchronous>, transform_indices = @transform_1, window_bounds = array<i64: 40, 32>}, {pipeline_mode = #tpu.pipeline_mode<synchronous>, transform_indices = @transform_2, window_bounds = array<i64: 1, 32>}, {pipeline_mode = #tpu.pipeline_mode<synchronous>, transform_indices = @transform_3, window_bounds = array<i64: 6, 32>}]} {
    %c0 = arith.constant 0 : index
    %c0_0 = arith.constant 0 : index
    %0 = vector.load %arg1[%c0, %c0_0] : memref<6x40xf32, #tpu.memory_space<vmem>>, vector<6x40xf32>
    %c0_1 = arith.constant 0 : index
    %c0_2 = arith.constant 0 : index
    %1 = vector.load %arg2[%c0_1, %c0_2] : memref<40x32xf32, #tpu.memory_space<vmem>>, vector<40x32xf32>
    %cst = arith.constant dense<0.000000e+00> : vector<6x32xf32>
    %2 = tpu.matmul %0, %1, %cst {dimension_numbers = #tpu.dot_dimension_numbers<[1], [0], [0], [1], [0, 0, 1, 1], [], []>} : vector<6x40xf32>, vector<40x32xf32>, vector<6x32xf32> -> vector<6x32xf32>
    %c0_3 = arith.constant 0 : index
    %c0_4 = arith.constant 0 : index
    %3 = vector.load %arg3[%c0_3, %c0_4] : memref<1x32xf32, #tpu.memory_space<vmem>>, vector<1x32xf32>
    %4 = vector.broadcast %3 : vector<1x32xf32> to vector<6x32xf32>
    %5 = arith.addf %2, %4 : vector<6x32xf32>
    %c0_5 = arith.constant 0 : index
    %c0_6 = arith.constant 0 : index
    %6 = vector.load %arg4[%c0_5, %c0_6] : memref<6x32xf32, #tpu.memory_space<vmem>>, vector<6x32xf32>
    tpu.vector_store %arg4[%c0_5, %c0_6], %5 {strides = array<i32>} : memref<6x32xf32, #tpu.memory_space<vmem>>, vector<6x32xf32>,
    return
  }
  func.func @transform_0(%arg0: i32) -> (i32, i32) {
    %c0_i32 = arith.constant 0 : i32
    %c0_i32_0 = arith.constant 0 : i32
    %c0_i32_1 = arith.constant 0 : i32
    return %c0_i32, %c0_i32_0 : i32, i32
  }
  func.func @transform_1(%arg0: i32) -> (i32, i32) {
    %c0_i32 = arith.constant 0 : i32
    %c0_i32_0 = arith.constant 0 : i32
    %c0_i32_1 = arith.constant 0 : i32
    return %c0_i32, %c0_i32_0 : i32, i32
  }
  func.func @transform_2(%arg0: i32) -> (i32, i32) {
    %c0_i32 = arith.constant 0 : i32
    %c0_i32_0 = arith.constant 0 : i32
    %c0_i32_1 = arith.constant 0 : i32
    return %c0_i32, %c0_i32_0 : i32, i32
  }
  func.func @transform_3(%arg0: i32) -> (i32, i32) {
    %c0_i32 = arith.constant 0 : i32
    %c0_i32_0 = arith.constant 0 : i32
    %c0_i32_1 = arith.constant 0 : i32
    return %c0_i32, %c0_i32_0 : i32, i32
  }
}

module attributes {stable_mosaic.version = 11 : i64} {
  func.func @context_block_kernel(%arg0: i32, %arg1: memref<1x8x32xf32, #tpu.memory_space<vmem>>, %arg2: memref<1x8x32xf32, #tpu.memory_space<vmem>>, %arg3: memref<1x8x32xf32, #tpu.memory_space<vmem>>, %arg4: memref<1x8x8xf32, #tpu.memory_space<vmem>>, %arg5: memref<4x32x32xf32, #tpu.memory_space<vmem>>, %arg6: memref<4x32xf32, #tpu.memory_space<vmem>>, %arg7: memref<2x32xf32, #tpu.memory_space<vmem>>, %arg8: memref<2x32xf32, #tpu.memory_space<vmem>>, %arg9: memref<1x32x32xf32, #tpu.memory_space<vmem>>, %arg10: memref<1x32xf32, #tpu.memory_space<vmem>>, %arg11: memref<1x8x32xf32, #tpu.memory_space<vmem>>) attributes {dimension_semantics = [#tpu.dimension_semantics<parallel>], iteration_bounds = array<i64: 2>, scalar_prefetch = 0 : i64, scratch_operands = 0 : i64, tpu.core_type = #tpu.core_type<tc>, window_params = [{transform_indices = @transform_0, window_bounds = array<i64: 1, 8, 32>}, {transform_indices = @transform_1, window_bounds = array<i64: 1, 8, 32>}, {transform_indices = @transform_2, window_bounds = array<i64: 1, 8, 32>}, {transform_indices = @transform_3, window_bounds = array<i64: 1, 8, 8>}, {pipeline_mode = #tpu.pipeline_mode<synchronous>, transform_indices = @transform_4, window_bounds = array<i64: 4, 32, 32>}, {pipeline_mode = #tpu.pipeline_mode<synchronous>, transform_indices = @transform_5, window_bounds = array<i64: 4, 32>}, {pipeline_mode = #tpu.pipeline_mode<synchronous>, transform_indices = @transform_6, window_bounds = array<i64: 2, 32>}, {pipeline_mode = #tpu.pipeline_mode<synchronous>, transform_indices = @transform_7, window_bounds = array<i64: 2, 32>}, {pipeline_mode = #tpu.pipeline_mode<synchronous>, transform_indices = @transform_8, window_bounds = array<i64: 1, 32, 32>}, {pipeline_mode = #tpu.pipeline_mode<synchronous>, transform_indices = @transform_9, window_bounds = array<i64: 1, 32>}, {transform_indices = @transform_10, window_bounds = array<i64: 1, 8, 32>}]} {
    %c0 = arith.constant 0 : index
    %c0_0 = arith.constant 0 : index
    %c0_1 = arith.constant 0 : index
    %0 = vector.load %arg1[%c0, %c0_0, %c0_1] : memref<1x8x32xf32, #tpu.memory_space<vmem>>, vector<1x8x32xf32>
    %1 = vector.shape_cast %0 : vector<1x8x32xf32> to vector<8x32xf32>
    %c0_2 = arith.constant 0 : index
    %c0_3 = arith.constant 0 : index
    %c0_4 = arith.constant 0 : index
    %2 = vector.load %arg2[%c0_2, %c0_3, %c0_4] : memref<1x8x32xf32, #tpu.memory_space<vmem>>, vector<1x8x32xf32>
    %3 = vector.shape_cast %2 : vector<1x8x32xf32> to vector<8x32xf32>
    %4 = arith.addf %1, %3 : vector<8x32xf32>
    %c0_5 = arith.constant 0 : index
    %c0_6 = arith.constant 0 : index
    %c0_7 = arith.constant 0 : index
    %5 = vector.load %arg3[%c0_5, %c0_6, %c0_7] : memref<1x8x32xf32, #tpu.memory_space<vmem>>, vector<1x8x32xf32>
    %6 = vector.shape_cast %5 : vector<1x8x32xf32> to vector<8x32xf32>
    %7 = arith.addf %4, %6 : vector<8x32xf32>
    %c0_8 = arith.constant 0 : index
    %c0_9 = arith.constant 0 : index
    %c0_10 = arith.constant 0 : index
    %8 = vector.load %arg5[%c0_8, %c0_9, %c0_10] : memref<4x32x32xf32, #tpu.memory_space<vmem>>, vector<4x32x32xf32>
    %c0_11 = arith.constant 0 : index
    %c0_12 = arith.constant 0 : index
    %9 = vector.load %arg6[%c0_11, %c0_12] : memref<4x32xf32, #tpu.memory_space<vmem>>, vector<4x32xf32>
    %c0_13 = arith.constant 0 : index
    %c0_14 = arith.constant 0 : index
    %10 = vector.load %arg7[%c0_13, %c0_14] : memref<2x32xf32, #tpu.memory_space<vmem>>, vector<2x32xf32>
    %c0_15 = arith.constant 0 : index
    %c0_16 = arith.constant 0 : index
    %11 = vector.load %arg8[%c0_15, %c0_16] : memref<2x32xf32, #tpu.memory_space<vmem>>, vector<2x32xf32>
    %c0_17 = arith.constant 0 : index
    %c0_18 = arith.constant 0 : index
    %c0_19 = arith.constant 0 : index
    %12 = vector.load %arg9[%c0_17, %c0_18, %c0_19] : memref<1x32x32xf32, #tpu.memory_space<vmem>>, vector<1x32x32xf32>
    %c0_20 = arith.constant 0 : index
    %c0_21 = arith.constant 0 : index
    %13 = vector.load %arg10[%c0_20, %c0_21] : memref<1x32xf32, #tpu.memory_space<vmem>>, vector<1x32xf32>
    %c0_22 = arith.constant 0 : index
    %c0_23 = arith.constant 0 : index
    %c0_24 = arith.constant 0 : index
    %14 = vector.load %arg4[%c0_22, %c0_23, %c0_24] : memref<1x8x8xf32, #tpu.memory_space<vmem>>, vector<1x8x8xf32>
    %15 = vector.shape_cast %14 : vector<1x8x8xf32> to vector<8x8xf32>
    %16 = vector.extract_strided_slice %8 {offsets = [0, 0, 0], sizes = [1, 32, 32], strides = [1, 1, 1]} : vector<4x32x32xf32> to vector<1x32x32xf32>
    %17 = vector.shape_cast %16 : vector<1x32x32xf32> to vector<32x32xf32>
    %cst = arith.constant dense<0.000000e+00> : vector<8x32xf32>
    %18 = tpu.matmul %7, %17, %cst {dimension_numbers = #tpu.dot_dimension_numbers<[1], [0], [0], [1], [0, 0, 1, 1], [], []>} : vector<8x32xf32>, vector<32x32xf32>, vector<8x32xf32> -> vector<8x32xf32>
    %19 = vector.extract_strided_slice %9 {offsets = [0, 0], sizes = [1, 32], strides = [1, 1]} : vector<4x32xf32> to vector<1x32xf32>
    %20 = vector.broadcast %19 : vector<1x32xf32> to vector<8x32xf32>
    %21 = arith.addf %18, %20 : vector<8x32xf32>
    %22 = vector.extract_strided_slice %8 {offsets = [1, 0, 0], sizes = [1, 32, 32], strides = [1, 1, 1]} : vector<4x32x32xf32> to vector<1x32x32xf32>
    %23 = vector.shape_cast %22 : vector<1x32x32xf32> to vector<32x32xf32>
    %cst_25 = arith.constant dense<0.000000e+00> : vector<8x32xf32>
    %24 = tpu.matmul %7, %23, %cst_25 {dimension_numbers = #tpu.dot_dimension_numbers<[1], [0], [0], [1], [0, 0, 1, 1], [], []>} : vector<8x32xf32>, vector<32x32xf32>, vector<8x32xf32> -> vector<8x32xf32>
    %25 = vector.extract_strided_slice %9 {offsets = [1, 0], sizes = [1, 32], strides = [1, 1]} : vector<4x32xf32> to vector<1x32xf32>
    %26 = vector.broadcast %25 : vector<1x32xf32> to vector<8x32xf32>
    %27 = arith.addf %24, %26 : vector<8x32xf32>
    %28 = vector.extract_strided_slice %8 {offsets = [2, 0, 0], sizes = [1, 32, 32], strides = [1, 1, 1]} : vector<4x32x32xf32> to vector<1x32x32xf32>
    %29 = vector.shape_cast %28 : vector<1x32x32xf32> to vector<32x32xf32>
    %cst_26 = arith.constant dense<0.000000e+00> : vector<8x32xf32>
    %30 = tpu.matmul %7, %29, %cst_26 {dimension_numbers = #tpu.dot_dimension_numbers<[1], [0], [0], [1], [0, 0, 1, 1], [], []>} : vector<8x32xf32>, vector<32x32xf32>, vector<8x32xf32> -> vector<8x32xf32>
    %31 = vector.extract_strided_slice %9 {offsets = [2, 0], sizes = [1, 32], strides = [1, 1]} : vector<4x32xf32> to vector<1x32xf32>
    %32 = vector.broadcast %31 : vector<1x32xf32> to vector<8x32xf32>
    %33 = arith.addf %30, %32 : vector<8x32xf32>
    %cst_27 = arith.constant dense<0.000000e+00> : vector<8x8xf32>
    %34 = tpu.matmul %21, %27, %cst_27 {dimension_numbers = #tpu.dot_dimension_numbers<[1], [1], [0], [0], [0, 0, 1, 0], [], []>} : vector<8x32xf32>, vector<8x32xf32>, vector<8x8xf32> -> vector<8x8xf32>
    %cst_28 = arith.constant 0.176776692 : f32
    %35 = vector.broadcast %cst_28 : f32 to vector<8x8xf32>
    %36 = arith.mulf %34, %35 : vector<8x8xf32>
    %cst_29 = arith.constant 5.000000e-01 : f32
    %37 = vector.broadcast %cst_29 : f32 to vector<8x8xf32>
    %38 = arith.cmpf ogt, %15, %37 : vector<8x8xf32>
    %cst_30 = arith.constant -1.000000e+09 : f32
    %39 = vector.broadcast %cst_30 : f32 to vector<8x8xf32>
    %40 = arith.select %38, %39, %36 : vector<8x8xi1>, vector<8x8xf32>
    %cst_31 = arith.constant dense<0xFF800000> : vector<8xf32>
    %41 = vector.multi_reduction <maximumf>, %40, %cst_31 [1] : vector<8x8xf32> to vector<8xf32>
    %42 = vector.shape_cast %41 : vector<8xf32> to vector<8x1xf32>
    %43 = vector.broadcast %42 : vector<8x1xf32> to vector<8x8xf32>
    %44 = arith.subf %40, %43 : vector<8x8xf32>
    %45 = math.exp %44 : vector<8x8xf32>
    %cst_32 = arith.constant dense<0.000000e+00> : vector<8xf32>
    %46 = vector.multi_reduction <add>, %45, %cst_32 [1] : vector<8x8xf32> to vector<8xf32>
    %47 = vector.shape_cast %46 : vector<8xf32> to vector<8x1xf32>
    %48 = vector.broadcast %47 : vector<8x1xf32> to vector<8x8xf32>
    %49 = arith.divf %45, %48 : vector<8x8xf32>
    %cst_33 = arith.constant dense<0.000000e+00> : vector<8x32xf32>
    %50 = tpu.matmul %49, %33, %cst_33 {dimension_numbers = #tpu.dot_dimension_numbers<[1], [0], [0], [1], [0, 0, 1, 1], [], []>} : vector<8x8xf32>, vector<8x32xf32>, vector<8x32xf32> -> vector<8x32xf32>
    %51 = vector.extract_strided_slice %8 {offsets = [3, 0, 0], sizes = [1, 32, 32], strides = [1, 1, 1]} : vector<4x32x32xf32> to vector<1x32x32xf32>
    %52 = vector.shape_cast %51 : vector<1x32x32xf32> to vector<32x32xf32>
    %cst_34 = arith.constant dense<0.000000e+00> : vector<8x32xf32>
    %53 = tpu.matmul %50, %52, %cst_34 {dimension_numbers = #tpu.dot_dimension_numbers<[1], [0], [0], [1], [0, 0, 1, 1], [], []>} : vector<8x32xf32>, vector<32x32xf32>, vector<8x32xf32> -> vector<8x32xf32>
    %54 = vector.extract_strided_slice %9 {offsets = [3, 0], sizes = [1, 32], strides = [1, 1]} : vector<4x32xf32> to vector<1x32xf32>
    %55 = vector.broadcast %54 : vector<1x32xf32> to vector<8x32xf32>
    %56 = arith.addf %53, %55 : vector<8x32xf32>
    %57 = arith.addf %7, %56 : vector<8x32xf32>
    %58 = vector.extract_strided_slice %10 {offsets = [0, 0], sizes = [1, 32], strides = [1, 1]} : vector<2x32xf32> to vector<1x32xf32>
    %59 = vector.extract_strided_slice %11 {offsets = [0, 0], sizes = [1, 32], strides = [1, 1]} : vector<2x32xf32> to vector<1x32xf32>
    %cst_35 = arith.constant dense<0.000000e+00> : vector<8xf32>
    %60 = vector.multi_reduction <add>, %57, %cst_35 [1] : vector<8x32xf32> to vector<8xf32>
    %61 = vector.shape_cast %60 : vector<8xf32> to vector<8x1xf32>
    %cst_36 = arith.constant 3.200000e+01 : f32
    %62 = vector.broadcast %cst_36 : f32 to vector<8x1xf32>
    %63 = arith.divf %61, %62 : vector<8x1xf32>
    %64 = vector.broadcast %63 : vector<8x1xf32> to vector<8x32xf32>
    %65 = arith.subf %57, %64 : vector<8x32xf32>
    %66 = arith.mulf %65, %65 : vector<8x32xf32>
    %cst_37 = arith.constant dense<0.000000e+00> : vector<8xf32>
    %67 = vector.multi_reduction <add>, %66, %cst_37 [1] : vector<8x32xf32> to vector<8xf32>
    %68 = vector.shape_cast %67 : vector<8xf32> to vector<8x1xf32>
    %cst_38 = arith.constant 3.200000e+01 : f32
    %69 = vector.broadcast %cst_38 : f32 to vector<8x1xf32>
    %70 = arith.divf %68, %69 : vector<8x1xf32>
    %71 = vector.broadcast %63 : vector<8x1xf32> to vector<8x32xf32>
    %72 = arith.subf %57, %71 : vector<8x32xf32>
    %cst_39 = arith.constant 9.99999974E-6 : f32
    %73 = vector.broadcast %cst_39 : f32 to vector<8x1xf32>
    %74 = arith.addf %70, %73 : vector<8x1xf32>
    %75 = math.rsqrt %74 : vector<8x1xf32>
    %76 = vector.broadcast %75 : vector<8x1xf32> to vector<8x32xf32>
    %77 = arith.mulf %72, %76 : vector<8x32xf32>
    %78 = vector.broadcast %58 : vector<1x32xf32> to vector<8x32xf32>
    %79 = arith.mulf %77, %78 : vector<8x32xf32>
    %80 = vector.broadcast %59 : vector<1x32xf32> to vector<8x32xf32>
    %81 = arith.addf %79, %80 : vector<8x32xf32>
    %82 = vector.shape_cast %12 : vector<1x32x32xf32> to vector<32x32xf32>
    %cst_40 = arith.constant dense<0.000000e+00> : vector<8x32xf32>
    %83 = tpu.matmul %81, %82, %cst_40 {dimension_numbers = #tpu.dot_dimension_numbers<[1], [0], [0], [1], [0, 0, 1, 1], [], []>} : vector<8x32xf32>, vector<32x32xf32>, vector<8x32xf32> -> vector<8x32xf32>
    %84 = vector.broadcast %13 : vector<1x32xf32> to vector<8x32xf32>
    %85 = arith.addf %83, %84 : vector<8x32xf32>
    %cst_41 = arith.constant 0.000000e+00 : f32
    %86 = vector.broadcast %cst_41 : f32 to vector<8x32xf32>
    %87 = arith.maximumf %85, %86 : vector<8x32xf32>
    %88 = arith.addf %81, %87 : vector<8x32xf32>
    %89 = vector.extract_strided_slice %10 {offsets = [1, 0], sizes = [1, 32], strides = [1, 1]} : vector<2x32xf32> to vector<1x32xf32>
    %90 = vector.extract_strided_slice %11 {offsets = [1, 0], sizes = [1, 32], strides = [1, 1]} : vector<2x32xf32> to vector<1x32xf32>
    %cst_42 = arith.constant dense<0.000000e+00> : vector<8xf32>
    %91 = vector.multi_reduction <add>, %88, %cst_42 [1] : vector<8x32xf32> to vector<8xf32>
    %92 = vector.shape_cast %91 : vector<8xf32> to vector<8x1xf32>
    %cst_43 = arith.constant 3.200000e+01 : f32
    %93 = vector.broadcast %cst_43 : f32 to vector<8x1xf32>
    %94 = arith.divf %92, %93 : vector<8x1xf32>
    %95 = vector.broadcast %94 : vector<8x1xf32> to vector<8x32xf32>
    %96 = arith.subf %88, %95 : vector<8x32xf32>
    %97 = arith.mulf %96, %96 : vector<8x32xf32>
    %cst_44 = arith.constant dense<0.000000e+00> : vector<8xf32>
    %98 = vector.multi_reduction <add>, %97, %cst_44 [1] : vector<8x32xf32> to vector<8xf32>
    %99 = vector.shape_cast %98 : vector<8xf32> to vector<8x1xf32>
    %cst_45 = arith.constant 3.200000e+01 : f32
    %100 = vector.broadcast %cst_45 : f32 to vector<8x1xf32>
    %101 = arith.divf %99, %100 : vector<8x1xf32>
    %102 = vector.broadcast %94 : vector<8x1xf32> to vector<8x32xf32>
    %103 = arith.subf %88, %102 : vector<8x32xf32>
    %cst_46 = arith.constant 9.99999974E-6 : f32
    %104 = vector.broadcast %cst_46 : f32 to vector<8x1xf32>
    %105 = arith.addf %101, %104 : vector<8x1xf32>
    %106 = math.rsqrt %105 : vector<8x1xf32>
    %107 = vector.broadcast %106 : vector<8x1xf32> to vector<8x32xf32>
    %108 = arith.mulf %103, %107 : vector<8x32xf32>
    %109 = vector.broadcast %89 : vector<1x32xf32> to vector<8x32xf32>
    %110 = arith.mulf %108, %109 : vector<8x32xf32>
    %111 = vector.broadcast %90 : vector<1x32xf32> to vector<8x32xf32>
    %112 = arith.addf %110, %111 : vector<8x32xf32>
    %c0_47 = arith.constant 0 : index
    %c0_48 = arith.constant 0 : index
    %c0_49 = arith.constant 0 : index
    %113 = vector.load %arg11[%c0_47, %c0_48, %c0_49] : memref<1x8x32xf32, #tpu.memory_space<vmem>>, vector<1x8x32xf32>
    %114 = vector.shape_cast %113 : vector<1x8x32xf32> to vector<8x32xf32>
    %115 = vector.shape_cast %112 : vector<8x32xf32> to vector<1x8x32xf32>
    tpu.vector_store %arg11[%c0_47, %c0_48, %c0_49], %115 {strides = array<i32>} : memref<1x8x32xf32, #tpu.memory_space<vmem>>, vector<1x8x32xf32>,
    return
  }
  func.func @transform_0(%arg0: i32) -> (i32, i32, i32) {
    %c0_i32 = arith.constant 0 : i32
    %c0_i32_0 = arith.constant 0 : i32
    %c0_i32_1 = arith.constant 0 : i32
    return %arg0, %c0_i32, %c0_i32_0 : i32, i32, i32
  }
  func.func @transform_1(%arg0: i32) -> (i32, i32, i32) {
    %c0_i32 = arith.constant 0 : i32
    %c0_i32_0 = arith.constant 0 : i32
    %c0_i32_1 = arith.constant 0 : i32
    return %arg0, %c0_i32, %c0_i32_0 : i32, i32, i32
  }
  func.func @transform_2(%arg0: i32) -> (i32, i32, i32) {
    %c0_i32 = arith.constant 0 : i32
    %c0_i32_0 = arith.constant 0 : i32
    %c0_i32_1 = arith.constant 0 : i32
    return %arg0, %c0_i32, %c0_i32_0 : i32, i32, i32
  }
  func.func @transform_3(%arg0: i32) -> (i32, i32, i32) {
    %c0_i32 = arith.constant 0 : i32
    %c0_i32_0 = arith.constant 0 : i32
    %c0_i32_1 = arith.constant 0 : i32
    return %arg0, %c0_i32, %c0_i32_0 : i32, i32, i32
  }
  func.func @transform_4(%arg0: i32) -> (i32, i32, i32) {
    %c0_i32 = arith.constant 0 : i32
    %c0_i32_0 = arith.constant 0 : i32
    %c0_i32_1 = arith.constant 0 : i32
    %c0_i32_2 = arith.constant 0 : i32
    return %c0_i32, %c0_i32_0, %c0_i32_1 : i32, i32, i32
  }
  func.func @transform_5(%arg0: i32) -> (i32, i32) {
    %c0_i32 = arith.constant 0 : i32
    %c0_i32_0 = arith.constant 0 : i32
    %c0_i32_1 = arith.constant 0 : i32
    return %c0_i32, %c0_i32_0 : i32, i32
  }
  func.func @transform_6(%arg0: i32) -> (i32, i32) {
    %c0_i32 = arith.constant 0 : i32
    %c0_i32_0 = arith.constant 0 : i32
    %c0_i32_1 = arith.constant 0 : i32
    return %c0_i32, %c0_i32_0 : i32, i32
  }
  func.func @transform_7(%arg0: i32) -> (i32, i32) {
    %c0_i32 = arith.constant 0 : i32
    %c0_i32_0 = arith.constant 0 : i32
    %c0_i32_1 = arith.constant 0 : i32
    return %c0_i32, %c0_i32_0 : i32, i32
  }
  func.func @transform_8(%arg0: i32) -> (i32, i32, i32) {
    %c0_i32 = arith.constant 0 : i32
    %c0_i32_0 = arith.constant 0 : i32
    %c0_i32_1 = arith.constant 0 : i32
    %c0_i32_2 = arith.constant 0 : i32
    return %c0_i32, %c0_i32_0, %c0_i32_1 : i32, i32, i32
  }
  func.func @transform_9(%arg0: i32) -> (i32, i32) {
    %c0_i32 = arith.constant 0 : i32
    %c0_i32_0 = arith.constant 0 : i32
    %c0_i32_1 = arith.constant 0 : i32
    return %c0_i32, %c0_i32_0 : i32, i32
  }
  func.func @transform_10(%arg0: i32) -> (i32, i32, i32) {
    %c0_i32 = arith.constant 0 : i32
    %c0_i32_0 = arith.constant 0 : i32
    %c0_i32_1 = arith.constant 0 : i32
    return %arg0, %c0_i32, %c0_i32_0 : i32, i32, i32
  }
}

module attributes {stable_mosaic.version = 11 : i64} {
  func.func @linear_kernel(%arg0: i32, %arg1: memref<6x32xf32, #tpu.memory_space<vmem>>, %arg2: memref<32x32xf32, #tpu.memory_space<vmem>>, %arg3: memref<1x32xf32, #tpu.memory_space<vmem>>, %arg4: memref<6x32xf32, #tpu.memory_space<vmem>>) attributes {dimension_semantics = [#tpu.dimension_semantics<arbitrary>], iteration_bounds = array<i64: 1>, scalar_prefetch = 0 : i64, scratch_operands = 0 : i64, tpu.core_type = #tpu.core_type<tc>, window_params = [{pipeline_mode = #tpu.pipeline_mode<synchronous>, transform_indices = @transform_0, window_bounds = array<i64: 6, 32>}, {pipeline_mode = #tpu.pipeline_mode<synchronous>, transform_indices = @transform_1, window_bounds = array<i64: 32, 32>}, {pipeline_mode = #tpu.pipeline_mode<synchronous>, transform_indices = @transform_2, window_bounds = array<i64: 1, 32>}, {pipeline_mode = #tpu.pipeline_mode<synchronous>, transform_indices = @transform_3, window_bounds = array<i64: 6, 32>}]} {
    %c0 = arith.constant 0 : index
    %c0_0 = arith.constant 0 : index
    %0 = vector.load %arg1[%c0, %c0_0] : memref<6x32xf32, #tpu.memory_space<vmem>>, vector<6x32xf32>
    %c0_1 = arith.constant 0 : index
    %c0_2 = arith.constant 0 : index
    %1 = vector.load %arg2[%c0_1, %c0_2] : memref<32x32xf32, #tpu.memory_space<vmem>>, vector<32x32xf32>
    %cst = arith.constant dense<0.000000e+00> : vector<6x32xf32>
    %2 = tpu.matmul %0, %1, %cst {dimension_numbers = #tpu.dot_dimension_numbers<[1], [0], [0], [1], [0, 0, 1, 1], [], []>} : vector<6x32xf32>, vector<32x32xf32>, vector<6x32xf32> -> vector<6x32xf32>
    %c0_3 = arith.constant 0 : index
    %c0_4 = arith.constant 0 : index
    %3 = vector.load %arg3[%c0_3, %c0_4] : memref<1x32xf32, #tpu.memory_space<vmem>>, vector<1x32xf32>
    %4 = vector.broadcast %3 : vector<1x32xf32> to vector<6x32xf32>
    %5 = arith.addf %2, %4 : vector<6x32xf32>
    %c0_5 = arith.constant 0 : index
    %c0_6 = arith.constant 0 : index
    %6 = vector.load %arg4[%c0_5, %c0_6] : memref<6x32xf32, #tpu.memory_space<vmem>>, vector<6x32xf32>
    tpu.vector_store %arg4[%c0_5, %c0_6], %5 {strides = array<i32>} : memref<6x32xf32, #tpu.memory_space<vmem>>, vector<6x32xf32>,
    return
  }
  func.func @transform_0(%arg0: i32) -> (i32, i32) {
    %c0_i32 = arith.constant 0 : i32
    %c0_i32_0 = arith.constant 0 : i32
    %c0_i32_1 = arith.constant 0 : i32
    return %c0_i32, %c0_i32_0 : i32, i32
  }
  func.func @transform_1(%arg0: i32) -> (i32, i32) {
    %c0_i32 = arith.constant 0 : i32
    %c0_i32_0 = arith.constant 0 : i32
    %c0_i32_1 = arith.constant 0 : i32
    return %c0_i32, %c0_i32_0 : i32, i32
  }
  func.func @transform_2(%arg0: i32) -> (i32, i32) {
    %c0_i32 = arith.constant 0 : i32
    %c0_i32_0 = arith.constant 0 : i32
    %c0_i32_1 = arith.constant 0 : i32
    return %c0_i32, %c0_i32_0 : i32, i32
  }
  func.func @transform_3(%arg0: i32) -> (i32, i32) {
    %c0_i32 = arith.constant 0 : i32
    %c0_i32_0 = arith.constant 0 : i32
    %c0_i32_1 = arith.constant 0 : i32
    return %c0_i32, %c0_i32_0 : i32, i32
  }
}

module attributes {stable_mosaic.version = 11 : i64} {
  func.func @context_block_kernel(%arg0: i32, %arg1: memref<1x8x32xf32, #tpu.memory_space<vmem>>, %arg2: memref<1x8x32xf32, #tpu.memory_space<vmem>>, %arg3: memref<1x8x32xf32, #tpu.memory_space<vmem>>, %arg4: memref<1x8x8xf32, #tpu.memory_space<vmem>>, %arg5: memref<4x32x32xf32, #tpu.memory_space<vmem>>, %arg6: memref<4x32xf32, #tpu.memory_space<vmem>>, %arg7: memref<2x32xf32, #tpu.memory_space<vmem>>, %arg8: memref<2x32xf32, #tpu.memory_space<vmem>>, %arg9: memref<1x32x32xf32, #tpu.memory_space<vmem>>, %arg10: memref<1x32xf32, #tpu.memory_space<vmem>>, %arg11: memref<1x8x32xf32, #tpu.memory_space<vmem>>) attributes {dimension_semantics = [#tpu.dimension_semantics<parallel>], iteration_bounds = array<i64: 2>, scalar_prefetch = 0 : i64, scratch_operands = 0 : i64, tpu.core_type = #tpu.core_type<tc>, window_params = [{transform_indices = @transform_0, window_bounds = array<i64: 1, 8, 32>}, {transform_indices = @transform_1, window_bounds = array<i64: 1, 8, 32>}, {transform_indices = @transform_2, window_bounds = array<i64: 1, 8, 32>}, {transform_indices = @transform_3, window_bounds = array<i64: 1, 8, 8>}, {pipeline_mode = #tpu.pipeline_mode<synchronous>, transform_indices = @transform_4, window_bounds = array<i64: 4, 32, 32>}, {pipeline_mode = #tpu.pipeline_mode<synchronous>, transform_indices = @transform_5, window_bounds = array<i64: 4, 32>}, {pipeline_mode = #tpu.pipeline_mode<synchronous>, transform_indices = @transform_6, window_bounds = array<i64: 2, 32>}, {pipeline_mode = #tpu.pipeline_mode<synchronous>, transform_indices = @transform_7, window_bounds = array<i64: 2, 32>}, {pipeline_mode = #tpu.pipeline_mode<synchronous>, transform_indices = @transform_8, window_bounds = array<i64: 1, 32, 32>}, {pipeline_mode = #tpu.pipeline_mode<synchronous>, transform_indices = @transform_9, window_bounds = array<i64: 1, 32>}, {transform_indices = @transform_10, window_bounds = array<i64: 1, 8, 32>}]} {
    %c0 = arith.constant 0 : index
    %c0_0 = arith.constant 0 : index
    %c0_1 = arith.constant 0 : index
    %0 = vector.load %arg1[%c0, %c0_0, %c0_1] : memref<1x8x32xf32, #tpu.memory_space<vmem>>, vector<1x8x32xf32>
    %1 = vector.shape_cast %0 : vector<1x8x32xf32> to vector<8x32xf32>
    %c0_2 = arith.constant 0 : index
    %c0_3 = arith.constant 0 : index
    %c0_4 = arith.constant 0 : index
    %2 = vector.load %arg2[%c0_2, %c0_3, %c0_4] : memref<1x8x32xf32, #tpu.memory_space<vmem>>, vector<1x8x32xf32>
    %3 = vector.shape_cast %2 : vector<1x8x32xf32> to vector<8x32xf32>
    %4 = arith.addf %1, %3 : vector<8x32xf32>
    %c0_5 = arith.constant 0 : index
    %c0_6 = arith.constant 0 : index
    %c0_7 = arith.constant 0 : index
    %5 = vector.load %arg3[%c0_5, %c0_6, %c0_7] : memref<1x8x32xf32, #tpu.memory_space<vmem>>, vector<1x8x32xf32>
    %6 = vector.shape_cast %5 : vector<1x8x32xf32> to vector<8x32xf32>
    %7 = arith.addf %4, %6 : vector<8x32xf32>
    %c0_8 = arith.constant 0 : index
    %c0_9 = arith.constant 0 : index
    %c0_10 = arith.constant 0 : index
    %8 = vector.load %arg5[%c0_8, %c0_9, %c0_10] : memref<4x32x32xf32, #tpu.memory_space<vmem>>, vector<4x32x32xf32>
    %c0_11 = arith.constant 0 : index
    %c0_12 = arith.constant 0 : index
    %9 = vector.load %arg6[%c0_11, %c0_12] : memref<4x32xf32, #tpu.memory_space<vmem>>, vector<4x32xf32>
    %c0_13 = arith.constant 0 : index
    %c0_14 = arith.constant 0 : index
    %10 = vector.load %arg7[%c0_13, %c0_14] : memref<2x32xf32, #tpu.memory_space<vmem>>, vector<2x32xf32>
    %c0_15 = arith.constant 0 : index
    %c0_16 = arith.constant 0 : index
    %11 = vector.load %arg8[%c0_15, %c0_16] : memref<2x32xf32, #tpu.memory_space<vmem>>, vector<2x32xf32>
    %c0_17 = arith.constant 0 : index
    %c0_18 = arith.constant 0 : index
    %c0_19 = arith.constant 0 : index
    %12 = vector.load %arg9[%c0_17, %c0_18, %c0_19] : memref<1x32x32xf32, #tpu.memory_space<vmem>>, vector<1x32x32xf32>
    %c0_20 = arith.constant 0 : index
    %c0_21 = arith.constant 0 : index
    %13 = vector.load %arg10[%c0_20, %c0_21] : memref<1x32xf32, #tpu.memory_space<vmem>>, vector<1x32xf32>
    %c0_22 = arith.constant 0 : index
    %c0_23 = arith.constant 0 : index
    %c0_24 = arith.constant 0 : index
    %14 = vector.load %arg4[%c0_22, %c0_23, %c0_24] : memref<1x8x8xf32, #tpu.memory_space<vmem>>, vector<1x8x8xf32>
    %15 = vector.shape_cast %14 : vector<1x8x8xf32> to vector<8x8xf32>
    %16 = vector.extract_strided_slice %8 {offsets = [0, 0, 0], sizes = [1, 32, 32], strides = [1, 1, 1]} : vector<4x32x32xf32> to vector<1x32x32xf32>
    %17 = vector.shape_cast %16 : vector<1x32x32xf32> to vector<32x32xf32>
    %cst = arith.constant dense<0.000000e+00> : vector<8x32xf32>
    %18 = tpu.matmul %7, %17, %cst {dimension_numbers = #tpu.dot_dimension_numbers<[1], [0], [0], [1], [0, 0, 1, 1], [], []>} : vector<8x32xf32>, vector<32x32xf32>, vector<8x32xf32> -> vector<8x32xf32>
    %19 = vector.extract_strided_slice %9 {offsets = [0, 0], sizes = [1, 32], strides = [1, 1]} : vector<4x32xf32> to vector<1x32xf32>
    %20 = vector.broadcast %19 : vector<1x32xf32> to vector<8x32xf32>
    %21 = arith.addf %18, %20 : vector<8x32xf32>
    %22 = vector.extract_strided_slice %8 {offsets = [1, 0, 0], sizes = [1, 32, 32], strides = [1, 1, 1]} : vector<4x32x32xf32> to vector<1x32x32xf32>
    %23 = vector.shape_cast %22 : vector<1x32x32xf32> to vector<32x32xf32>
    %cst_25 = arith.constant dense<0.000000e+00> : vector<8x32xf32>
    %24 = tpu.matmul %7, %23, %cst_25 {dimension_numbers = #tpu.dot_dimension_numbers<[1], [0], [0], [1], [0, 0, 1, 1], [], []>} : vector<8x32xf32>, vector<32x32xf32>, vector<8x32xf32> -> vector<8x32xf32>
    %25 = vector.extract_strided_slice %9 {offsets = [1, 0], sizes = [1, 32], strides = [1, 1]} : vector<4x32xf32> to vector<1x32xf32>
    %26 = vector.broadcast %25 : vector<1x32xf32> to vector<8x32xf32>
    %27 = arith.addf %24, %26 : vector<8x32xf32>
    %28 = vector.extract_strided_slice %8 {offsets = [2, 0, 0], sizes = [1, 32, 32], strides = [1, 1, 1]} : vector<4x32x32xf32> to vector<1x32x32xf32>
    %29 = vector.shape_cast %28 : vector<1x32x32xf32> to vector<32x32xf32>
    %cst_26 = arith.constant dense<0.000000e+00> : vector<8x32xf32>
    %30 = tpu.matmul %7, %29, %cst_26 {dimension_numbers = #tpu.dot_dimension_numbers<[1], [0], [0], [1], [0, 0, 1, 1], [], []>} : vector<8x32xf32>, vector<32x32xf32>, vector<8x32xf32> -> vector<8x32xf32>
    %31 = vector.extract_strided_slice %9 {offsets = [2, 0], sizes = [1, 32], strides = [1, 1]} : vector<4x32xf32> to vector<1x32xf32>
    %32 = vector.broadcast %31 : vector<1x32xf32> to vector<8x32xf32>
    %33 = arith.addf %30, %32 : vector<8x32xf32>
    %cst_27 = arith.constant dense<0.000000e+00> : vector<8x8xf32>
    %34 = tpu.matmul %21, %27, %cst_27 {dimension_numbers = #tpu.dot_dimension_numbers<[1], [1], [0], [0], [0, 0, 1, 0], [], []>} : vector<8x32xf32>, vector<8x32xf32>, vector<8x8xf32> -> vector<8x8xf32>
    %cst_28 = arith.constant 0.176776692 : f32
    %35 = vector.broadcast %cst_28 : f32 to vector<8x8xf32>
    %36 = arith.mulf %34, %35 : vector<8x8xf32>
    %cst_29 = arith.constant 5.000000e-01 : f32
    %37 = vector.broadcast %cst_29 : f32 to vector<8x8xf32>
    %38 = arith.cmpf ogt, %15, %37 : vector<8x8xf32>
    %cst_30 = arith.constant -1.000000e+09 : f32
    %39 = vector.broadcast %cst_30 : f32 to vector<8x8xf32>
    %40 = arith.select %38, %39, %36 : vector<8x8xi1>, vector<8x8xf32>
    %cst_31 = arith.constant dense<0xFF800000> : vector<8xf32>
    %41 = vector.multi_reduction <maximumf>, %40, %cst_31 [1] : vector<8x8xf32> to vector<8xf32>
    %42 = vector.shape_cast %41 : vector<8xf32> to vector<8x1xf32>
    %43 = vector.broadcast %42 : vector<8x1xf32> to vector<8x8xf32>
    %44 = arith.subf %40, %43 : vector<8x8xf32>
    %45 = math.exp %44 : vector<8x8xf32>
    %cst_32 = arith.constant dense<0.000000e+00> : vector<8xf32>
    %46 = vector.multi_reduction <add>, %45, %cst_32 [1] : vector<8x8xf32> to vector<8xf32>
    %47 = vector.shape_cast %46 : vector<8xf32> to vector<8x1xf32>
    %48 = vector.broadcast %47 : vector<8x1xf32> to vector<8x8xf32>
    %49 = arith.divf %45, %48 : vector<8x8xf32>
    %cst_33 = arith.constant dense<0.000000e+00> : vector<8x32xf32>
    %50 = tpu.matmul %49, %33, %cst_33 {dimension_numbers = #tpu.dot_dimension_numbers<[1], [0], [0], [1], [0, 0, 1, 1], [], []>} : vector<8x8xf32>, vector<8x32xf32>, vector<8x32xf32> -> vector<8x32xf32>
    %51 = vector.extract_strided_slice %8 {offsets = [3, 0, 0], sizes = [1, 32, 32], strides = [1, 1, 1]} : vector<4x32x32xf32> to vector<1x32x32xf32>
    %52 = vector.shape_cast %51 : vector<1x32x32xf32> to vector<32x32xf32>
    %cst_34 = arith.constant dense<0.000000e+00> : vector<8x32xf32>
    %53 = tpu.matmul %50, %52, %cst_34 {dimension_numbers = #tpu.dot_dimension_numbers<[1], [0], [0], [1], [0, 0, 1, 1], [], []>} : vector<8x32xf32>, vector<32x32xf32>, vector<8x32xf32> -> vector<8x32xf32>
    %54 = vector.extract_strided_slice %9 {offsets = [3, 0], sizes = [1, 32], strides = [1, 1]} : vector<4x32xf32> to vector<1x32xf32>
    %55 = vector.broadcast %54 : vector<1x32xf32> to vector<8x32xf32>
    %56 = arith.addf %53, %55 : vector<8x32xf32>
    %57 = arith.addf %7, %56 : vector<8x32xf32>
    %58 = vector.extract_strided_slice %10 {offsets = [0, 0], sizes = [1, 32], strides = [1, 1]} : vector<2x32xf32> to vector<1x32xf32>
    %59 = vector.extract_strided_slice %11 {offsets = [0, 0], sizes = [1, 32], strides = [1, 1]} : vector<2x32xf32> to vector<1x32xf32>
    %cst_35 = arith.constant dense<0.000000e+00> : vector<8xf32>
    %60 = vector.multi_reduction <add>, %57, %cst_35 [1] : vector<8x32xf32> to vector<8xf32>
    %61 = vector.shape_cast %60 : vector<8xf32> to vector<8x1xf32>
    %cst_36 = arith.constant 3.200000e+01 : f32
    %62 = vector.broadcast %cst_36 : f32 to vector<8x1xf32>
    %63 = arith.divf %61, %62 : vector<8x1xf32>
    %64 = vector.broadcast %63 : vector<8x1xf32> to vector<8x32xf32>
    %65 = arith.subf %57, %64 : vector<8x32xf32>
    %66 = arith.mulf %65, %65 : vector<8x32xf32>
    %cst_37 = arith.constant dense<0.000000e+00> : vector<8xf32>
    %67 = vector.multi_reduction <add>, %66, %cst_37 [1] : vector<8x32xf32> to vector<8xf32>
    %68 = vector.shape_cast %67 : vector<8xf32> to vector<8x1xf32>
    %cst_38 = arith.constant 3.200000e+01 : f32
    %69 = vector.broadcast %cst_38 : f32 to vector<8x1xf32>
    %70 = arith.divf %68, %69 : vector<8x1xf32>
    %71 = vector.broadcast %63 : vector<8x1xf32> to vector<8x32xf32>
    %72 = arith.subf %57, %71 : vector<8x32xf32>
    %cst_39 = arith.constant 9.99999974E-6 : f32
    %73 = vector.broadcast %cst_39 : f32 to vector<8x1xf32>
    %74 = arith.addf %70, %73 : vector<8x1xf32>
    %75 = math.rsqrt %74 : vector<8x1xf32>
    %76 = vector.broadcast %75 : vector<8x1xf32> to vector<8x32xf32>
    %77 = arith.mulf %72, %76 : vector<8x32xf32>
    %78 = vector.broadcast %58 : vector<1x32xf32> to vector<8x32xf32>
    %79 = arith.mulf %77, %78 : vector<8x32xf32>
    %80 = vector.broadcast %59 : vector<1x32xf32> to vector<8x32xf32>
    %81 = arith.addf %79, %80 : vector<8x32xf32>
    %82 = vector.shape_cast %12 : vector<1x32x32xf32> to vector<32x32xf32>
    %cst_40 = arith.constant dense<0.000000e+00> : vector<8x32xf32>
    %83 = tpu.matmul %81, %82, %cst_40 {dimension_numbers = #tpu.dot_dimension_numbers<[1], [0], [0], [1], [0, 0, 1, 1], [], []>} : vector<8x32xf32>, vector<32x32xf32>, vector<8x32xf32> -> vector<8x32xf32>
    %84 = vector.broadcast %13 : vector<1x32xf32> to vector<8x32xf32>
    %85 = arith.addf %83, %84 : vector<8x32xf32>
    %cst_41 = arith.constant 0.000000e+00 : f32
    %86 = vector.broadcast %cst_41 : f32 to vector<8x32xf32>
    %87 = arith.maximumf %85, %86 : vector<8x32xf32>
    %88 = arith.addf %81, %87 : vector<8x32xf32>
    %89 = vector.extract_strided_slice %10 {offsets = [1, 0], sizes = [1, 32], strides = [1, 1]} : vector<2x32xf32> to vector<1x32xf32>
    %90 = vector.extract_strided_slice %11 {offsets = [1, 0], sizes = [1, 32], strides = [1, 1]} : vector<2x32xf32> to vector<1x32xf32>
    %cst_42 = arith.constant dense<0.000000e+00> : vector<8xf32>
    %91 = vector.multi_reduction <add>, %88, %cst_42 [1] : vector<8x32xf32> to vector<8xf32>
    %92 = vector.shape_cast %91 : vector<8xf32> to vector<8x1xf32>
    %cst_43 = arith.constant 3.200000e+01 : f32
    %93 = vector.broadcast %cst_43 : f32 to vector<8x1xf32>
    %94 = arith.divf %92, %93 : vector<8x1xf32>
    %95 = vector.broadcast %94 : vector<8x1xf32> to vector<8x32xf32>
    %96 = arith.subf %88, %95 : vector<8x32xf32>
    %97 = arith.mulf %96, %96 : vector<8x32xf32>
    %cst_44 = arith.constant dense<0.000000e+00> : vector<8xf32>
    %98 = vector.multi_reduction <add>, %97, %cst_44 [1] : vector<8x32xf32> to vector<8xf32>
    %99 = vector.shape_cast %98 : vector<8xf32> to vector<8x1xf32>
    %cst_45 = arith.constant 3.200000e+01 : f32
    %100 = vector.broadcast %cst_45 : f32 to vector<8x1xf32>
    %101 = arith.divf %99, %100 : vector<8x1xf32>
    %102 = vector.broadcast %94 : vector<8x1xf32> to vector<8x32xf32>
    %103 = arith.subf %88, %102 : vector<8x32xf32>
    %cst_46 = arith.constant 9.99999974E-6 : f32
    %104 = vector.broadcast %cst_46 : f32 to vector<8x1xf32>
    %105 = arith.addf %101, %104 : vector<8x1xf32>
    %106 = math.rsqrt %105 : vector<8x1xf32>
    %107 = vector.broadcast %106 : vector<8x1xf32> to vector<8x32xf32>
    %108 = arith.mulf %103, %107 : vector<8x32xf32>
    %109 = vector.broadcast %89 : vector<1x32xf32> to vector<8x32xf32>
    %110 = arith.mulf %108, %109 : vector<8x32xf32>
    %111 = vector.broadcast %90 : vector<1x32xf32> to vector<8x32xf32>
    %112 = arith.addf %110, %111 : vector<8x32xf32>
    %c0_47 = arith.constant 0 : index
    %c0_48 = arith.constant 0 : index
    %c0_49 = arith.constant 0 : index
    %113 = vector.load %arg11[%c0_47, %c0_48, %c0_49] : memref<1x8x32xf32, #tpu.memory_space<vmem>>, vector<1x8x32xf32>
    %114 = vector.shape_cast %113 : vector<1x8x32xf32> to vector<8x32xf32>
    %115 = vector.shape_cast %112 : vector<8x32xf32> to vector<1x8x32xf32>
    tpu.vector_store %arg11[%c0_47, %c0_48, %c0_49], %115 {strides = array<i32>} : memref<1x8x32xf32, #tpu.memory_space<vmem>>, vector<1x8x32xf32>,
    return
  }
  func.func @transform_0(%arg0: i32) -> (i32, i32, i32) {
    %c0_i32 = arith.constant 0 : i32
    %c0_i32_0 = arith.constant 0 : i32
    %c0_i32_1 = arith.constant 0 : i32
    return %arg0, %c0_i32, %c0_i32_0 : i32, i32, i32
  }
  func.func @transform_1(%arg0: i32) -> (i32, i32, i32) {
    %c0_i32 = arith.constant 0 : i32
    %c0_i32_0 = arith.constant 0 : i32
    %c0_i32_1 = arith.constant 0 : i32
    return %arg0, %c0_i32, %c0_i32_0 : i32, i32, i32
  }
  func.func @transform_2(%arg0: i32) -> (i32, i32, i32) {
    %c0_i32 = arith.constant 0 : i32
    %c0_i32_0 = arith.constant 0 : i32
    %c0_i32_1 = arith.constant 0 : i32
    return %arg0, %c0_i32, %c0_i32_0 : i32, i32, i32
  }
  func.func @transform_3(%arg0: i32) -> (i32, i32, i32) {
    %c0_i32 = arith.constant 0 : i32
    %c0_i32_0 = arith.constant 0 : i32
    %c0_i32_1 = arith.constant 0 : i32
    return %arg0, %c0_i32, %c0_i32_0 : i32, i32, i32
  }
  func.func @transform_4(%arg0: i32) -> (i32, i32, i32) {
    %c0_i32 = arith.constant 0 : i32
    %c0_i32_0 = arith.constant 0 : i32
    %c0_i32_1 = arith.constant 0 : i32
    %c0_i32_2 = arith.constant 0 : i32
    return %c0_i32, %c0_i32_0, %c0_i32_1 : i32, i32, i32
  }
  func.func @transform_5(%arg0: i32) -> (i32, i32) {
    %c0_i32 = arith.constant 0 : i32
    %c0_i32_0 = arith.constant 0 : i32
    %c0_i32_1 = arith.constant 0 : i32
    return %c0_i32, %c0_i32_0 : i32, i32
  }
  func.func @transform_6(%arg0: i32) -> (i32, i32) {
    %c0_i32 = arith.constant 0 : i32
    %c0_i32_0 = arith.constant 0 : i32
    %c0_i32_1 = arith.constant 0 : i32
    return %c0_i32, %c0_i32_0 : i32, i32
  }
  func.func @transform_7(%arg0: i32) -> (i32, i32) {
    %c0_i32 = arith.constant 0 : i32
    %c0_i32_0 = arith.constant 0 : i32
    %c0_i32_1 = arith.constant 0 : i32
    return %c0_i32, %c0_i32_0 : i32, i32
  }
  func.func @transform_8(%arg0: i32) -> (i32, i32, i32) {
    %c0_i32 = arith.constant 0 : i32
    %c0_i32_0 = arith.constant 0 : i32
    %c0_i32_1 = arith.constant 0 : i32
    %c0_i32_2 = arith.constant 0 : i32
    return %c0_i32, %c0_i32_0, %c0_i32_1 : i32, i32, i32
  }
  func.func @transform_9(%arg0: i32) -> (i32, i32) {
    %c0_i32 = arith.constant 0 : i32
    %c0_i32_0 = arith.constant 0 : i32
    %c0_i32_1 = arith.constant 0 : i32
    return %c0_i32, %c0_i32_0 : i32, i32
  }
  func.func @transform_10(%arg0: i32) -> (i32, i32, i32) {
    %c0_i32 = arith.constant 0 : i32
    %c0_i32_0 = arith.constant 0 : i32
    %c0_i32_1 = arith.constant 0 : i32
    return %arg0, %c0_i32, %c0_i32_0 : i32, i32, i32
  }
}

module attributes {stable_mosaic.version = 11 : i64} {
  func.func @emotion_block_kernel(%arg0: i32, %arg1: memref<1x8x32xf32, #tpu.memory_space<vmem>>, %arg2: memref<1x8x32xf32, #tpu.memory_space<vmem>>, %arg3: memref<1x1x32xf32, #tpu.memory_space<vmem>>, %arg4: memref<1x1x32xf32, #tpu.memory_space<vmem>>, %arg5: memref<1x8x8xf32, #tpu.memory_space<vmem>>, %arg6: memref<4x32x32xf32, #tpu.memory_space<vmem>>, %arg7: memref<4x32xf32, #tpu.memory_space<vmem>>, %arg8: memref<2x32xf32, #tpu.memory_space<vmem>>, %arg9: memref<2x32xf32, #tpu.memory_space<vmem>>, %arg10: memref<2x32x32xf32, #tpu.memory_space<vmem>>, %arg11: memref<2x32xf32, #tpu.memory_space<vmem>>, %arg12: memref<32x32xf32, #tpu.memory_space<vmem>>, %arg13: memref<1x32xf32, #tpu.memory_space<vmem>>, %arg14: memref<1x8x32xf32, #tpu.memory_space<vmem>>) attributes {dimension_semantics = [#tpu.dimension_semantics<parallel>], iteration_bounds = array<i64: 2>, scalar_prefetch = 0 : i64, scratch_operands = 0 : i64, tpu.core_type = #tpu.core_type<tc>, window_params = [{transform_indices = @transform_0, window_bounds = array<i64: 1, 8, 32>}, {transform_indices = @transform_1, window_bounds = array<i64: 1, 8, 32>}, {transform_indices = @transform_2, window_bounds = array<i64: 1, 1, 32>}, {transform_indices = @transform_3, window_bounds = array<i64: 1, 1, 32>}, {transform_indices = @transform_4, window_bounds = array<i64: 1, 8, 8>}, {pipeline_mode = #tpu.pipeline_mode<synchronous>, transform_indices = @transform_5, window_bounds = array<i64: 4, 32, 32>}, {pipeline_mode = #tpu.pipeline_mode<synchronous>, transform_indices = @transform_6, window_bounds = array<i64: 4, 32>}, {pipeline_mode = #tpu.pipeline_mode<synchronous>, transform_indices = @transform_7, window_bounds = array<i64: 2, 32>}, {pipeline_mode = #tpu.pipeline_mode<synchronous>, transform_indices = @transform_8, window_bounds = array<i64: 2, 32>}, {pipeline_mode = #tpu.pipeline_mode<synchronous>, transform_indices = @transform_9, window_bounds = array<i64: 2, 32, 32>}, {pipeline_mode = #tpu.pipeline_mode<synchronous>, transform_indices = @transform_10, window_bounds = array<i64: 2, 32>}, {pipeline_mode = #tpu.pipeline_mode<synchronous>, transform_indices = @transform_11, window_bounds = array<i64: 32, 32>}, {pipeline_mode = #tpu.pipeline_mode<synchronous>, transform_indices = @transform_12, window_bounds = array<i64: 1, 32>}, {transform_indices = @transform_13, window_bounds = array<i64: 1, 8, 32>}]} {
    %c0 = arith.constant 0 : index
    %c0_0 = arith.constant 0 : index
    %c0_1 = arith.constant 0 : index
    %0 = vector.load %arg1[%c0, %c0_0, %c0_1] : memref<1x8x32xf32, #tpu.memory_space<vmem>>, vector<1x8x32xf32>
    %1 = vector.shape_cast %0 : vector<1x8x32xf32> to vector<8x32xf32>
    %c0_2 = arith.constant 0 : index
    %c0_3 = arith.constant 0 : index
    %c0_4 = arith.constant 0 : index
    %2 = vector.load %arg2[%c0_2, %c0_3, %c0_4] : memref<1x8x32xf32, #tpu.memory_space<vmem>>, vector<1x8x32xf32>
    %3 = vector.shape_cast %2 : vector<1x8x32xf32> to vector<8x32xf32>
    %4 = arith.addf %1, %3 : vector<8x32xf32>
    %c0_5 = arith.constant 0 : index
    %c0_6 = arith.constant 0 : index
    %c0_7 = arith.constant 0 : index
    %5 = vector.load %arg3[%c0_5, %c0_6, %c0_7] : memref<1x1x32xf32, #tpu.memory_space<vmem>>, vector<1x1x32xf32>
    %6 = vector.shape_cast %5 : vector<1x1x32xf32> to vector<1x32xf32>
    %7 = vector.broadcast %6 : vector<1x32xf32> to vector<8x32xf32>
    %8 = arith.addf %4, %7 : vector<8x32xf32>
    %c0_8 = arith.constant 0 : index
    %c0_9 = arith.constant 0 : index
    %c0_10 = arith.constant 0 : index
    %9 = vector.load %arg4[%c0_8, %c0_9, %c0_10] : memref<1x1x32xf32, #tpu.memory_space<vmem>>, vector<1x1x32xf32>
    %10 = vector.shape_cast %9 : vector<1x1x32xf32> to vector<1x32xf32>
    %11 = vector.broadcast %10 : vector<1x32xf32> to vector<8x32xf32>
    %12 = arith.addf %8, %11 : vector<8x32xf32>
    %c0_11 = arith.constant 0 : index
    %c0_12 = arith.constant 0 : index
    %c0_13 = arith.constant 0 : index
    %13 = vector.load %arg6[%c0_11, %c0_12, %c0_13] : memref<4x32x32xf32, #tpu.memory_space<vmem>>, vector<4x32x32xf32>
    %c0_14 = arith.constant 0 : index
    %c0_15 = arith.constant 0 : index
    %14 = vector.load %arg7[%c0_14, %c0_15] : memref<4x32xf32, #tpu.memory_space<vmem>>, vector<4x32xf32>
    %c0_16 = arith.constant 0 : index
    %c0_17 = arith.constant 0 : index
    %15 = vector.load %arg8[%c0_16, %c0_17] : memref<2x32xf32, #tpu.memory_space<vmem>>, vector<2x32xf32>
    %c0_18 = arith.constant 0 : index
    %c0_19 = arith.constant 0 : index
    %16 = vector.load %arg9[%c0_18, %c0_19] : memref<2x32xf32, #tpu.memory_space<vmem>>, vector<2x32xf32>
    %c0_20 = arith.constant 0 : index
    %c0_21 = arith.constant 0 : index
    %c0_22 = arith.constant 0 : index
    %17 = vector.load %arg10[%c0_20, %c0_21, %c0_22] : memref<2x32x32xf32, #tpu.memory_space<vmem>>, vector<2x32x32xf32>
    %c0_23 = arith.constant 0 : index
    %c0_24 = arith.constant 0 : index
    %18 = vector.load %arg11[%c0_23, %c0_24] : memref<2x32xf32, #tpu.memory_space<vmem>>, vector<2x32xf32>
    %c0_25 = arith.constant 0 : index
    %c0_26 = arith.constant 0 : index
    %c0_27 = arith.constant 0 : index
    %19 = vector.load %arg5[%c0_25, %c0_26, %c0_27] : memref<1x8x8xf32, #tpu.memory_space<vmem>>, vector<1x8x8xf32>
    %20 = vector.shape_cast %19 : vector<1x8x8xf32> to vector<8x8xf32>
    %21 = vector.extract_strided_slice %13 {offsets = [0, 0, 0], sizes = [1, 32, 32], strides = [1, 1, 1]} : vector<4x32x32xf32> to vector<1x32x32xf32>
    %22 = vector.shape_cast %21 : vector<1x32x32xf32> to vector<32x32xf32>
    %cst = arith.constant dense<0.000000e+00> : vector<8x32xf32>
    %23 = tpu.matmul %12, %22, %cst {dimension_numbers = #tpu.dot_dimension_numbers<[1], [0], [0], [1], [0, 0, 1, 1], [], []>} : vector<8x32xf32>, vector<32x32xf32>, vector<8x32xf32> -> vector<8x32xf32>
    %24 = vector.extract_strided_slice %14 {offsets = [0, 0], sizes = [1, 32], strides = [1, 1]} : vector<4x32xf32> to vector<1x32xf32>
    %25 = vector.broadcast %24 : vector<1x32xf32> to vector<8x32xf32>
    %26 = arith.addf %23, %25 : vector<8x32xf32>
    %27 = vector.extract_strided_slice %13 {offsets = [1, 0, 0], sizes = [1, 32, 32], strides = [1, 1, 1]} : vector<4x32x32xf32> to vector<1x32x32xf32>
    %28 = vector.shape_cast %27 : vector<1x32x32xf32> to vector<32x32xf32>
    %cst_28 = arith.constant dense<0.000000e+00> : vector<8x32xf32>
    %29 = tpu.matmul %12, %28, %cst_28 {dimension_numbers = #tpu.dot_dimension_numbers<[1], [0], [0], [1], [0, 0, 1, 1], [], []>} : vector<8x32xf32>, vector<32x32xf32>, vector<8x32xf32> -> vector<8x32xf32>
    %30 = vector.extract_strided_slice %14 {offsets = [1, 0], sizes = [1, 32], strides = [1, 1]} : vector<4x32xf32> to vector<1x32xf32>
    %31 = vector.broadcast %30 : vector<1x32xf32> to vector<8x32xf32>
    %32 = arith.addf %29, %31 : vector<8x32xf32>
    %33 = vector.extract_strided_slice %13 {offsets = [2, 0, 0], sizes = [1, 32, 32], strides = [1, 1, 1]} : vector<4x32x32xf32> to vector<1x32x32xf32>
    %34 = vector.shape_cast %33 : vector<1x32x32xf32> to vector<32x32xf32>
    %cst_29 = arith.constant dense<0.000000e+00> : vector<8x32xf32>
    %35 = tpu.matmul %12, %34, %cst_29 {dimension_numbers = #tpu.dot_dimension_numbers<[1], [0], [0], [1], [0, 0, 1, 1], [], []>} : vector<8x32xf32>, vector<32x32xf32>, vector<8x32xf32> -> vector<8x32xf32>
    %36 = vector.extract_strided_slice %14 {offsets = [2, 0], sizes = [1, 32], strides = [1, 1]} : vector<4x32xf32> to vector<1x32xf32>
    %37 = vector.broadcast %36 : vector<1x32xf32> to vector<8x32xf32>
    %38 = arith.addf %35, %37 : vector<8x32xf32>
    %cst_30 = arith.constant dense<0.000000e+00> : vector<8x8xf32>
    %39 = tpu.matmul %26, %32, %cst_30 {dimension_numbers = #tpu.dot_dimension_numbers<[1], [1], [0], [0], [0, 0, 1, 0], [], []>} : vector<8x32xf32>, vector<8x32xf32>, vector<8x8xf32> -> vector<8x8xf32>
    %cst_31 = arith.constant 0.176776692 : f32
    %40 = vector.broadcast %cst_31 : f32 to vector<8x8xf32>
    %41 = arith.mulf %39, %40 : vector<8x8xf32>
    %cst_32 = arith.constant 5.000000e-01 : f32
    %42 = vector.broadcast %cst_32 : f32 to vector<8x8xf32>
    %43 = arith.cmpf ogt, %20, %42 : vector<8x8xf32>
    %cst_33 = arith.constant -1.000000e+09 : f32
    %44 = vector.broadcast %cst_33 : f32 to vector<8x8xf32>
    %45 = arith.select %43, %44, %41 : vector<8x8xi1>, vector<8x8xf32>
    %cst_34 = arith.constant dense<0xFF800000> : vector<8xf32>
    %46 = vector.multi_reduction <maximumf>, %45, %cst_34 [1] : vector<8x8xf32> to vector<8xf32>
    %47 = vector.shape_cast %46 : vector<8xf32> to vector<8x1xf32>
    %48 = vector.broadcast %47 : vector<8x1xf32> to vector<8x8xf32>
    %49 = arith.subf %45, %48 : vector<8x8xf32>
    %50 = math.exp %49 : vector<8x8xf32>
    %cst_35 = arith.constant dense<0.000000e+00> : vector<8xf32>
    %51 = vector.multi_reduction <add>, %50, %cst_35 [1] : vector<8x8xf32> to vector<8xf32>
    %52 = vector.shape_cast %51 : vector<8xf32> to vector<8x1xf32>
    %53 = vector.broadcast %52 : vector<8x1xf32> to vector<8x8xf32>
    %54 = arith.divf %50, %53 : vector<8x8xf32>
    %cst_36 = arith.constant dense<0.000000e+00> : vector<8x32xf32>
    %55 = tpu.matmul %54, %38, %cst_36 {dimension_numbers = #tpu.dot_dimension_numbers<[1], [0], [0], [1], [0, 0, 1, 1], [], []>} : vector<8x8xf32>, vector<8x32xf32>, vector<8x32xf32> -> vector<8x32xf32>
    %56 = vector.extract_strided_slice %13 {offsets = [3, 0, 0], sizes = [1, 32, 32], strides = [1, 1, 1]} : vector<4x32x32xf32> to vector<1x32x32xf32>
    %57 = vector.shape_cast %56 : vector<1x32x32xf32> to vector<32x32xf32>
    %cst_37 = arith.constant dense<0.000000e+00> : vector<8x32xf32>
    %58 = tpu.matmul %55, %57, %cst_37 {dimension_numbers = #tpu.dot_dimension_numbers<[1], [0], [0], [1], [0, 0, 1, 1], [], []>} : vector<8x32xf32>, vector<32x32xf32>, vector<8x32xf32> -> vector<8x32xf32>
    %59 = vector.extract_strided_slice %14 {offsets = [3, 0], sizes = [1, 32], strides = [1, 1]} : vector<4x32xf32> to vector<1x32xf32>
    %60 = vector.broadcast %59 : vector<1x32xf32> to vector<8x32xf32>
    %61 = arith.addf %58, %60 : vector<8x32xf32>
    %62 = arith.addf %12, %61 : vector<8x32xf32>
    %63 = vector.extract_strided_slice %15 {offsets = [0, 0], sizes = [1, 32], strides = [1, 1]} : vector<2x32xf32> to vector<1x32xf32>
    %64 = vector.extract_strided_slice %16 {offsets = [0, 0], sizes = [1, 32], strides = [1, 1]} : vector<2x32xf32> to vector<1x32xf32>
    %cst_38 = arith.constant dense<0.000000e+00> : vector<8xf32>
    %65 = vector.multi_reduction <add>, %62, %cst_38 [1] : vector<8x32xf32> to vector<8xf32>
    %66 = vector.shape_cast %65 : vector<8xf32> to vector<8x1xf32>
    %cst_39 = arith.constant 3.200000e+01 : f32
    %67 = vector.broadcast %cst_39 : f32 to vector<8x1xf32>
    %68 = arith.divf %66, %67 : vector<8x1xf32>
    %69 = vector.broadcast %68 : vector<8x1xf32> to vector<8x32xf32>
    %70 = arith.subf %62, %69 : vector<8x32xf32>
    %71 = arith.mulf %70, %70 : vector<8x32xf32>
    %cst_40 = arith.constant dense<0.000000e+00> : vector<8xf32>
    %72 = vector.multi_reduction <add>, %71, %cst_40 [1] : vector<8x32xf32> to vector<8xf32>
    %73 = vector.shape_cast %72 : vector<8xf32> to vector<8x1xf32>
    %cst_41 = arith.constant 3.200000e+01 : f32
    %74 = vector.broadcast %cst_41 : f32 to vector<8x1xf32>
    %75 = arith.divf %73, %74 : vector<8x1xf32>
    %76 = vector.broadcast %68 : vector<8x1xf32> to vector<8x32xf32>
    %77 = arith.subf %62, %76 : vector<8x32xf32>
    %cst_42 = arith.constant 9.99999974E-6 : f32
    %78 = vector.broadcast %cst_42 : f32 to vector<8x1xf32>
    %79 = arith.addf %75, %78 : vector<8x1xf32>
    %80 = math.rsqrt %79 : vector<8x1xf32>
    %81 = vector.broadcast %80 : vector<8x1xf32> to vector<8x32xf32>
    %82 = arith.mulf %77, %81 : vector<8x32xf32>
    %83 = vector.broadcast %63 : vector<1x32xf32> to vector<8x32xf32>
    %84 = arith.mulf %82, %83 : vector<8x32xf32>
    %85 = vector.broadcast %64 : vector<1x32xf32> to vector<8x32xf32>
    %86 = arith.addf %84, %85 : vector<8x32xf32>
    %87 = vector.extract_strided_slice %17 {offsets = [0, 0, 0], sizes = [1, 32, 32], strides = [1, 1, 1]} : vector<2x32x32xf32> to vector<1x32x32xf32>
    %88 = vector.shape_cast %87 : vector<1x32x32xf32> to vector<32x32xf32>
    %cst_43 = arith.constant dense<0.000000e+00> : vector<8x32xf32>
    %89 = tpu.matmul %86, %88, %cst_43 {dimension_numbers = #tpu.dot_dimension_numbers<[1], [0], [0], [1], [0, 0, 1, 1], [], []>} : vector<8x32xf32>, vector<32x32xf32>, vector<8x32xf32> -> vector<8x32xf32>
    %90 = vector.extract_strided_slice %18 {offsets = [0, 0], sizes = [1, 32], strides = [1, 1]} : vector<2x32xf32> to vector<1x32xf32>
    %91 = vector.broadcast %90 : vector<1x32xf32> to vector<8x32xf32>
    %92 = arith.addf %89, %91 : vector<8x32xf32>
    %cst_44 = arith.constant 0.000000e+00 : f32
    %93 = vector.broadcast %cst_44 : f32 to vector<8x32xf32>
    %94 = arith.maximumf %92, %93 : vector<8x32xf32>
    %95 = vector.extract_strided_slice %17 {offsets = [1, 0, 0], sizes = [1, 32, 32], strides = [1, 1, 1]} : vector<2x32x32xf32> to vector<1x32x32xf32>
    %96 = vector.shape_cast %95 : vector<1x32x32xf32> to vector<32x32xf32>
    %cst_45 = arith.constant dense<0.000000e+00> : vector<8x32xf32>
    %97 = tpu.matmul %94, %96, %cst_45 {dimension_numbers = #tpu.dot_dimension_numbers<[1], [0], [0], [1], [0, 0, 1, 1], [], []>} : vector<8x32xf32>, vector<32x32xf32>, vector<8x32xf32> -> vector<8x32xf32>
    %98 = vector.extract_strided_slice %18 {offsets = [1, 0], sizes = [1, 32], strides = [1, 1]} : vector<2x32xf32> to vector<1x32xf32>
    %99 = vector.broadcast %98 : vector<1x32xf32> to vector<8x32xf32>
    %100 = arith.addf %97, %99 : vector<8x32xf32>
    %cst_46 = arith.constant 0.000000e+00 : f32
    %101 = vector.broadcast %cst_46 : f32 to vector<8x32xf32>
    %102 = arith.maximumf %100, %101 : vector<8x32xf32>
    %103 = arith.addf %86, %102 : vector<8x32xf32>
    %104 = vector.extract_strided_slice %15 {offsets = [1, 0], sizes = [1, 32], strides = [1, 1]} : vector<2x32xf32> to vector<1x32xf32>
    %105 = vector.extract_strided_slice %16 {offsets = [1, 0], sizes = [1, 32], strides = [1, 1]} : vector<2x32xf32> to vector<1x32xf32>
    %cst_47 = arith.constant dense<0.000000e+00> : vector<8xf32>
    %106 = vector.multi_reduction <add>, %103, %cst_47 [1] : vector<8x32xf32> to vector<8xf32>
    %107 = vector.shape_cast %106 : vector<8xf32> to vector<8x1xf32>
    %cst_48 = arith.constant 3.200000e+01 : f32
    %108 = vector.broadcast %cst_48 : f32 to vector<8x1xf32>
    %109 = arith.divf %107, %108 : vector<8x1xf32>
    %110 = vector.broadcast %109 : vector<8x1xf32> to vector<8x32xf32>
    %111 = arith.subf %103, %110 : vector<8x32xf32>
    %112 = arith.mulf %111, %111 : vector<8x32xf32>
    %cst_49 = arith.constant dense<0.000000e+00> : vector<8xf32>
    %113 = vector.multi_reduction <add>, %112, %cst_49 [1] : vector<8x32xf32> to vector<8xf32>
    %114 = vector.shape_cast %113 : vector<8xf32> to vector<8x1xf32>
    %cst_50 = arith.constant 3.200000e+01 : f32
    %115 = vector.broadcast %cst_50 : f32 to vector<8x1xf32>
    %116 = arith.divf %114, %115 : vector<8x1xf32>
    %117 = vector.broadcast %109 : vector<8x1xf32> to vector<8x32xf32>
    %118 = arith.subf %103, %117 : vector<8x32xf32>
    %cst_51 = arith.constant 9.99999974E-6 : f32
    %119 = vector.broadcast %cst_51 : f32 to vector<8x1xf32>
    %120 = arith.addf %116, %119 : vector<8x1xf32>
    %121 = math.rsqrt %120 : vector<8x1xf32>
    %122 = vector.broadcast %121 : vector<8x1xf32> to vector<8x32xf32>
    %123 = arith.mulf %118, %122 : vector<8x32xf32>
    %124 = vector.broadcast %104 : vector<1x32xf32> to vector<8x32xf32>
    %125 = arith.mulf %123, %124 : vector<8x32xf32>
    %126 = vector.broadcast %105 : vector<1x32xf32> to vector<8x32xf32>
    %127 = arith.addf %125, %126 : vector<8x32xf32>
    %c0_52 = arith.constant 0 : index
    %c0_53 = arith.constant 0 : index
    %128 = vector.load %arg12[%c0_52, %c0_53] : memref<32x32xf32, #tpu.memory_space<vmem>>, vector<32x32xf32>
    %cst_54 = arith.constant dense<0.000000e+00> : vector<8x32xf32>
    %129 = tpu.matmul %127, %128, %cst_54 {dimension_numbers = #tpu.dot_dimension_numbers<[1], [0], [0], [1], [0, 0, 1, 1], [], []>} : vector<8x32xf32>, vector<32x32xf32>, vector<8x32xf32> -> vector<8x32xf32>
    %c0_55 = arith.constant 0 : index
    %c0_56 = arith.constant 0 : index
    %130 = vector.load %arg13[%c0_55, %c0_56] : memref<1x32xf32, #tpu.memory_space<vmem>>, vector<1x32xf32>
    %131 = vector.broadcast %130 : vector<1x32xf32> to vector<8x32xf32>
    %132 = arith.addf %129, %131 : vector<8x32xf32>
    %c0_57 = arith.constant 0 : index
    %c0_58 = arith.constant 0 : index
    %c0_59 = arith.constant 0 : index
    %133 = vector.load %arg14[%c0_57, %c0_58, %c0_59] : memref<1x8x32xf32, #tpu.memory_space<vmem>>, vector<1x8x32xf32>
    %134 = vector.shape_cast %133 : vector<1x8x32xf32> to vector<8x32xf32>
    %135 = vector.shape_cast %132 : vector<8x32xf32> to vector<1x8x32xf32>
    tpu.vector_store %arg14[%c0_57, %c0_58, %c0_59], %135 {strides = array<i32>} : memref<1x8x32xf32, #tpu.memory_space<vmem>>, vector<1x8x32xf32>,
    return
  }
  func.func @transform_0(%arg0: i32) -> (i32, i32, i32) {
    %c0_i32 = arith.constant 0 : i32
    %c0_i32_0 = arith.constant 0 : i32
    %c0_i32_1 = arith.constant 0 : i32
    return %arg0, %c0_i32, %c0_i32_0 : i32, i32, i32
  }
  func.func @transform_1(%arg0: i32) -> (i32, i32, i32) {
    %c0_i32 = arith.constant 0 : i32
    %c0_i32_0 = arith.constant 0 : i32
    %c0_i32_1 = arith.constant 0 : i32
    return %arg0, %c0_i32, %c0_i32_0 : i32, i32, i32
  }
  func.func @transform_2(%arg0: i32) -> (i32, i32, i32) {
    %c0_i32 = arith.constant 0 : i32
    %c0_i32_0 = arith.constant 0 : i32
    %c0_i32_1 = arith.constant 0 : i32
    return %arg0, %c0_i32, %c0_i32_0 : i32, i32, i32
  }
  func.func @transform_3(%arg0: i32) -> (i32, i32, i32) {
    %c0_i32 = arith.constant 0 : i32
    %c0_i32_0 = arith.constant 0 : i32
    %c0_i32_1 = arith.constant 0 : i32
    return %arg0, %c0_i32, %c0_i32_0 : i32, i32, i32
  }
  func.func @transform_4(%arg0: i32) -> (i32, i32, i32) {
    %c0_i32 = arith.constant 0 : i32
    %c0_i32_0 = arith.constant 0 : i32
    %c0_i32_1 = arith.constant 0 : i32
    return %arg0, %c0_i32, %c0_i32_0 : i32, i32, i32
  }
  func.func @transform_5(%arg0: i32) -> (i32, i32, i32) {
    %c0_i32 = arith.constant 0 : i32
    %c0_i32_0 = arith.constant 0 : i32
    %c0_i32_1 = arith.constant 0 : i32
    %c0_i32_2 = arith.constant 0 : i32
    return %c0_i32, %c0_i32_0, %c0_i32_1 : i32, i32, i32
  }
  func.func @transform_6(%arg0: i32) -> (i32, i32) {
    %c0_i32 = arith.constant 0 : i32
    %c0_i32_0 = arith.constant 0 : i32
    %c0_i32_1 = arith.constant 0 : i32
    return %c0_i32, %c0_i32_0 : i32, i32
  }
  func.func @transform_7(%arg0: i32) -> (i32, i32) {
    %c0_i32 = arith.constant 0 : i32
    %c0_i32_0 = arith.constant 0 : i32
    %c0_i32_1 = arith.constant 0 : i32
    return %c0_i32, %c0_i32_0 : i32, i32
  }
  func.func @transform_8(%arg0: i32) -> (i32, i32) {
    %c0_i32 = arith.constant 0 : i32
    %c0_i32_0 = arith.constant 0 : i32
    %c0_i32_1 = arith.constant 0 : i32
    return %c0_i32, %c0_i32_0 : i32, i32
  }
  func.func @transform_9(%arg0: i32) -> (i32, i32, i32) {
    %c0_i32 = arith.constant 0 : i32
    %c0_i32_0 = arith.constant 0 : i32
    %c0_i32_1 = arith.constant 0 : i32
    %c0_i32_2 = arith.constant 0 : i32
    return %c0_i32, %c0_i32_0, %c0_i32_1 : i32, i32, i32
  }
  func.func @transform_10(%arg0: i32) -> (i32, i32) {
    %c0_i32 = arith.constant 0 : i32
    %c0_i32_0 = arith.constant 0 : i32
    %c0_i32_1 = arith.constant 0 : i32
    return %c0_i32, %c0_i32_0 : i32, i32
  }
  func.func @transform_11(%arg0: i32) -> (i32, i32) {
    %c0_i32 = arith.constant 0 : i32
    %c0_i32_0 = arith.constant 0 : i32
    %c0_i32_1 = arith.constant 0 : i32
    return %c0_i32, %c0_i32_0 : i32, i32
  }
  func.func @transform_12(%arg0: i32) -> (i32, i32) {
    %c0_i32 = arith.constant 0 : i32
    %c0_i32_0 = arith.constant 0 : i32
    %c0_i32_1 = arith.constant 0 : i32
    return %c0_i32, %c0_i32_0 : i32, i32
  }
  func.func @transform_13(%arg0: i32) -> (i32, i32, i32) {
    %c0_i32 = arith.constant 0 : i32
    %c0_i32_0 = arith.constant 0 : i32
    %c0_i32_1 = arith.constant 0 : i32
    return %arg0, %c0_i32, %c0_i32_0 : i32, i32, i32
  }
}

module attributes {stable_mosaic.version = 11 : i64} {
  func.func @emotion_block_kernel(%arg0: i32, %arg1: memref<1x8x32xf32, #tpu.memory_space<vmem>>, %arg2: memref<1x8x32xf32, #tpu.memory_space<vmem>>, %arg3: memref<1x1x32xf32, #tpu.memory_space<vmem>>, %arg4: memref<1x1x32xf32, #tpu.memory_space<vmem>>, %arg5: memref<1x8x8xf32, #tpu.memory_space<vmem>>, %arg6: memref<4x32x32xf32, #tpu.memory_space<vmem>>, %arg7: memref<4x32xf32, #tpu.memory_space<vmem>>, %arg8: memref<2x32xf32, #tpu.memory_space<vmem>>, %arg9: memref<2x32xf32, #tpu.memory_space<vmem>>, %arg10: memref<2x32x32xf32, #tpu.memory_space<vmem>>, %arg11: memref<2x32xf32, #tpu.memory_space<vmem>>, %arg12: memref<32x32xf32, #tpu.memory_space<vmem>>, %arg13: memref<1x32xf32, #tpu.memory_space<vmem>>, %arg14: memref<1x8x32xf32, #tpu.memory_space<vmem>>) attributes {dimension_semantics = [#tpu.dimension_semantics<parallel>], iteration_bounds = array<i64: 2>, scalar_prefetch = 0 : i64, scratch_operands = 0 : i64, tpu.core_type = #tpu.core_type<tc>, window_params = [{transform_indices = @transform_0, window_bounds = array<i64: 1, 8, 32>}, {transform_indices = @transform_1, window_bounds = array<i64: 1, 8, 32>}, {transform_indices = @transform_2, window_bounds = array<i64: 1, 1, 32>}, {transform_indices = @transform_3, window_bounds = array<i64: 1, 1, 32>}, {transform_indices = @transform_4, window_bounds = array<i64: 1, 8, 8>}, {pipeline_mode = #tpu.pipeline_mode<synchronous>, transform_indices = @transform_5, window_bounds = array<i64: 4, 32, 32>}, {pipeline_mode = #tpu.pipeline_mode<synchronous>, transform_indices = @transform_6, window_bounds = array<i64: 4, 32>}, {pipeline_mode = #tpu.pipeline_mode<synchronous>, transform_indices = @transform_7, window_bounds = array<i64: 2, 32>}, {pipeline_mode = #tpu.pipeline_mode<synchronous>, transform_indices = @transform_8, window_bounds = array<i64: 2, 32>}, {pipeline_mode = #tpu.pipeline_mode<synchronous>, transform_indices = @transform_9, window_bounds = array<i64: 2, 32, 32>}, {pipeline_mode = #tpu.pipeline_mode<synchronous>, transform_indices = @transform_10, window_bounds = array<i64: 2, 32>}, {pipeline_mode = #tpu.pipeline_mode<synchronous>, transform_indices = @transform_11, window_bounds = array<i64: 32, 32>}, {pipeline_mode = #tpu.pipeline_mode<synchronous>, transform_indices = @transform_12, window_bounds = array<i64: 1, 32>}, {transform_indices = @transform_13, window_bounds = array<i64: 1, 8, 32>}]} {
    %c0 = arith.constant 0 : index
    %c0_0 = arith.constant 0 : index
    %c0_1 = arith.constant 0 : index
    %0 = vector.load %arg1[%c0, %c0_0, %c0_1] : memref<1x8x32xf32, #tpu.memory_space<vmem>>, vector<1x8x32xf32>
    %1 = vector.shape_cast %0 : vector<1x8x32xf32> to vector<8x32xf32>
    %c0_2 = arith.constant 0 : index
    %c0_3 = arith.constant 0 : index
    %c0_4 = arith.constant 0 : index
    %2 = vector.load %arg2[%c0_2, %c0_3, %c0_4] : memref<1x8x32xf32, #tpu.memory_space<vmem>>, vector<1x8x32xf32>
    %3 = vector.shape_cast %2 : vector<1x8x32xf32> to vector<8x32xf32>
    %4 = arith.addf %1, %3 : vector<8x32xf32>
    %c0_5 = arith.constant 0 : index
    %c0_6 = arith.constant 0 : index
    %c0_7 = arith.constant 0 : index
    %5 = vector.load %arg3[%c0_5, %c0_6, %c0_7] : memref<1x1x32xf32, #tpu.memory_space<vmem>>, vector<1x1x32xf32>
    %6 = vector.shape_cast %5 : vector<1x1x32xf32> to vector<1x32xf32>
    %7 = vector.broadcast %6 : vector<1x32xf32> to vector<8x32xf32>
    %8 = arith.addf %4, %7 : vector<8x32xf32>
    %c0_8 = arith.constant 0 : index
    %c0_9 = arith.constant 0 : index
    %c0_10 = arith.constant 0 : index
    %9 = vector.load %arg4[%c0_8, %c0_9, %c0_10] : memref<1x1x32xf32, #tpu.memory_space<vmem>>, vector<1x1x32xf32>
    %10 = vector.shape_cast %9 : vector<1x1x32xf32> to vector<1x32xf32>
    %11 = vector.broadcast %10 : vector<1x32xf32> to vector<8x32xf32>
    %12 = arith.addf %8, %11 : vector<8x32xf32>
    %c0_11 = arith.constant 0 : index
    %c0_12 = arith.constant 0 : index
    %c0_13 = arith.constant 0 : index
    %13 = vector.load %arg6[%c0_11, %c0_12, %c0_13] : memref<4x32x32xf32, #tpu.memory_space<vmem>>, vector<4x32x32xf32>
    %c0_14 = arith.constant 0 : index
    %c0_15 = arith.constant 0 : index
    %14 = vector.load %arg7[%c0_14, %c0_15] : memref<4x32xf32, #tpu.memory_space<vmem>>, vector<4x32xf32>
    %c0_16 = arith.constant 0 : index
    %c0_17 = arith.constant 0 : index
    %15 = vector.load %arg8[%c0_16, %c0_17] : memref<2x32xf32, #tpu.memory_space<vmem>>, vector<2x32xf32>
    %c0_18 = arith.constant 0 : index
    %c0_19 = arith.constant 0 : index
    %16 = vector.load %arg9[%c0_18, %c0_19] : memref<2x32xf32, #tpu.memory_space<vmem>>, vector<2x32xf32>
    %c0_20 = arith.constant 0 : index
    %c0_21 = arith.constant 0 : index
    %c0_22 = arith.constant 0 : index
    %17 = vector.load %arg10[%c0_20, %c0_21, %c0_22] : memref<2x32x32xf32, #tpu.memory_space<vmem>>, vector<2x32x32xf32>
    %c0_23 = arith.constant 0 : index
    %c0_24 = arith.constant 0 : index
    %18 = vector.load %arg11[%c0_23, %c0_24] : memref<2x32xf32, #tpu.memory_space<vmem>>, vector<2x32xf32>
    %c0_25 = arith.constant 0 : index
    %c0_26 = arith.constant 0 : index
    %c0_27 = arith.constant 0 : index
    %19 = vector.load %arg5[%c0_25, %c0_26, %c0_27] : memref<1x8x8xf32, #tpu.memory_space<vmem>>, vector<1x8x8xf32>
    %20 = vector.shape_cast %19 : vector<1x8x8xf32> to vector<8x8xf32>
    %21 = vector.extract_strided_slice %13 {offsets = [0, 0, 0], sizes = [1, 32, 32], strides = [1, 1, 1]} : vector<4x32x32xf32> to vector<1x32x32xf32>
    %22 = vector.shape_cast %21 : vector<1x32x32xf32> to vector<32x32xf32>
    %cst = arith.constant dense<0.000000e+00> : vector<8x32xf32>
    %23 = tpu.matmul %12, %22, %cst {dimension_numbers = #tpu.dot_dimension_numbers<[1], [0], [0], [1], [0, 0, 1, 1], [], []>} : vector<8x32xf32>, vector<32x32xf32>, vector<8x32xf32> -> vector<8x32xf32>
    %24 = vector.extract_strided_slice %14 {offsets = [0, 0], sizes = [1, 32], strides = [1, 1]} : vector<4x32xf32> to vector<1x32xf32>
    %25 = vector.broadcast %24 : vector<1x32xf32> to vector<8x32xf32>
    %26 = arith.addf %23, %25 : vector<8x32xf32>
    %27 = vector.extract_strided_slice %13 {offsets = [1, 0, 0], sizes = [1, 32, 32], strides = [1, 1, 1]} : vector<4x32x32xf32> to vector<1x32x32xf32>
    %28 = vector.shape_cast %27 : vector<1x32x32xf32> to vector<32x32xf32>
    %cst_28 = arith.constant dense<0.000000e+00> : vector<8x32xf32>
    %29 = tpu.matmul %12, %28, %cst_28 {dimension_numbers = #tpu.dot_dimension_numbers<[1], [0], [0], [1], [0, 0, 1, 1], [], []>} : vector<8x32xf32>, vector<32x32xf32>, vector<8x32xf32> -> vector<8x32xf32>
    %30 = vector.extract_strided_slice %14 {offsets = [1, 0], sizes = [1, 32], strides = [1, 1]} : vector<4x32xf32> to vector<1x32xf32>
    %31 = vector.broadcast %30 : vector<1x32xf32> to vector<8x32xf32>
    %32 = arith.addf %29, %31 : vector<8x32xf32>
    %33 = vector.extract_strided_slice %13 {offsets = [2, 0, 0], sizes = [1, 32, 32], strides = [1, 1, 1]} : vector<4x32x32xf32> to vector<1x32x32xf32>
    %34 = vector.shape_cast %33 : vector<1x32x32xf32> to vector<32x32xf32>
    %cst_29 = arith.constant dense<0.000000e+00> : vector<8x32xf32>
    %35 = tpu.matmul %12, %34, %cst_29 {dimension_numbers = #tpu.dot_dimension_numbers<[1], [0], [0], [1], [0, 0, 1, 1], [], []>} : vector<8x32xf32>, vector<32x32xf32>, vector<8x32xf32> -> vector<8x32xf32>
    %36 = vector.extract_strided_slice %14 {offsets = [2, 0], sizes = [1, 32], strides = [1, 1]} : vector<4x32xf32> to vector<1x32xf32>
    %37 = vector.broadcast %36 : vector<1x32xf32> to vector<8x32xf32>
    %38 = arith.addf %35, %37 : vector<8x32xf32>
    %cst_30 = arith.constant dense<0.000000e+00> : vector<8x8xf32>
    %39 = tpu.matmul %26, %32, %cst_30 {dimension_numbers = #tpu.dot_dimension_numbers<[1], [1], [0], [0], [0, 0, 1, 0], [], []>} : vector<8x32xf32>, vector<8x32xf32>, vector<8x8xf32> -> vector<8x8xf32>
    %cst_31 = arith.constant 0.176776692 : f32
    %40 = vector.broadcast %cst_31 : f32 to vector<8x8xf32>
    %41 = arith.mulf %39, %40 : vector<8x8xf32>
    %cst_32 = arith.constant 5.000000e-01 : f32
    %42 = vector.broadcast %cst_32 : f32 to vector<8x8xf32>
    %43 = arith.cmpf ogt, %20, %42 : vector<8x8xf32>
    %cst_33 = arith.constant -1.000000e+09 : f32
    %44 = vector.broadcast %cst_33 : f32 to vector<8x8xf32>
    %45 = arith.select %43, %44, %41 : vector<8x8xi1>, vector<8x8xf32>
    %cst_34 = arith.constant dense<0xFF800000> : vector<8xf32>
    %46 = vector.multi_reduction <maximumf>, %45, %cst_34 [1] : vector<8x8xf32> to vector<8xf32>
    %47 = vector.shape_cast %46 : vector<8xf32> to vector<8x1xf32>
    %48 = vector.broadcast %47 : vector<8x1xf32> to vector<8x8xf32>
    %49 = arith.subf %45, %48 : vector<8x8xf32>
    %50 = math.exp %49 : vector<8x8xf32>
    %cst_35 = arith.constant dense<0.000000e+00> : vector<8xf32>
    %51 = vector.multi_reduction <add>, %50, %cst_35 [1] : vector<8x8xf32> to vector<8xf32>
    %52 = vector.shape_cast %51 : vector<8xf32> to vector<8x1xf32>
    %53 = vector.broadcast %52 : vector<8x1xf32> to vector<8x8xf32>
    %54 = arith.divf %50, %53 : vector<8x8xf32>
    %cst_36 = arith.constant dense<0.000000e+00> : vector<8x32xf32>
    %55 = tpu.matmul %54, %38, %cst_36 {dimension_numbers = #tpu.dot_dimension_numbers<[1], [0], [0], [1], [0, 0, 1, 1], [], []>} : vector<8x8xf32>, vector<8x32xf32>, vector<8x32xf32> -> vector<8x32xf32>
    %56 = vector.extract_strided_slice %13 {offsets = [3, 0, 0], sizes = [1, 32, 32], strides = [1, 1, 1]} : vector<4x32x32xf32> to vector<1x32x32xf32>
    %57 = vector.shape_cast %56 : vector<1x32x32xf32> to vector<32x32xf32>
    %cst_37 = arith.constant dense<0.000000e+00> : vector<8x32xf32>
    %58 = tpu.matmul %55, %57, %cst_37 {dimension_numbers = #tpu.dot_dimension_numbers<[1], [0], [0], [1], [0, 0, 1, 1], [], []>} : vector<8x32xf32>, vector<32x32xf32>, vector<8x32xf32> -> vector<8x32xf32>
    %59 = vector.extract_strided_slice %14 {offsets = [3, 0], sizes = [1, 32], strides = [1, 1]} : vector<4x32xf32> to vector<1x32xf32>
    %60 = vector.broadcast %59 : vector<1x32xf32> to vector<8x32xf32>
    %61 = arith.addf %58, %60 : vector<8x32xf32>
    %62 = arith.addf %12, %61 : vector<8x32xf32>
    %63 = vector.extract_strided_slice %15 {offsets = [0, 0], sizes = [1, 32], strides = [1, 1]} : vector<2x32xf32> to vector<1x32xf32>
    %64 = vector.extract_strided_slice %16 {offsets = [0, 0], sizes = [1, 32], strides = [1, 1]} : vector<2x32xf32> to vector<1x32xf32>
    %cst_38 = arith.constant dense<0.000000e+00> : vector<8xf32>
    %65 = vector.multi_reduction <add>, %62, %cst_38 [1] : vector<8x32xf32> to vector<8xf32>
    %66 = vector.shape_cast %65 : vector<8xf32> to vector<8x1xf32>
    %cst_39 = arith.constant 3.200000e+01 : f32
    %67 = vector.broadcast %cst_39 : f32 to vector<8x1xf32>
    %68 = arith.divf %66, %67 : vector<8x1xf32>
    %69 = vector.broadcast %68 : vector<8x1xf32> to vector<8x32xf32>
    %70 = arith.subf %62, %69 : vector<8x32xf32>
    %71 = arith.mulf %70, %70 : vector<8x32xf32>
    %cst_40 = arith.constant dense<0.000000e+00> : vector<8xf32>
    %72 = vector.multi_reduction <add>, %71, %cst_40 [1] : vector<8x32xf32> to vector<8xf32>
    %73 = vector.shape_cast %72 : vector<8xf32> to vector<8x1xf32>
    %cst_41 = arith.constant 3.200000e+01 : f32
    %74 = vector.broadcast %cst_41 : f32 to vector<8x1xf32>
    %75 = arith.divf %73, %74 : vector<8x1xf32>
    %76 = vector.broadcast %68 : vector<8x1xf32> to vector<8x32xf32>
    %77 = arith.subf %62, %76 : vector<8x32xf32>
    %cst_42 = arith.constant 9.99999974E-6 : f32
    %78 = vector.broadcast %cst_42 : f32 to vector<8x1xf32>
    %79 = arith.addf %75, %78 : vector<8x1xf32>
    %80 = math.rsqrt %79 : vector<8x1xf32>
    %81 = vector.broadcast %80 : vector<8x1xf32> to vector<8x32xf32>
    %82 = arith.mulf %77, %81 : vector<8x32xf32>
    %83 = vector.broadcast %63 : vector<1x32xf32> to vector<8x32xf32>
    %84 = arith.mulf %82, %83 : vector<8x32xf32>
    %85 = vector.broadcast %64 : vector<1x32xf32> to vector<8x32xf32>
    %86 = arith.addf %84, %85 : vector<8x32xf32>
    %87 = vector.extract_strided_slice %17 {offsets = [0, 0, 0], sizes = [1, 32, 32], strides = [1, 1, 1]} : vector<2x32x32xf32> to vector<1x32x32xf32>
    %88 = vector.shape_cast %87 : vector<1x32x32xf32> to vector<32x32xf32>
    %cst_43 = arith.constant dense<0.000000e+00> : vector<8x32xf32>
    %89 = tpu.matmul %86, %88, %cst_43 {dimension_numbers = #tpu.dot_dimension_numbers<[1], [0], [0], [1], [0, 0, 1, 1], [], []>} : vector<8x32xf32>, vector<32x32xf32>, vector<8x32xf32> -> vector<8x32xf32>
    %90 = vector.extract_strided_slice %18 {offsets = [0, 0], sizes = [1, 32], strides = [1, 1]} : vector<2x32xf32> to vector<1x32xf32>
    %91 = vector.broadcast %90 : vector<1x32xf32> to vector<8x32xf32>
    %92 = arith.addf %89, %91 : vector<8x32xf32>
    %cst_44 = arith.constant 0.000000e+00 : f32
    %93 = vector.broadcast %cst_44 : f32 to vector<8x32xf32>
    %94 = arith.maximumf %92, %93 : vector<8x32xf32>
    %95 = vector.extract_strided_slice %17 {offsets = [1, 0, 0], sizes = [1, 32, 32], strides = [1, 1, 1]} : vector<2x32x32xf32> to vector<1x32x32xf32>
    %96 = vector.shape_cast %95 : vector<1x32x32xf32> to vector<32x32xf32>
    %cst_45 = arith.constant dense<0.000000e+00> : vector<8x32xf32>
    %97 = tpu.matmul %94, %96, %cst_45 {dimension_numbers = #tpu.dot_dimension_numbers<[1], [0], [0], [1], [0, 0, 1, 1], [], []>} : vector<8x32xf32>, vector<32x32xf32>, vector<8x32xf32> -> vector<8x32xf32>
    %98 = vector.extract_strided_slice %18 {offsets = [1, 0], sizes = [1, 32], strides = [1, 1]} : vector<2x32xf32> to vector<1x32xf32>
    %99 = vector.broadcast %98 : vector<1x32xf32> to vector<8x32xf32>
    %100 = arith.addf %97, %99 : vector<8x32xf32>
    %cst_46 = arith.constant 0.000000e+00 : f32
    %101 = vector.broadcast %cst_46 : f32 to vector<8x32xf32>
    %102 = arith.maximumf %100, %101 : vector<8x32xf32>
    %103 = arith.addf %86, %102 : vector<8x32xf32>
    %104 = vector.extract_strided_slice %15 {offsets = [1, 0], sizes = [1, 32], strides = [1, 1]} : vector<2x32xf32> to vector<1x32xf32>
    %105 = vector.extract_strided_slice %16 {offsets = [1, 0], sizes = [1, 32], strides = [1, 1]} : vector<2x32xf32> to vector<1x32xf32>
    %cst_47 = arith.constant dense<0.000000e+00> : vector<8xf32>
    %106 = vector.multi_reduction <add>, %103, %cst_47 [1] : vector<8x32xf32> to vector<8xf32>
    %107 = vector.shape_cast %106 : vector<8xf32> to vector<8x1xf32>
    %cst_48 = arith.constant 3.200000e+01 : f32
    %108 = vector.broadcast %cst_48 : f32 to vector<8x1xf32>
    %109 = arith.divf %107, %108 : vector<8x1xf32>
    %110 = vector.broadcast %109 : vector<8x1xf32> to vector<8x32xf32>
    %111 = arith.subf %103, %110 : vector<8x32xf32>
    %112 = arith.mulf %111, %111 : vector<8x32xf32>
    %cst_49 = arith.constant dense<0.000000e+00> : vector<8xf32>
    %113 = vector.multi_reduction <add>, %112, %cst_49 [1] : vector<8x32xf32> to vector<8xf32>
    %114 = vector.shape_cast %113 : vector<8xf32> to vector<8x1xf32>
    %cst_50 = arith.constant 3.200000e+01 : f32
    %115 = vector.broadcast %cst_50 : f32 to vector<8x1xf32>
    %116 = arith.divf %114, %115 : vector<8x1xf32>
    %117 = vector.broadcast %109 : vector<8x1xf32> to vector<8x32xf32>
    %118 = arith.subf %103, %117 : vector<8x32xf32>
    %cst_51 = arith.constant 9.99999974E-6 : f32
    %119 = vector.broadcast %cst_51 : f32 to vector<8x1xf32>
    %120 = arith.addf %116, %119 : vector<8x1xf32>
    %121 = math.rsqrt %120 : vector<8x1xf32>
    %122 = vector.broadcast %121 : vector<8x1xf32> to vector<8x32xf32>
    %123 = arith.mulf %118, %122 : vector<8x32xf32>
    %124 = vector.broadcast %104 : vector<1x32xf32> to vector<8x32xf32>
    %125 = arith.mulf %123, %124 : vector<8x32xf32>
    %126 = vector.broadcast %105 : vector<1x32xf32> to vector<8x32xf32>
    %127 = arith.addf %125, %126 : vector<8x32xf32>
    %c0_52 = arith.constant 0 : index
    %c0_53 = arith.constant 0 : index
    %128 = vector.load %arg12[%c0_52, %c0_53] : memref<32x32xf32, #tpu.memory_space<vmem>>, vector<32x32xf32>
    %cst_54 = arith.constant dense<0.000000e+00> : vector<8x32xf32>
    %129 = tpu.matmul %127, %128, %cst_54 {dimension_numbers = #tpu.dot_dimension_numbers<[1], [0], [0], [1], [0, 0, 1, 1], [], []>} : vector<8x32xf32>, vector<32x32xf32>, vector<8x32xf32> -> vector<8x32xf32>
    %c0_55 = arith.constant 0 : index
    %c0_56 = arith.constant 0 : index
    %130 = vector.load %arg13[%c0_55, %c0_56] : memref<1x32xf32, #tpu.memory_space<vmem>>, vector<1x32xf32>
    %131 = vector.broadcast %130 : vector<1x32xf32> to vector<8x32xf32>
    %132 = arith.addf %129, %131 : vector<8x32xf32>
    %c0_57 = arith.constant 0 : index
    %c0_58 = arith.constant 0 : index
    %c0_59 = arith.constant 0 : index
    %133 = vector.load %arg14[%c0_57, %c0_58, %c0_59] : memref<1x8x32xf32, #tpu.memory_space<vmem>>, vector<1x8x32xf32>
    %134 = vector.shape_cast %133 : vector<1x8x32xf32> to vector<8x32xf32>
    %135 = vector.shape_cast %132 : vector<8x32xf32> to vector<1x8x32xf32>
    tpu.vector_store %arg14[%c0_57, %c0_58, %c0_59], %135 {strides = array<i32>} : memref<1x8x32xf32, #tpu.memory_space<vmem>>, vector<1x8x32xf32>,
    return
  }
  func.func @transform_0(%arg0: i32) -> (i32, i32, i32) {
    %c0_i32 = arith.constant 0 : i32
    %c0_i32_0 = arith.constant 0 : i32
    %c0_i32_1 = arith.constant 0 : i32
    return %arg0, %c0_i32, %c0_i32_0 : i32, i32, i32
  }
  func.func @transform_1(%arg0: i32) -> (i32, i32, i32) {
    %c0_i32 = arith.constant 0 : i32
    %c0_i32_0 = arith.constant 0 : i32
    %c0_i32_1 = arith.constant 0 : i32
    return %arg0, %c0_i32, %c0_i32_0 : i32, i32, i32
  }
  func.func @transform_2(%arg0: i32) -> (i32, i32, i32) {
    %c0_i32 = arith.constant 0 : i32
    %c0_i32_0 = arith.constant 0 : i32
    %c0_i32_1 = arith.constant 0 : i32
    return %arg0, %c0_i32, %c0_i32_0 : i32, i32, i32
  }
  func.func @transform_3(%arg0: i32) -> (i32, i32, i32) {
    %c0_i32 = arith.constant 0 : i32
    %c0_i32_0 = arith.constant 0 : i32
    %c0_i32_1 = arith.constant 0 : i32
    return %arg0, %c0_i32, %c0_i32_0 : i32, i32, i32
  }
  func.func @transform_4(%arg0: i32) -> (i32, i32, i32) {
    %c0_i32 = arith.constant 0 : i32
    %c0_i32_0 = arith.constant 0 : i32
    %c0_i32_1 = arith.constant 0 : i32
    return %arg0, %c0_i32, %c0_i32_0 : i32, i32, i32
  }
  func.func @transform_5(%arg0: i32) -> (i32, i32, i32) {
    %c0_i32 = arith.constant 0 : i32
    %c0_i32_0 = arith.constant 0 : i32
    %c0_i32_1 = arith.constant 0 : i32
    %c0_i32_2 = arith.constant 0 : i32
    return %c0_i32, %c0_i32_0, %c0_i32_1 : i32, i32, i32
  }
  func.func @transform_6(%arg0: i32) -> (i32, i32) {
    %c0_i32 = arith.constant 0 : i32
    %c0_i32_0 = arith.constant 0 : i32
    %c0_i32_1 = arith.constant 0 : i32
    return %c0_i32, %c0_i32_0 : i32, i32
  }
  func.func @transform_7(%arg0: i32) -> (i32, i32) {
    %c0_i32 = arith.constant 0 : i32
    %c0_i32_0 = arith.constant 0 : i32
    %c0_i32_1 = arith.constant 0 : i32
    return %c0_i32, %c0_i32_0 : i32, i32
  }
  func.func @transform_8(%arg0: i32) -> (i32, i32) {
    %c0_i32 = arith.constant 0 : i32
    %c0_i32_0 = arith.constant 0 : i32
    %c0_i32_1 = arith.constant 0 : i32
    return %c0_i32, %c0_i32_0 : i32, i32
  }
  func.func @transform_9(%arg0: i32) -> (i32, i32, i32) {
    %c0_i32 = arith.constant 0 : i32
    %c0_i32_0 = arith.constant 0 : i32
    %c0_i32_1 = arith.constant 0 : i32
    %c0_i32_2 = arith.constant 0 : i32
    return %c0_i32, %c0_i32_0, %c0_i32_1 : i32, i32, i32
  }
  func.func @transform_10(%arg0: i32) -> (i32, i32) {
    %c0_i32 = arith.constant 0 : i32
    %c0_i32_0 = arith.constant 0 : i32
    %c0_i32_1 = arith.constant 0 : i32
    return %c0_i32, %c0_i32_0 : i32, i32
  }
  func.func @transform_11(%arg0: i32) -> (i32, i32) {
    %c0_i32 = arith.constant 0 : i32
    %c0_i32_0 = arith.constant 0 : i32
    %c0_i32_1 = arith.constant 0 : i32
    return %c0_i32, %c0_i32_0 : i32, i32
  }
  func.func @transform_12(%arg0: i32) -> (i32, i32) {
    %c0_i32 = arith.constant 0 : i32
    %c0_i32_0 = arith.constant 0 : i32
    %c0_i32_1 = arith.constant 0 : i32
    return %c0_i32, %c0_i32_0 : i32, i32
  }
  func.func @transform_13(%arg0: i32) -> (i32, i32, i32) {
    %c0_i32 = arith.constant 0 : i32
    %c0_i32_0 = arith.constant 0 : i32
    %c0_i32_1 = arith.constant 0 : i32
    return %arg0, %c0_i32, %c0_i32_0 : i32, i32, i32
  }
}

module attributes {stable_mosaic.version = 11 : i64} {
  func.func @context_block_kernel(%arg0: i32, %arg1: memref<1x8x32xf32, #tpu.memory_space<vmem>>, %arg2: memref<1x8x32xf32, #tpu.memory_space<vmem>>, %arg3: memref<1x8x32xf32, #tpu.memory_space<vmem>>, %arg4: memref<1x8x8xf32, #tpu.memory_space<vmem>>, %arg5: memref<4x32x32xf32, #tpu.memory_space<vmem>>, %arg6: memref<4x32xf32, #tpu.memory_space<vmem>>, %arg7: memref<2x32xf32, #tpu.memory_space<vmem>>, %arg8: memref<2x32xf32, #tpu.memory_space<vmem>>, %arg9: memref<1x32x32xf32, #tpu.memory_space<vmem>>, %arg10: memref<1x32xf32, #tpu.memory_space<vmem>>, %arg11: memref<1x8x32xf32, #tpu.memory_space<vmem>>) attributes {dimension_semantics = [#tpu.dimension_semantics<parallel>], iteration_bounds = array<i64: 2>, scalar_prefetch = 0 : i64, scratch_operands = 0 : i64, tpu.core_type = #tpu.core_type<tc>, window_params = [{transform_indices = @transform_0, window_bounds = array<i64: 1, 8, 32>}, {transform_indices = @transform_1, window_bounds = array<i64: 1, 8, 32>}, {transform_indices = @transform_2, window_bounds = array<i64: 1, 8, 32>}, {transform_indices = @transform_3, window_bounds = array<i64: 1, 8, 8>}, {pipeline_mode = #tpu.pipeline_mode<synchronous>, transform_indices = @transform_4, window_bounds = array<i64: 4, 32, 32>}, {pipeline_mode = #tpu.pipeline_mode<synchronous>, transform_indices = @transform_5, window_bounds = array<i64: 4, 32>}, {pipeline_mode = #tpu.pipeline_mode<synchronous>, transform_indices = @transform_6, window_bounds = array<i64: 2, 32>}, {pipeline_mode = #tpu.pipeline_mode<synchronous>, transform_indices = @transform_7, window_bounds = array<i64: 2, 32>}, {pipeline_mode = #tpu.pipeline_mode<synchronous>, transform_indices = @transform_8, window_bounds = array<i64: 1, 32, 32>}, {pipeline_mode = #tpu.pipeline_mode<synchronous>, transform_indices = @transform_9, window_bounds = array<i64: 1, 32>}, {transform_indices = @transform_10, window_bounds = array<i64: 1, 8, 32>}]} {
    %c0 = arith.constant 0 : index
    %c0_0 = arith.constant 0 : index
    %c0_1 = arith.constant 0 : index
    %0 = vector.load %arg1[%c0, %c0_0, %c0_1] : memref<1x8x32xf32, #tpu.memory_space<vmem>>, vector<1x8x32xf32>
    %1 = vector.shape_cast %0 : vector<1x8x32xf32> to vector<8x32xf32>
    %c0_2 = arith.constant 0 : index
    %c0_3 = arith.constant 0 : index
    %c0_4 = arith.constant 0 : index
    %2 = vector.load %arg2[%c0_2, %c0_3, %c0_4] : memref<1x8x32xf32, #tpu.memory_space<vmem>>, vector<1x8x32xf32>
    %3 = vector.shape_cast %2 : vector<1x8x32xf32> to vector<8x32xf32>
    %4 = arith.addf %1, %3 : vector<8x32xf32>
    %c0_5 = arith.constant 0 : index
    %c0_6 = arith.constant 0 : index
    %c0_7 = arith.constant 0 : index
    %5 = vector.load %arg3[%c0_5, %c0_6, %c0_7] : memref<1x8x32xf32, #tpu.memory_space<vmem>>, vector<1x8x32xf32>
    %6 = vector.shape_cast %5 : vector<1x8x32xf32> to vector<8x32xf32>
    %7 = arith.addf %4, %6 : vector<8x32xf32>
    %c0_8 = arith.constant 0 : index
    %c0_9 = arith.constant 0 : index
    %c0_10 = arith.constant 0 : index
    %8 = vector.load %arg5[%c0_8, %c0_9, %c0_10] : memref<4x32x32xf32, #tpu.memory_space<vmem>>, vector<4x32x32xf32>
    %c0_11 = arith.constant 0 : index
    %c0_12 = arith.constant 0 : index
    %9 = vector.load %arg6[%c0_11, %c0_12] : memref<4x32xf32, #tpu.memory_space<vmem>>, vector<4x32xf32>
    %c0_13 = arith.constant 0 : index
    %c0_14 = arith.constant 0 : index
    %10 = vector.load %arg7[%c0_13, %c0_14] : memref<2x32xf32, #tpu.memory_space<vmem>>, vector<2x32xf32>
    %c0_15 = arith.constant 0 : index
    %c0_16 = arith.constant 0 : index
    %11 = vector.load %arg8[%c0_15, %c0_16] : memref<2x32xf32, #tpu.memory_space<vmem>>, vector<2x32xf32>
    %c0_17 = arith.constant 0 : index
    %c0_18 = arith.constant 0 : index
    %c0_19 = arith.constant 0 : index
    %12 = vector.load %arg9[%c0_17, %c0_18, %c0_19] : memref<1x32x32xf32, #tpu.memory_space<vmem>>, vector<1x32x32xf32>
    %c0_20 = arith.constant 0 : index
    %c0_21 = arith.constant 0 : index
    %13 = vector.load %arg10[%c0_20, %c0_21] : memref<1x32xf32, #tpu.memory_space<vmem>>, vector<1x32xf32>
    %c0_22 = arith.constant 0 : index
    %c0_23 = arith.constant 0 : index
    %c0_24 = arith.constant 0 : index
    %14 = vector.load %arg4[%c0_22, %c0_23, %c0_24] : memref<1x8x8xf32, #tpu.memory_space<vmem>>, vector<1x8x8xf32>
    %15 = vector.shape_cast %14 : vector<1x8x8xf32> to vector<8x8xf32>
    %16 = vector.extract_strided_slice %8 {offsets = [0, 0, 0], sizes = [1, 32, 32], strides = [1, 1, 1]} : vector<4x32x32xf32> to vector<1x32x32xf32>
    %17 = vector.shape_cast %16 : vector<1x32x32xf32> to vector<32x32xf32>
    %cst = arith.constant dense<0.000000e+00> : vector<8x32xf32>
    %18 = tpu.matmul %7, %17, %cst {dimension_numbers = #tpu.dot_dimension_numbers<[1], [0], [0], [1], [0, 0, 1, 1], [], []>} : vector<8x32xf32>, vector<32x32xf32>, vector<8x32xf32> -> vector<8x32xf32>
    %19 = vector.extract_strided_slice %9 {offsets = [0, 0], sizes = [1, 32], strides = [1, 1]} : vector<4x32xf32> to vector<1x32xf32>
    %20 = vector.broadcast %19 : vector<1x32xf32> to vector<8x32xf32>
    %21 = arith.addf %18, %20 : vector<8x32xf32>
    %22 = vector.extract_strided_slice %8 {offsets = [1, 0, 0], sizes = [1, 32, 32], strides = [1, 1, 1]} : vector<4x32x32xf32> to vector<1x32x32xf32>
    %23 = vector.shape_cast %22 : vector<1x32x32xf32> to vector<32x32xf32>
    %cst_25 = arith.constant dense<0.000000e+00> : vector<8x32xf32>
    %24 = tpu.matmul %7, %23, %cst_25 {dimension_numbers = #tpu.dot_dimension_numbers<[1], [0], [0], [1], [0, 0, 1, 1], [], []>} : vector<8x32xf32>, vector<32x32xf32>, vector<8x32xf32> -> vector<8x32xf32>
    %25 = vector.extract_strided_slice %9 {offsets = [1, 0], sizes = [1, 32], strides = [1, 1]} : vector<4x32xf32> to vector<1x32xf32>
    %26 = vector.broadcast %25 : vector<1x32xf32> to vector<8x32xf32>
    %27 = arith.addf %24, %26 : vector<8x32xf32>
    %28 = vector.extract_strided_slice %8 {offsets = [2, 0, 0], sizes = [1, 32, 32], strides = [1, 1, 1]} : vector<4x32x32xf32> to vector<1x32x32xf32>
    %29 = vector.shape_cast %28 : vector<1x32x32xf32> to vector<32x32xf32>
    %cst_26 = arith.constant dense<0.000000e+00> : vector<8x32xf32>
    %30 = tpu.matmul %7, %29, %cst_26 {dimension_numbers = #tpu.dot_dimension_numbers<[1], [0], [0], [1], [0, 0, 1, 1], [], []>} : vector<8x32xf32>, vector<32x32xf32>, vector<8x32xf32> -> vector<8x32xf32>
    %31 = vector.extract_strided_slice %9 {offsets = [2, 0], sizes = [1, 32], strides = [1, 1]} : vector<4x32xf32> to vector<1x32xf32>
    %32 = vector.broadcast %31 : vector<1x32xf32> to vector<8x32xf32>
    %33 = arith.addf %30, %32 : vector<8x32xf32>
    %cst_27 = arith.constant dense<0.000000e+00> : vector<8x8xf32>
    %34 = tpu.matmul %21, %27, %cst_27 {dimension_numbers = #tpu.dot_dimension_numbers<[1], [1], [0], [0], [0, 0, 1, 0], [], []>} : vector<8x32xf32>, vector<8x32xf32>, vector<8x8xf32> -> vector<8x8xf32>
    %cst_28 = arith.constant 0.176776692 : f32
    %35 = vector.broadcast %cst_28 : f32 to vector<8x8xf32>
    %36 = arith.mulf %34, %35 : vector<8x8xf32>
    %cst_29 = arith.constant 5.000000e-01 : f32
    %37 = vector.broadcast %cst_29 : f32 to vector<8x8xf32>
    %38 = arith.cmpf ogt, %15, %37 : vector<8x8xf32>
    %cst_30 = arith.constant -1.000000e+09 : f32
    %39 = vector.broadcast %cst_30 : f32 to vector<8x8xf32>
    %40 = arith.select %38, %39, %36 : vector<8x8xi1>, vector<8x8xf32>
    %cst_31 = arith.constant dense<0xFF800000> : vector<8xf32>
    %41 = vector.multi_reduction <maximumf>, %40, %cst_31 [1] : vector<8x8xf32> to vector<8xf32>
    %42 = vector.shape_cast %41 : vector<8xf32> to vector<8x1xf32>
    %43 = vector.broadcast %42 : vector<8x1xf32> to vector<8x8xf32>
    %44 = arith.subf %40, %43 : vector<8x8xf32>
    %45 = math.exp %44 : vector<8x8xf32>
    %cst_32 = arith.constant dense<0.000000e+00> : vector<8xf32>
    %46 = vector.multi_reduction <add>, %45, %cst_32 [1] : vector<8x8xf32> to vector<8xf32>
    %47 = vector.shape_cast %46 : vector<8xf32> to vector<8x1xf32>
    %48 = vector.broadcast %47 : vector<8x1xf32> to vector<8x8xf32>
    %49 = arith.divf %45, %48 : vector<8x8xf32>
    %cst_33 = arith.constant dense<0.000000e+00> : vector<8x32xf32>
    %50 = tpu.matmul %49, %33, %cst_33 {dimension_numbers = #tpu.dot_dimension_numbers<[1], [0], [0], [1], [0, 0, 1, 1], [], []>} : vector<8x8xf32>, vector<8x32xf32>, vector<8x32xf32> -> vector<8x32xf32>
    %51 = vector.extract_strided_slice %8 {offsets = [3, 0, 0], sizes = [1, 32, 32], strides = [1, 1, 1]} : vector<4x32x32xf32> to vector<1x32x32xf32>
    %52 = vector.shape_cast %51 : vector<1x32x32xf32> to vector<32x32xf32>
    %cst_34 = arith.constant dense<0.000000e+00> : vector<8x32xf32>
    %53 = tpu.matmul %50, %52, %cst_34 {dimension_numbers = #tpu.dot_dimension_numbers<[1], [0], [0], [1], [0, 0, 1, 1], [], []>} : vector<8x32xf32>, vector<32x32xf32>, vector<8x32xf32> -> vector<8x32xf32>
    %54 = vector.extract_strided_slice %9 {offsets = [3, 0], sizes = [1, 32], strides = [1, 1]} : vector<4x32xf32> to vector<1x32xf32>
    %55 = vector.broadcast %54 : vector<1x32xf32> to vector<8x32xf32>
    %56 = arith.addf %53, %55 : vector<8x32xf32>
    %57 = arith.addf %7, %56 : vector<8x32xf32>
    %58 = vector.extract_strided_slice %10 {offsets = [0, 0], sizes = [1, 32], strides = [1, 1]} : vector<2x32xf32> to vector<1x32xf32>
    %59 = vector.extract_strided_slice %11 {offsets = [0, 0], sizes = [1, 32], strides = [1, 1]} : vector<2x32xf32> to vector<1x32xf32>
    %cst_35 = arith.constant dense<0.000000e+00> : vector<8xf32>
    %60 = vector.multi_reduction <add>, %57, %cst_35 [1] : vector<8x32xf32> to vector<8xf32>
    %61 = vector.shape_cast %60 : vector<8xf32> to vector<8x1xf32>
    %cst_36 = arith.constant 3.200000e+01 : f32
    %62 = vector.broadcast %cst_36 : f32 to vector<8x1xf32>
    %63 = arith.divf %61, %62 : vector<8x1xf32>
    %64 = vector.broadcast %63 : vector<8x1xf32> to vector<8x32xf32>
    %65 = arith.subf %57, %64 : vector<8x32xf32>
    %66 = arith.mulf %65, %65 : vector<8x32xf32>
    %cst_37 = arith.constant dense<0.000000e+00> : vector<8xf32>
    %67 = vector.multi_reduction <add>, %66, %cst_37 [1] : vector<8x32xf32> to vector<8xf32>
    %68 = vector.shape_cast %67 : vector<8xf32> to vector<8x1xf32>
    %cst_38 = arith.constant 3.200000e+01 : f32
    %69 = vector.broadcast %cst_38 : f32 to vector<8x1xf32>
    %70 = arith.divf %68, %69 : vector<8x1xf32>
    %71 = vector.broadcast %63 : vector<8x1xf32> to vector<8x32xf32>
    %72 = arith.subf %57, %71 : vector<8x32xf32>
    %cst_39 = arith.constant 9.99999974E-6 : f32
    %73 = vector.broadcast %cst_39 : f32 to vector<8x1xf32>
    %74 = arith.addf %70, %73 : vector<8x1xf32>
    %75 = math.rsqrt %74 : vector<8x1xf32>
    %76 = vector.broadcast %75 : vector<8x1xf32> to vector<8x32xf32>
    %77 = arith.mulf %72, %76 : vector<8x32xf32>
    %78 = vector.broadcast %58 : vector<1x32xf32> to vector<8x32xf32>
    %79 = arith.mulf %77, %78 : vector<8x32xf32>
    %80 = vector.broadcast %59 : vector<1x32xf32> to vector<8x32xf32>
    %81 = arith.addf %79, %80 : vector<8x32xf32>
    %82 = vector.shape_cast %12 : vector<1x32x32xf32> to vector<32x32xf32>
    %cst_40 = arith.constant dense<0.000000e+00> : vector<8x32xf32>
    %83 = tpu.matmul %81, %82, %cst_40 {dimension_numbers = #tpu.dot_dimension_numbers<[1], [0], [0], [1], [0, 0, 1, 1], [], []>} : vector<8x32xf32>, vector<32x32xf32>, vector<8x32xf32> -> vector<8x32xf32>
    %84 = vector.broadcast %13 : vector<1x32xf32> to vector<8x32xf32>
    %85 = arith.addf %83, %84 : vector<8x32xf32>
    %cst_41 = arith.constant 0.000000e+00 : f32
    %86 = vector.broadcast %cst_41 : f32 to vector<8x32xf32>
    %87 = arith.maximumf %85, %86 : vector<8x32xf32>
    %88 = arith.addf %81, %87 : vector<8x32xf32>
    %89 = vector.extract_strided_slice %10 {offsets = [1, 0], sizes = [1, 32], strides = [1, 1]} : vector<2x32xf32> to vector<1x32xf32>
    %90 = vector.extract_strided_slice %11 {offsets = [1, 0], sizes = [1, 32], strides = [1, 1]} : vector<2x32xf32> to vector<1x32xf32>
    %cst_42 = arith.constant dense<0.000000e+00> : vector<8xf32>
    %91 = vector.multi_reduction <add>, %88, %cst_42 [1] : vector<8x32xf32> to vector<8xf32>
    %92 = vector.shape_cast %91 : vector<8xf32> to vector<8x1xf32>
    %cst_43 = arith.constant 3.200000e+01 : f32
    %93 = vector.broadcast %cst_43 : f32 to vector<8x1xf32>
    %94 = arith.divf %92, %93 : vector<8x1xf32>
    %95 = vector.broadcast %94 : vector<8x1xf32> to vector<8x32xf32>
    %96 = arith.subf %88, %95 : vector<8x32xf32>
    %97 = arith.mulf %96, %96 : vector<8x32xf32>
    %cst_44 = arith.constant dense<0.000000e+00> : vector<8xf32>
    %98 = vector.multi_reduction <add>, %97, %cst_44 [1] : vector<8x32xf32> to vector<8xf32>
    %99 = vector.shape_cast %98 : vector<8xf32> to vector<8x1xf32>
    %cst_45 = arith.constant 3.200000e+01 : f32
    %100 = vector.broadcast %cst_45 : f32 to vector<8x1xf32>
    %101 = arith.divf %99, %100 : vector<8x1xf32>
    %102 = vector.broadcast %94 : vector<8x1xf32> to vector<8x32xf32>
    %103 = arith.subf %88, %102 : vector<8x32xf32>
    %cst_46 = arith.constant 9.99999974E-6 : f32
    %104 = vector.broadcast %cst_46 : f32 to vector<8x1xf32>
    %105 = arith.addf %101, %104 : vector<8x1xf32>
    %106 = math.rsqrt %105 : vector<8x1xf32>
    %107 = vector.broadcast %106 : vector<8x1xf32> to vector<8x32xf32>
    %108 = arith.mulf %103, %107 : vector<8x32xf32>
    %109 = vector.broadcast %89 : vector<1x32xf32> to vector<8x32xf32>
    %110 = arith.mulf %108, %109 : vector<8x32xf32>
    %111 = vector.broadcast %90 : vector<1x32xf32> to vector<8x32xf32>
    %112 = arith.addf %110, %111 : vector<8x32xf32>
    %c0_47 = arith.constant 0 : index
    %c0_48 = arith.constant 0 : index
    %c0_49 = arith.constant 0 : index
    %113 = vector.load %arg11[%c0_47, %c0_48, %c0_49] : memref<1x8x32xf32, #tpu.memory_space<vmem>>, vector<1x8x32xf32>
    %114 = vector.shape_cast %113 : vector<1x8x32xf32> to vector<8x32xf32>
    %115 = vector.shape_cast %112 : vector<8x32xf32> to vector<1x8x32xf32>
    tpu.vector_store %arg11[%c0_47, %c0_48, %c0_49], %115 {strides = array<i32>} : memref<1x8x32xf32, #tpu.memory_space<vmem>>, vector<1x8x32xf32>,
    return
  }
  func.func @transform_0(%arg0: i32) -> (i32, i32, i32) {
    %c0_i32 = arith.constant 0 : i32
    %c0_i32_0 = arith.constant 0 : i32
    %c0_i32_1 = arith.constant 0 : i32
    return %arg0, %c0_i32, %c0_i32_0 : i32, i32, i32
  }
  func.func @transform_1(%arg0: i32) -> (i32, i32, i32) {
    %c0_i32 = arith.constant 0 : i32
    %c0_i32_0 = arith.constant 0 : i32
    %c0_i32_1 = arith.constant 0 : i32
    return %arg0, %c0_i32, %c0_i32_0 : i32, i32, i32
  }
  func.func @transform_2(%arg0: i32) -> (i32, i32, i32) {
    %c0_i32 = arith.constant 0 : i32
    %c0_i32_0 = arith.constant 0 : i32
    %c0_i32_1 = arith.constant 0 : i32
    return %arg0, %c0_i32, %c0_i32_0 : i32, i32, i32
  }
  func.func @transform_3(%arg0: i32) -> (i32, i32, i32) {
    %c0_i32 = arith.constant 0 : i32
    %c0_i32_0 = arith.constant 0 : i32
    %c0_i32_1 = arith.constant 0 : i32
    return %arg0, %c0_i32, %c0_i32_0 : i32, i32, i32
  }
  func.func @transform_4(%arg0: i32) -> (i32, i32, i32) {
    %c0_i32 = arith.constant 0 : i32
    %c0_i32_0 = arith.constant 0 : i32
    %c0_i32_1 = arith.constant 0 : i32
    %c0_i32_2 = arith.constant 0 : i32
    return %c0_i32, %c0_i32_0, %c0_i32_1 : i32, i32, i32
  }
  func.func @transform_5(%arg0: i32) -> (i32, i32) {
    %c0_i32 = arith.constant 0 : i32
    %c0_i32_0 = arith.constant 0 : i32
    %c0_i32_1 = arith.constant 0 : i32
    return %c0_i32, %c0_i32_0 : i32, i32
  }
  func.func @transform_6(%arg0: i32) -> (i32, i32) {
    %c0_i32 = arith.constant 0 : i32
    %c0_i32_0 = arith.constant 0 : i32
    %c0_i32_1 = arith.constant 0 : i32
    return %c0_i32, %c0_i32_0 : i32, i32
  }
  func.func @transform_7(%arg0: i32) -> (i32, i32) {
    %c0_i32 = arith.constant 0 : i32
    %c0_i32_0 = arith.constant 0 : i32
    %c0_i32_1 = arith.constant 0 : i32
    return %c0_i32, %c0_i32_0 : i32, i32
  }
  func.func @transform_8(%arg0: i32) -> (i32, i32, i32) {
    %c0_i32 = arith.constant 0 : i32
    %c0_i32_0 = arith.constant 0 : i32
    %c0_i32_1 = arith.constant 0 : i32
    %c0_i32_2 = arith.constant 0 : i32
    return %c0_i32, %c0_i32_0, %c0_i32_1 : i32, i32, i32
  }
  func.func @transform_9(%arg0: i32) -> (i32, i32) {
    %c0_i32 = arith.constant 0 : i32
    %c0_i32_0 = arith.constant 0 : i32
    %c0_i32_1 = arith.constant 0 : i32
    return %c0_i32, %c0_i32_0 : i32, i32
  }
  func.func @transform_10(%arg0: i32) -> (i32, i32, i32) {
    %c0_i32 = arith.constant 0 : i32
    %c0_i32_0 = arith.constant 0 : i32
    %c0_i32_1 = arith.constant 0 : i32
    return %arg0, %c0_i32, %c0_i32_0 : i32, i32, i32
  }
}

module attributes {stable_mosaic.version = 11 : i64} {
  func.func @emotion_block_kernel(%arg0: i32, %arg1: memref<1x8x32xf32, #tpu.memory_space<vmem>>, %arg2: memref<1x8x32xf32, #tpu.memory_space<vmem>>, %arg3: memref<1x1x32xf32, #tpu.memory_space<vmem>>, %arg4: memref<1x1x32xf32, #tpu.memory_space<vmem>>, %arg5: memref<1x8x8xf32, #tpu.memory_space<vmem>>, %arg6: memref<4x32x32xf32, #tpu.memory_space<vmem>>, %arg7: memref<4x32xf32, #tpu.memory_space<vmem>>, %arg8: memref<2x32xf32, #tpu.memory_space<vmem>>, %arg9: memref<2x32xf32, #tpu.memory_space<vmem>>, %arg10: memref<2x32x32xf32, #tpu.memory_space<vmem>>, %arg11: memref<2x32xf32, #tpu.memory_space<vmem>>, %arg12: memref<32x32xf32, #tpu.memory_space<vmem>>, %arg13: memref<1x32xf32, #tpu.memory_space<vmem>>, %arg14: memref<1x8x32xf32, #tpu.memory_space<vmem>>) attributes {dimension_semantics = [#tpu.dimension_semantics<parallel>], iteration_bounds = array<i64: 2>, scalar_prefetch = 0 : i64, scratch_operands = 0 : i64, tpu.core_type = #tpu.core_type<tc>, window_params = [{transform_indices = @transform_0, window_bounds = array<i64: 1, 8, 32>}, {transform_indices = @transform_1, window_bounds = array<i64: 1, 8, 32>}, {transform_indices = @transform_2, window_bounds = array<i64: 1, 1, 32>}, {transform_indices = @transform_3, window_bounds = array<i64: 1, 1, 32>}, {transform_indices = @transform_4, window_bounds = array<i64: 1, 8, 8>}, {pipeline_mode = #tpu.pipeline_mode<synchronous>, transform_indices = @transform_5, window_bounds = array<i64: 4, 32, 32>}, {pipeline_mode = #tpu.pipeline_mode<synchronous>, transform_indices = @transform_6, window_bounds = array<i64: 4, 32>}, {pipeline_mode = #tpu.pipeline_mode<synchronous>, transform_indices = @transform_7, window_bounds = array<i64: 2, 32>}, {pipeline_mode = #tpu.pipeline_mode<synchronous>, transform_indices = @transform_8, window_bounds = array<i64: 2, 32>}, {pipeline_mode = #tpu.pipeline_mode<synchronous>, transform_indices = @transform_9, window_bounds = array<i64: 2, 32, 32>}, {pipeline_mode = #tpu.pipeline_mode<synchronous>, transform_indices = @transform_10, window_bounds = array<i64: 2, 32>}, {pipeline_mode = #tpu.pipeline_mode<synchronous>, transform_indices = @transform_11, window_bounds = array<i64: 32, 32>}, {pipeline_mode = #tpu.pipeline_mode<synchronous>, transform_indices = @transform_12, window_bounds = array<i64: 1, 32>}, {transform_indices = @transform_13, window_bounds = array<i64: 1, 8, 32>}]} {
    %c0 = arith.constant 0 : index
    %c0_0 = arith.constant 0 : index
    %c0_1 = arith.constant 0 : index
    %0 = vector.load %arg1[%c0, %c0_0, %c0_1] : memref<1x8x32xf32, #tpu.memory_space<vmem>>, vector<1x8x32xf32>
    %1 = vector.shape_cast %0 : vector<1x8x32xf32> to vector<8x32xf32>
    %c0_2 = arith.constant 0 : index
    %c0_3 = arith.constant 0 : index
    %c0_4 = arith.constant 0 : index
    %2 = vector.load %arg2[%c0_2, %c0_3, %c0_4] : memref<1x8x32xf32, #tpu.memory_space<vmem>>, vector<1x8x32xf32>
    %3 = vector.shape_cast %2 : vector<1x8x32xf32> to vector<8x32xf32>
    %4 = arith.addf %1, %3 : vector<8x32xf32>
    %c0_5 = arith.constant 0 : index
    %c0_6 = arith.constant 0 : index
    %c0_7 = arith.constant 0 : index
    %5 = vector.load %arg3[%c0_5, %c0_6, %c0_7] : memref<1x1x32xf32, #tpu.memory_space<vmem>>, vector<1x1x32xf32>
    %6 = vector.shape_cast %5 : vector<1x1x32xf32> to vector<1x32xf32>
    %7 = vector.broadcast %6 : vector<1x32xf32> to vector<8x32xf32>
    %8 = arith.addf %4, %7 : vector<8x32xf32>
    %c0_8 = arith.constant 0 : index
    %c0_9 = arith.constant 0 : index
    %c0_10 = arith.constant 0 : index
    %9 = vector.load %arg4[%c0_8, %c0_9, %c0_10] : memref<1x1x32xf32, #tpu.memory_space<vmem>>, vector<1x1x32xf32>
    %10 = vector.shape_cast %9 : vector<1x1x32xf32> to vector<1x32xf32>
    %11 = vector.broadcast %10 : vector<1x32xf32> to vector<8x32xf32>
    %12 = arith.addf %8, %11 : vector<8x32xf32>
    %c0_11 = arith.constant 0 : index
    %c0_12 = arith.constant 0 : index
    %c0_13 = arith.constant 0 : index
    %13 = vector.load %arg6[%c0_11, %c0_12, %c0_13] : memref<4x32x32xf32, #tpu.memory_space<vmem>>, vector<4x32x32xf32>
    %c0_14 = arith.constant 0 : index
    %c0_15 = arith.constant 0 : index
    %14 = vector.load %arg7[%c0_14, %c0_15] : memref<4x32xf32, #tpu.memory_space<vmem>>, vector<4x32xf32>
    %c0_16 = arith.constant 0 : index
    %c0_17 = arith.constant 0 : index
    %15 = vector.load %arg8[%c0_16, %c0_17] : memref<2x32xf32, #tpu.memory_space<vmem>>, vector<2x32xf32>
    %c0_18 = arith.constant 0 : index
    %c0_19 = arith.constant 0 : index
    %16 = vector.load %arg9[%c0_18, %c0_19] : memref<2x32xf32, #tpu.memory_space<vmem>>, vector<2x32xf32>
    %c0_20 = arith.constant 0 : index
    %c0_21 = arith.constant 0 : index
    %c0_22 = arith.constant 0 : index
    %17 = vector.load %arg10[%c0_20, %c0_21, %c0_22] : memref<2x32x32xf32, #tpu.memory_space<vmem>>, vector<2x32x32xf32>
    %c0_23 = arith.constant 0 : index
    %c0_24 = arith.constant 0 : index
    %18 = vector.load %arg11[%c0_23, %c0_24] : memref<2x32xf32, #tpu.memory_space<vmem>>, vector<2x32xf32>
    %c0_25 = arith.constant 0 : index
    %c0_26 = arith.constant 0 : index
    %c0_27 = arith.constant 0 : index
    %19 = vector.load %arg5[%c0_25, %c0_26, %c0_27] : memref<1x8x8xf32, #tpu.memory_space<vmem>>, vector<1x8x8xf32>
    %20 = vector.shape_cast %19 : vector<1x8x8xf32> to vector<8x8xf32>
    %21 = vector.extract_strided_slice %13 {offsets = [0, 0, 0], sizes = [1, 32, 32], strides = [1, 1, 1]} : vector<4x32x32xf32> to vector<1x32x32xf32>
    %22 = vector.shape_cast %21 : vector<1x32x32xf32> to vector<32x32xf32>
    %cst = arith.constant dense<0.000000e+00> : vector<8x32xf32>
    %23 = tpu.matmul %12, %22, %cst {dimension_numbers = #tpu.dot_dimension_numbers<[1], [0], [0], [1], [0, 0, 1, 1], [], []>} : vector<8x32xf32>, vector<32x32xf32>, vector<8x32xf32> -> vector<8x32xf32>
    %24 = vector.extract_strided_slice %14 {offsets = [0, 0], sizes = [1, 32], strides = [1, 1]} : vector<4x32xf32> to vector<1x32xf32>
    %25 = vector.broadcast %24 : vector<1x32xf32> to vector<8x32xf32>
    %26 = arith.addf %23, %25 : vector<8x32xf32>
    %27 = vector.extract_strided_slice %13 {offsets = [1, 0, 0], sizes = [1, 32, 32], strides = [1, 1, 1]} : vector<4x32x32xf32> to vector<1x32x32xf32>
    %28 = vector.shape_cast %27 : vector<1x32x32xf32> to vector<32x32xf32>
    %cst_28 = arith.constant dense<0.000000e+00> : vector<8x32xf32>
    %29 = tpu.matmul %12, %28, %cst_28 {dimension_numbers = #tpu.dot_dimension_numbers<[1], [0], [0], [1], [0, 0, 1, 1], [], []>} : vector<8x32xf32>, vector<32x32xf32>, vector<8x32xf32> -> vector<8x32xf32>
    %30 = vector.extract_strided_slice %14 {offsets = [1, 0], sizes = [1, 32], strides = [1, 1]} : vector<4x32xf32> to vector<1x32xf32>
    %31 = vector.broadcast %30 : vector<1x32xf32> to vector<8x32xf32>
    %32 = arith.addf %29, %31 : vector<8x32xf32>
    %33 = vector.extract_strided_slice %13 {offsets = [2, 0, 0], sizes = [1, 32, 32], strides = [1, 1, 1]} : vector<4x32x32xf32> to vector<1x32x32xf32>
    %34 = vector.shape_cast %33 : vector<1x32x32xf32> to vector<32x32xf32>
    %cst_29 = arith.constant dense<0.000000e+00> : vector<8x32xf32>
    %35 = tpu.matmul %12, %34, %cst_29 {dimension_numbers = #tpu.dot_dimension_numbers<[1], [0], [0], [1], [0, 0, 1, 1], [], []>} : vector<8x32xf32>, vector<32x32xf32>, vector<8x32xf32> -> vector<8x32xf32>
    %36 = vector.extract_strided_slice %14 {offsets = [2, 0], sizes = [1, 32], strides = [1, 1]} : vector<4x32xf32> to vector<1x32xf32>
    %37 = vector.broadcast %36 : vector<1x32xf32> to vector<8x32xf32>
    %38 = arith.addf %35, %37 : vector<8x32xf32>
    %cst_30 = arith.constant dense<0.000000e+00> : vector<8x8xf32>
    %39 = tpu.matmul %26, %32, %cst_30 {dimension_numbers = #tpu.dot_dimension_numbers<[1], [1], [0], [0], [0, 0, 1, 0], [], []>} : vector<8x32xf32>, vector<8x32xf32>, vector<8x8xf32> -> vector<8x8xf32>
    %cst_31 = arith.constant 0.176776692 : f32
    %40 = vector.broadcast %cst_31 : f32 to vector<8x8xf32>
    %41 = arith.mulf %39, %40 : vector<8x8xf32>
    %cst_32 = arith.constant 5.000000e-01 : f32
    %42 = vector.broadcast %cst_32 : f32 to vector<8x8xf32>
    %43 = arith.cmpf ogt, %20, %42 : vector<8x8xf32>
    %cst_33 = arith.constant -1.000000e+09 : f32
    %44 = vector.broadcast %cst_33 : f32 to vector<8x8xf32>
    %45 = arith.select %43, %44, %41 : vector<8x8xi1>, vector<8x8xf32>
    %cst_34 = arith.constant dense<0xFF800000> : vector<8xf32>
    %46 = vector.multi_reduction <maximumf>, %45, %cst_34 [1] : vector<8x8xf32> to vector<8xf32>
    %47 = vector.shape_cast %46 : vector<8xf32> to vector<8x1xf32>
    %48 = vector.broadcast %47 : vector<8x1xf32> to vector<8x8xf32>
    %49 = arith.subf %45, %48 : vector<8x8xf32>
    %50 = math.exp %49 : vector<8x8xf32>
    %cst_35 = arith.constant dense<0.000000e+00> : vector<8xf32>
    %51 = vector.multi_reduction <add>, %50, %cst_35 [1] : vector<8x8xf32> to vector<8xf32>
    %52 = vector.shape_cast %51 : vector<8xf32> to vector<8x1xf32>
    %53 = vector.broadcast %52 : vector<8x1xf32> to vector<8x8xf32>
    %54 = arith.divf %50, %53 : vector<8x8xf32>
    %cst_36 = arith.constant dense<0.000000e+00> : vector<8x32xf32>
    %55 = tpu.matmul %54, %38, %cst_36 {dimension_numbers = #tpu.dot_dimension_numbers<[1], [0], [0], [1], [0, 0, 1, 1], [], []>} : vector<8x8xf32>, vector<8x32xf32>, vector<8x32xf32> -> vector<8x32xf32>
    %56 = vector.extract_strided_slice %13 {offsets = [3, 0, 0], sizes = [1, 32, 32], strides = [1, 1, 1]} : vector<4x32x32xf32> to vector<1x32x32xf32>
    %57 = vector.shape_cast %56 : vector<1x32x32xf32> to vector<32x32xf32>
    %cst_37 = arith.constant dense<0.000000e+00> : vector<8x32xf32>
    %58 = tpu.matmul %55, %57, %cst_37 {dimension_numbers = #tpu.dot_dimension_numbers<[1], [0], [0], [1], [0, 0, 1, 1], [], []>} : vector<8x32xf32>, vector<32x32xf32>, vector<8x32xf32> -> vector<8x32xf32>
    %59 = vector.extract_strided_slice %14 {offsets = [3, 0], sizes = [1, 32], strides = [1, 1]} : vector<4x32xf32> to vector<1x32xf32>
    %60 = vector.broadcast %59 : vector<1x32xf32> to vector<8x32xf32>
    %61 = arith.addf %58, %60 : vector<8x32xf32>
    %62 = arith.addf %12, %61 : vector<8x32xf32>
    %63 = vector.extract_strided_slice %15 {offsets = [0, 0], sizes = [1, 32], strides = [1, 1]} : vector<2x32xf32> to vector<1x32xf32>
    %64 = vector.extract_strided_slice %16 {offsets = [0, 0], sizes = [1, 32], strides = [1, 1]} : vector<2x32xf32> to vector<1x32xf32>
    %cst_38 = arith.constant dense<0.000000e+00> : vector<8xf32>
    %65 = vector.multi_reduction <add>, %62, %cst_38 [1] : vector<8x32xf32> to vector<8xf32>
    %66 = vector.shape_cast %65 : vector<8xf32> to vector<8x1xf32>
    %cst_39 = arith.constant 3.200000e+01 : f32
    %67 = vector.broadcast %cst_39 : f32 to vector<8x1xf32>
    %68 = arith.divf %66, %67 : vector<8x1xf32>
    %69 = vector.broadcast %68 : vector<8x1xf32> to vector<8x32xf32>
    %70 = arith.subf %62, %69 : vector<8x32xf32>
    %71 = arith.mulf %70, %70 : vector<8x32xf32>
    %cst_40 = arith.constant dense<0.000000e+00> : vector<8xf32>
    %72 = vector.multi_reduction <add>, %71, %cst_40 [1] : vector<8x32xf32> to vector<8xf32>
    %73 = vector.shape_cast %72 : vector<8xf32> to vector<8x1xf32>
    %cst_41 = arith.constant 3.200000e+01 : f32
    %74 = vector.broadcast %cst_41 : f32 to vector<8x1xf32>
    %75 = arith.divf %73, %74 : vector<8x1xf32>
    %76 = vector.broadcast %68 : vector<8x1xf32> to vector<8x32xf32>
    %77 = arith.subf %62, %76 : vector<8x32xf32>
    %cst_42 = arith.constant 9.99999974E-6 : f32
    %78 = vector.broadcast %cst_42 : f32 to vector<8x1xf32>
    %79 = arith.addf %75, %78 : vector<8x1xf32>
    %80 = math.rsqrt %79 : vector<8x1xf32>
    %81 = vector.broadcast %80 : vector<8x1xf32> to vector<8x32xf32>
    %82 = arith.mulf %77, %81 : vector<8x32xf32>
    %83 = vector.broadcast %63 : vector<1x32xf32> to vector<8x32xf32>
    %84 = arith.mulf %82, %83 : vector<8x32xf32>
    %85 = vector.broadcast %64 : vector<1x32xf32> to vector<8x32xf32>
    %86 = arith.addf %84, %85 : vector<8x32xf32>
    %87 = vector.extract_strided_slice %17 {offsets = [0, 0, 0], sizes = [1, 32, 32], strides = [1, 1, 1]} : vector<2x32x32xf32> to vector<1x32x32xf32>
    %88 = vector.shape_cast %87 : vector<1x32x32xf32> to vector<32x32xf32>
    %cst_43 = arith.constant dense<0.000000e+00> : vector<8x32xf32>
    %89 = tpu.matmul %86, %88, %cst_43 {dimension_numbers = #tpu.dot_dimension_numbers<[1], [0], [0], [1], [0, 0, 1, 1], [], []>} : vector<8x32xf32>, vector<32x32xf32>, vector<8x32xf32> -> vector<8x32xf32>
    %90 = vector.extract_strided_slice %18 {offsets = [0, 0], sizes = [1, 32], strides = [1, 1]} : vector<2x32xf32> to vector<1x32xf32>
    %91 = vector.broadcast %90 : vector<1x32xf32> to vector<8x32xf32>
    %92 = arith.addf %89, %91 : vector<8x32xf32>
    %cst_44 = arith.constant 0.000000e+00 : f32
    %93 = vector.broadcast %cst_44 : f32 to vector<8x32xf32>
    %94 = arith.maximumf %92, %93 : vector<8x32xf32>
    %95 = vector.extract_strided_slice %17 {offsets = [1, 0, 0], sizes = [1, 32, 32], strides = [1, 1, 1]} : vector<2x32x32xf32> to vector<1x32x32xf32>
    %96 = vector.shape_cast %95 : vector<1x32x32xf32> to vector<32x32xf32>
    %cst_45 = arith.constant dense<0.000000e+00> : vector<8x32xf32>
    %97 = tpu.matmul %94, %96, %cst_45 {dimension_numbers = #tpu.dot_dimension_numbers<[1], [0], [0], [1], [0, 0, 1, 1], [], []>} : vector<8x32xf32>, vector<32x32xf32>, vector<8x32xf32> -> vector<8x32xf32>
    %98 = vector.extract_strided_slice %18 {offsets = [1, 0], sizes = [1, 32], strides = [1, 1]} : vector<2x32xf32> to vector<1x32xf32>
    %99 = vector.broadcast %98 : vector<1x32xf32> to vector<8x32xf32>
    %100 = arith.addf %97, %99 : vector<8x32xf32>
    %cst_46 = arith.constant 0.000000e+00 : f32
    %101 = vector.broadcast %cst_46 : f32 to vector<8x32xf32>
    %102 = arith.maximumf %100, %101 : vector<8x32xf32>
    %103 = arith.addf %86, %102 : vector<8x32xf32>
    %104 = vector.extract_strided_slice %15 {offsets = [1, 0], sizes = [1, 32], strides = [1, 1]} : vector<2x32xf32> to vector<1x32xf32>
    %105 = vector.extract_strided_slice %16 {offsets = [1, 0], sizes = [1, 32], strides = [1, 1]} : vector<2x32xf32> to vector<1x32xf32>
    %cst_47 = arith.constant dense<0.000000e+00> : vector<8xf32>
    %106 = vector.multi_reduction <add>, %103, %cst_47 [1] : vector<8x32xf32> to vector<8xf32>
    %107 = vector.shape_cast %106 : vector<8xf32> to vector<8x1xf32>
    %cst_48 = arith.constant 3.200000e+01 : f32
    %108 = vector.broadcast %cst_48 : f32 to vector<8x1xf32>
    %109 = arith.divf %107, %108 : vector<8x1xf32>
    %110 = vector.broadcast %109 : vector<8x1xf32> to vector<8x32xf32>
    %111 = arith.subf %103, %110 : vector<8x32xf32>
    %112 = arith.mulf %111, %111 : vector<8x32xf32>
    %cst_49 = arith.constant dense<0.000000e+00> : vector<8xf32>
    %113 = vector.multi_reduction <add>, %112, %cst_49 [1] : vector<8x32xf32> to vector<8xf32>
    %114 = vector.shape_cast %113 : vector<8xf32> to vector<8x1xf32>
    %cst_50 = arith.constant 3.200000e+01 : f32
    %115 = vector.broadcast %cst_50 : f32 to vector<8x1xf32>
    %116 = arith.divf %114, %115 : vector<8x1xf32>
    %117 = vector.broadcast %109 : vector<8x1xf32> to vector<8x32xf32>
    %118 = arith.subf %103, %117 : vector<8x32xf32>
    %cst_51 = arith.constant 9.99999974E-6 : f32
    %119 = vector.broadcast %cst_51 : f32 to vector<8x1xf32>
    %120 = arith.addf %116, %119 : vector<8x1xf32>
    %121 = math.rsqrt %120 : vector<8x1xf32>
    %122 = vector.broadcast %121 : vector<8x1xf32> to vector<8x32xf32>
    %123 = arith.mulf %118, %122 : vector<8x32xf32>
    %124 = vector.broadcast %104 : vector<1x32xf32> to vector<8x32xf32>
    %125 = arith.mulf %123, %124 : vector<8x32xf32>
    %126 = vector.broadcast %105 : vector<1x32xf32> to vector<8x32xf32>
    %127 = arith.addf %125, %126 : vector<8x32xf32>
    %c0_52 = arith.constant 0 : index
    %c0_53 = arith.constant 0 : index
    %128 = vector.load %arg12[%c0_52, %c0_53] : memref<32x32xf32, #tpu.memory_space<vmem>>, vector<32x32xf32>
    %cst_54 = arith.constant dense<0.000000e+00> : vector<8x32xf32>
    %129 = tpu.matmul %127, %128, %cst_54 {dimension_numbers = #tpu.dot_dimension_numbers<[1], [0], [0], [1], [0, 0, 1, 1], [], []>} : vector<8x32xf32>, vector<32x32xf32>, vector<8x32xf32> -> vector<8x32xf32>
    %c0_55 = arith.constant 0 : index
    %c0_56 = arith.constant 0 : index
    %130 = vector.load %arg13[%c0_55, %c0_56] : memref<1x32xf32, #tpu.memory_space<vmem>>, vector<1x32xf32>
    %131 = vector.broadcast %130 : vector<1x32xf32> to vector<8x32xf32>
    %132 = arith.addf %129, %131 : vector<8x32xf32>
    %c0_57 = arith.constant 0 : index
    %c0_58 = arith.constant 0 : index
    %c0_59 = arith.constant 0 : index
    %133 = vector.load %arg14[%c0_57, %c0_58, %c0_59] : memref<1x8x32xf32, #tpu.memory_space<vmem>>, vector<1x8x32xf32>
    %134 = vector.shape_cast %133 : vector<1x8x32xf32> to vector<8x32xf32>
    %135 = vector.shape_cast %132 : vector<8x32xf32> to vector<1x8x32xf32>
    tpu.vector_store %arg14[%c0_57, %c0_58, %c0_59], %135 {strides = array<i32>} : memref<1x8x32xf32, #tpu.memory_space<vmem>>, vector<1x8x32xf32>,
    return
  }
  func.func @transform_0(%arg0: i32) -> (i32, i32, i32) {
    %c0_i32 = arith.constant 0 : i32
    %c0_i32_0 = arith.constant 0 : i32
    %c0_i32_1 = arith.constant 0 : i32
    return %arg0, %c0_i32, %c0_i32_0 : i32, i32, i32
  }
  func.func @transform_1(%arg0: i32) -> (i32, i32, i32) {
    %c0_i32 = arith.constant 0 : i32
    %c0_i32_0 = arith.constant 0 : i32
    %c0_i32_1 = arith.constant 0 : i32
    return %arg0, %c0_i32, %c0_i32_0 : i32, i32, i32
  }
  func.func @transform_2(%arg0: i32) -> (i32, i32, i32) {
    %c0_i32 = arith.constant 0 : i32
    %c0_i32_0 = arith.constant 0 : i32
    %c0_i32_1 = arith.constant 0 : i32
    return %arg0, %c0_i32, %c0_i32_0 : i32, i32, i32
  }
  func.func @transform_3(%arg0: i32) -> (i32, i32, i32) {
    %c0_i32 = arith.constant 0 : i32
    %c0_i32_0 = arith.constant 0 : i32
    %c0_i32_1 = arith.constant 0 : i32
    return %arg0, %c0_i32, %c0_i32_0 : i32, i32, i32
  }
  func.func @transform_4(%arg0: i32) -> (i32, i32, i32) {
    %c0_i32 = arith.constant 0 : i32
    %c0_i32_0 = arith.constant 0 : i32
    %c0_i32_1 = arith.constant 0 : i32
    return %arg0, %c0_i32, %c0_i32_0 : i32, i32, i32
  }
  func.func @transform_5(%arg0: i32) -> (i32, i32, i32) {
    %c0_i32 = arith.constant 0 : i32
    %c0_i32_0 = arith.constant 0 : i32
    %c0_i32_1 = arith.constant 0 : i32
    %c0_i32_2 = arith.constant 0 : i32
    return %c0_i32, %c0_i32_0, %c0_i32_1 : i32, i32, i32
  }
  func.func @transform_6(%arg0: i32) -> (i32, i32) {
    %c0_i32 = arith.constant 0 : i32
    %c0_i32_0 = arith.constant 0 : i32
    %c0_i32_1 = arith.constant 0 : i32
    return %c0_i32, %c0_i32_0 : i32, i32
  }
  func.func @transform_7(%arg0: i32) -> (i32, i32) {
    %c0_i32 = arith.constant 0 : i32
    %c0_i32_0 = arith.constant 0 : i32
    %c0_i32_1 = arith.constant 0 : i32
    return %c0_i32, %c0_i32_0 : i32, i32
  }
  func.func @transform_8(%arg0: i32) -> (i32, i32) {
    %c0_i32 = arith.constant 0 : i32
    %c0_i32_0 = arith.constant 0 : i32
    %c0_i32_1 = arith.constant 0 : i32
    return %c0_i32, %c0_i32_0 : i32, i32
  }
  func.func @transform_9(%arg0: i32) -> (i32, i32, i32) {
    %c0_i32 = arith.constant 0 : i32
    %c0_i32_0 = arith.constant 0 : i32
    %c0_i32_1 = arith.constant 0 : i32
    %c0_i32_2 = arith.constant 0 : i32
    return %c0_i32, %c0_i32_0, %c0_i32_1 : i32, i32, i32
  }
  func.func @transform_10(%arg0: i32) -> (i32, i32) {
    %c0_i32 = arith.constant 0 : i32
    %c0_i32_0 = arith.constant 0 : i32
    %c0_i32_1 = arith.constant 0 : i32
    return %c0_i32, %c0_i32_0 : i32, i32
  }
  func.func @transform_11(%arg0: i32) -> (i32, i32) {
    %c0_i32 = arith.constant 0 : i32
    %c0_i32_0 = arith.constant 0 : i32
    %c0_i32_1 = arith.constant 0 : i32
    return %c0_i32, %c0_i32_0 : i32, i32
  }
  func.func @transform_12(%arg0: i32) -> (i32, i32) {
    %c0_i32 = arith.constant 0 : i32
    %c0_i32_0 = arith.constant 0 : i32
    %c0_i32_1 = arith.constant 0 : i32
    return %c0_i32, %c0_i32_0 : i32, i32
  }
  func.func @transform_13(%arg0: i32) -> (i32, i32, i32) {
    %c0_i32 = arith.constant 0 : i32
    %c0_i32_0 = arith.constant 0 : i32
    %c0_i32_1 = arith.constant 0 : i32
    return %arg0, %c0_i32, %c0_i32_0 : i32, i32, i32
  }
}

module attributes {stable_mosaic.version = 11 : i64} {
  func.func @mixer_kernel(%arg0: i32, %arg1: memref<1x8x32xf32, #tpu.memory_space<vmem>>, %arg2: memref<1x8x32xf32, #tpu.memory_space<vmem>>, %arg3: memref<1x8x32xf32, #tpu.memory_space<vmem>>, %arg4: memref<1x8x1xf32, #tpu.memory_space<vmem>>, %arg5: memref<96x32xf32, #tpu.memory_space<vmem>>, %arg6: memref<1x32xf32, #tpu.memory_space<vmem>>, %arg7: memref<96x32xf32, #tpu.memory_space<vmem>>, %arg8: memref<1x32xf32, #tpu.memory_space<vmem>>, %arg9: memref<96x32xf32, #tpu.memory_space<vmem>>, %arg10: memref<1x32xf32, #tpu.memory_space<vmem>>, %arg11: memref<96x32xf32, #tpu.memory_space<vmem>>, %arg12: memref<1x32xf32, #tpu.memory_space<vmem>>, %arg13: memref<32x32xf32, #tpu.memory_space<vmem>>, %arg14: memref<1x32xf32, #tpu.memory_space<vmem>>, %arg15: memref<1x8x32xf32, #tpu.memory_space<vmem>>) attributes {dimension_semantics = [#tpu.dimension_semantics<parallel>], iteration_bounds = array<i64: 2>, scalar_prefetch = 0 : i64, scratch_operands = 0 : i64, tpu.core_type = #tpu.core_type<tc>, window_params = [{transform_indices = @transform_0, window_bounds = array<i64: 1, 8, 32>}, {transform_indices = @transform_1, window_bounds = array<i64: 1, 8, 32>}, {transform_indices = @transform_2, window_bounds = array<i64: 1, 8, 32>}, {transform_indices = @transform_3, window_bounds = array<i64: 1, 8, 1>}, {pipeline_mode = #tpu.pipeline_mode<synchronous>, transform_indices = @transform_4, window_bounds = array<i64: 96, 32>}, {pipeline_mode = #tpu.pipeline_mode<synchronous>, transform_indices = @transform_5, window_bounds = array<i64: 1, 32>}, {pipeline_mode = #tpu.pipeline_mode<synchronous>, transform_indices = @transform_6, window_bounds = array<i64: 96, 32>}, {pipeline_mode = #tpu.pipeline_mode<synchronous>, transform_indices = @transform_7, window_bounds = array<i64: 1, 32>}, {pipeline_mode = #tpu.pipeline_mode<synchronous>, transform_indices = @transform_8, window_bounds = array<i64: 96, 32>}, {pipeline_mode = #tpu.pipeline_mode<synchronous>, transform_indices = @transform_9, window_bounds = array<i64: 1, 32>}, {pipeline_mode = #tpu.pipeline_mode<synchronous>, transform_indices = @transform_10, window_bounds = array<i64: 96, 32>}, {pipeline_mode = #tpu.pipeline_mode<synchronous>, transform_indices = @transform_11, window_bounds = array<i64: 1, 32>}, {pipeline_mode = #tpu.pipeline_mode<synchronous>, transform_indices = @transform_12, window_bounds = array<i64: 32, 32>}, {pipeline_mode = #tpu.pipeline_mode<synchronous>, transform_indices = @transform_13, window_bounds = array<i64: 1, 32>}, {transform_indices = @transform_14, window_bounds = array<i64: 1, 8, 32>}]} {
    %c0 = arith.constant 0 : index
    %c0_0 = arith.constant 0 : index
    %c0_1 = arith.constant 0 : index
    %0 = vector.load %arg1[%c0, %c0_0, %c0_1] : memref<1x8x32xf32, #tpu.memory_space<vmem>>, vector<1x8x32xf32>
    %1 = vector.shape_cast %0 : vector<1x8x32xf32> to vector<8x32xf32>
    %c0_2 = arith.constant 0 : index
    %c0_3 = arith.constant 0 : index
    %c0_4 = arith.constant 0 : index
    %2 = vector.load %arg2[%c0_2, %c0_3, %c0_4] : memref<1x8x32xf32, #tpu.memory_space<vmem>>, vector<1x8x32xf32>
    %3 = vector.shape_cast %2 : vector<1x8x32xf32> to vector<8x32xf32>
    %4 = arith.addf %1, %3 : vector<8x32xf32>
    %c0_5 = arith.constant 0 : index
    %c0_6 = arith.constant 0 : index
    %c0_7 = arith.constant 0 : index
    %5 = vector.load %arg3[%c0_5, %c0_6, %c0_7] : memref<1x8x32xf32, #tpu.memory_space<vmem>>, vector<1x8x32xf32>
    %6 = vector.shape_cast %5 : vector<1x8x32xf32> to vector<8x32xf32>
    %7 = arith.addf %4, %6 : vector<8x32xf32>
    %c0_8 = arith.constant 0 : index
    %c0_9 = arith.constant 0 : index
    %8 = vector.load %arg5[%c0_8, %c0_9] : memref<96x32xf32, #tpu.memory_space<vmem>>, vector<96x32xf32>
    %c0_10 = arith.constant 0 : index
    %c0_11 = arith.constant 0 : index
    %9 = vector.load %arg6[%c0_10, %c0_11] : memref<1x32xf32, #tpu.memory_space<vmem>>, vector<1x32xf32>
    %cst = arith.constant 0.000000e+00 : f32
    %10 = vector.broadcast %cst : f32 to vector<1x32xf32>
    %11 = tpu.concatenate %10, %7, %10 in 0 : vector<1x32xf32>, vector<8x32xf32>, vector<1x32xf32> -> vector<10x32xf32>
    %12 = vector.extract_strided_slice %11 {offsets = [0, 0], sizes = [8, 32], strides = [1, 1]} : vector<10x32xf32> to vector<8x32xf32>
    %13 = vector.extract_strided_slice %11 {offsets = [1, 0], sizes = [8, 32], strides = [1, 1]} : vector<10x32xf32> to vector<8x32xf32>
    %14 = vector.extract_strided_slice %11 {offsets = [2, 0], sizes = [8, 32], strides = [1, 1]} : vector<10x32xf32> to vector<8x32xf32>
    %15 = tpu.concatenate %12, %13, %14 in 1 : vector<8x32xf32>, vector<8x32xf32>, vector<8x32xf32> -> vector<8x96xf32>
    %cst_12 = arith.constant dense<0.000000e+00> : vector<8x32xf32>
    %16 = tpu.matmul %15, %8, %cst_12 {dimension_numbers = #tpu.dot_dimension_numbers<[1], [0], [0], [1], [0, 0, 1, 1], [], []>} : vector<8x96xf32>, vector<96x32xf32>, vector<8x32xf32> -> vector<8x32xf32>
    %17 = vector.broadcast %9 : vector<1x32xf32> to vector<8x32xf32>
    %18 = arith.addf %16, %17 : vector<8x32xf32>
    %cst_13 = arith.constant 0.000000e+00 : f32
    %19 = vector.broadcast %cst_13 : f32 to vector<8x32xf32>
    %20 = arith.maximumf %18, %19 : vector<8x32xf32>
    %c0_14 = arith.constant 0 : index
    %c0_15 = arith.constant 0 : index
    %21 = vector.load %arg7[%c0_14, %c0_15] : memref<96x32xf32, #tpu.memory_space<vmem>>, vector<96x32xf32>
    %c0_16 = arith.constant 0 : index
    %c0_17 = arith.constant 0 : index
    %22 = vector.load %arg8[%c0_16, %c0_17] : memref<1x32xf32, #tpu.memory_space<vmem>>, vector<1x32xf32>
    %cst_18 = arith.constant 0.000000e+00 : f32
    %23 = vector.broadcast %cst_18 : f32 to vector<1x32xf32>
    %24 = tpu.concatenate %23, %20, %23 in 0 : vector<1x32xf32>, vector<8x32xf32>, vector<1x32xf32> -> vector<10x32xf32>
    %25 = vector.extract_strided_slice %24 {offsets = [0, 0], sizes = [8, 32], strides = [1, 1]} : vector<10x32xf32> to vector<8x32xf32>
    %26 = vector.extract_strided_slice %24 {offsets = [1, 0], sizes = [8, 32], strides = [1, 1]} : vector<10x32xf32> to vector<8x32xf32>
    %27 = vector.extract_strided_slice %24 {offsets = [2, 0], sizes = [8, 32], strides = [1, 1]} : vector<10x32xf32> to vector<8x32xf32>
    %28 = tpu.concatenate %25, %26, %27 in 1 : vector<8x32xf32>, vector<8x32xf32>, vector<8x32xf32> -> vector<8x96xf32>
    %cst_19 = arith.constant dense<0.000000e+00> : vector<8x32xf32>
    %29 = tpu.matmul %28, %21, %cst_19 {dimension_numbers = #tpu.dot_dimension_numbers<[1], [0], [0], [1], [0, 0, 1, 1], [], []>} : vector<8x96xf32>, vector<96x32xf32>, vector<8x32xf32> -> vector<8x32xf32>
    %30 = vector.broadcast %22 : vector<1x32xf32> to vector<8x32xf32>
    %31 = arith.addf %29, %30 : vector<8x32xf32>
    %cst_20 = arith.constant 0.000000e+00 : f32
    %32 = vector.broadcast %cst_20 : f32 to vector<8x32xf32>
    %33 = arith.maximumf %31, %32 : vector<8x32xf32>
    %34 = arith.addf %7, %33 : vector<8x32xf32>
    %c0_21 = arith.constant 0 : index
    %c0_22 = arith.constant 0 : index
    %35 = vector.load %arg9[%c0_21, %c0_22] : memref<96x32xf32, #tpu.memory_space<vmem>>, vector<96x32xf32>
    %c0_23 = arith.constant 0 : index
    %c0_24 = arith.constant 0 : index
    %36 = vector.load %arg10[%c0_23, %c0_24] : memref<1x32xf32, #tpu.memory_space<vmem>>, vector<1x32xf32>
    %cst_25 = arith.constant 0.000000e+00 : f32
    %37 = vector.broadcast %cst_25 : f32 to vector<1x32xf32>
    %38 = tpu.concatenate %37, %34, %37 in 0 : vector<1x32xf32>, vector<8x32xf32>, vector<1x32xf32> -> vector<10x32xf32>
    %39 = vector.extract_strided_slice %38 {offsets = [0, 0], sizes = [8, 32], strides = [1, 1]} : vector<10x32xf32> to vector<8x32xf32>
    %40 = vector.extract_strided_slice %38 {offsets = [1, 0], sizes = [8, 32], strides = [1, 1]} : vector<10x32xf32> to vector<8x32xf32>
    %41 = vector.extract_strided_slice %38 {offsets = [2, 0], sizes = [8, 32], strides = [1, 1]} : vector<10x32xf32> to vector<8x32xf32>
    %42 = tpu.concatenate %39, %40, %41 in 1 : vector<8x32xf32>, vector<8x32xf32>, vector<8x32xf32> -> vector<8x96xf32>
    %cst_26 = arith.constant dense<0.000000e+00> : vector<8x32xf32>
    %43 = tpu.matmul %42, %35, %cst_26 {dimension_numbers = #tpu.dot_dimension_numbers<[1], [0], [0], [1], [0, 0, 1, 1], [], []>} : vector<8x96xf32>, vector<96x32xf32>, vector<8x32xf32> -> vector<8x32xf32>
    %44 = vector.broadcast %36 : vector<1x32xf32> to vector<8x32xf32>
    %45 = arith.addf %43, %44 : vector<8x32xf32>
    %cst_27 = arith.constant 0.000000e+00 : f32
    %46 = vector.broadcast %cst_27 : f32 to vector<8x32xf32>
    %47 = arith.maximumf %45, %46 : vector<8x32xf32>
    %c0_28 = arith.constant 0 : index
    %c0_29 = arith.constant 0 : index
    %48 = vector.load %arg11[%c0_28, %c0_29] : memref<96x32xf32, #tpu.memory_space<vmem>>, vector<96x32xf32>
    %c0_30 = arith.constant 0 : index
    %c0_31 = arith.constant 0 : index
    %49 = vector.load %arg12[%c0_30, %c0_31] : memref<1x32xf32, #tpu.memory_space<vmem>>, vector<1x32xf32>
    %cst_32 = arith.constant 0.000000e+00 : f32
    %50 = vector.broadcast %cst_32 : f32 to vector<1x32xf32>
    %51 = tpu.concatenate %50, %47, %50 in 0 : vector<1x32xf32>, vector<8x32xf32>, vector<1x32xf32> -> vector<10x32xf32>
    %52 = vector.extract_strided_slice %51 {offsets = [0, 0], sizes = [8, 32], strides = [1, 1]} : vector<10x32xf32> to vector<8x32xf32>
    %53 = vector.extract_strided_slice %51 {offsets = [1, 0], sizes = [8, 32], strides = [1, 1]} : vector<10x32xf32> to vector<8x32xf32>
    %54 = vector.extract_strided_slice %51 {offsets = [2, 0], sizes = [8, 32], strides = [1, 1]} : vector<10x32xf32> to vector<8x32xf32>
    %55 = tpu.concatenate %52, %53, %54 in 1 : vector<8x32xf32>, vector<8x32xf32>, vector<8x32xf32> -> vector<8x96xf32>
    %cst_33 = arith.constant dense<0.000000e+00> : vector<8x32xf32>
    %56 = tpu.matmul %55, %48, %cst_33 {dimension_numbers = #tpu.dot_dimension_numbers<[1], [0], [0], [1], [0, 0, 1, 1], [], []>} : vector<8x96xf32>, vector<96x32xf32>, vector<8x32xf32> -> vector<8x32xf32>
    %57 = vector.broadcast %49 : vector<1x32xf32> to vector<8x32xf32>
    %58 = arith.addf %56, %57 : vector<8x32xf32>
    %cst_34 = arith.constant 0.000000e+00 : f32
    %59 = vector.broadcast %cst_34 : f32 to vector<8x32xf32>
    %60 = arith.maximumf %58, %59 : vector<8x32xf32>
    %61 = arith.addf %7, %60 : vector<8x32xf32>
    %c0_35 = arith.constant 0 : index
    %c0_36 = arith.constant 0 : index
    %62 = vector.load %arg13[%c0_35, %c0_36] : memref<32x32xf32, #tpu.memory_space<vmem>>, vector<32x32xf32>
    %cst_37 = arith.constant dense<0.000000e+00> : vector<8x32xf32>
    %63 = tpu.matmul %61, %62, %cst_37 {dimension_numbers = #tpu.dot_dimension_numbers<[1], [0], [0], [1], [0, 0, 1, 1], [], []>} : vector<8x32xf32>, vector<32x32xf32>, vector<8x32xf32> -> vector<8x32xf32>
    %c0_38 = arith.constant 0 : index
    %c0_39 = arith.constant 0 : index
    %64 = vector.load %arg14[%c0_38, %c0_39] : memref<1x32xf32, #tpu.memory_space<vmem>>, vector<1x32xf32>
    %65 = vector.broadcast %64 : vector<1x32xf32> to vector<8x32xf32>
    %66 = arith.addf %63, %65 : vector<8x32xf32>
    %c0_40 = arith.constant 0 : index
    %c0_41 = arith.constant 0 : index
    %c0_42 = arith.constant 0 : index
    %67 = vector.load %arg4[%c0_40, %c0_41, %c0_42] : memref<1x8x1xf32, #tpu.memory_space<vmem>>, vector<1x8x1xf32>
    %68 = vector.shape_cast %67 : vector<1x8x1xf32> to vector<8x1xf32>
    %cst_43 = arith.constant 1.000000e+00 : f32
    %69 = vector.broadcast %cst_43 : f32 to vector<8x1xf32>
    %70 = arith.subf %69, %68 : vector<8x1xf32>
    %71 = vector.broadcast %70 : vector<8x1xf32> to vector<8x32xf32>
    %72 = arith.mulf %66, %71 : vector<8x32xf32>
    %c0_44 = arith.constant 0 : index
    %c0_45 = arith.constant 0 : index
    %c0_46 = arith.constant 0 : index
    %73 = vector.load %arg15[%c0_44, %c0_45, %c0_46] : memref<1x8x32xf32, #tpu.memory_space<vmem>>, vector<1x8x32xf32>
    %74 = vector.shape_cast %73 : vector<1x8x32xf32> to vector<8x32xf32>
    %75 = vector.shape_cast %72 : vector<8x32xf32> to vector<1x8x32xf32>
    tpu.vector_store %arg15[%c0_44, %c0_45, %c0_46], %75 {strides = array<i32>} : memref<1x8x32xf32, #tpu.memory_space<vmem>>, vector<1x8x32xf32>,
    return
  }
  func.func @transform_0(%arg0: i32) -> (i32, i32, i32) {
    %c0_i32 = arith.constant 0 : i32
    %c0_i32_0 = arith.constant 0 : i32
    %c0_i32_1 = arith.constant 0 : i32
    return %arg0, %c0_i32, %c0_i32_0 : i32, i32, i32
  }
  func.func @transform_1(%arg0: i32) -> (i32, i32, i32) {
    %c0_i32 = arith.constant 0 : i32
    %c0_i32_0 = arith.constant 0 : i32
    %c0_i32_1 = arith.constant 0 : i32
    return %arg0, %c0_i32, %c0_i32_0 : i32, i32, i32
  }
  func.func @transform_2(%arg0: i32) -> (i32, i32, i32) {
    %c0_i32 = arith.constant 0 : i32
    %c0_i32_0 = arith.constant 0 : i32
    %c0_i32_1 = arith.constant 0 : i32
    return %arg0, %c0_i32, %c0_i32_0 : i32, i32, i32
  }
  func.func @transform_3(%arg0: i32) -> (i32, i32, i32) {
    %c0_i32 = arith.constant 0 : i32
    %c0_i32_0 = arith.constant 0 : i32
    %c0_i32_1 = arith.constant 0 : i32
    return %arg0, %c0_i32, %c0_i32_0 : i32, i32, i32
  }
  func.func @transform_4(%arg0: i32) -> (i32, i32) {
    %c0_i32 = arith.constant 0 : i32
    %c0_i32_0 = arith.constant 0 : i32
    %c0_i32_1 = arith.constant 0 : i32
    return %c0_i32, %c0_i32_0 : i32, i32
  }
  func.func @transform_5(%arg0: i32) -> (i32, i32) {
    %c0_i32 = arith.constant 0 : i32
    %c0_i32_0 = arith.constant 0 : i32
    %c0_i32_1 = arith.constant 0 : i32
    return %c0_i32, %c0_i32_0 : i32, i32
  }
  func.func @transform_6(%arg0: i32) -> (i32, i32) {
    %c0_i32 = arith.constant 0 : i32
    %c0_i32_0 = arith.constant 0 : i32
    %c0_i32_1 = arith.constant 0 : i32
    return %c0_i32, %c0_i32_0 : i32, i32
  }
  func.func @transform_7(%arg0: i32) -> (i32, i32) {
    %c0_i32 = arith.constant 0 : i32
    %c0_i32_0 = arith.constant 0 : i32
    %c0_i32_1 = arith.constant 0 : i32
    return %c0_i32, %c0_i32_0 : i32, i32
  }
  func.func @transform_8(%arg0: i32) -> (i32, i32) {
    %c0_i32 = arith.constant 0 : i32
    %c0_i32_0 = arith.constant 0 : i32
    %c0_i32_1 = arith.constant 0 : i32
    return %c0_i32, %c0_i32_0 : i32, i32
  }
  func.func @transform_9(%arg0: i32) -> (i32, i32) {
    %c0_i32 = arith.constant 0 : i32
    %c0_i32_0 = arith.constant 0 : i32
    %c0_i32_1 = arith.constant 0 : i32
    return %c0_i32, %c0_i32_0 : i32, i32
  }
  func.func @transform_10(%arg0: i32) -> (i32, i32) {
    %c0_i32 = arith.constant 0 : i32
    %c0_i32_0 = arith.constant 0 : i32
    %c0_i32_1 = arith.constant 0 : i32
    return %c0_i32, %c0_i32_0 : i32, i32
  }
  func.func @transform_11(%arg0: i32) -> (i32, i32) {
    %c0_i32 = arith.constant 0 : i32
    %c0_i32_0 = arith.constant 0 : i32
    %c0_i32_1 = arith.constant 0 : i32
    return %c0_i32, %c0_i32_0 : i32, i32
  }
  func.func @transform_12(%arg0: i32) -> (i32, i32) {
    %c0_i32 = arith.constant 0 : i32
    %c0_i32_0 = arith.constant 0 : i32
    %c0_i32_1 = arith.constant 0 : i32
    return %c0_i32, %c0_i32_0 : i32, i32
  }
  func.func @transform_13(%arg0: i32) -> (i32, i32) {
    %c0_i32 = arith.constant 0 : i32
    %c0_i32_0 = arith.constant 0 : i32
    %c0_i32_1 = arith.constant 0 : i32
    return %c0_i32, %c0_i32_0 : i32, i32
  }
  func.func @transform_14(%arg0: i32) -> (i32, i32, i32) {
    %c0_i32 = arith.constant 0 : i32
    %c0_i32_0 = arith.constant 0 : i32
    %c0_i32_1 = arith.constant 0 : i32
    return %arg0, %c0_i32, %c0_i32_0 : i32, i32, i32
  }
}

module attributes {stable_mosaic.version = 11 : i64} {
  func.func @varpred_kernel(%arg0: i32, %arg1: memref<1x8x32xf32, #tpu.memory_space<vmem>>, %arg2: memref<1x8x1xf32, #tpu.memory_space<vmem>>, %arg3: memref<96x32xf32, #tpu.memory_space<vmem>>, %arg4: memref<1x32xf32, #tpu.memory_space<vmem>>, %arg5: memref<2x32xf32, #tpu.memory_space<vmem>>, %arg6: memref<96x32xf32, #tpu.memory_space<vmem>>, %arg7: memref<1x32xf32, #tpu.memory_space<vmem>>, %arg8: memref<2x32xf32, #tpu.memory_space<vmem>>, %arg9: memref<32x1xf32, #tpu.memory_space<vmem>>, %arg10: memref<1x1xf32, #tpu.memory_space<vmem>>, %arg11: memref<1x8x1xf32, #tpu.memory_space<vmem>>) attributes {dimension_semantics = [#tpu.dimension_semantics<parallel>], iteration_bounds = array<i64: 2>, scalar_prefetch = 0 : i64, scratch_operands = 0 : i64, tpu.core_type = #tpu.core_type<tc>, window_params = [{transform_indices = @transform_0, window_bounds = array<i64: 1, 8, 32>}, {transform_indices = @transform_1, window_bounds = array<i64: 1, 8, 1>}, {pipeline_mode = #tpu.pipeline_mode<synchronous>, transform_indices = @transform_2, window_bounds = array<i64: 96, 32>}, {pipeline_mode = #tpu.pipeline_mode<synchronous>, transform_indices = @transform_3, window_bounds = array<i64: 1, 32>}, {pipeline_mode = #tpu.pipeline_mode<synchronous>, transform_indices = @transform_4, window_bounds = array<i64: 2, 32>}, {pipeline_mode = #tpu.pipeline_mode<synchronous>, transform_indices = @transform_5, window_bounds = array<i64: 96, 32>}, {pipeline_mode = #tpu.pipeline_mode<synchronous>, transform_indices = @transform_6, window_bounds = array<i64: 1, 32>}, {pipeline_mode = #tpu.pipeline_mode<synchronous>, transform_indices = @transform_7, window_bounds = array<i64: 2, 32>}, {pipeline_mode = #tpu.pipeline_mode<synchronous>, transform_indices = @transform_8, window_bounds = array<i64: 32, 1>}, {pipeline_mode = #tpu.pipeline_mode<synchronous>, transform_indices = @transform_9, window_bounds = array<i64: 1, 1>}, {transform_indices = @transform_10, window_bounds = array<i64: 1, 8, 1>}]} {
    %c0 = arith.constant 0 : index
    %c0_0 = arith.constant 0 : index
    %c0_1 = arith.constant 0 : index
    %0 = vector.load %arg1[%c0, %c0_0, %c0_1] : memref<1x8x32xf32, #tpu.memory_space<vmem>>, vector<1x8x32xf32>
    %1 = vector.shape_cast %0 : vector<1x8x32xf32> to vector<8x32xf32>
    %c0_2 = arith.constant 0 : index
    %c0_3 = arith.constant 0 : index
    %2 = vector.load %arg3[%c0_2, %c0_3] : memref<96x32xf32, #tpu.memory_space<vmem>>, vector<96x32xf32>
    %c0_4 = arith.constant 0 : index
    %c0_5 = arith.constant 0 : index
    %3 = vector.load %arg4[%c0_4, %c0_5] : memref<1x32xf32, #tpu.memory_space<vmem>>, vector<1x32xf32>
    %cst = arith.constant 0.000000e+00 : f32
    %4 = vector.broadcast %cst : f32 to vector<1x32xf32>
    %5 = tpu.concatenate %4, %1, %4 in 0 : vector<1x32xf32>, vector<8x32xf32>, vector<1x32xf32> -> vector<10x32xf32>
    %6 = vector.extract_strided_slice %5 {offsets = [0, 0], sizes = [8, 32], strides = [1, 1]} : vector<10x32xf32> to vector<8x32xf32>
    %7 = vector.extract_strided_slice %5 {offsets = [1, 0], sizes = [8, 32], strides = [1, 1]} : vector<10x32xf32> to vector<8x32xf32>
    %8 = vector.extract_strided_slice %5 {offsets = [2, 0], sizes = [8, 32], strides = [1, 1]} : vector<10x32xf32> to vector<8x32xf32>
    %9 = tpu.concatenate %6, %7, %8 in 1 : vector<8x32xf32>, vector<8x32xf32>, vector<8x32xf32> -> vector<8x96xf32>
    %cst_6 = arith.constant dense<0.000000e+00> : vector<8x32xf32>
    %10 = tpu.matmul %9, %2, %cst_6 {dimension_numbers = #tpu.dot_dimension_numbers<[1], [0], [0], [1], [0, 0, 1, 1], [], []>} : vector<8x96xf32>, vector<96x32xf32>, vector<8x32xf32> -> vector<8x32xf32>
    %11 = vector.broadcast %3 : vector<1x32xf32> to vector<8x32xf32>
    %12 = arith.addf %10, %11 : vector<8x32xf32>
    %cst_7 = arith.constant 0.000000e+00 : f32
    %13 = vector.broadcast %cst_7 : f32 to vector<8x32xf32>
    %14 = arith.maximumf %12, %13 : vector<8x32xf32>
    %c0_8 = arith.constant 0 : index
    %c0_9 = arith.constant 0 : index
    %15 = vector.load %arg5[%c0_8, %c0_9] : memref<2x32xf32, #tpu.memory_space<vmem>>, vector<2x32xf32>
    %16 = vector.extract_strided_slice %15 {offsets = [0, 0], sizes = [1, 32], strides = [1, 1]} : vector<2x32xf32> to vector<1x32xf32>
    %17 = vector.extract_strided_slice %15 {offsets = [1, 0], sizes = [1, 32], strides = [1, 1]} : vector<2x32xf32> to vector<1x32xf32>
    %cst_10 = arith.constant dense<0.000000e+00> : vector<8xf32>
    %18 = vector.multi_reduction <add>, %14, %cst_10 [1] : vector<8x32xf32> to vector<8xf32>
    %19 = vector.shape_cast %18 : vector<8xf32> to vector<8x1xf32>
    %cst_11 = arith.constant 3.200000e+01 : f32
    %20 = vector.broadcast %cst_11 : f32 to vector<8x1xf32>
    %21 = arith.divf %19, %20 : vector<8x1xf32>
    %22 = vector.broadcast %21 : vector<8x1xf32> to vector<8x32xf32>
    %23 = arith.subf %14, %22 : vector<8x32xf32>
    %24 = arith.mulf %23, %23 : vector<8x32xf32>
    %cst_12 = arith.constant dense<0.000000e+00> : vector<8xf32>
    %25 = vector.multi_reduction <add>, %24, %cst_12 [1] : vector<8x32xf32> to vector<8xf32>
    %26 = vector.shape_cast %25 : vector<8xf32> to vector<8x1xf32>
    %cst_13 = arith.constant 3.200000e+01 : f32
    %27 = vector.broadcast %cst_13 : f32 to vector<8x1xf32>
    %28 = arith.divf %26, %27 : vector<8x1xf32>
    %29 = vector.broadcast %21 : vector<8x1xf32> to vector<8x32xf32>
    %30 = arith.subf %14, %29 : vector<8x32xf32>
    %cst_14 = arith.constant 9.99999974E-6 : f32
    %31 = vector.broadcast %cst_14 : f32 to vector<8x1xf32>
    %32 = arith.addf %28, %31 : vector<8x1xf32>
    %33 = math.rsqrt %32 : vector<8x1xf32>
    %34 = vector.broadcast %33 : vector<8x1xf32> to vector<8x32xf32>
    %35 = arith.mulf %30, %34 : vector<8x32xf32>
    %36 = vector.broadcast %16 : vector<1x32xf32> to vector<8x32xf32>
    %37 = arith.mulf %35, %36 : vector<8x32xf32>
    %38 = vector.broadcast %17 : vector<1x32xf32> to vector<8x32xf32>
    %39 = arith.addf %37, %38 : vector<8x32xf32>
    %c0_15 = arith.constant 0 : index
    %c0_16 = arith.constant 0 : index
    %40 = vector.load %arg6[%c0_15, %c0_16] : memref<96x32xf32, #tpu.memory_space<vmem>>, vector<96x32xf32>
    %c0_17 = arith.constant 0 : index
    %c0_18 = arith.constant 0 : index
    %41 = vector.load %arg7[%c0_17, %c0_18] : memref<1x32xf32, #tpu.memory_space<vmem>>, vector<1x32xf32>
    %cst_19 = arith.constant 0.000000e+00 : f32
    %42 = vector.broadcast %cst_19 : f32 to vector<1x32xf32>
    %43 = tpu.concatenate %42, %39, %42 in 0 : vector<1x32xf32>, vector<8x32xf32>, vector<1x32xf32> -> vector<10x32xf32>
    %44 = vector.extract_strided_slice %43 {offsets = [0, 0], sizes = [8, 32], strides = [1, 1]} : vector<10x32xf32> to vector<8x32xf32>
    %45 = vector.extract_strided_slice %43 {offsets = [1, 0], sizes = [8, 32], strides = [1, 1]} : vector<10x32xf32> to vector<8x32xf32>
    %46 = vector.extract_strided_slice %43 {offsets = [2, 0], sizes = [8, 32], strides = [1, 1]} : vector<10x32xf32> to vector<8x32xf32>
    %47 = tpu.concatenate %44, %45, %46 in 1 : vector<8x32xf32>, vector<8x32xf32>, vector<8x32xf32> -> vector<8x96xf32>
    %cst_20 = arith.constant dense<0.000000e+00> : vector<8x32xf32>
    %48 = tpu.matmul %47, %40, %cst_20 {dimension_numbers = #tpu.dot_dimension_numbers<[1], [0], [0], [1], [0, 0, 1, 1], [], []>} : vector<8x96xf32>, vector<96x32xf32>, vector<8x32xf32> -> vector<8x32xf32>
    %49 = vector.broadcast %41 : vector<1x32xf32> to vector<8x32xf32>
    %50 = arith.addf %48, %49 : vector<8x32xf32>
    %cst_21 = arith.constant 0.000000e+00 : f32
    %51 = vector.broadcast %cst_21 : f32 to vector<8x32xf32>
    %52 = arith.maximumf %50, %51 : vector<8x32xf32>
    %c0_22 = arith.constant 0 : index
    %c0_23 = arith.constant 0 : index
    %53 = vector.load %arg8[%c0_22, %c0_23] : memref<2x32xf32, #tpu.memory_space<vmem>>, vector<2x32xf32>
    %54 = vector.extract_strided_slice %53 {offsets = [0, 0], sizes = [1, 32], strides = [1, 1]} : vector<2x32xf32> to vector<1x32xf32>
    %55 = vector.extract_strided_slice %53 {offsets = [1, 0], sizes = [1, 32], strides = [1, 1]} : vector<2x32xf32> to vector<1x32xf32>
    %cst_24 = arith.constant dense<0.000000e+00> : vector<8xf32>
    %56 = vector.multi_reduction <add>, %52, %cst_24 [1] : vector<8x32xf32> to vector<8xf32>
    %57 = vector.shape_cast %56 : vector<8xf32> to vector<8x1xf32>
    %cst_25 = arith.constant 3.200000e+01 : f32
    %58 = vector.broadcast %cst_25 : f32 to vector<8x1xf32>
    %59 = arith.divf %57, %58 : vector<8x1xf32>
    %60 = vector.broadcast %59 : vector<8x1xf32> to vector<8x32xf32>
    %61 = arith.subf %52, %60 : vector<8x32xf32>
    %62 = arith.mulf %61, %61 : vector<8x32xf32>
    %cst_26 = arith.constant dense<0.000000e+00> : vector<8xf32>
    %63 = vector.multi_reduction <add>, %62, %cst_26 [1] : vector<8x32xf32> to vector<8xf32>
    %64 = vector.shape_cast %63 : vector<8xf32> to vector<8x1xf32>
    %cst_27 = arith.constant 3.200000e+01 : f32
    %65 = vector.broadcast %cst_27 : f32 to vector<8x1xf32>
    %66 = arith.divf %64, %65 : vector<8x1xf32>
    %67 = vector.broadcast %59 : vector<8x1xf32> to vector<8x32xf32>
    %68 = arith.subf %52, %67 : vector<8x32xf32>
    %cst_28 = arith.constant 9.99999974E-6 : f32
    %69 = vector.broadcast %cst_28 : f32 to vector<8x1xf32>
    %70 = arith.addf %66, %69 : vector<8x1xf32>
    %71 = math.rsqrt %70 : vector<8x1xf32>
    %72 = vector.broadcast %71 : vector<8x1xf32> to vector<8x32xf32>
    %73 = arith.mulf %68, %72 : vector<8x32xf32>
    %74 = vector.broadcast %54 : vector<1x32xf32> to vector<8x32xf32>
    %75 = arith.mulf %73, %74 : vector<8x32xf32>
    %76 = vector.broadcast %55 : vector<1x32xf32> to vector<8x32xf32>
    %77 = arith.addf %75, %76 : vector<8x32xf32>
    %c0_29 = arith.constant 0 : index
    %c0_30 = arith.constant 0 : index
    %78 = vector.load %arg9[%c0_29, %c0_30] : memref<32x1xf32, #tpu.memory_space<vmem>>, vector<32x1xf32>
    %cst_31 = arith.constant dense<0.000000e+00> : vector<8x1xf32>
    %79 = tpu.matmul %77, %78, %cst_31 {dimension_numbers = #tpu.dot_dimension_numbers<[1], [0], [0], [1], [0, 0, 1, 1], [], []>} : vector<8x32xf32>, vector<32x1xf32>, vector<8x1xf32> -> vector<8x1xf32>
    %c0_32 = arith.constant 0 : index
    %c0_33 = arith.constant 0 : index
    %80 = vector.load %arg10[%c0_32, %c0_33] : memref<1x1xf32, #tpu.memory_space<vmem>>, vector<1x1xf32>
    %81 = vector.broadcast %80 : vector<1x1xf32> to vector<8x1xf32>
    %82 = arith.addf %79, %81 : vector<8x1xf32>
    %c0_34 = arith.constant 0 : index
    %c0_35 = arith.constant 0 : index
    %c0_36 = arith.constant 0 : index
    %83 = vector.load %arg2[%c0_34, %c0_35, %c0_36] : memref<1x8x1xf32, #tpu.memory_space<vmem>>, vector<1x8x1xf32>
    %84 = vector.shape_cast %83 : vector<1x8x1xf32> to vector<8x1xf32>
    %cst_37 = arith.constant 1.000000e+00 : f32
    %85 = vector.broadcast %cst_37 : f32 to vector<8x1xf32>
    %86 = arith.subf %85, %84 : vector<8x1xf32>
    %87 = arith.mulf %82, %86 : vector<8x1xf32>
    %c0_38 = arith.constant 0 : index
    %c0_39 = arith.constant 0 : index
    %c0_40 = arith.constant 0 : index
    %88 = vector.load %arg11[%c0_38, %c0_39, %c0_40] : memref<1x8x1xf32, #tpu.memory_space<vmem>>, vector<1x8x1xf32>
    %89 = vector.shape_cast %88 : vector<1x8x1xf32> to vector<8x1xf32>
    %90 = vector.shape_cast %87 : vector<8x1xf32> to vector<1x8x1xf32>
    tpu.vector_store %arg11[%c0_38, %c0_39, %c0_40], %90 {strides = array<i32>} : memref<1x8x1xf32, #tpu.memory_space<vmem>>, vector<1x8x1xf32>,
    return
  }
  func.func @transform_0(%arg0: i32) -> (i32, i32, i32) {
    %c0_i32 = arith.constant 0 : i32
    %c0_i32_0 = arith.constant 0 : i32
    %c0_i32_1 = arith.constant 0 : i32
    return %arg0, %c0_i32, %c0_i32_0 : i32, i32, i32
  }
  func.func @transform_1(%arg0: i32) -> (i32, i32, i32) {
    %c0_i32 = arith.constant 0 : i32
    %c0_i32_0 = arith.constant 0 : i32
    %c0_i32_1 = arith.constant 0 : i32
    return %arg0, %c0_i32, %c0_i32_0 : i32, i32, i32
  }
  func.func @transform_2(%arg0: i32) -> (i32, i32) {
    %c0_i32 = arith.constant 0 : i32
    %c0_i32_0 = arith.constant 0 : i32
    %c0_i32_1 = arith.constant 0 : i32
    return %c0_i32, %c0_i32_0 : i32, i32
  }
  func.func @transform_3(%arg0: i32) -> (i32, i32) {
    %c0_i32 = arith.constant 0 : i32
    %c0_i32_0 = arith.constant 0 : i32
    %c0_i32_1 = arith.constant 0 : i32
    return %c0_i32, %c0_i32_0 : i32, i32
  }
  func.func @transform_4(%arg0: i32) -> (i32, i32) {
    %c0_i32 = arith.constant 0 : i32
    %c0_i32_0 = arith.constant 0 : i32
    %c0_i32_1 = arith.constant 0 : i32
    return %c0_i32, %c0_i32_0 : i32, i32
  }
  func.func @transform_5(%arg0: i32) -> (i32, i32) {
    %c0_i32 = arith.constant 0 : i32
    %c0_i32_0 = arith.constant 0 : i32
    %c0_i32_1 = arith.constant 0 : i32
    return %c0_i32, %c0_i32_0 : i32, i32
  }
  func.func @transform_6(%arg0: i32) -> (i32, i32) {
    %c0_i32 = arith.constant 0 : i32
    %c0_i32_0 = arith.constant 0 : i32
    %c0_i32_1 = arith.constant 0 : i32
    return %c0_i32, %c0_i32_0 : i32, i32
  }
  func.func @transform_7(%arg0: i32) -> (i32, i32) {
    %c0_i32 = arith.constant 0 : i32
    %c0_i32_0 = arith.constant 0 : i32
    %c0_i32_1 = arith.constant 0 : i32
    return %c0_i32, %c0_i32_0 : i32, i32
  }
  func.func @transform_8(%arg0: i32) -> (i32, i32) {
    %c0_i32 = arith.constant 0 : i32
    %c0_i32_0 = arith.constant 0 : i32
    %c0_i32_1 = arith.constant 0 : i32
    return %c0_i32, %c0_i32_0 : i32, i32
  }
  func.func @transform_9(%arg0: i32) -> (i32, i32) {
    %c0_i32 = arith.constant 0 : i32
    %c0_i32_0 = arith.constant 0 : i32
    %c0_i32_1 = arith.constant 0 : i32
    return %c0_i32, %c0_i32_0 : i32, i32
  }
  func.func @transform_10(%arg0: i32) -> (i32, i32, i32) {
    %c0_i32 = arith.constant 0 : i32
    %c0_i32_0 = arith.constant 0 : i32
    %c0_i32_1 = arith.constant 0 : i32
    return %arg0, %c0_i32, %c0_i32_0 : i32, i32, i32
  }
}

</mosaic_0001>

<bundles_post_ra>
// kernel: history_dialogue_forward.12
= control target key start
LH: loop header
LB: loop body
LE: loop exit
PB: predicated region body
PF: predicated region fallthrough
CT: control target
= control target key end

     0   :  { %vm24_vm0 = vcmask 326656   ;;  %vm48_vm1 = vcmask 259072   ;;  %s100_s1 = inlined_call_operand.vmem [shape: f32[40,32], index: 1, kind: input, shape index: {}]   ;;  %s101_s2 = inlined_call_operand.vmem [shape: f32[1,32], index: 2, kind: input, shape index: {}]   ;;  %s102_s0 = inlined_call_operand.vmem [shape: f32[6,40], index: 0, kind: input, shape index: {}]   ;;  %s103_s3 = inlined_call_operand.vmem [shape: f32[6,32], index: 3, kind: output, shape index: {}]  }
   0x1   :  { %v19_v0 = vld [vmem:[%s100_s1 + $0x20] sm:$0xff]  ;;  %v18_v1 = vld [vmem:[%s100_s1 + $0x18] sm:$0xff]  ;;  %v17_v2 = vld [vmem:[%s100_s1 + $0x10] sm:$0xff] }
   0x2   :  { %39 = vmatpush.msra.mxu0 %v19_v0  ;;  %v16_v3 = vld [vmem:[%s100_s1 + $0x8] sm:$0xff]  ;;  %v15_v4 = vld [vmem:[%s100_s1] sm:$0xff] }
   0x3   :  { %v14_v5 = vld [vmem:[%s102_s0] sm:$0x3f] }
   0x4   :  { %40 = vmatpush.msra.mxu0 %v18_v1  ;;  %v55_v6 = vld [vmem:[%s101_s2] ss:$0 sm:$0xff] }
   0x6   :  { %41 = vmatpush.msra.mxu0 %v17_v2 }
   0x8   :  { %42 = vmatpush.msra.mxu0 %v16_v3 }
   0xa   :  { %43 = vmatpush.msra.mxu0 %v15_v4 }
   0xb   :  { %54 = vmatmul.msk.f32.vlgmr.msra.gmra.mxu0 %vm24_vm0, %v14_v5 }
  0x88   :  { %v45_v7 = vpop.f32.mrf.mxu0 }
  0x89   :  { %v46_v8 = vadd.f32 %v55_v6, %v45_v7 }
  0x8b   :  { %49 = vst.msk [vmem:[%s103_s3] sm:$0x3f] %vm48_vm1, %v46_v8 }

// kernel: history_dialogue_forward.11
= control target key start
LH: loop header
LB: loop body
LE: loop exit
PB: predicated region body
PF: predicated region fallthrough
CT: control target
= control target key end

     0   :  { %vm30_vm0 = vcmask 392192   ;;  %vm84_vm1 = vcmask 261120   ;;  %s209_s1 = inlined_call_operand.vmem [shape: f32[48,32], index: 1, kind: input, shape index: {}]   ;;  %s210_s2 = inlined_call_operand.vmem [shape: f32[1,32], index: 2, kind: input, shape index: {}]   ;;  %s211_s0 = inlined_call_operand.vmem [shape: f32[48,48], index: 0, kind: input, shape index: {}]   ;;  %s212_s3 = inlined_call_operand.vmem [shape: f32[48,32], index: 3, kind: output, shape index: {}]  }
   0x1   :  { %v25_v0 = vld [vmem:[%s209_s1 + $0x28] sm:$0xff]  ;;  %v24_v1 = vld [vmem:[%s209_s1 + $0x20] sm:$0xff]  ;;  %v23_v2 = vld [vmem:[%s209_s1 + $0x18] sm:$0xff] }
   0x2   :  { %103 = vmatpush.msra.mxu3 %v25_v0  ;;  %101 = vmatpush.msra.mxu1 %v25_v0  ;;  %v22_v3 = vld [vmem:[%s209_s1 + $0x10] sm:$0xff]  ;;  %v21_v4 = vld [vmem:[%s209_s1 + $0x8] sm:$0xff]  ;;  %v20_v5 = vld [vmem:[%s209_s1] sm:$0xff] }
   0x3   :  { %102 = vmatpush.msra.mxu2 %v25_v0  ;;  %59 = vmatpush.msra.mxu0 %v25_v0  ;;  %v18_v6 = vld [vmem:[%s211_s0 + $0x20] sm:$0xff]  ;;  %v15_v7 = vld [vmem:[%s211_s0 + $0x8] sm:$0xff]  ;;  %v17_v8 = vld [vmem:[%s211_s0 + $0x18] sm:$0xff] }
   0x4   :  { %106 = vmatpush.msra.mxu3 %v24_v1  ;;  %104 = vmatpush.msra.mxu1 %v24_v1  ;;  %v14_v9 = vld [vmem:[%s211_s0] sm:$0xff]  ;;  %v19_v10 = vld [vmem:[%s211_s0 + $0x28] sm:$0xff]  ;;  %v16_v11 = vld [vmem:[%s211_s0 + $0x10] sm:$0xff] }
   0x5   :  { %105 = vmatpush.msra.mxu2 %v24_v1  ;;  %60 = vmatpush.msra.mxu0 %v24_v1  ;;  %v119_v12 = vld [vmem:[%s210_s2] ss:$0 sm:$0xff] }
   0x6   :  { %109 = vmatpush.msra.mxu3 %v23_v2  ;;  %107 = vmatpush.msra.mxu1 %v23_v2 }
   0x7   :  { %108 = vmatpush.msra.mxu2 %v23_v2  ;;  %61 = vmatpush.msra.mxu0 %v23_v2 }
   0x8   :  { %112 = vmatpush.msra.mxu3 %v22_v3  ;;  %110 = vmatpush.msra.mxu1 %v22_v3 }
   0x9   :  { %111 = vmatpush.msra.mxu2 %v22_v3  ;;  %62 = vmatpush.msra.mxu0 %v22_v3 }
   0xa   :  { %115 = vmatpush.msra.mxu3 %v21_v4  ;;  %113 = vmatpush.msra.mxu1 %v21_v4 }
   0xb   :  { %114 = vmatpush.msra.mxu2 %v21_v4  ;;  %63 = vmatpush.msra.mxu0 %v21_v4 }
   0xc   :  { %118 = vmatpush.msra.mxu3 %v20_v5  ;;  %116 = vmatpush.msra.mxu1 %v20_v5 }
   0xd   :  { %99 = vmatmul.msk.f32.vlgmr.msra.gmra.mxu3 %vm30_vm0, %v18_v6  ;;  %96 = vmatmul.msk.f32.vlgmr.msra.gmra.mxu1 %vm30_vm0, %v15_v7 }
   0xe   :  { %117 = vmatpush.msra.mxu2 %v20_v5  ;;  %64 = vmatpush.msra.mxu0 %v20_v5 }
   0xf   :  { %98 = vmatmul.msk.f32.vlgmr.msra.gmra.mxu2 %vm30_vm0, %v17_v8  ;;  %95 = vmatmul.msk.f32.vlgmr.msra.gmra.mxu0 %vm30_vm0, %v14_v9 }
  0x15   :  { %100 = vmatmul.msk.f32.gmra.mxu3 %vm30_vm0, %v19_v10  ;;  %97 = vmatmul.msk.f32.gmra.mxu1 %vm30_vm0, %v16_v11 }
  0x8a   :  { %v69_v13 = vpop.f32.mrf.mxu1 }
  0x8b   :  { %v70_v14 = vadd.f32 %v119_v12, %v69_v13 }
  0x8c   :  { %v66_v15 = vpop.f32.mrf.mxu0 }
  0x8d   :  { %86 = vst.msk [vmem:[%s212_s3 + $0x8] sm:$0xff] %vm84_vm1, %v70_v14  ;;  %v67_v16 = vadd.f32 %v119_v12, %v66_v15 }
  0x8f   :  { %85 = vst.msk [vmem:[%s212_s3] sm:$0xff] %vm84_vm1, %v67_v16 }
  0x90   :  { %v78_v17 = vpop.f32.mrf.mxu3 }
  0x91   :  { %v79_v18 = vadd.f32 %v119_v12, %v78_v17 }
  0x92   :  { %v72_v19 = vpop.f32.mrf.mxu1  ;;  %v75_v20 = vpop.f32.mrf.mxu2 }
  0x93   :  { %89 = vst.msk [vmem:[%s212_s3 + $0x20] sm:$0xff] %vm84_vm1, %v79_v18  ;;  %v73_v21 = vadd.f32 %v119_v12, %v72_v19  ;;  %v76_v22 = vadd.f32 %v119_v12, %v75_v20 }
  0x95   :  { %87 = vst.msk [vmem:[%s212_s3 + $0x10] sm:$0xff] %vm84_vm1, %v73_v21 }
  0x96   :  { %88 = vst.msk [vmem:[%s212_s3 + $0x18] sm:$0xff] %vm84_vm1, %v76_v22 }
  0x98   :  { %v81_v23 = vpop.f32.mrf.mxu3 }
  0x99   :  { %v82_v24 = vadd.f32 %v119_v12, %v81_v23 }
  0x9b   :  { %90 = vst.msk [vmem:[%s212_s3 + $0x28] sm:$0xff] %vm84_vm1, %v82_v24 }

// kernel: history_dialogue_forward.13
= control target key start
LH: loop header
LB: loop body
LE: loop exit
PB: predicated region body
PF: predicated region fallthrough
CT: control target
= control target key end

     0   :  { %vm23_vm0 = vcmask 261120   ;;  %vm47_vm1 = vcmask 259072   ;;  %s96_s1 = inlined_call_operand.vmem [shape: f32[32,32], index: 1, kind: input, shape index: {}]   ;;  %s97_s2 = inlined_call_operand.vmem [shape: f32[1,32], index: 2, kind: input, shape index: {}]   ;;  %s98_s0 = inlined_call_operand.vmem [shape: f32[6,32], index: 0, kind: input, shape index: {}]   ;;  %s99_s3 = inlined_call_operand.vmem [shape: f32[6,32], index: 3, kind: output, shape index: {}]  }
   0x1   :  { %v18_v0 = vld [vmem:[%s96_s1 + $0x18] sm:$0xff]  ;;  %v17_v1 = vld [vmem:[%s96_s1 + $0x10] sm:$0xff]  ;;  %v16_v2 = vld [vmem:[%s96_s1 + $0x8] sm:$0xff] }
   0x2   :  { %39 = vmatpush.msra.mxu0 %v18_v0  ;;  %v15_v3 = vld [vmem:[%s96_s1] sm:$0xff] }
   0x3   :  { %v14_v4 = vld [vmem:[%s98_s0] sm:$0x3f] }
   0x4   :  { %40 = vmatpush.msra.mxu0 %v17_v1  ;;  %v54_v5 = vld [vmem:[%s97_s2] ss:$0 sm:$0xff] }
   0x6   :  { %41 = vmatpush.msra.mxu0 %v16_v2 }
   0x8   :  { %42 = vmatpush.msra.mxu0 %v15_v3 }
   0x9   :  { %53 = vmatmul.msk.f32.vlgmr.msra.gmra.mxu0 %vm23_vm0, %v14_v4 }
  0x86   :  { %v44_v6 = vpop.f32.mrf.mxu0 }
  0x87   :  { %v45_v7 = vadd.f32 %v54_v5, %v44_v6 }
  0x89   :  { %48 = vst.msk [vmem:[%s99_s3] sm:$0x3f] %vm47_vm1, %v45_v7 }

// kernel: history_dialogue_forward.14
= control target key start
LH: loop header
LB: loop body
LE: loop exit
PB: predicated region body
PF: predicated region fallthrough
CT: control target
= control target key end

     0   :  { %s886_s13 = smov 0   ;;  %s1018_s0 = inlined_call_operand.vmem [shape: f32[2,8,32], index: 0, kind: input, shape index: {}]   ;;  %s1019_s1 = inlined_call_operand.vmem [shape: f32[2,8,32], index: 1, kind: input, shape index: {}, may-alias: {1,2}]   ;;  %s1020_s2 = inlined_call_operand.vmem [shape: f32[2,8,32], index: 2, kind: input, shape index: {}, may-alias: {1,2}]   ;;  %s1021_s3 = inlined_call_operand.vmem [shape: f32[2,8,8], index: 3, kind: input, shape index: {}]   ;;  %s1022_s4 = inlined_call_operand.vmem [shape: f32[4,32,32], index: 4, kind: input, shape index: {}]   ;;  %s1023_s5 = inlined_call_operand.vmem [shape: f32[4,32], index: 5, kind: input, shape index: {}]   ;;  %s1024_s6 = inlined_call_operand.vmem [shape: f32[2,32], index: 6, kind: input, shape index: {}]   ;;  %s1025_s7 = inlined_call_operand.vmem [shape: f32[2,32], index: 7, kind: input, shape index: {}]   ;;  %s1026_s8 = inlined_call_operand.vmem [shape: f32[1,32,32], index: 8, kind: input, shape index: {}]   ;;  %s1027_s9 = inlined_call_operand.vmem [shape: f32[1,32], index: 9, kind: input, shape index: {}]   ;;  %s1028_s10 = inlined_call_operand.vmem [shape: f32[2,8,32], index: 10, kind: output, shape index: {}]  }
   0x1 LB: > { %s782_s14 = sadd.s32 4294967295, %s828_s13   ;;  %p786_p0 = scmp.ge.s32.totalorder %s828_s13, 1  ;;  %s828_s13 = sphi %s886_s13, %s20_s13  }
   0x2   : > { %p338_p1 = scmp.lt.s32.totalorder %s828_s13, 3 }
   0x4   : > { %p339_p2 = pnand %p786_p0, %p338_p1 }
   0x5   : > { %p386_p3 = scmp.lt.s32.totalorder (!%p339_p2), %s782_s14, 1 }
   0x6   : > { %342 = sbr.rel (%p339_p2) target bundleno = 1482 (0x5ca), region = 60 }
   0xb   : > { %v418_v0 = vld [vmem:[%s1022_s4 + $0x38] sm:$0xff]  ;;  %v417_v1 = vld [vmem:[%s1022_s4 + $0x30] sm:$0xff]  ;;  %v416_v4 = vld [vmem:[%s1022_s4 + $0x28] sm:$0xff]  ;;  %s1030_s14 = smov (!%p386_p3, %s782_s14), 1  ;;  %vm437_vm0 = vcmask 261120   ;;  %vm532_vm2 = vcmask 64512  }
   0xc   : > { %v414_v2 = vld [vmem:[%s1022_s4 + $0x18] sm:$0xff]  ;;  %474 = vmatpush.msra.mxu1 %v418_v0  ;;  %v413_v3 = vld [vmem:[%s1022_s4 + $0x10] sm:$0xff]  ;;  %v412_v5 = vld [vmem:[%s1022_s4 + $0x8] sm:$0xff]  ;;  %s915_s29 = sshll.u32 %s1030_s14, 3  ;;  %v830_v59 = vmov 32.0  }
   0xd   : > { %453 = vmatpush.msra.mxu0 %v414_v2  ;;  %v415_v6 = vld [vmem:[%s1022_s4 + $0x20] sm:$0xff]  ;;  %s389_s16 = scalar_lea.vmem %s1018_s0, %s915_s29  ;;  %s393_s19 = scalar_lea.vmem %s1019_s1, %s915_s29  ;;  %v422_v20 = vld [vmem:[%s1022_s4 + $0x58] sm:$0xff]  ;;  %v421_v26 = vld [vmem:[%s1022_s4 + $0x50] sm:$0xff] }
   0xe   : > { %475 = vmatpush.msra.mxu1 %v417_v1  ;;  %v411_v7 = vld [vmem:[%s1022_s4] sm:$0xff]  ;;  %s397_s21 = scalar_lea.vmem %s1020_s2, %s915_s29  ;;  %495 = vmatpush.msra.mxu2 %v422_v20  ;;  %s401_s28 = scalar_lea.vmem %s1021_s3, %s915_s29  ;;  %v420_v27 = vld [vmem:[%s1022_s4 + $0x48] sm:$0xff]  ;;  %v426_v37 = vld [vmem:[%s1022_s4 + $0x78] sm:$0xff] }
   0xf   : > { %454 = vmatpush.msra.mxu0 %v413_v3  ;;  %v406_v8 = vld [vmem:[%s389_s16] sm:$0xff]  ;;  %v425_v38 = vld [vmem:[%s1022_s4 + $0x70] sm:$0xff]  ;;  %v424_v39 = vld [vmem:[%s1022_s4 + $0x68] sm:$0xff]  ;;  %s405_s23 = scalar_lea.vmem %s1028_s10, %s915_s29 }
  0x10   : > { %476 = vmatpush.msra.mxu1 %v416_v4  ;;  %v407_v9 = vld [vmem:[%s393_s19] sm:$0xff]  ;;  %496 = vmatpush.msra.mxu2 %v421_v26 }
  0x11   : > { %455 = vmatpush.msra.mxu0 %v412_v5  ;;  %v408_v10 = vadd.f32 %v407_v9, %v406_v8  ;;  %v409_v11 = vld [vmem:[%s397_s21] sm:$0xff]  ;;  %v432_v8 = vld [vmem:[%s1026_s8 + $0x10] sm:$0xff]  ;;  %v431_v9 = vld [vmem:[%s1026_s8 + $0x8] sm:$0xff] }
  0x12   : > { %477 = vmatpush.msra.mxu1 %v415_v6  ;;  %v941_v13 = vld [vmem:[%s1023_s5] sm:$0xf]  ;;  %497 = vmatpush.msra.mxu2 %v420_v27 }
  0x13   : > { %456 = vmatpush.msra.mxu0 %v411_v7  ;;  %v932_v12 = vadd.f32 %v409_v11, %v408_v10  ;;  %v461_v14 = vperm.slane %v941_v13, 1  ;;  %v436_v15 = vperm.slane %v941_v13, 0  ;;  %v435_v21 = vld [vmem:[%s401_s28] sm:$0xff]  ;;  %v482_v34 = vperm.slane %v941_v13, 2  ;;  %v433_v7 = vld [vmem:[%s1026_s8 + $0x18] sm:$0xff] }
  0x14   : > { %vm530_vm1 = vcmp.gt.f32.partialorder %v435_v21, 0.5  ;;  %v419_v28 = vld [vmem:[%s1022_s4 + $0x40] sm:$0xff]  ;;  %v580_v54 = vperm.slane %v941_v13, 3  ;;  %656 = vmatpush.msrb.mxu1 %v433_v7 }
  0x15   : > { %793 = vmatmul.msk.f32.vlgmr.msra.gmra.mxu1 %vm437_vm0, %v932_v12  ;;  %792 = vmatmul.msk.f32.vlgmr.msra.gmra.mxu0 %vm437_vm0, %v932_v12  ;;  %v423_v40 = vld [vmem:[%s1022_s4 + $0x60] sm:$0xff] }
  0x16   : > { %498 = vmatpush.msra.mxu2 %v419_v28  ;;  %596 = vmatpush.msrb.mxu0 %v426_v37  ;;  %v430_v10 = vld [vmem:[%s1026_s8] sm:$0xff] }
  0x17   : > { %794 = vmatmul.msk.f32.vlgmr.msra.gmra.mxu2 %vm437_vm0, %v932_v12  ;;  %657 = vmatpush.msrb.mxu1 %v432_v8  ;;  %v429_v21 = vld [vmem:[%s1025_s7] sm:$0x3] }
  0x18   : > { %597 = vmatpush.msrb.mxu0 %v425_v38  ;;  %v811_v28 = vld [vmem:[%s1027_s9] ss:$0 sm:$0xff] }
  0x19   : > { %658 = vmatpush.msrb.mxu1 %v431_v9 }
  0x1a   : > { %598 = vmatpush.msrb.mxu0 %v424_v39 }
  0x1b   : > { %659 = vmatpush.msrb.mxu1 %v430_v10 }
  0x1c   : > { %599 = vmatpush.msrb.mxu0 %v423_v40 }
  0x92   : > { %v479_v16 = vpop.f32.mrf.mxu1  ;;  %v458_v17 = vpop.f32.mrf.mxu0 }
  0x93   : > { %v480_v18 = vadd.f32 %v479_v16, %v461_v14  ;;  %v459_v19 = vadd.f32 %v458_v17, %v436_v15 }
  0x95   : > { %795 = vmatpush.xpose.msk.msra.mxu3 %vm437_vm0, %v480_v18 }
  0x98   : > { %796 = vmatmul.msk.f32.vlgmr.msra.gmra.mxu3 %vm437_vm0, %v459_v19  ;;  %v428_v19 = vld [vmem:[%s1024_s6] sm:$0x3] }
  0x9a   : > { %v500_v35 = vpop.f32.mrf.mxu2 }
  0x9b   : > { %v501_v36 = vadd.f32 %v500_v35, %v482_v34 }
  0x9d   : > { %575 = vmatpush.msrb.mxu3 %v501_v36 }
 0x11b   : > { %v526_v22 = vpop.f32.mrf.mxu3 }
 0x11c   : > { %v529_v23 = vmul.f32 0.17677669, %v526_v22  ;;  %v634_v22 = vperm.slane %v428_v19, 0 }
 0x11e   : > { %v531_v24 = vsel %vm530_vm1, -1e+09, %v529_v23 }
 0x11f   : > { %v533_v25 = vsel %vm532_vm2, %v531_v24, -inf }
 0x120   : > { %534 = vmax.xlane.f32.xlu0 %v533_v25  ;;  %v636_v25 = vperm.slane %v429_v21, 0 }
 0x193   : > { %v535_v29 = vpop.xlane.xlu0 %534 }
 0x194   : > { %v536_v30 = vsub.f32 %v531_v24, %v535_v29 }
 0x196   : > { %v537_v31 = vmul.f32 1.442695, %v536_v30 }
 0x198   : > { %812 = vpow2.f32 %v537_v31 }
 0x19e   : > { %v813_v32 = vpop.eup %812 }
 0x19f   : > { %v539_v33 = vsel %vm532_vm2, %v813_v32, 0.0 }
 0x1a0   : > { %540 = vadd.xlane.f32.xlu0 %v539_v33 }
 0x213   : > { %v541_v41 = vpop.xlane.xlu0 %540 }
 0x214   : > { %814 = vrcp.f32 %v541_v41  ;;  %v553_v45 = vand.u32 2147483648, %v541_v41  ;;  %v551_v47 = vand.u32 2147483647, %v541_v41  ;;  %vm547_vm4 = vweird.f32 %v541_v41 }
 0x215   : > { %816 = vrcp.f32 %v830_v59 }
 0x216   : > { %v554_v49 = vor.u32 1.1754944e-38, %v553_v45  ;;  %vm552_vm6 = vcmp.eq.f32.partialorder %v551_v47, 8.507059e+37 }
 0x21a   : > { %v815_v42 = vpop.eup %814 }
 0x21b   : > { %v543_v43 = vmul.f32 %v815_v42, %v541_v41  ;;  %vm548_vm3 = vweird.f32 %v815_v42  ;;  %v817_v60 = vpop.eup %816 }
 0x21c   : > { %vm549_vm5 = vmor %vm547_vm4, %vm548_vm3  ;;  %v609_v61 = vmul.f32 32.0, %v817_v60  ;;  %vm613_vm7 = vweird.f32 %v817_v60 }
 0x21d   : > { %v544_v44 = vsub.f32 1.0, %v543_v43 }
 0x21e   : > { %v610_v62 = vsub.f32 1.0, %v609_v61 }
 0x21f   : > { %v545_v46 = vmul.f32 %v815_v42, %v544_v44 }
 0x220   : > { %v611_v63 = vmul.f32 %v817_v60, %v610_v62 }
 0x221   : > { %v546_v48 = vadd.f32 %v815_v42, %v545_v46 }
 0x222   : > { %v612_v0 = vadd.f32 %v817_v60, %v611_v63 }
 0x223   : > { %v550_v50 = vsel %vm549_vm5, %v815_v42, %v546_v48  ;;  %v688_v48 = vperm.slane %v428_v19, 1 }
 0x224   : > { %v555_v51 = vsel %vm552_vm6, %v554_v49, %v550_v50  ;;  %v614_v1 = vsel %vm613_vm7, %v817_v60, %v612_v0  ;;  %v690_v50 = vperm.slane %v429_v21, 1 }
 0x225   : > { %v556_v52 = vmul.f32 %v813_v32, %v555_v51 }
 0x227   : > { %797 = vmatmul.msk.f32.vlgmr.msrb.gmra.mxu3 %vm532_vm2, %v556_v52 }
 0x2aa   : > { %v577_v53 = vpop.f32.mrf.mxu3 }
 0x2ab   : > { %798 = vmatmul.msk.f32.vlgmr.msrb.gmra.mxu0 %vm437_vm0, %v577_v53 }
 0x328   : > { %v601_v55 = vpop.f32.mrf.mxu0 }
 0x329   : > { %v602_v56 = vadd.f32 %v601_v55, %v580_v54 }
 0x32b   : > { %v604_v57 = vadd.f32 %v602_v56, %v932_v12 }
 0x32d   : > { %v605_v58 = vsel %vm437_vm0, %v604_v57, 0.0 }
 0x32e   : > { %606 = vadd.xlane.f32.xlu1 %v605_v58 }
 0x3a1   : > { %v607_v2 = vpop.xlane.xlu1 %606 }
 0x3a2   : > { %v615_v3 = vmul.f32 %v614_v1, %v607_v2 }
 0x3a4   : > { %v616_v4 = vsub.f32 %v604_v57, %v615_v3 }
 0x3a6   : > { %v617_v5 = vmul.f32 %v616_v4, %v616_v4 }
 0x3a8   : > { %v618_v6 = vsel %vm437_vm0, %v617_v5, 0.0 }
 0x3a9   : > { %619 = vadd.xlane.f32.xlu1 %v618_v6 }
 0x41c   : > { %v620_v11 = vpop.xlane.xlu1 %619 }
 0x41d   : > { %v621_v12 = vmul.f32 %v620_v11, %v614_v1 }
 0x41f   : > { %v622_v13 = vadd.f32 1e-05, %v621_v12 }
 0x421   : > { %818 = vrsqrt.f32 %v622_v13  ;;  %vm629_vm9 = vweird.f32 %v622_v13 }
 0x427   : > { %v819_v14 = vpop.eup %818 }
 0x428   : > { %v624_v15 = vmul.f32 %v819_v14, %v622_v13  ;;  %vm630_vm8 = vweird.f32 %v819_v14 }
 0x429   : > { %vm631_vm10 = vmor %vm629_vm9, %vm630_vm8 }
 0x42a   : > { %v625_v16 = vmul.f32 %v819_v14, %v624_v15 }
 0x42c   : > { %v626_v17 = vmul.f32 0.5, %v625_v16 }
 0x42e   : > { %v627_v18 = vsub.f32 1.5, %v626_v17 }
 0x430   : > { %v628_v20 = vmul.f32 %v819_v14, %v627_v18 }
 0x432   : > { %v632_v23 = vsel %vm631_vm10, %v819_v14, %v628_v20 }
 0x433   : > { %v633_v24 = vmul.f32 %v632_v23, %v616_v4 }
 0x435   : > { %v635_v26 = vmul.f32 %v634_v22, %v633_v24 }
 0x437   : > { %v637_v27 = vadd.f32 %v636_v25, %v635_v26 }
 0x439   : > { %799 = vmatmul.msk.f32.vlgmr.msrb.gmra.mxu1 %vm437_vm0, %v637_v27 }
 0x4b6   : > { %v661_v29 = vpop.f32.mrf.mxu1 }
 0x4b7   : > { %v662_v30 = vadd.f32 %v811_v28, %v661_v29 }
 0x4b9   : > { %v664_v31 = vmax.f32 %v662_v30, 0.0 }
 0x4bb   : > { %v665_v32 = vadd.f32 %v664_v31, %v637_v27 }
 0x4bd   : > { %v666_v33 = vsel %vm437_vm0, %v665_v32, 0.0 }
 0x4be   : > { %667 = vadd.xlane.f32.xlu2 %v666_v33 }
 0x531   : > { %v668_v34 = vpop.xlane.xlu2 %667 }
 0x532   : > { %v669_v35 = vmul.f32 %v668_v34, %v614_v1 }
 0x534   : > { %v670_v36 = vsub.f32 %v665_v32, %v669_v35 }
 0x536   : > { %v671_v37 = vmul.f32 %v670_v36, %v670_v36 }
 0x538   : > { %v672_v38 = vsel %vm437_vm0, %v671_v37, 0.0 }
 0x539   : > { %673 = vadd.xlane.f32.xlu2 %v672_v38 }
 0x5ac   : > { %v674_v39 = vpop.xlane.xlu2 %673 }
 0x5ad   : > { %v675_v40 = vmul.f32 %v674_v39, %v614_v1 }
 0x5af   : > { %v676_v41 = vadd.f32 1e-05, %v675_v40 }
 0x5b1   : > { %820 = vrsqrt.f32 %v676_v41  ;;  %vm683_vm12 = vweird.f32 %v676_v41 }
 0x5b7   : > { %v821_v42 = vpop.eup %820 }
 0x5b8   : > { %v678_v43 = vmul.f32 %v821_v42, %v676_v41  ;;  %vm684_vm11 = vweird.f32 %v821_v42 }
 0x5b9   : > { %vm685_vm13 = vmor %vm683_vm12, %vm684_vm11 }
 0x5ba   : > { %v679_v44 = vmul.f32 %v821_v42, %v678_v43 }
 0x5bc   : > { %v680_v45 = vmul.f32 0.5, %v679_v44 }
 0x5be   : > { %v681_v46 = vsub.f32 1.5, %v680_v45 }
 0x5c0   : > { %v682_v47 = vmul.f32 %v821_v42, %v681_v46 }
 0x5c2   : > { %v686_v49 = vsel %vm685_vm13, %v821_v42, %v682_v47 }
 0x5c3   : > { %v687_v51 = vmul.f32 %v686_v49, %v670_v36 }
 0x5c5   : > { %v689_v52 = vmul.f32 %v688_v48, %v687_v51 }
 0x5c7   : > { %v691_v53 = vadd.f32 %v690_v50, %v689_v52 }
 0x5c9   : > { %692 = vst.msk [vmem:[%s405_s23] sm:$0xff] %vm437_vm0, %v691_v53 }
 0x5ca PF: > { %s20_s13 = sadd.s32 1, %s828_s13  }
 0x5cb   : > { %p17_p4 = scmp.ge.s32.totalorder %s20_s13, 4  }
 0x5cd   :  { %19 = sbr.rel (!%p17_p4) target bundleno = 1 (0x1), region = 99 }

// kernel: history_dialogue_forward.16
= control target key start
LH: loop header
LB: loop body
LE: loop exit
PB: predicated region body
PF: predicated region fallthrough
CT: control target
= control target key end

     0   :  { %15 = vsyncpa [#allocation3], 0  ;;  %s1364_s0 = inlined_call_operand.vmem [shape: f32[2,8,32], index: 0, kind: input, shape index: {}]   ;;  %s1365_s1 = inlined_call_operand.vmem [shape: f32[2,8,32], index: 1, kind: input, shape index: {}]   ;;  %s1366_s2 = inlined_call_operand.vmem [shape: f32[2,8,32], index: 2, kind: input, shape index: {}]   ;;  %s1367_s3 = inlined_call_operand.vmem [shape: f32[2,8,8], index: 3, kind: input, shape index: {}]   ;;  %s1368_s4 = inlined_call_operand.hbm [shape: f32[4,32,32], index: 4, kind: input, shape index: {}]   ;;  %s1369_s5 = inlined_call_operand.vmem [shape: f32[4,32], index: 5, kind: input, shape index: {}]   ;;  %s1370_s6 = inlined_call_operand.hbm [shape: f32[2,32], index: 6, kind: input, shape index: {}]   ;;  %s1371_s7 = inlined_call_operand.hbm [shape: f32[2,32], index: 7, kind: input, shape index: {}]   ;;  %s1372_s8 = inlined_call_operand.hbm [shape: f32[1,32,32], index: 8, kind: input, shape index: {}]   ;;  %s1373_s9 = inlined_call_operand.hbm [shape: f32[1,32], index: 9, kind: input, shape index: {}]   ;;  %s1374_s10 = inlined_call_operand.vmem [shape: f32[2,8,32], index: 10, kind: output, shape index: {}]  }
   0x1   :  { %16 = vsyncpa [#allocation5], 0 }
   0x2   :  { %17 = vsyncpa [#allocation8], 0  ;;  %s1245_s13 = smov 0  }
   0x3 LB: > { %s313_s16 = sshll.u32 %s1370_s6, 4  ;;  %s1254_s17 = sadd.s32 4294967295, %s1180_s13   ;;  %s1180_s13 = sphi %s1245_s13, %s23_s13   ;;  %s314_s16 = int_to_ptr.hbm [resolvable:$true] %s313_s16 }
   0x4   : > { %p911_p0 = scmp.ge.s32.totalorder %s1180_s13, 1  ;;  %p284_p1 = scmp.lt.s32.totalorder %s1180_s13, 3 }
   0x5   : > { %p975_p2 = scmp.eq.s32.totalorder %s1254_s17, 0  ;;  %s1182_s19 = smov [#allocation4]  }
   0x6   : > { %p1259_p3 = pnand %p911_p0, %p284_p1  ;;  %s315_s20 = sshll.u32 %s1182_s19, 4  ;;  %s316_s20 = int_to_ptr.vmem [resolvable:$true] %s315_s20 }
   0x7   : > { %s336_s23 = sshll.u32 %s1372_s8, 4  ;;  %s1183_s25 = smov [#allocation7]   ;;  %s337_s23 = int_to_ptr.hbm [resolvable:$true] %s336_s23 }
   0x8   : > { %p959_p4 = pneg %p1259_p3  ;;  %s338_s26 = sshll.u32 %s1183_s25, 4  ;;  %s339_s26 = int_to_ptr.vmem [resolvable:$true] %s338_s26 }
   0x9   : > { %s295_s29 = sshll.u32 %s1368_s4, 4  ;;  %s1184_s30 = smov 128   ;;  %s296_s29 = int_to_ptr.hbm [resolvable:$true] %s295_s29 }
   0xa   : > { %p1270_p5 = pnand %p975_p2, %p959_p4  ;;  %s1185_s11 = smov 8  }
   0xb   : > { %s1186_s12 = smov [#allocation2]   ;;  %s325_s21 = sshll.u32 %s1371_s7, 4  ;;  %s326_s21 = int_to_ptr.hbm [resolvable:$true] %s325_s21 }
   0xc   : > { %965 = dma.hbm_to_vmem [thread:$0]  (!%p1270_p5), %s314_s16, 32, %s316_s20, [#allocation5]  }
   0xd   : > { %971 = dma.hbm_to_vmem [thread:$0]  (!%p1270_p5), %s337_s23, 512, %s339_s26, [#allocation8], %s1184_s30, %s1184_s30, %s1185_s11  }
   0xe   : > { %s297_s14 = sshll.u32 %s1186_s12, 4  ;;  %s351_s16 = sshll.u32 %s1373_s9, 4  ;;  %s298_s14 = int_to_ptr.vmem [resolvable:$true] %s297_s14  ;;  %s352_s16 = int_to_ptr.hbm [resolvable:$true] %s351_s16 }
   0xf   : > { %962 = dma.hbm_to_vmem [thread:$0]  (!%p1270_p5), %s296_s29, 2048, %s298_s14, [#allocation3], %s1184_s30, %s1184_s30, %s1185_s11  }
  0x10   : > { %s1187_s20 = smov [#allocation6]   ;;  %s1188_s23 = smov [#allocation9]  }
  0x11   : > { %s327_s27 = sshll.u32 %s1187_s20, 4  ;;  %s353_s26 = sshll.u32 %s1188_s23, 4  ;;  %s328_s27 = int_to_ptr.vmem [resolvable:$true] %s327_s27  ;;  %s354_s26 = int_to_ptr.vmem [resolvable:$true] %s353_s26 }
  0x12   : > { %968 = dma.hbm_to_vmem [thread:$0]  (!%p1270_p5), %s326_s21, 32, %s328_s27, [#allocation5]  }
  0x13   : > { %974 = dma.hbm_to_vmem [thread:$0]  (!%p1270_p5), %s352_s16, 16, %s354_s26, [#allocation8]  }
  0x14   : > { %394 = sbr.rel (%p1259_p3) target bundleno = 1502 (0x5de), region = 60 }
  0x19   : > { %1167 = dma.done.wait (%p975_p2), [#allocation3], 2048  }
  0x1a   : > { %1169 = vsyncadd (%p975_p2), [#allocation3], 4294965248 }
  0x1b   : > { %1171 = dma.done.wait (%p975_p2), [#allocation5], 64  }
  0x1c   : > { %1173 = vsyncadd (%p975_p2), [#allocation5], 4294967232 }
  0x1d   : > { %1175 = dma.done.wait (%p975_p2), [#allocation8], 528  }
  0x1e   : > { %1177 = vsyncadd (%p975_p2), [#allocation8], 4294966768  ;;  %p463_p6 = scmp.lt.s32.totalorder %s1254_s17, 1  ;;  %v495_v0 = vld [vmem:[#allocation2 + $0x38] sm:$0xff]  ;;  %v494_v1 = vld [vmem:[#allocation2 + $0x30] sm:$0xff]  ;;  %vm514_vm0 = vcmask 261120  }
  0x1f   : > { %v491_v2 = vld [vmem:[#allocation2 + $0x18] sm:$0xff]  ;;  %551 = vmatpush.msra.mxu1 %v495_v0  ;;  %v493_v3 = vld [vmem:[#allocation2 + $0x28] sm:$0xff]  ;;  %v490_v4 = vld [vmem:[#allocation2 + $0x10] sm:$0xff]  ;;  %vm609_vm2 = vcmask 64512   ;;  %v1189_v59 = vmov 32.0  }
  0x20   : > { %s1378_s17 = smov (!%p463_p6, %s1254_s17), 1  ;;  %530 = vmatpush.msra.mxu0 %v491_v2  ;;  %v489_v5 = vld [vmem:[#allocation2 + $0x8] sm:$0xff]  ;;  %v492_v10 = vld [vmem:[#allocation2 + $0x20] sm:$0xff]  ;;  %v499_v20 = vld [vmem:[#allocation2 + $0x58] sm:$0xff] }
  0x21   : > { %s1309_s18 = sshll.u32 %s1378_s17, 3  ;;  %552 = vmatpush.msra.mxu1 %v494_v1  ;;  %v488_v11 = vld [vmem:[#allocation2] sm:$0xff]  ;;  %572 = vmatpush.msra.mxu2 %v499_v20  ;;  %v498_v26 = vld [vmem:[#allocation2 + $0x50] sm:$0xff]  ;;  %v497_v27 = vld [vmem:[#allocation2 + $0x48] sm:$0xff] }
  0x22   : > { %s466_s29 = scalar_lea.vmem %s1364_s0, %s1309_s18  ;;  %s470_s12 = scalar_lea.vmem %s1365_s1, %s1309_s18  ;;  %531 = vmatpush.msra.mxu0 %v490_v4  ;;  %v1332_v13 = vld [vmem:[%s1369_s5] sm:$0xf]  ;;  %v503_v37 = vld [vmem:[#allocation2 + $0x78] sm:$0xff]  ;;  %v502_v38 = vld [vmem:[#allocation2 + $0x70] sm:$0xff] }
  0x23   : > { %s474_s19 = scalar_lea.vmem %s1366_s2, %s1309_s18  ;;  %v483_v6 = vld [vmem:[%s466_s29] sm:$0xff]  ;;  %553 = vmatpush.msra.mxu1 %v493_v3  ;;  %v538_v14 = vperm.slane %v1332_v13, 1  ;;  %v513_v15 = vperm.slane %v1332_v13, 0  ;;  %s478_s16 = scalar_lea.vmem %s1367_s3, %s1309_s18  ;;  %573 = vmatpush.msra.mxu2 %v498_v26  ;;  %v559_v34 = vperm.slane %v1332_v13, 2  ;;  %v501_v39 = vld [vmem:[#allocation2 + $0x68] sm:$0xff]  ;;  %v657_v54 = vperm.slane %v1332_v13, 3 }
  0x24   : > { %v484_v7 = vld [vmem:[%s470_s12] sm:$0xff]  ;;  %532 = vmatpush.msra.mxu0 %v489_v5  ;;  %s482_s23 = scalar_lea.vmem %s1374_s10, %s1309_s18 }
  0x25   : > { %v485_v8 = vadd.f32 %v484_v7, %v483_v6  ;;  %v486_v9 = vld [vmem:[%s474_s19] sm:$0xff]  ;;  %554 = vmatpush.msra.mxu1 %v492_v10  ;;  %574 = vmatpush.msra.mxu2 %v497_v27 }
  0x26   : > { %533 = vmatpush.msra.mxu0 %v488_v11  ;;  %v512_v21 = vld [vmem:[%s478_s16] sm:$0xff] }
  0x27   : > { %v1323_v12 = vadd.f32 %v486_v9, %v485_v8  ;;  %vm607_vm1 = vcmp.gt.f32.partialorder %v512_v21, 0.5  ;;  %v496_v28 = vld [vmem:[#allocation2 + $0x40] sm:$0xff]  ;;  %v509_v8 = vld [vmem:[#allocation7 + $0x10] sm:$0xff]  ;;  %v508_v9 = vld [vmem:[#allocation7 + $0x8] sm:$0xff] }
  0x28   : > { %575 = vmatpush.msra.mxu2 %v496_v28  ;;  %673 = vmatpush.msrb.mxu0 %v503_v37  ;;  %v500_v40 = vld [vmem:[#allocation2 + $0x60] sm:$0xff] }
  0x29   : > { %930 = vmatmul.msk.f32.vlgmr.msra.gmra.mxu1 %vm514_vm0, %v1323_v12  ;;  %929 = vmatmul.msk.f32.vlgmr.msra.gmra.mxu0 %vm514_vm0, %v1323_v12  ;;  %v510_v7 = vld [vmem:[#allocation7 + $0x18] sm:$0xff]  ;;  %v507_v10 = vld [vmem:[#allocation7] sm:$0xff] }
  0x2a   : > { %931 = vmatmul.msk.f32.vlgmr.msra.gmra.mxu2 %vm514_vm0, %v1323_v12  ;;  %674 = vmatpush.msrb.mxu0 %v502_v38  ;;  %v506_v21 = vld [vmem:[#allocation6] sm:$0x3]  ;;  %v1001_v28 = vld [vmem:[#allocation9] ss:$0 sm:$0xff] }
  0x2b   : > { %733 = vmatpush.msrb.mxu1 %v510_v7 }
  0x2c   : > { %675 = vmatpush.msrb.mxu0 %v501_v39 }
  0x2d   : > { %734 = vmatpush.msrb.mxu1 %v509_v8 }
  0x2e   : > { %676 = vmatpush.msrb.mxu0 %v500_v40 }
  0x2f   : > { %735 = vmatpush.msrb.mxu1 %v508_v9 }
  0x31   : > { %736 = vmatpush.msrb.mxu1 %v507_v10 }
  0xa6   : > { %v556_v16 = vpop.f32.mrf.mxu1  ;;  %v535_v17 = vpop.f32.mrf.mxu0 }
  0xa7   : > { %v557_v18 = vadd.f32 %v556_v16, %v538_v14  ;;  %v536_v19 = vadd.f32 %v535_v17, %v513_v15 }
  0xa9   : > { %932 = vmatpush.xpose.msk.msra.mxu3 %vm514_vm0, %v557_v18 }
  0xac   : > { %933 = vmatmul.msk.f32.vlgmr.msra.gmra.mxu3 %vm514_vm0, %v536_v19  ;;  %v505_v19 = vld [vmem:[#allocation4] sm:$0x3] }
  0xad   : > { %v577_v35 = vpop.f32.mrf.mxu2 }
  0xae   : > { %v578_v36 = vadd.f32 %v577_v35, %v559_v34 }
  0xb0   : > { %652 = vmatpush.msrb.mxu3 %v578_v36 }
 0x12f   : > { %v603_v22 = vpop.f32.mrf.mxu3 }
 0x130   : > { %v606_v23 = vmul.f32 0.17677669, %v603_v22  ;;  %v711_v22 = vperm.slane %v505_v19, 0 }
 0x132   : > { %v608_v24 = vsel %vm607_vm1, -1e+09, %v606_v23 }
 0x133   : > { %v610_v25 = vsel %vm609_vm2, %v608_v24, -inf }
 0x134   : > { %611 = vmax.xlane.f32.xlu0 %v610_v25  ;;  %v713_v25 = vperm.slane %v506_v21, 0 }
 0x1a7   : > { %v612_v29 = vpop.xlane.xlu0 %611 }
 0x1a8   : > { %v613_v30 = vsub.f32 %v608_v24, %v612_v29 }
 0x1aa   : > { %v614_v31 = vmul.f32 1.442695, %v613_v30 }
 0x1ac   : > { %1002 = vpow2.f32 %v614_v31 }
 0x1b2   : > { %v1003_v32 = vpop.eup %1002 }
 0x1b3   : > { %v616_v33 = vsel %vm609_vm2, %v1003_v32, 0.0 }
 0x1b4   : > { %617 = vadd.xlane.f32.xlu0 %v616_v33 }
 0x227   : > { %v618_v41 = vpop.xlane.xlu0 %617 }
 0x228   : > { %1004 = vrcp.f32 %v618_v41  ;;  %v630_v45 = vand.u32 2147483648, %v618_v41  ;;  %v628_v47 = vand.u32 2147483647, %v618_v41  ;;  %vm624_vm4 = vweird.f32 %v618_v41 }
 0x229   : > { %1006 = vrcp.f32 %v1189_v59 }
 0x22a   : > { %v631_v49 = vor.u32 1.1754944e-38, %v630_v45  ;;  %vm629_vm6 = vcmp.eq.f32.partialorder %v628_v47, 8.507059e+37 }
 0x22e   : > { %v1005_v42 = vpop.eup %1004 }
 0x22f   : > { %v620_v43 = vmul.f32 %v1005_v42, %v618_v41  ;;  %vm625_vm3 = vweird.f32 %v1005_v42  ;;  %v1007_v60 = vpop.eup %1006 }
 0x230   : > { %vm626_vm5 = vmor %vm624_vm4, %vm625_vm3  ;;  %v686_v61 = vmul.f32 32.0, %v1007_v60  ;;  %vm690_vm7 = vweird.f32 %v1007_v60 }
 0x231   : > { %v621_v44 = vsub.f32 1.0, %v620_v43 }
 0x232   : > { %v687_v62 = vsub.f32 1.0, %v686_v61 }
 0x233   : > { %v622_v46 = vmul.f32 %v1005_v42, %v621_v44 }
 0x234   : > { %v688_v63 = vmul.f32 %v1007_v60, %v687_v62 }
 0x235   : > { %v623_v48 = vadd.f32 %v1005_v42, %v622_v46 }
 0x236   : > { %v689_v0 = vadd.f32 %v1007_v60, %v688_v63 }
 0x237   : > { %v627_v50 = vsel %vm626_vm5, %v1005_v42, %v623_v48  ;;  %v765_v48 = vperm.slane %v505_v19, 1 }
 0x238   : > { %v632_v51 = vsel %vm629_vm6, %v631_v49, %v627_v50  ;;  %v691_v1 = vsel %vm690_vm7, %v1007_v60, %v689_v0  ;;  %v767_v50 = vperm.slane %v506_v21, 1 }
 0x239   : > { %v633_v52 = vmul.f32 %v1003_v32, %v632_v51 }
 0x23b   : > { %934 = vmatmul.msk.f32.vlgmr.msrb.gmra.mxu3 %vm609_vm2, %v633_v52 }
 0x2be   : > { %v654_v53 = vpop.f32.mrf.mxu3 }
 0x2bf   : > { %935 = vmatmul.msk.f32.vlgmr.msrb.gmra.mxu0 %vm514_vm0, %v654_v53 }
 0x33c   : > { %v678_v55 = vpop.f32.mrf.mxu0 }
 0x33d   : > { %v679_v56 = vadd.f32 %v678_v55, %v657_v54 }
 0x33f   : > { %v681_v57 = vadd.f32 %v679_v56, %v1323_v12 }
 0x341   : > { %v682_v58 = vsel %vm514_vm0, %v681_v57, 0.0 }
 0x342   : > { %683 = vadd.xlane.f32.xlu1 %v682_v58 }
 0x3b5   : > { %v684_v2 = vpop.xlane.xlu1 %683 }
 0x3b6   : > { %v692_v3 = vmul.f32 %v691_v1, %v684_v2 }
 0x3b8   : > { %v693_v4 = vsub.f32 %v681_v57, %v692_v3 }
 0x3ba   : > { %v694_v5 = vmul.f32 %v693_v4, %v693_v4 }
 0x3bc   : > { %v695_v6 = vsel %vm514_vm0, %v694_v5, 0.0 }
 0x3bd   : > { %696 = vadd.xlane.f32.xlu1 %v695_v6 }
 0x430   : > { %v697_v11 = vpop.xlane.xlu1 %696 }
 0x431   : > { %v698_v12 = vmul.f32 %v697_v11, %v691_v1 }
 0x433   : > { %v699_v13 = vadd.f32 1e-05, %v698_v12 }
 0x435   : > { %1008 = vrsqrt.f32 %v699_v13  ;;  %vm706_vm9 = vweird.f32 %v699_v13 }
 0x43b   : > { %v1009_v14 = vpop.eup %1008 }
 0x43c   : > { %v701_v15 = vmul.f32 %v1009_v14, %v699_v13  ;;  %vm707_vm8 = vweird.f32 %v1009_v14 }
 0x43d   : > { %vm708_vm10 = vmor %vm706_vm9, %vm707_vm8 }
 0x43e   : > { %v702_v16 = vmul.f32 %v1009_v14, %v701_v15 }
 0x440   : > { %v703_v17 = vmul.f32 0.5, %v702_v16 }
 0x442   : > { %v704_v18 = vsub.f32 1.5, %v703_v17 }
 0x444   : > { %v705_v20 = vmul.f32 %v1009_v14, %v704_v18 }
 0x446   : > { %v709_v23 = vsel %vm708_vm10, %v1009_v14, %v705_v20 }
 0x447   : > { %v710_v24 = vmul.f32 %v709_v23, %v693_v4 }
 0x449   : > { %v712_v26 = vmul.f32 %v711_v22, %v710_v24 }
 0x44b   : > { %v714_v27 = vadd.f32 %v713_v25, %v712_v26 }
 0x44d   : > { %936 = vmatmul.msk.f32.vlgmr.msrb.gmra.mxu1 %vm514_vm0, %v714_v27 }
 0x4ca   : > { %v738_v29 = vpop.f32.mrf.mxu1 }
 0x4cb   : > { %v739_v30 = vadd.f32 %v1001_v28, %v738_v29 }
 0x4cd   : > { %v741_v31 = vmax.f32 %v739_v30, 0.0 }
 0x4cf   : > { %v742_v32 = vadd.f32 %v741_v31, %v714_v27 }
 0x4d1   : > { %v743_v33 = vsel %vm514_vm0, %v742_v32, 0.0 }
 0x4d2   : > { %744 = vadd.xlane.f32.xlu2 %v743_v33 }
 0x545   : > { %v745_v34 = vpop.xlane.xlu2 %744 }
 0x546   : > { %v746_v35 = vmul.f32 %v745_v34, %v691_v1 }
 0x548   : > { %v747_v36 = vsub.f32 %v742_v32, %v746_v35 }
 0x54a   : > { %v748_v37 = vmul.f32 %v747_v36, %v747_v36 }
 0x54c   : > { %v749_v38 = vsel %vm514_vm0, %v748_v37, 0.0 }
 0x54d   : > { %750 = vadd.xlane.f32.xlu2 %v749_v38 }
 0x5c0   : > { %v751_v39 = vpop.xlane.xlu2 %750 }
 0x5c1   : > { %v752_v40 = vmul.f32 %v751_v39, %v691_v1 }
 0x5c3   : > { %v753_v41 = vadd.f32 1e-05, %v752_v40 }
 0x5c5   : > { %1010 = vrsqrt.f32 %v753_v41  ;;  %vm760_vm12 = vweird.f32 %v753_v41 }
 0x5cb   : > { %v1011_v42 = vpop.eup %1010 }
 0x5cc   : > { %v755_v43 = vmul.f32 %v1011_v42, %v753_v41  ;;  %vm761_vm11 = vweird.f32 %v1011_v42 }
 0x5cd   : > { %vm762_vm13 = vmor %vm760_vm12, %vm761_vm11 }
 0x5ce   : > { %v756_v44 = vmul.f32 %v1011_v42, %v755_v43 }
 0x5d0   : > { %v757_v45 = vmul.f32 0.5, %v756_v44 }
 0x5d2   : > { %v758_v46 = vsub.f32 1.5, %v757_v45 }
 0x5d4   : > { %v759_v47 = vmul.f32 %v1011_v42, %v758_v46 }
 0x5d6   : > { %v763_v49 = vsel %vm762_vm13, %v1011_v42, %v759_v47 }
 0x5d7   : > { %v764_v51 = vmul.f32 %v763_v49, %v747_v36 }
 0x5d9   : > { %v766_v52 = vmul.f32 %v765_v48, %v764_v51 }
 0x5db   : > { %v768_v53 = vadd.f32 %v767_v50, %v766_v52 }
 0x5dd   : > { %769 = vst.msk [vmem:[%s482_s23] sm:$0xff] %vm514_vm0, %v768_v53 }
 0x5de PF: > { %s23_s13 = sadd.s32 1, %s1180_s13  }
 0x5df   : > { %p20_p7 = scmp.ge.s32.totalorder %s23_s13, 4  }
 0x5e1   :  { %22 = sbr.rel (!%p20_p7) target bundleno = 3 (0x3), region = 120 }
 0x5e6   :  { %789 = vsyncpa [#allocation3], 1 }
 0x5e7   :  { %791 = vsyncpa [#allocation3 + $0x1], 1 }
 0x5e8   :  { %792 = vsyncpa [#allocation5], 1 }
 0x5e9   :  { %793 = vsyncpa [#allocation8], 1 }

// kernel: history_dialogue_forward.17
= control target key start
LH: loop header
LB: loop body
LE: loop exit
PB: predicated region body
PF: predicated region fallthrough
CT: control target
= control target key end

     0   :  { %s1661_s0 = inlined_call_operand.vmem [shape: f32[2,8,32], index: 0, kind: input, shape index: {}]   ;;  %s1662_s1 = inlined_call_operand.vmem [shape: f32[2,8,32], index: 1, kind: input, shape index: {}]   ;;  %s1663_s2 = inlined_call_operand.vmem [shape: f32[2,1,32], index: 2, kind: input, shape index: {}]   ;;  %s1664_s3 = inlined_call_operand.vmem [shape: f32[2,1,32], index: 3, kind: input, shape index: {}]   ;;  %s1665_s4 = inlined_call_operand.vmem [shape: f32[2,8,8], index: 4, kind: input, shape index: {}]   ;;  %s1666_s5 = inlined_call_operand.hbm [shape: f32[4,32,32], index: 5, kind: input, shape index: {}]   ;;  %s1667_s6 = inlined_call_operand.vmem [shape: f32[4,32], index: 6, kind: input, shape index: {}]   ;;  %s1668_s7 = inlined_call_operand.hbm [shape: f32[2,32], index: 7, kind: input, shape index: {}]   ;;  %s1669_s8 = inlined_call_operand.hbm [shape: f32[2,32], index: 8, kind: input, shape index: {}]   ;;  %s1670_s9 = inlined_call_operand.vmem [shape: f32[2,32,32], index: 9, kind: input, shape index: {}]   ;;  %s1671_s10 = inlined_call_operand.hbm [shape: f32[2,32], index: 10, kind: input, shape index: {}]   ;;  %s1672_s11 = inlined_call_operand.hbm [shape: f32[32,32], index: 11, kind: input, shape index: {}]   ;;  %s1673_s12 = inlined_call_operand.hbm [shape: f32[1,32], index: 12, kind: input, shape index: {}]   ;;  %s1674_s13 = inlined_call_operand.vmem [shape: f32[2,8,32], index: 13, kind: output, shape index: {}]  }
   0x1   :  { %1675 = sst [smem:[#allocation16_spill]] %s1666_s5 }
   0x2   :  { %1676 = sst [smem:[#allocation17_spill]] %s1668_s7 }
   0x3   :  { %18 = vsyncpa [#allocation3], 0 }
   0x4   :  { %19 = vsyncpa [#allocation5], 0 }
   0x5   :  { %20 = vsyncpa [#allocation8], 0 }
   0x6   :  { %21 = vsyncpa [#allocation11], 0  ;;  %s1499_s25 = smov 0  }
   0x7 LB: > { %s1677_s7 = sld [smem:[#allocation17_spill]]  ;;  %s1508_s29 = sadd.s32 4294967295, %s1418_s25   ;;  %s1418_s25 = sphi %s1499_s25, %s27_s25  }
   0x8   : > { %p1100_p0 = scmp.ge.s32.totalorder %s1418_s25, 1  ;;  %p356_p1 = scmp.lt.s32.totalorder %s1418_s25, 3 }
   0x9   : > { %p1174_p2 = scmp.eq.s32.totalorder %s1508_s29, 0  ;;  %s1420_s14 = smov [#allocation4]  }
   0xa   : > { %p1513_p3 = pnand %p1100_p0, %p356_p1  ;;  %s387_s15 = sshll.u32 %s1420_s14, 4  ;;  %s388_s15 = int_to_ptr.vmem [resolvable:$true] %s387_s15 }
   0xb   : > { %s412_s18 = sshll.u32 %s1671_s10, 4  ;;  %s1679_s5 = sld [smem:[#allocation16_spill]]  ;;  %s413_s18 = int_to_ptr.hbm [resolvable:$true] %s412_s18 }
   0xc   : > { %p1155_p4 = pneg %p1513_p3  ;;  %s1421_s23 = smov [#allocation7]  }
   0xd   : > { %s385_s28 = sshll.u32 %s1677_s7, 4  ;;  %s414_s24 = sshll.u32 %s1421_s23, 4  ;;  %s386_s28 = int_to_ptr.hbm [resolvable:$true] %s385_s28  ;;  %s415_s24 = int_to_ptr.vmem [resolvable:$true] %s414_s24 }
   0xe   : > { %p1527_p5 = pnand %p1174_p2, %p1155_p4  ;;  %s1422_s26 = smov [#allocation2]  }
   0xf   : > { %s369_s27 = sshll.u32 %s1422_s26, 4  ;;  %s1423_s14 = smov 128   ;;  %s370_s27 = int_to_ptr.vmem [resolvable:$true] %s369_s27 }
  0x10   : > { %1161 = dma.hbm_to_vmem [thread:$0]  (!%p1527_p5), %s386_s28, 32, %s388_s15, [#allocation5]  }
  0x11   : > { %s367_s21 = sshll.u32 %s1679_s5, 4  ;;  %s1424_s16 = smov 8   ;;  %s368_s21 = int_to_ptr.hbm [resolvable:$true] %s367_s21 }
  0x12   : > { %1167 = dma.hbm_to_vmem [thread:$0]  (!%p1527_p5), %s413_s18, 32, %s415_s24, [#allocation8]  }
  0x13   : > { %1158 = dma.hbm_to_vmem [thread:$0]  (!%p1527_p5), %s368_s21, 2048, %s370_s27, [#allocation3], %s1423_s14, %s1423_s14, %s1424_s16  }
  0x14   : > { %s397_s20 = sshll.u32 %s1669_s8, 4  ;;  %s1425_s23 = smov [#allocation6]   ;;  %s398_s20 = int_to_ptr.hbm [resolvable:$true] %s397_s20 }
  0x15   : > { %s399_s5 = sshll.u32 %s1425_s23, 4  ;;  %s423_s18 = sshll.u32 %s1672_s11, 4  ;;  %s400_s5 = int_to_ptr.vmem [resolvable:$true] %s399_s5  ;;  %s424_s18 = int_to_ptr.hbm [resolvable:$true] %s423_s18 }
  0x16   : > { %1164 = dma.hbm_to_vmem [thread:$0]  (!%p1527_p5), %s398_s20, 32, %s400_s5, [#allocation5]  }
  0x17   : > { %s1426_s24 = smov [#allocation9]   ;;  %s438_s27 = sshll.u32 %s1673_s12, 4  ;;  %s439_s27 = int_to_ptr.hbm [resolvable:$true] %s438_s27 }
  0x18   : > { %s425_s26 = sshll.u32 %s1426_s24, 4  ;;  %s1427_s17 = smov [#allocation10]   ;;  %s426_s26 = int_to_ptr.vmem [resolvable:$true] %s425_s26 }
  0x19   : > { %1170 = dma.hbm_to_vmem [thread:$0]  (!%p1527_p5), %s424_s18, 512, %s426_s26, [#allocation8], %s1423_s14, %s1423_s14, %s1424_s16  }
  0x1a   : > { %s440_s19 = sshll.u32 %s1427_s17, 4  ;;  %486 = sbr.rel (%p1513_p3) target bundleno = 1782 (0x6f6), region = 72  ;;  %s441_s19 = int_to_ptr.vmem [resolvable:$true] %s440_s19 }
  0x1b   : > { %1173 = dma.hbm_to_vmem [thread:$0]  (!%p1527_p5), %s439_s27, 16, %s441_s19, [#allocation11]  }
  0x1f   : > { %1401 = dma.done.wait (%p1174_p2), [#allocation3], 2048  }
  0x20   : > { %1403 = vsyncadd (%p1174_p2), [#allocation3], 4294965248 }
  0x21   : > { %1405 = dma.done.wait (%p1174_p2), [#allocation5], 64  }
  0x22   : > { %1407 = vsyncadd (%p1174_p2), [#allocation5], 4294967232 }
  0x23   : > { %1409 = dma.done.wait (%p1174_p2), [#allocation8], 544  }
  0x24   : > { %1411 = vsyncadd (%p1174_p2), [#allocation8], 4294966752 }
  0x25   : > { %1413 = dma.done.wait (%p1174_p2), [#allocation11], 16  }
  0x26   : > { %1415 = vsyncadd (%p1174_p2), [#allocation11], 4294967280  ;;  %p568_p6 = scmp.lt.s32.totalorder %s1508_s29, 1  ;;  %v610_v0 = vld [vmem:[#allocation2 + $0x38] sm:$0xff]  ;;  %v609_v1 = vld [vmem:[#allocation2 + $0x30] sm:$0xff]  ;;  %vm633_vm0 = vcmask 261120  }
  0x27   : > { %v606_v2 = vld [vmem:[#allocation2 + $0x18] sm:$0xff]  ;;  %670 = vmatpush.msra.mxu1 %v610_v0  ;;  %v608_v3 = vld [vmem:[#allocation2 + $0x28] sm:$0xff]  ;;  %v605_v4 = vld [vmem:[#allocation2 + $0x10] sm:$0xff]  ;;  %vm728_vm2 = vcmask 64512   ;;  %v1428_v61 = vmov 32.0  }
  0x28   : > { %s1682_s29 = smov (!%p568_p6, %s1508_s29), 1  ;;  %649 = vmatpush.msra.mxu0 %v606_v2  ;;  %v604_v5 = vld [vmem:[#allocation2 + $0x8] sm:$0xff]  ;;  %v607_v10 = vld [vmem:[#allocation2 + $0x20] sm:$0xff]  ;;  %v614_v22 = vld [vmem:[#allocation2 + $0x58] sm:$0xff] }
  0x29   : > { %s1572_s5 = sshll.u32 %s1682_s29, 3  ;;  %s578_s15 = scalar_lea.vmem %s1663_s2, %s1682_s29  ;;  %671 = vmatpush.msra.mxu1 %v609_v1  ;;  %v603_v12 = vld [vmem:[#allocation2] sm:$0xff]  ;;  %691 = vmatpush.msra.mxu2 %v614_v22  ;;  %v613_v28 = vld [vmem:[#allocation2 + $0x50] sm:$0xff]  ;;  %v612_v29 = vld [vmem:[#allocation2 + $0x48] sm:$0xff] }
  0x2a   : > { %s571_s22 = scalar_lea.vmem %s1661_s0, %s1572_s5  ;;  %s575_s20 = scalar_lea.vmem %s1662_s1, %s1572_s5  ;;  %650 = vmatpush.msra.mxu0 %v605_v4  ;;  %v1203_v9 = vld [vmem:[%s578_s15] ss:$0 sm:$0xff]  ;;  %v618_v39 = vld [vmem:[#allocation2 + $0x78] sm:$0xff]  ;;  %v617_v40 = vld [vmem:[#allocation2 + $0x70] sm:$0xff] }
  0x2b   : > { %s581_s26 = scalar_lea.vmem %s1664_s3, %s1682_s29  ;;  %v590_v6 = vld [vmem:[%s571_s22] sm:$0xff]  ;;  %672 = vmatpush.msra.mxu1 %v608_v3  ;;  %s585_s19 = scalar_lea.vmem %s1665_s4, %s1572_s5  ;;  %692 = vmatpush.msra.mxu2 %v613_v28  ;;  %v616_v41 = vld [vmem:[#allocation2 + $0x68] sm:$0xff] }
  0x2c   : > { %v591_v7 = vld [vmem:[%s575_s20] sm:$0xff]  ;;  %651 = vmatpush.msra.mxu0 %v604_v5  ;;  %s589_s30 = scalar_lea.vmem %s1674_s13, %s1572_s5 }
  0x2d   : > { %v592_v8 = vadd.f32 %v591_v7, %v590_v6  ;;  %v1204_v11 = vld [vmem:[%s581_s26] ss:$0 sm:$0xff]  ;;  %673 = vmatpush.msra.mxu1 %v607_v10  ;;  %693 = vmatpush.msra.mxu2 %v612_v29  ;;  %v624_v10 = vld [vmem:[%s1670_s9 + $0x10] sm:$0xff] }
  0x2e   : > { %652 = vmatpush.msra.mxu0 %v603_v12  ;;  %v1597_v15 = vld [vmem:[%s1667_s6] sm:$0xf] }
  0x2f   : > { %v597_v13 = vadd.f32 %v1203_v9, %v592_v8  ;;  %v657_v16 = vperm.slane %v1597_v15, 1  ;;  %v632_v17 = vperm.slane %v1597_v15, 0  ;;  %v631_v23 = vld [vmem:[%s585_s19] sm:$0xff]  ;;  %v678_v36 = vperm.slane %v1597_v15, 2  ;;  %v625_v9 = vld [vmem:[%s1670_s9 + $0x18] sm:$0xff] }
  0x30   : > { %vm726_vm1 = vcmp.gt.f32.partialorder %v631_v23, 0.5  ;;  %v611_v30 = vld [vmem:[#allocation2 + $0x40] sm:$0xff]  ;;  %792 = vmatpush.msrb.mxu0 %v618_v39  ;;  %v776_v56 = vperm.slane %v1597_v15, 3  ;;  %850 = vmatpush.msrb.mxu1 %v625_v9 }
  0x31   : > { %v1588_v14 = vadd.f32 %v1204_v11, %v597_v13  ;;  %694 = vmatpush.msra.mxu2 %v611_v30  ;;  %v615_v42 = vld [vmem:[#allocation2 + $0x60] sm:$0xff]  ;;  %v623_v11 = vld [vmem:[%s1670_s9 + $0x8] sm:$0xff]  ;;  %v629_v13 = vld [vmem:[%s1670_s9 + $0x38] sm:$0xff] }
  0x32   : > { %793 = vmatpush.msrb.mxu0 %v617_v40  ;;  %851 = vmatpush.msrb.mxu1 %v624_v10  ;;  %v622_v12 = vld [vmem:[%s1670_s9] sm:$0xff] }
  0x33   : > { %1120 = vmatmul.msk.f32.vlgmr.msra.gmra.mxu1 %vm633_vm0, %v1588_v14  ;;  %1119 = vmatmul.msk.f32.vlgmr.msra.gmra.mxu0 %vm633_vm0, %v1588_v14  ;;  %v620_v23 = vld [vmem:[#allocation4] sm:$0x3] }
  0x34   : > { %1121 = vmatmul.msk.f32.vlgmr.msra.gmra.mxu2 %vm633_vm0, %v1588_v14  ;;  %794 = vmatpush.msrb.mxu0 %v616_v41 }
  0x35   : > { %852 = vmatpush.msrb.mxu1 %v623_v11  ;;  %875 = vmatpush.msrb.mxu2 %v629_v13 }
  0x36   : > { %795 = vmatpush.msrb.mxu0 %v615_v42 }
  0x37   : > { %853 = vmatpush.msrb.mxu1 %v622_v12 }
  0xb0   : > { %v675_v18 = vpop.f32.mrf.mxu1  ;;  %v654_v19 = vpop.f32.mrf.mxu0 }
  0xb1   : > { %v676_v20 = vadd.f32 %v675_v18, %v657_v16  ;;  %v655_v21 = vadd.f32 %v654_v19, %v632_v17 }
  0xb3   : > { %1122 = vmatpush.xpose.msk.msra.mxu3 %vm633_vm0, %v676_v20 }
  0xb6   : > { %1123 = vmatmul.msk.f32.vlgmr.msra.gmra.mxu3 %vm633_vm0, %v655_v21 }
  0xb7   : > { %v696_v37 = vpop.f32.mrf.mxu2 }
  0xb8   : > { %v697_v38 = vadd.f32 %v696_v37, %v678_v36 }
  0xba   : > { %771 = vmatpush.msrb.mxu3 %v697_v38 }
 0x139   : > { %v722_v24 = vpop.f32.mrf.mxu3 }
 0x13a   : > { %v725_v25 = vmul.f32 0.17677669, %v722_v24 }
 0x13c   : > { %v727_v26 = vsel %vm726_vm1, -1e+09, %v725_v25  ;;  %v621_v25 = vld [vmem:[#allocation6] sm:$0x3] }
 0x13d   : > { %v729_v27 = vsel %vm728_vm2, %v727_v26, -inf  ;;  %v832_v29 = vperm.slane %v621_v25, 0 }
 0x13e   : > { %730 = vmax.xlane.f32.xlu0 %v729_v27 }
 0x1b1   : > { %v731_v31 = vpop.xlane.xlu0 %730 }
 0x1b2   : > { %v732_v32 = vsub.f32 %v727_v26, %v731_v31  ;;  %v830_v26 = vperm.slane %v620_v23, 0 }
 0x1b4   : > { %v733_v33 = vmul.f32 1.442695, %v732_v32  ;;  %v627_v32 = vld [vmem:[%s1670_s9 + $0x28] sm:$0xff] }
 0x1b6   : > { %1206 = vpow2.f32 %v733_v33  ;;  %v626_v33 = vld [vmem:[%s1670_s9 + $0x20] sm:$0xff] }
 0x1bc   : > { %v1207_v34 = vpop.eup %1206 }
 0x1bd   : > { %v735_v35 = vsel %vm728_vm2, %v1207_v34, 0.0 }
 0x1be   : > { %736 = vadd.xlane.f32.xlu0 %v735_v35 }
 0x231   : > { %v737_v43 = vpop.xlane.xlu0 %736 }
 0x232   : > { %1208 = vrcp.f32 %v737_v43  ;;  %v749_v47 = vand.u32 2147483648, %v737_v43  ;;  %v747_v49 = vand.u32 2147483647, %v737_v43  ;;  %vm743_vm4 = vweird.f32 %v737_v43 }
 0x233   : > { %1210 = vrcp.f32 %v1428_v61 }
 0x234   : > { %v750_v51 = vor.u32 1.1754944e-38, %v749_v47  ;;  %vm748_vm6 = vcmp.eq.f32.partialorder %v747_v49, 8.507059e+37 }
 0x238   : > { %v1209_v44 = vpop.eup %1208 }
 0x239   : > { %v739_v45 = vmul.f32 %v1209_v44, %v737_v43  ;;  %vm744_vm3 = vweird.f32 %v1209_v44  ;;  %v1211_v62 = vpop.eup %1210 }
 0x23a   : > { %vm745_vm5 = vmor %vm743_vm4, %vm744_vm3  ;;  %v805_v63 = vmul.f32 32.0, %v1211_v62  ;;  %vm809_vm7 = vweird.f32 %v1211_v62 }
 0x23b   : > { %v740_v46 = vsub.f32 1.0, %v739_v45 }
 0x23c   : > { %v806_v0 = vsub.f32 1.0, %v805_v63  ;;  %v907_v63 = vperm.slane %v620_v23, 1 }
 0x23d   : > { %v741_v48 = vmul.f32 %v1209_v44, %v740_v46 }
 0x23e   : > { %v807_v1 = vmul.f32 %v1211_v62, %v806_v0 }
 0x23f   : > { %v742_v50 = vadd.f32 %v1209_v44, %v741_v48 }
 0x240   : > { %v808_v2 = vadd.f32 %v1211_v62, %v807_v1  ;;  %v909_v1 = vperm.slane %v621_v25, 1 }
 0x241   : > { %v746_v52 = vsel %vm745_vm5, %v1209_v44, %v742_v50  ;;  %v914_v50 = vld [vmem:[#allocation9 + $0x18] sm:$0xff] }
 0x242   : > { %v751_v53 = vsel %vm748_vm6, %v750_v51, %v746_v52  ;;  %v1617_v3 = vsel %vm809_vm7, %v1211_v62, %v808_v2  ;;  %934 = vmatpush.msra.mxu3 %v914_v50  ;;  %v913_v51 = vld [vmem:[#allocation9 + $0x10] sm:$0xff]  ;;  %v912_v52 = vld [vmem:[#allocation9 + $0x8] sm:$0xff] }
 0x243   : > { %v752_v54 = vmul.f32 %v1207_v34, %v751_v53  ;;  %v630_v34 = vld [vmem:[#allocation7] sm:$0x3]  ;;  %v911_v53 = vld [vmem:[#allocation9] sm:$0xff] }
 0x244   : > { %v834_v35 = vperm.slane %v630_v34, 0  ;;  %v859_v39 = vperm.slane %v630_v34, 1  ;;  %935 = vmatpush.msra.mxu3 %v913_v51 }
 0x245   : > { %1124 = vmatmul.msk.f32.vlgmr.msrb.gmra.mxu3 %vm728_vm2, %v752_v54 }
 0x246   : > { %936 = vmatpush.msra.mxu3 %v912_v52 }
 0x248   : > { %937 = vmatpush.msra.mxu3 %v911_v53 }
 0x2c8   : > { %v773_v55 = vpop.f32.mrf.mxu3 }
 0x2c9   : > { %1125 = vmatmul.msk.f32.vlgmr.msrb.gmra.mxu0 %vm633_vm0, %v773_v55 }
 0x346   : > { %v797_v57 = vpop.f32.mrf.mxu0 }
 0x347   : > { %v798_v58 = vadd.f32 %v797_v57, %v776_v56 }
 0x349   : > { %v800_v59 = vadd.f32 %v798_v58, %v1588_v14  ;;  %v628_v14 = vld [vmem:[%s1670_s9 + $0x30] sm:$0xff] }
 0x34a   : > { %876 = vmatpush.msrb.mxu2 %v628_v14 }
 0x34b   : > { %v801_v60 = vsel %vm633_vm0, %v800_v59, 0.0 }
 0x34c   : > { %802 = vadd.xlane.f32.xlu1 %v801_v60  ;;  %877 = vmatpush.msrb.mxu2 %v627_v32 }
 0x34e   : > { %878 = vmatpush.msrb.mxu2 %v626_v33 }
 0x3bf   : > { %v803_v4 = vpop.xlane.xlu1 %802 }
 0x3c0   : > { %v811_v5 = vmul.f32 %v1617_v3, %v803_v4 }
 0x3c2   : > { %v812_v6 = vsub.f32 %v800_v59, %v811_v5 }
 0x3c4   : > { %v813_v7 = vmul.f32 %v812_v6, %v812_v6 }
 0x3c6   : > { %v814_v8 = vsel %vm633_vm0, %v813_v7, 0.0 }
 0x3c7   : > { %815 = vadd.xlane.f32.xlu1 %v814_v8 }
 0x43a   : > { %v816_v15 = vpop.xlane.xlu1 %815 }
 0x43b   : > { %v817_v16 = vmul.f32 %v816_v15, %v1617_v3 }
 0x43d   : > { %v818_v17 = vadd.f32 1e-05, %v817_v16 }
 0x43f   : > { %1212 = vrsqrt.f32 %v818_v17  ;;  %vm825_vm9 = vweird.f32 %v818_v17 }
 0x445   : > { %v1213_v18 = vpop.eup %1212 }
 0x446   : > { %v820_v19 = vmul.f32 %v1213_v18, %v818_v17  ;;  %vm826_vm8 = vweird.f32 %v1213_v18 }
 0x447   : > { %vm827_vm10 = vmor %vm825_vm9, %vm826_vm8 }
 0x448   : > { %v821_v20 = vmul.f32 %v1213_v18, %v820_v19 }
 0x44a   : > { %v822_v21 = vmul.f32 0.5, %v821_v20 }
 0x44c   : > { %v823_v22 = vsub.f32 1.5, %v822_v21 }
 0x44e   : > { %v824_v24 = vmul.f32 %v1213_v18, %v823_v22 }
 0x450   : > { %v828_v27 = vsel %vm827_vm10, %v1213_v18, %v824_v24 }
 0x451   : > { %v829_v28 = vmul.f32 %v828_v27, %v812_v6 }
 0x453   : > { %v831_v30 = vmul.f32 %v830_v26, %v829_v28 }
 0x455   : > { %v833_v31 = vadd.f32 %v832_v29, %v831_v30 }
 0x457   : > { %1126 = vmatmul.msk.f32.vlgmr.msrb.gmra.mxu1 %vm633_vm0, %v833_v31 }
 0x4d4   : > { %v855_v36 = vpop.f32.mrf.mxu1 }
 0x4d5   : > { %v856_v37 = vadd.f32 %v855_v36, %v834_v35 }
 0x4d7   : > { %v858_v38 = vmax.f32 %v856_v37, 0.0 }
 0x4d9   : > { %1127 = vmatmul.msk.f32.vlgmr.msrb.gmra.mxu2 %vm633_vm0, %v858_v38 }
 0x55c   : > { %v880_v40 = vpop.f32.mrf.mxu2 }
 0x55d   : > { %v881_v41 = vadd.f32 %v880_v40, %v859_v39 }
 0x55f   : > { %v883_v42 = vmax.f32 %v881_v41, 0.0 }
 0x561   : > { %v884_v43 = vadd.f32 %v883_v42, %v833_v31 }
 0x563   : > { %v885_v44 = vsel %vm633_vm0, %v884_v43, 0.0 }
 0x564   : > { %886 = vadd.xlane.f32.xlu2 %v885_v44 }
 0x5d7   : > { %v887_v45 = vpop.xlane.xlu2 %886 }
 0x5d8   : > { %v888_v46 = vmul.f32 %v887_v45, %v1617_v3 }
 0x5da   : > { %v889_v47 = vsub.f32 %v884_v43, %v888_v46 }
 0x5dc   : > { %v890_v48 = vmul.f32 %v889_v47, %v889_v47 }
 0x5de   : > { %v891_v49 = vsel %vm633_vm0, %v890_v48, 0.0 }
 0x5df   : > { %892 = vadd.xlane.f32.xlu2 %v891_v49 }
 0x652   : > { %v893_v54 = vpop.xlane.xlu2 %892 }
 0x653   : > { %v894_v55 = vmul.f32 %v893_v54, %v1617_v3  ;;  %v1205_v3 = vld [vmem:[#allocation10] ss:$0 sm:$0xff] }
 0x655   : > { %v895_v56 = vadd.f32 1e-05, %v894_v55 }
 0x657   : > { %1214 = vrsqrt.f32 %v895_v56  ;;  %vm902_vm12 = vweird.f32 %v895_v56 }
 0x65d   : > { %v1215_v57 = vpop.eup %1214 }
 0x65e   : > { %v897_v58 = vmul.f32 %v1215_v57, %v895_v56  ;;  %vm903_vm11 = vweird.f32 %v1215_v57 }
 0x65f   : > { %vm904_vm13 = vmor %vm902_vm12, %vm903_vm11 }
 0x660   : > { %v898_v59 = vmul.f32 %v1215_v57, %v897_v58 }
 0x662   : > { %v899_v60 = vmul.f32 0.5, %v898_v59 }
 0x664   : > { %v900_v61 = vsub.f32 1.5, %v899_v60 }
 0x666   : > { %v901_v62 = vmul.f32 %v1215_v57, %v900_v61 }
 0x668   : > { %v905_v0 = vsel %vm904_vm13, %v1215_v57, %v901_v62 }
 0x669   : > { %v906_v2 = vmul.f32 %v905_v0, %v889_v47 }
 0x66b   : > { %v908_v4 = vmul.f32 %v907_v63, %v906_v2 }
 0x66d   : > { %v910_v5 = vadd.f32 %v909_v1, %v908_v4 }
 0x66f   : > { %1128 = vmatmul.msk.f32.vlgmr.msra.gmra.mxu3 %vm633_vm0, %v910_v5 }
 0x6f2   : > { %v939_v6 = vpop.f32.mrf.mxu3 }
 0x6f3   : > { %v940_v7 = vadd.f32 %v1205_v3, %v939_v6 }
 0x6f5   : > { %942 = vst.msk [vmem:[%s589_s30] sm:$0xff] %vm633_vm0, %v940_v7 }
 0x6f6 PF: > { %s27_s25 = sadd.s32 1, %s1418_s25  }
 0x6f7   : > { %p24_p7 = scmp.ge.s32.totalorder %s27_s25, 4  }
 0x6f9   :  { %26 = sbr.rel (!%p24_p7) target bundleno = 7 (0x7), region = 139 }
 0x6fe   :  { %962 = vsyncpa [#allocation3], 1 }
 0x6ff   :  { %964 = vsyncpa [#allocation3 + $0x1], 1 }
 0x700   :  { %965 = vsyncpa [#allocation5], 1 }
 0x701   :  { %966 = vsyncpa [#allocation8], 1 }
 0x702   :  { %967 = vsyncpa [#allocation11], 1 }

// kernel: history_dialogue_forward.15
= control target key start
LH: loop header
LB: loop body
LE: loop exit
PB: predicated region body
PF: predicated region fallthrough
CT: control target
= control target key end

     0   :  { %18 = vsyncpa [#allocation3], 0  ;;  %s1358_s0 = inlined_call_operand.vmem [shape: f32[2,8,32], index: 0, kind: input, shape index: {}]   ;;  %s1359_s1 = inlined_call_operand.vmem [shape: f32[2,8,32], index: 1, kind: input, shape index: {}]   ;;  %s1360_s2 = inlined_call_operand.vmem [shape: f32[2,1,32], index: 2, kind: input, shape index: {}]   ;;  %s1361_s3 = inlined_call_operand.vmem [shape: f32[2,1,32], index: 3, kind: input, shape index: {}]   ;;  %s1362_s4 = inlined_call_operand.vmem [shape: f32[2,8,8], index: 4, kind: input, shape index: {}]   ;;  %s1363_s5 = inlined_call_operand.hbm [shape: f32[4,32,32], index: 5, kind: input, shape index: {}]   ;;  %s1364_s6 = inlined_call_operand.vmem [shape: f32[4,32], index: 6, kind: input, shape index: {}]   ;;  %s1365_s7 = inlined_call_operand.vmem [shape: f32[2,32], index: 7, kind: input, shape index: {}]   ;;  %s1366_s8 = inlined_call_operand.vmem [shape: f32[2,32], index: 8, kind: input, shape index: {}]   ;;  %s1367_s9 = inlined_call_operand.vmem [shape: f32[2,32,32], index: 9, kind: input, shape index: {}]   ;;  %s1368_s10 = inlined_call_operand.vmem [shape: f32[2,32], index: 10, kind: input, shape index: {}]   ;;  %s1369_s11 = inlined_call_operand.vmem [shape: f32[32,32], index: 11, kind: input, shape index: {}]   ;;  %s1370_s12 = inlined_call_operand.hbm [shape: f32[1,32], index: 12, kind: input, shape index: {}]   ;;  %s1371_s13 = inlined_call_operand.vmem [shape: f32[2,8,32], index: 13, kind: output, shape index: {}]  }
   0x1   :  { %19 = vsyncpa [#allocation5], 0  ;;  %s1221_s25 = smov 0  }
   0x2 LB: > { %s365_s28 = sshll.u32 %s1363_s5, 4  ;;  %s1000_s29 = sadd.s32 4294967295, %s1144_s25   ;;  %s1144_s25 = sphi %s1221_s25, %s25_s25   ;;  %s366_s28 = int_to_ptr.hbm [resolvable:$true] %s365_s28 }
   0x3   : > { %p1002_p0 = scmp.ge.s32.totalorder %s1144_s25, 1  ;;  %p354_p1 = scmp.lt.s32.totalorder %s1144_s25, 3 }
   0x4   : > { %p1040_p2 = scmp.eq.s32.totalorder %s1000_s29, 0  ;;  %s1146_s14 = smov [#allocation2]  }
   0x5   : > { %p1232_p3 = pnand %p1002_p0, %p354_p1  ;;  %s367_s15 = sshll.u32 %s1146_s14, 4  ;;  %s368_s15 = int_to_ptr.vmem [resolvable:$true] %s367_s15 }
   0x6   : > { %s398_s18 = sshll.u32 %s1370_s12, 4  ;;  %s1147_s19 = smov [#allocation4]   ;;  %s399_s18 = int_to_ptr.hbm [resolvable:$true] %s398_s18 }
   0x7   : > { %p1033_p4 = pneg %p1232_p3  ;;  %s400_s20 = sshll.u32 %s1147_s19, 4  ;;  %s401_s20 = int_to_ptr.vmem [resolvable:$true] %s400_s20 }
   0x8   : > { %s1148_s21 = smov 128   ;;  %s1149_s22 = smov 8  }
   0x9   : > { %p1034_p5 = pnand %p1040_p2, %p1033_p4  ;;  %446 = sbr.rel (%p1232_p3) target bundleno = 1761 (0x6e1), region = 72 }
   0xb   : > { %1036 = dma.hbm_to_vmem [thread:$0]  (!%p1034_p5), %s366_s28, 2048, %s368_s15, [#allocation3], %s1148_s21, %s1148_s21, %s1149_s22  }
   0xc   : > { %1039 = dma.hbm_to_vmem [thread:$0]  (!%p1034_p5), %s399_s18, 16, %s401_s20, [#allocation5]  }
   0xe   : > { %1135 = dma.done.wait (%p1040_p2), [#allocation3], 2048  }
   0xf   : > { %1137 = vsyncadd (%p1040_p2), [#allocation3], 4294965248 }
  0x10   : > { %1139 = dma.done.wait (%p1040_p2), [#allocation5], 16  }
  0x11   : > { %1141 = vsyncadd (%p1040_p2), [#allocation5], 4294967280  ;;  %p508_p6 = scmp.lt.s32.totalorder %s1000_s29, 1  ;;  %v550_v0 = vld [vmem:[#allocation2 + $0x38] sm:$0xff]  ;;  %v549_v1 = vld [vmem:[#allocation2 + $0x30] sm:$0xff]  ;;  %vm573_vm0 = vcmask 261120  }
  0x12   : > { %v546_v2 = vld [vmem:[#allocation2 + $0x18] sm:$0xff]  ;;  %610 = vmatpush.msra.mxu1 %v550_v0  ;;  %v548_v3 = vld [vmem:[#allocation2 + $0x28] sm:$0xff]  ;;  %v545_v4 = vld [vmem:[#allocation2 + $0x10] sm:$0xff]  ;;  %vm668_vm2 = vcmask 64512   ;;  %v1150_v61 = vmov 32.0  }
  0x13   : > { %s1374_s29 = smov (!%p508_p6, %s1000_s29), 1  ;;  %589 = vmatpush.msra.mxu0 %v546_v2  ;;  %v544_v5 = vld [vmem:[#allocation2 + $0x8] sm:$0xff]  ;;  %v547_v10 = vld [vmem:[#allocation2 + $0x20] sm:$0xff]  ;;  %v554_v22 = vld [vmem:[#allocation2 + $0x58] sm:$0xff] }
  0x14   : > { %s1248_s23 = sshll.u32 %s1374_s29, 3  ;;  %s518_s17 = scalar_lea.vmem %s1360_s2, %s1374_s29  ;;  %611 = vmatpush.msra.mxu1 %v549_v1  ;;  %v543_v12 = vld [vmem:[#allocation2] sm:$0xff]  ;;  %631 = vmatpush.msra.mxu2 %v554_v22  ;;  %v553_v28 = vld [vmem:[#allocation2 + $0x50] sm:$0xff]  ;;  %v552_v29 = vld [vmem:[#allocation2 + $0x48] sm:$0xff] }
  0x15   : > { %s511_s27 = scalar_lea.vmem %s1358_s0, %s1248_s23  ;;  %s515_s14 = scalar_lea.vmem %s1359_s1, %s1248_s23  ;;  %590 = vmatpush.msra.mxu0 %v545_v4  ;;  %v1057_v9 = vld [vmem:[%s518_s17] ss:$0 sm:$0xff]  ;;  %v558_v39 = vld [vmem:[#allocation2 + $0x78] sm:$0xff]  ;;  %v557_v40 = vld [vmem:[#allocation2 + $0x70] sm:$0xff] }
  0x16   : > { %s521_s20 = scalar_lea.vmem %s1361_s3, %s1374_s29  ;;  %v530_v6 = vld [vmem:[%s511_s27] sm:$0xff]  ;;  %612 = vmatpush.msra.mxu1 %v548_v3  ;;  %s525_s26 = scalar_lea.vmem %s1362_s4, %s1248_s23  ;;  %632 = vmatpush.msra.mxu2 %v553_v28  ;;  %v556_v41 = vld [vmem:[#allocation2 + $0x68] sm:$0xff] }
  0x17   : > { %v531_v7 = vld [vmem:[%s515_s14] sm:$0xff]  ;;  %591 = vmatpush.msra.mxu0 %v544_v5  ;;  %s529_s30 = scalar_lea.vmem %s1371_s13, %s1248_s23 }
  0x18   : > { %v532_v8 = vadd.f32 %v531_v7, %v530_v6  ;;  %v1058_v11 = vld [vmem:[%s521_s20] ss:$0 sm:$0xff]  ;;  %613 = vmatpush.msra.mxu1 %v547_v10  ;;  %633 = vmatpush.msra.mxu2 %v552_v29  ;;  %v564_v10 = vld [vmem:[%s1367_s9 + $0x10] sm:$0xff] }
  0x19   : > { %592 = vmatpush.msra.mxu0 %v543_v12  ;;  %v1273_v15 = vld [vmem:[%s1364_s6] sm:$0xf] }
  0x1a   : > { %v537_v13 = vadd.f32 %v1057_v9, %v532_v8  ;;  %v597_v16 = vperm.slane %v1273_v15, 1  ;;  %v572_v17 = vperm.slane %v1273_v15, 0  ;;  %v571_v23 = vld [vmem:[%s525_s26] sm:$0xff]  ;;  %v618_v36 = vperm.slane %v1273_v15, 2  ;;  %v565_v9 = vld [vmem:[%s1367_s9 + $0x18] sm:$0xff] }
  0x1b   : > { %vm666_vm1 = vcmp.gt.f32.partialorder %v571_v23, 0.5  ;;  %v551_v30 = vld [vmem:[#allocation2 + $0x40] sm:$0xff]  ;;  %732 = vmatpush.msrb.mxu0 %v558_v39  ;;  %v716_v56 = vperm.slane %v1273_v15, 3  ;;  %790 = vmatpush.msrb.mxu1 %v565_v9 }
  0x1c   : > { %v1264_v14 = vadd.f32 %v1058_v11, %v537_v13  ;;  %634 = vmatpush.msra.mxu2 %v551_v30  ;;  %v555_v42 = vld [vmem:[#allocation2 + $0x60] sm:$0xff]  ;;  %v563_v11 = vld [vmem:[%s1367_s9 + $0x8] sm:$0xff]  ;;  %v569_v13 = vld [vmem:[%s1367_s9 + $0x38] sm:$0xff] }
  0x1d   : > { %733 = vmatpush.msrb.mxu0 %v557_v40  ;;  %791 = vmatpush.msrb.mxu1 %v564_v10  ;;  %v562_v12 = vld [vmem:[%s1367_s9] sm:$0xff] }
  0x1e   : > { %1014 = vmatmul.msk.f32.vlgmr.msra.gmra.mxu1 %vm573_vm0, %v1264_v14  ;;  %1013 = vmatmul.msk.f32.vlgmr.msra.gmra.mxu0 %vm573_vm0, %v1264_v14  ;;  %v560_v23 = vld [vmem:[%s1365_s7] sm:$0x3] }
  0x1f   : > { %1015 = vmatmul.msk.f32.vlgmr.msra.gmra.mxu2 %vm573_vm0, %v1264_v14  ;;  %734 = vmatpush.msrb.mxu0 %v556_v41 }
  0x20   : > { %792 = vmatpush.msrb.mxu1 %v563_v11  ;;  %815 = vmatpush.msrb.mxu2 %v569_v13 }
  0x21   : > { %735 = vmatpush.msrb.mxu0 %v555_v42 }
  0x22   : > { %793 = vmatpush.msrb.mxu1 %v562_v12 }
  0x9b   : > { %v615_v18 = vpop.f32.mrf.mxu1  ;;  %v594_v19 = vpop.f32.mrf.mxu0 }
  0x9c   : > { %v616_v20 = vadd.f32 %v615_v18, %v597_v16  ;;  %v595_v21 = vadd.f32 %v594_v19, %v572_v17 }
  0x9e   : > { %1016 = vmatpush.xpose.msk.msra.mxu3 %vm573_vm0, %v616_v20 }
  0xa1   : > { %1017 = vmatmul.msk.f32.vlgmr.msra.gmra.mxu3 %vm573_vm0, %v595_v21 }
  0xa2   : > { %v636_v37 = vpop.f32.mrf.mxu2 }
  0xa3   : > { %v637_v38 = vadd.f32 %v636_v37, %v618_v36 }
  0xa5   : > { %711 = vmatpush.msrb.mxu3 %v637_v38 }
 0x124   : > { %v662_v24 = vpop.f32.mrf.mxu3 }
 0x125   : > { %v665_v25 = vmul.f32 0.17677669, %v662_v24 }
 0x127   : > { %v667_v26 = vsel %vm666_vm1, -1e+09, %v665_v25  ;;  %v561_v25 = vld [vmem:[%s1366_s8] sm:$0x3] }
 0x128   : > { %v669_v27 = vsel %vm668_vm2, %v667_v26, -inf  ;;  %v772_v29 = vperm.slane %v561_v25, 0 }
 0x129   : > { %670 = vmax.xlane.f32.xlu0 %v669_v27 }
 0x19c   : > { %v671_v31 = vpop.xlane.xlu0 %670 }
 0x19d   : > { %v672_v32 = vsub.f32 %v667_v26, %v671_v31  ;;  %v770_v26 = vperm.slane %v560_v23, 0 }
 0x19f   : > { %v673_v33 = vmul.f32 1.442695, %v672_v32  ;;  %v567_v32 = vld [vmem:[%s1367_s9 + $0x28] sm:$0xff] }
 0x1a1   : > { %1060 = vpow2.f32 %v673_v33  ;;  %v566_v33 = vld [vmem:[%s1367_s9 + $0x20] sm:$0xff] }
 0x1a7   : > { %v1061_v34 = vpop.eup %1060 }
 0x1a8   : > { %v675_v35 = vsel %vm668_vm2, %v1061_v34, 0.0 }
 0x1a9   : > { %676 = vadd.xlane.f32.xlu0 %v675_v35 }
 0x21c   : > { %v677_v43 = vpop.xlane.xlu0 %676 }
 0x21d   : > { %1062 = vrcp.f32 %v677_v43  ;;  %v689_v47 = vand.u32 2147483648, %v677_v43  ;;  %v687_v49 = vand.u32 2147483647, %v677_v43  ;;  %vm683_vm4 = vweird.f32 %v677_v43 }
 0x21e   : > { %1064 = vrcp.f32 %v1150_v61 }
 0x21f   : > { %v690_v51 = vor.u32 1.1754944e-38, %v689_v47  ;;  %vm688_vm6 = vcmp.eq.f32.partialorder %v687_v49, 8.507059e+37 }
 0x223   : > { %v1063_v44 = vpop.eup %1062 }
 0x224   : > { %v679_v45 = vmul.f32 %v1063_v44, %v677_v43  ;;  %vm684_vm3 = vweird.f32 %v1063_v44  ;;  %v1065_v62 = vpop.eup %1064 }
 0x225   : > { %vm685_vm5 = vmor %vm683_vm4, %vm684_vm3  ;;  %v745_v63 = vmul.f32 32.0, %v1065_v62  ;;  %vm749_vm7 = vweird.f32 %v1065_v62 }
 0x226   : > { %v680_v46 = vsub.f32 1.0, %v679_v45 }
 0x227   : > { %v746_v0 = vsub.f32 1.0, %v745_v63  ;;  %v847_v63 = vperm.slane %v560_v23, 1 }
 0x228   : > { %v681_v48 = vmul.f32 %v1063_v44, %v680_v46 }
 0x229   : > { %v747_v1 = vmul.f32 %v1065_v62, %v746_v0 }
 0x22a   : > { %v682_v50 = vadd.f32 %v1063_v44, %v681_v48 }
 0x22b   : > { %v748_v2 = vadd.f32 %v1065_v62, %v747_v1  ;;  %v849_v1 = vperm.slane %v561_v25, 1 }
 0x22c   : > { %v686_v52 = vsel %vm685_vm5, %v1063_v44, %v682_v50  ;;  %v854_v50 = vld [vmem:[%s1369_s11 + $0x18] sm:$0xff] }
 0x22d   : > { %v691_v53 = vsel %vm688_vm6, %v690_v51, %v686_v52  ;;  %v1293_v3 = vsel %vm749_vm7, %v1065_v62, %v748_v2  ;;  %874 = vmatpush.msra.mxu3 %v854_v50  ;;  %v853_v51 = vld [vmem:[%s1369_s11 + $0x10] sm:$0xff]  ;;  %v852_v52 = vld [vmem:[%s1369_s11 + $0x8] sm:$0xff] }
 0x22e   : > { %v692_v54 = vmul.f32 %v1061_v34, %v691_v53  ;;  %v570_v34 = vld [vmem:[%s1368_s10] sm:$0x3] }
 0x22f   : > { %v774_v35 = vperm.slane %v570_v34, 0  ;;  %v799_v39 = vperm.slane %v570_v34, 1  ;;  %875 = vmatpush.msra.mxu3 %v853_v51  ;;  %v851_v53 = vld [vmem:[%s1369_s11] sm:$0xff] }
 0x230   : > { %1018 = vmatmul.msk.f32.vlgmr.msrb.gmra.mxu3 %vm668_vm2, %v692_v54 }
 0x231   : > { %876 = vmatpush.msra.mxu3 %v852_v52 }
 0x233   : > { %877 = vmatpush.msra.mxu3 %v851_v53 }
 0x2b3   : > { %v713_v55 = vpop.f32.mrf.mxu3 }
 0x2b4   : > { %1019 = vmatmul.msk.f32.vlgmr.msrb.gmra.mxu0 %vm573_vm0, %v713_v55 }
 0x331   : > { %v737_v57 = vpop.f32.mrf.mxu0 }
 0x332   : > { %v738_v58 = vadd.f32 %v737_v57, %v716_v56 }
 0x334   : > { %v740_v59 = vadd.f32 %v738_v58, %v1264_v14  ;;  %v568_v14 = vld [vmem:[%s1367_s9 + $0x30] sm:$0xff] }
 0x335   : > { %816 = vmatpush.msrb.mxu2 %v568_v14 }
 0x336   : > { %v741_v60 = vsel %vm573_vm0, %v740_v59, 0.0 }
 0x337   : > { %742 = vadd.xlane.f32.xlu1 %v741_v60  ;;  %817 = vmatpush.msrb.mxu2 %v567_v32 }
 0x339   : > { %818 = vmatpush.msrb.mxu2 %v566_v33 }
 0x3aa   : > { %v743_v4 = vpop.xlane.xlu1 %742 }
 0x3ab   : > { %v751_v5 = vmul.f32 %v1293_v3, %v743_v4 }
 0x3ad   : > { %v752_v6 = vsub.f32 %v740_v59, %v751_v5 }
 0x3af   : > { %v753_v7 = vmul.f32 %v752_v6, %v752_v6 }
 0x3b1   : > { %v754_v8 = vsel %vm573_vm0, %v753_v7, 0.0 }
 0x3b2   : > { %755 = vadd.xlane.f32.xlu1 %v754_v8 }
 0x425   : > { %v756_v15 = vpop.xlane.xlu1 %755 }
 0x426   : > { %v757_v16 = vmul.f32 %v756_v15, %v1293_v3 }
 0x428   : > { %v758_v17 = vadd.f32 1e-05, %v757_v16 }
 0x42a   : > { %1066 = vrsqrt.f32 %v758_v17  ;;  %vm765_vm9 = vweird.f32 %v758_v17 }
 0x430   : > { %v1067_v18 = vpop.eup %1066 }
 0x431   : > { %v760_v19 = vmul.f32 %v1067_v18, %v758_v17  ;;  %vm766_vm8 = vweird.f32 %v1067_v18 }
 0x432   : > { %vm767_vm10 = vmor %vm765_vm9, %vm766_vm8 }
 0x433   : > { %v761_v20 = vmul.f32 %v1067_v18, %v760_v19 }
 0x435   : > { %v762_v21 = vmul.f32 0.5, %v761_v20 }
 0x437   : > { %v763_v22 = vsub.f32 1.5, %v762_v21 }
 0x439   : > { %v764_v24 = vmul.f32 %v1067_v18, %v763_v22 }
 0x43b   : > { %v768_v27 = vsel %vm767_vm10, %v1067_v18, %v764_v24 }
 0x43c   : > { %v769_v28 = vmul.f32 %v768_v27, %v752_v6 }
 0x43e   : > { %v771_v30 = vmul.f32 %v770_v26, %v769_v28 }
 0x440   : > { %v773_v31 = vadd.f32 %v772_v29, %v771_v30 }
 0x442   : > { %1020 = vmatmul.msk.f32.vlgmr.msrb.gmra.mxu1 %vm573_vm0, %v773_v31 }
 0x4bf   : > { %v795_v36 = vpop.f32.mrf.mxu1 }
 0x4c0   : > { %v796_v37 = vadd.f32 %v795_v36, %v774_v35 }
 0x4c2   : > { %v798_v38 = vmax.f32 %v796_v37, 0.0 }
 0x4c4   : > { %1021 = vmatmul.msk.f32.vlgmr.msrb.gmra.mxu2 %vm573_vm0, %v798_v38 }
 0x547   : > { %v820_v40 = vpop.f32.mrf.mxu2 }
 0x548   : > { %v821_v41 = vadd.f32 %v820_v40, %v799_v39 }
 0x54a   : > { %v823_v42 = vmax.f32 %v821_v41, 0.0 }
 0x54c   : > { %v824_v43 = vadd.f32 %v823_v42, %v773_v31 }
 0x54e   : > { %v825_v44 = vsel %vm573_vm0, %v824_v43, 0.0 }
 0x54f   : > { %826 = vadd.xlane.f32.xlu2 %v825_v44 }
 0x5c2   : > { %v827_v45 = vpop.xlane.xlu2 %826 }
 0x5c3   : > { %v828_v46 = vmul.f32 %v827_v45, %v1293_v3 }
 0x5c5   : > { %v829_v47 = vsub.f32 %v824_v43, %v828_v46 }
 0x5c7   : > { %v830_v48 = vmul.f32 %v829_v47, %v829_v47 }
 0x5c9   : > { %v831_v49 = vsel %vm573_vm0, %v830_v48, 0.0 }
 0x5ca   : > { %832 = vadd.xlane.f32.xlu2 %v831_v49 }
 0x63d   : > { %v833_v54 = vpop.xlane.xlu2 %832 }
 0x63e   : > { %v834_v55 = vmul.f32 %v833_v54, %v1293_v3  ;;  %v1059_v3 = vld [vmem:[#allocation4] ss:$0 sm:$0xff] }
 0x640   : > { %v835_v56 = vadd.f32 1e-05, %v834_v55 }
 0x642   : > { %1068 = vrsqrt.f32 %v835_v56  ;;  %vm842_vm12 = vweird.f32 %v835_v56 }
 0x648   : > { %v1069_v57 = vpop.eup %1068 }
 0x649   : > { %v837_v58 = vmul.f32 %v1069_v57, %v835_v56  ;;  %vm843_vm11 = vweird.f32 %v1069_v57 }
 0x64a   : > { %vm844_vm13 = vmor %vm842_vm12, %vm843_vm11 }
 0x64b   : > { %v838_v59 = vmul.f32 %v1069_v57, %v837_v58 }
 0x64d   : > { %v839_v60 = vmul.f32 0.5, %v838_v59 }
 0x64f   : > { %v840_v61 = vsub.f32 1.5, %v839_v60 }
 0x651   : > { %v841_v62 = vmul.f32 %v1069_v57, %v840_v61 }
 0x653   : > { %v845_v0 = vsel %vm844_vm13, %v1069_v57, %v841_v62 }
 0x654   : > { %v846_v2 = vmul.f32 %v845_v0, %v829_v47 }
 0x656   : > { %v848_v4 = vmul.f32 %v847_v63, %v846_v2 }
 0x658   : > { %v850_v5 = vadd.f32 %v849_v1, %v848_v4 }
 0x65a   : > { %1022 = vmatmul.msk.f32.vlgmr.msra.gmra.mxu3 %vm573_vm0, %v850_v5 }
 0x6dd   : > { %v879_v6 = vpop.f32.mrf.mxu3 }
 0x6de   : > { %v880_v7 = vadd.f32 %v1059_v3, %v879_v6 }
 0x6e0   : > { %882 = vst.msk [vmem:[%s529_s30] sm:$0xff] %vm573_vm0, %v880_v7 }
 0x6e1 PF: > { %s25_s25 = sadd.s32 1, %s1144_s25  }
 0x6e2   : > { %p22_p7 = scmp.ge.s32.totalorder %s25_s25, 4  }
 0x6e4   :  { %24 = sbr.rel (!%p22_p7) target bundleno = 2 (0x2), region = 123 }
 0x6e9   :  { %902 = vsyncpa [#allocation3], 1 }
 0x6ea   :  { %904 = vsyncpa [#allocation3 + $0x1], 1 }
 0x6eb   :  { %905 = vsyncpa [#allocation5], 1 }

// kernel: history_dialogue_forward.18
= control target key start
LH: loop header
LB: loop body
LE: loop exit
PB: predicated region body
PF: predicated region fallthrough
CT: control target
= control target key end

     0   :  { %15 = vsyncpa [#allocation3], 0  ;;  %s1296_s0 = inlined_call_operand.vmem [shape: f32[2,8,32], index: 0, kind: input, shape index: {}]   ;;  %s1297_s1 = inlined_call_operand.vmem [shape: f32[2,8,32], index: 1, kind: input, shape index: {}]   ;;  %s1298_s2 = inlined_call_operand.vmem [shape: f32[2,8,32], index: 2, kind: input, shape index: {}]   ;;  %s1299_s3 = inlined_call_operand.vmem [shape: f32[2,8,8], index: 3, kind: input, shape index: {}]   ;;  %s1300_s4 = inlined_call_operand.hbm [shape: f32[4,32,32], index: 4, kind: input, shape index: {}]   ;;  %s1301_s5 = inlined_call_operand.vmem [shape: f32[4,32], index: 5, kind: input, shape index: {}]   ;;  %s1302_s6 = inlined_call_operand.vmem [shape: f32[2,32], index: 6, kind: input, shape index: {}]   ;;  %s1303_s7 = inlined_call_operand.hbm [shape: f32[2,32], index: 7, kind: input, shape index: {}]   ;;  %s1304_s8 = inlined_call_operand.hbm [shape: f32[1,32,32], index: 8, kind: input, shape index: {}]   ;;  %s1305_s9 = inlined_call_operand.hbm [shape: f32[1,32], index: 9, kind: input, shape index: {}]   ;;  %s1306_s10 = inlined_call_operand.vmem [shape: f32[2,8,32], index: 10, kind: output, shape index: {}]  }
   0x1   :  { %16 = vsyncpa [#allocation5], 0 }
   0x2   :  { %17 = vsyncpa [#allocation8], 0  ;;  %s1179_s13 = smov 0  }
   0x3 LB: > { %s316_s16 = sshll.u32 %s1303_s7, 4  ;;  %s1188_s17 = sadd.s32 4294967295, %s1115_s13   ;;  %s1115_s13 = sphi %s1179_s13, %s23_s13   ;;  %s317_s16 = int_to_ptr.hbm [resolvable:$true] %s316_s16 }
   0x4   : > { %p888_p0 = scmp.ge.s32.totalorder %s1115_s13, 1  ;;  %p284_p1 = scmp.lt.s32.totalorder %s1115_s13, 3 }
   0x5   : > { %p943_p2 = scmp.eq.s32.totalorder %s1188_s17, 0  ;;  %s1117_s19 = smov [#allocation4]  }
   0x6   : > { %p1193_p3 = pnand %p888_p0, %p284_p1  ;;  %s318_s20 = sshll.u32 %s1117_s19, 4  ;;  %s319_s20 = int_to_ptr.vmem [resolvable:$true] %s318_s20 }
   0x7   : > { %s295_s23 = sshll.u32 %s1300_s4, 4  ;;  %s1118_s25 = smov [#allocation2]   ;;  %s296_s23 = int_to_ptr.hbm [resolvable:$true] %s295_s23 }
   0x8   : > { %p930_p4 = pneg %p1193_p3  ;;  %s297_s26 = sshll.u32 %s1118_s25, 4  ;;  %s298_s26 = int_to_ptr.vmem [resolvable:$true] %s297_s26 }
   0x9   : > { %s327_s29 = sshll.u32 %s1304_s8, 4  ;;  %s1119_s30 = smov 128   ;;  %s328_s29 = int_to_ptr.hbm [resolvable:$true] %s327_s29 }
   0xa   : > { %p1204_p5 = pnand %p943_p2, %p930_p4  ;;  %s1120_s11 = smov 8  }
   0xb   : > { %s1121_s12 = smov [#allocation6]   ;;  %s342_s21 = sshll.u32 %s1305_s9, 4  ;;  %s343_s21 = int_to_ptr.hbm [resolvable:$true] %s342_s21 }
   0xc   : > { %936 = dma.hbm_to_vmem [thread:$0]  (!%p1204_p5), %s317_s16, 32, %s319_s20, [#allocation5]  }
   0xd   : > { %933 = dma.hbm_to_vmem [thread:$0]  (!%p1204_p5), %s296_s23, 2048, %s298_s26, [#allocation3], %s1119_s30, %s1119_s30, %s1120_s11  }
   0xe   : > { %s329_s14 = sshll.u32 %s1121_s12, 4  ;;  %s1122_s22 = smov [#allocation7]   ;;  %s330_s14 = int_to_ptr.vmem [resolvable:$true] %s329_s14 }
   0xf   : > { %939 = dma.hbm_to_vmem [thread:$0]  (!%p1204_p5), %s328_s29, 512, %s330_s14, [#allocation5], %s1119_s30, %s1119_s30, %s1120_s11  }
  0x10   : > { %s344_s25 = sshll.u32 %s1122_s22, 4  ;;  %385 = sbr.rel (%p1193_p3) target bundleno = 1498 (0x5da), region = 60  ;;  %s345_s25 = int_to_ptr.vmem [resolvable:$true] %s344_s25 }
  0x11   : > { %942 = dma.hbm_to_vmem [thread:$0]  (!%p1204_p5), %s343_s21, 16, %s345_s25, [#allocation8]  }
  0x15   : > { %1102 = dma.done.wait (%p943_p2), [#allocation3], 2048  }
  0x16   : > { %1104 = vsyncadd (%p943_p2), [#allocation3], 4294965248 }
  0x17   : > { %1106 = dma.done.wait (%p943_p2), [#allocation5], 544  }
  0x18   : > { %1108 = vsyncadd (%p943_p2), [#allocation5], 4294966752 }
  0x19   : > { %1110 = dma.done.wait (%p943_p2), [#allocation8], 16  }
  0x1a   : > { %1112 = vsyncadd (%p943_p2), [#allocation8], 4294967280  ;;  %p449_p6 = scmp.lt.s32.totalorder %s1188_s17, 1  ;;  %v481_v0 = vld [vmem:[#allocation2 + $0x38] sm:$0xff]  ;;  %v480_v1 = vld [vmem:[#allocation2 + $0x30] sm:$0xff]  ;;  %vm500_vm0 = vcmask 261120  }
  0x1b   : > { %v477_v2 = vld [vmem:[#allocation2 + $0x18] sm:$0xff]  ;;  %537 = vmatpush.msra.mxu1 %v481_v0  ;;  %v479_v3 = vld [vmem:[#allocation2 + $0x28] sm:$0xff]  ;;  %v476_v4 = vld [vmem:[#allocation2 + $0x10] sm:$0xff]  ;;  %vm595_vm2 = vcmask 64512   ;;  %v1123_v59 = vmov 32.0  }
  0x1c   : > { %s1310_s17 = smov (!%p449_p6, %s1188_s17), 1  ;;  %516 = vmatpush.msra.mxu0 %v477_v2  ;;  %v475_v5 = vld [vmem:[#allocation2 + $0x8] sm:$0xff]  ;;  %v478_v10 = vld [vmem:[#allocation2 + $0x20] sm:$0xff]  ;;  %v485_v20 = vld [vmem:[#allocation2 + $0x58] sm:$0xff] }
  0x1d   : > { %s1238_s16 = sshll.u32 %s1310_s17, 3  ;;  %538 = vmatpush.msra.mxu1 %v480_v1  ;;  %v474_v11 = vld [vmem:[#allocation2] sm:$0xff]  ;;  %558 = vmatpush.msra.mxu2 %v485_v20  ;;  %v484_v26 = vld [vmem:[#allocation2 + $0x50] sm:$0xff]  ;;  %v483_v27 = vld [vmem:[#allocation2 + $0x48] sm:$0xff] }
  0x1e   : > { %s452_s23 = scalar_lea.vmem %s1296_s0, %s1238_s16  ;;  %s456_s27 = scalar_lea.vmem %s1297_s1, %s1238_s16  ;;  %517 = vmatpush.msra.mxu0 %v476_v4  ;;  %v1261_v13 = vld [vmem:[%s1301_s5] sm:$0xf]  ;;  %v489_v37 = vld [vmem:[#allocation2 + $0x78] sm:$0xff]  ;;  %v488_v38 = vld [vmem:[#allocation2 + $0x70] sm:$0xff] }
  0x1f   : > { %s460_s30 = scalar_lea.vmem %s1298_s2, %s1238_s16  ;;  %v469_v6 = vld [vmem:[%s452_s23] sm:$0xff]  ;;  %539 = vmatpush.msra.mxu1 %v479_v3  ;;  %v524_v14 = vperm.slane %v1261_v13, 1  ;;  %v499_v15 = vperm.slane %v1261_v13, 0  ;;  %s464_s15 = scalar_lea.vmem %s1299_s3, %s1238_s16  ;;  %559 = vmatpush.msra.mxu2 %v484_v26  ;;  %v545_v34 = vperm.slane %v1261_v13, 2  ;;  %v487_v39 = vld [vmem:[#allocation2 + $0x68] sm:$0xff]  ;;  %v643_v54 = vperm.slane %v1261_v13, 3 }
  0x20   : > { %v470_v7 = vld [vmem:[%s456_s27] sm:$0xff]  ;;  %518 = vmatpush.msra.mxu0 %v475_v5  ;;  %s468_s18 = scalar_lea.vmem %s1306_s10, %s1238_s16 }
  0x21   : > { %v471_v8 = vadd.f32 %v470_v7, %v469_v6  ;;  %v472_v9 = vld [vmem:[%s460_s30] sm:$0xff]  ;;  %540 = vmatpush.msra.mxu1 %v478_v10  ;;  %560 = vmatpush.msra.mxu2 %v483_v27 }
  0x22   : > { %519 = vmatpush.msra.mxu0 %v474_v11  ;;  %v498_v21 = vld [vmem:[%s464_s15] sm:$0xff] }
  0x23   : > { %v1252_v12 = vadd.f32 %v472_v9, %v471_v8  ;;  %vm593_vm1 = vcmp.gt.f32.partialorder %v498_v21, 0.5  ;;  %v482_v28 = vld [vmem:[#allocation2 + $0x40] sm:$0xff]  ;;  %v495_v8 = vld [vmem:[#allocation6 + $0x10] sm:$0xff]  ;;  %v494_v9 = vld [vmem:[#allocation6 + $0x8] sm:$0xff] }
  0x24   : > { %561 = vmatpush.msra.mxu2 %v482_v28  ;;  %659 = vmatpush.msrb.mxu0 %v489_v37  ;;  %v486_v40 = vld [vmem:[#allocation2 + $0x60] sm:$0xff] }
  0x25   : > { %905 = vmatmul.msk.f32.vlgmr.msra.gmra.mxu1 %vm500_vm0, %v1252_v12  ;;  %904 = vmatmul.msk.f32.vlgmr.msra.gmra.mxu0 %vm500_vm0, %v1252_v12  ;;  %v496_v7 = vld [vmem:[#allocation6 + $0x18] sm:$0xff]  ;;  %v493_v10 = vld [vmem:[#allocation6] sm:$0xff] }
  0x26   : > { %906 = vmatmul.msk.f32.vlgmr.msra.gmra.mxu2 %vm500_vm0, %v1252_v12  ;;  %660 = vmatpush.msrb.mxu0 %v488_v38  ;;  %v492_v21 = vld [vmem:[#allocation4] sm:$0x3]  ;;  %v966_v28 = vld [vmem:[#allocation7] ss:$0 sm:$0xff] }
  0x27   : > { %719 = vmatpush.msrb.mxu1 %v496_v7 }
  0x28   : > { %661 = vmatpush.msrb.mxu0 %v487_v39 }
  0x29   : > { %720 = vmatpush.msrb.mxu1 %v495_v8 }
  0x2a   : > { %662 = vmatpush.msrb.mxu0 %v486_v40 }
  0x2b   : > { %721 = vmatpush.msrb.mxu1 %v494_v9 }
  0x2d   : > { %722 = vmatpush.msrb.mxu1 %v493_v10 }
  0xa2   : > { %v542_v16 = vpop.f32.mrf.mxu1  ;;  %v521_v17 = vpop.f32.mrf.mxu0 }
  0xa3   : > { %v543_v18 = vadd.f32 %v542_v16, %v524_v14  ;;  %v522_v19 = vadd.f32 %v521_v17, %v499_v15 }
  0xa5   : > { %907 = vmatpush.xpose.msk.msra.mxu3 %vm500_vm0, %v543_v18 }
  0xa8   : > { %908 = vmatmul.msk.f32.vlgmr.msra.gmra.mxu3 %vm500_vm0, %v522_v19  ;;  %v491_v19 = vld [vmem:[%s1302_s6] sm:$0x3] }
  0xa9   : > { %v563_v35 = vpop.f32.mrf.mxu2 }
  0xaa   : > { %v564_v36 = vadd.f32 %v563_v35, %v545_v34 }
  0xac   : > { %638 = vmatpush.msrb.mxu3 %v564_v36 }
 0x12b   : > { %v589_v22 = vpop.f32.mrf.mxu3 }
 0x12c   : > { %v592_v23 = vmul.f32 0.17677669, %v589_v22  ;;  %v697_v22 = vperm.slane %v491_v19, 0 }
 0x12e   : > { %v594_v24 = vsel %vm593_vm1, -1e+09, %v592_v23 }
 0x12f   : > { %v596_v25 = vsel %vm595_vm2, %v594_v24, -inf }
 0x130   : > { %597 = vmax.xlane.f32.xlu0 %v596_v25  ;;  %v699_v25 = vperm.slane %v492_v21, 0 }
 0x1a3   : > { %v598_v29 = vpop.xlane.xlu0 %597 }
 0x1a4   : > { %v599_v30 = vsub.f32 %v594_v24, %v598_v29 }
 0x1a6   : > { %v600_v31 = vmul.f32 1.442695, %v599_v30 }
 0x1a8   : > { %967 = vpow2.f32 %v600_v31 }
 0x1ae   : > { %v968_v32 = vpop.eup %967 }
 0x1af   : > { %v602_v33 = vsel %vm595_vm2, %v968_v32, 0.0 }
 0x1b0   : > { %603 = vadd.xlane.f32.xlu0 %v602_v33 }
 0x223   : > { %v604_v41 = vpop.xlane.xlu0 %603 }
 0x224   : > { %969 = vrcp.f32 %v604_v41  ;;  %v616_v45 = vand.u32 2147483648, %v604_v41  ;;  %v614_v47 = vand.u32 2147483647, %v604_v41  ;;  %vm610_vm4 = vweird.f32 %v604_v41 }
 0x225   : > { %971 = vrcp.f32 %v1123_v59 }
 0x226   : > { %v617_v49 = vor.u32 1.1754944e-38, %v616_v45  ;;  %vm615_vm6 = vcmp.eq.f32.partialorder %v614_v47, 8.507059e+37 }
 0x22a   : > { %v970_v42 = vpop.eup %969 }
 0x22b   : > { %v606_v43 = vmul.f32 %v970_v42, %v604_v41  ;;  %vm611_vm3 = vweird.f32 %v970_v42  ;;  %v972_v60 = vpop.eup %971 }
 0x22c   : > { %vm612_vm5 = vmor %vm610_vm4, %vm611_vm3  ;;  %v672_v61 = vmul.f32 32.0, %v972_v60  ;;  %vm676_vm7 = vweird.f32 %v972_v60 }
 0x22d   : > { %v607_v44 = vsub.f32 1.0, %v606_v43 }
 0x22e   : > { %v673_v62 = vsub.f32 1.0, %v672_v61 }
 0x22f   : > { %v608_v46 = vmul.f32 %v970_v42, %v607_v44 }
 0x230   : > { %v674_v63 = vmul.f32 %v972_v60, %v673_v62 }
 0x231   : > { %v609_v48 = vadd.f32 %v970_v42, %v608_v46 }
 0x232   : > { %v675_v0 = vadd.f32 %v972_v60, %v674_v63 }
 0x233   : > { %v613_v50 = vsel %vm612_vm5, %v970_v42, %v609_v48  ;;  %v751_v48 = vperm.slane %v491_v19, 1 }
 0x234   : > { %v618_v51 = vsel %vm615_vm6, %v617_v49, %v613_v50  ;;  %v677_v1 = vsel %vm676_vm7, %v972_v60, %v675_v0  ;;  %v753_v50 = vperm.slane %v492_v21, 1 }
 0x235   : > { %v619_v52 = vmul.f32 %v968_v32, %v618_v51 }
 0x237   : > { %909 = vmatmul.msk.f32.vlgmr.msrb.gmra.mxu3 %vm595_vm2, %v619_v52 }
 0x2ba   : > { %v640_v53 = vpop.f32.mrf.mxu3 }
 0x2bb   : > { %910 = vmatmul.msk.f32.vlgmr.msrb.gmra.mxu0 %vm500_vm0, %v640_v53 }
 0x338   : > { %v664_v55 = vpop.f32.mrf.mxu0 }
 0x339   : > { %v665_v56 = vadd.f32 %v664_v55, %v643_v54 }
 0x33b   : > { %v667_v57 = vadd.f32 %v665_v56, %v1252_v12 }
 0x33d   : > { %v668_v58 = vsel %vm500_vm0, %v667_v57, 0.0 }
 0x33e   : > { %669 = vadd.xlane.f32.xlu1 %v668_v58 }
 0x3b1   : > { %v670_v2 = vpop.xlane.xlu1 %669 }
 0x3b2   : > { %v678_v3 = vmul.f32 %v677_v1, %v670_v2 }
 0x3b4   : > { %v679_v4 = vsub.f32 %v667_v57, %v678_v3 }
 0x3b6   : > { %v680_v5 = vmul.f32 %v679_v4, %v679_v4 }
 0x3b8   : > { %v681_v6 = vsel %vm500_vm0, %v680_v5, 0.0 }
 0x3b9   : > { %682 = vadd.xlane.f32.xlu1 %v681_v6 }
 0x42c   : > { %v683_v11 = vpop.xlane.xlu1 %682 }
 0x42d   : > { %v684_v12 = vmul.f32 %v683_v11, %v677_v1 }
 0x42f   : > { %v685_v13 = vadd.f32 1e-05, %v684_v12 }
 0x431   : > { %973 = vrsqrt.f32 %v685_v13  ;;  %vm692_vm9 = vweird.f32 %v685_v13 }
 0x437   : > { %v974_v14 = vpop.eup %973 }
 0x438   : > { %v687_v15 = vmul.f32 %v974_v14, %v685_v13  ;;  %vm693_vm8 = vweird.f32 %v974_v14 }
 0x439   : > { %vm694_vm10 = vmor %vm692_vm9, %vm693_vm8 }
 0x43a   : > { %v688_v16 = vmul.f32 %v974_v14, %v687_v15 }
 0x43c   : > { %v689_v17 = vmul.f32 0.5, %v688_v16 }
 0x43e   : > { %v690_v18 = vsub.f32 1.5, %v689_v17 }
 0x440   : > { %v691_v20 = vmul.f32 %v974_v14, %v690_v18 }
 0x442   : > { %v695_v23 = vsel %vm694_vm10, %v974_v14, %v691_v20 }
 0x443   : > { %v696_v24 = vmul.f32 %v695_v23, %v679_v4 }
 0x445   : > { %v698_v26 = vmul.f32 %v697_v22, %v696_v24 }
 0x447   : > { %v700_v27 = vadd.f32 %v699_v25, %v698_v26 }
 0x449   : > { %911 = vmatmul.msk.f32.vlgmr.msrb.gmra.mxu1 %vm500_vm0, %v700_v27 }
 0x4c6   : > { %v724_v29 = vpop.f32.mrf.mxu1 }
 0x4c7   : > { %v725_v30 = vadd.f32 %v966_v28, %v724_v29 }
 0x4c9   : > { %v727_v31 = vmax.f32 %v725_v30, 0.0 }
 0x4cb   : > { %v728_v32 = vadd.f32 %v727_v31, %v700_v27 }
 0x4cd   : > { %v729_v33 = vsel %vm500_vm0, %v728_v32, 0.0 }
 0x4ce   : > { %730 = vadd.xlane.f32.xlu2 %v729_v33 }
 0x541   : > { %v731_v34 = vpop.xlane.xlu2 %730 }
 0x542   : > { %v732_v35 = vmul.f32 %v731_v34, %v677_v1 }
 0x544   : > { %v733_v36 = vsub.f32 %v728_v32, %v732_v35 }
 0x546   : > { %v734_v37 = vmul.f32 %v733_v36, %v733_v36 }
 0x548   : > { %v735_v38 = vsel %vm500_vm0, %v734_v37, 0.0 }
 0x549   : > { %736 = vadd.xlane.f32.xlu2 %v735_v38 }
 0x5bc   : > { %v737_v39 = vpop.xlane.xlu2 %736 }
 0x5bd   : > { %v738_v40 = vmul.f32 %v737_v39, %v677_v1 }
 0x5bf   : > { %v739_v41 = vadd.f32 1e-05, %v738_v40 }
 0x5c1   : > { %975 = vrsqrt.f32 %v739_v41  ;;  %vm746_vm12 = vweird.f32 %v739_v41 }
 0x5c7   : > { %v976_v42 = vpop.eup %975 }
 0x5c8   : > { %v741_v43 = vmul.f32 %v976_v42, %v739_v41  ;;  %vm747_vm11 = vweird.f32 %v976_v42 }
 0x5c9   : > { %vm748_vm13 = vmor %vm746_vm12, %vm747_vm11 }
 0x5ca   : > { %v742_v44 = vmul.f32 %v976_v42, %v741_v43 }
 0x5cc   : > { %v743_v45 = vmul.f32 0.5, %v742_v44 }
 0x5ce   : > { %v744_v46 = vsub.f32 1.5, %v743_v45 }
 0x5d0   : > { %v745_v47 = vmul.f32 %v976_v42, %v744_v46 }
 0x5d2   : > { %v749_v49 = vsel %vm748_vm13, %v976_v42, %v745_v47 }
 0x5d3   : > { %v750_v51 = vmul.f32 %v749_v49, %v733_v36 }
 0x5d5   : > { %v752_v52 = vmul.f32 %v751_v48, %v750_v51 }
 0x5d7   : > { %v754_v53 = vadd.f32 %v753_v50, %v752_v52 }
 0x5d9   : > { %755 = vst.msk [vmem:[%s468_s18] sm:$0xff] %vm500_vm0, %v754_v53 }
 0x5da PF: > { %s23_s13 = sadd.s32 1, %s1115_s13  }
 0x5db   : > { %p20_p7 = scmp.ge.s32.totalorder %s23_s13, 4  }
 0x5dd   :  { %22 = sbr.rel (!%p20_p7) target bundleno = 3 (0x3), region = 116 }
 0x5e2   :  { %775 = vsyncpa [#allocation3], 1 }
 0x5e3   :  { %777 = vsyncpa [#allocation3 + $0x1], 1 }
 0x5e4   :  { %778 = vsyncpa [#allocation5], 1 }
 0x5e5   :  { %779 = vsyncpa [#allocation8], 1 }

// kernel: history_dialogue_forward.19
= control target key start
LH: loop header
LB: loop body
LE: loop exit
PB: predicated region body
PF: predicated region fallthrough
CT: control target
= control target key end

     0   :  { %s1729_s0 = inlined_call_operand.vmem [shape: f32[2,8,32], index: 0, kind: input, shape index: {}]   ;;  %s1730_s1 = inlined_call_operand.vmem [shape: f32[2,8,32], index: 1, kind: input, shape index: {}]   ;;  %s1731_s2 = inlined_call_operand.vmem [shape: f32[2,1,32], index: 2, kind: input, shape index: {}]   ;;  %s1732_s3 = inlined_call_operand.vmem [shape: f32[2,1,32], index: 3, kind: input, shape index: {}]   ;;  %s1733_s4 = inlined_call_operand.vmem [shape: f32[2,8,8], index: 4, kind: input, shape index: {}]   ;;  %s1734_s5 = inlined_call_operand.hbm [shape: f32[4,32,32], index: 5, kind: input, shape index: {}]   ;;  %s1735_s6 = inlined_call_operand.hbm [shape: f32[4,32], index: 6, kind: input, shape index: {}]   ;;  %s1736_s7 = inlined_call_operand.hbm [shape: f32[2,32], index: 7, kind: input, shape index: {}]   ;;  %s1737_s8 = inlined_call_operand.hbm [shape: f32[2,32], index: 8, kind: input, shape index: {}]   ;;  %s1738_s9 = inlined_call_operand.vmem [shape: f32[2,32,32], index: 9, kind: input, shape index: {}]   ;;  %s1739_s10 = inlined_call_operand.hbm [shape: f32[2,32], index: 10, kind: input, shape index: {}]   ;;  %s1740_s11 = inlined_call_operand.hbm [shape: f32[32,32], index: 11, kind: input, shape index: {}]   ;;  %s1741_s12 = inlined_call_operand.hbm [shape: f32[1,32], index: 12, kind: input, shape index: {}]   ;;  %s1742_s13 = inlined_call_operand.vmem [shape: f32[2,8,32], index: 13, kind: output, shape index: {}]  }
   0x1   :  { %1743 = sst [smem:[#allocation17_spill]] %s1734_s5 }
   0x2   :  { %1744 = sst [smem:[#allocation18_spill]] %s1735_s6 }
   0x3   :  { %18 = vsyncpa [#allocation3], 0 }
   0x4   :  { %19 = vsyncpa [#allocation5], 0 }
   0x5   :  { %20 = vsyncpa [#allocation8], 0 }
   0x6   :  { %21 = vsyncpa [#allocation11], 0  ;;  %s1565_s25 = smov 0  }
   0x7 LB: > { %s1745_s6 = sld [smem:[#allocation18_spill]]  ;;  %s1574_s29 = sadd.s32 4294967295, %s1483_s25   ;;  %s1483_s25 = sphi %s1565_s25, %s27_s25  }
   0x8   : > { %p1123_p0 = scmp.ge.s32.totalorder %s1483_s25, 1  ;;  %p356_p1 = scmp.lt.s32.totalorder %s1483_s25, 3 }
   0x9   : > { %p1206_p2 = scmp.eq.s32.totalorder %s1574_s29, 0  ;;  %s1485_s14 = smov [#allocation4]  }
   0xa   : > { %p1579_p3 = pnand %p1123_p0, %p356_p1  ;;  %s384_s15 = sshll.u32 %s1485_s14, 4  ;;  %s385_s15 = int_to_ptr.vmem [resolvable:$true] %s384_s15 }
   0xb   : > { %s406_s18 = sshll.u32 %s1737_s8, 4  ;;  %s1486_s20 = smov [#allocation7]   ;;  %s407_s18 = int_to_ptr.hbm [resolvable:$true] %s406_s18 }
   0xc   : > { %p1184_p4 = pneg %p1579_p3  ;;  %s408_s21 = sshll.u32 %s1486_s20, 4  ;;  %s409_s21 = int_to_ptr.vmem [resolvable:$true] %s408_s21 }
   0xd   : > { %s382_s28 = sshll.u32 %s1745_s6, 4  ;;  %s432_s24 = sshll.u32 %s1740_s11, 4  ;;  %s383_s28 = int_to_ptr.hbm [resolvable:$true] %s382_s28  ;;  %s433_s24 = int_to_ptr.hbm [resolvable:$true] %s432_s24 }
   0xe   : > { %p1590_p5 = pnand %p1206_p2, %p1184_p4  ;;  %s1487_s26 = smov [#allocation10]  }
   0xf   : > { %s434_s27 = sshll.u32 %s1487_s26, 4  ;;  %s1748_s5 = sld [smem:[#allocation17_spill]]  ;;  %s435_s27 = int_to_ptr.vmem [resolvable:$true] %s434_s27 }
  0x10   : > { %1190 = dma.hbm_to_vmem [thread:$0]  (!%p1590_p5), %s383_s28, 64, %s385_s15, [#allocation5]  }
  0x11   : > { %1196 = dma.hbm_to_vmem [thread:$0]  (!%p1590_p5), %s407_s18, 32, %s409_s21, [#allocation8]  }
  0x12   : > { %s1488_s20 = smov 128   ;;  %s1489_s6 = smov 8  }
  0x13   : > { %1202 = dma.hbm_to_vmem [thread:$0]  (!%p1590_p5), %s433_s24, 512, %s435_s27, [#allocation11], %s1488_s20, %s1488_s20, %s1489_s6  }
  0x14   : > { %s394_s28 = sshll.u32 %s1736_s7, 4  ;;  %s1490_s15 = smov [#allocation2]   ;;  %s395_s28 = int_to_ptr.hbm [resolvable:$true] %s394_s28 }
  0x15   : > { %s367_s17 = sshll.u32 %s1748_s5, 4  ;;  %s369_s18 = sshll.u32 %s1490_s15, 4  ;;  %s368_s17 = int_to_ptr.hbm [resolvable:$true] %s367_s17  ;;  %s370_s18 = int_to_ptr.vmem [resolvable:$true] %s369_s18 }
  0x16   : > { %1187 = dma.hbm_to_vmem [thread:$0]  (!%p1590_p5), %s368_s17, 2048, %s370_s18, [#allocation3], %s1488_s20, %s1488_s20, %s1489_s6  }
  0x17   : > { %s1491_s21 = smov [#allocation6]   ;;  %s421_s5 = sshll.u32 %s1739_s10, 4  ;;  %s422_s5 = int_to_ptr.hbm [resolvable:$true] %s421_s5 }
  0x18   : > { %s396_s26 = sshll.u32 %s1491_s21, 4  ;;  %s447_s22 = sshll.u32 %s1741_s12, 4  ;;  %s397_s26 = int_to_ptr.vmem [resolvable:$true] %s396_s26  ;;  %s448_s22 = int_to_ptr.hbm [resolvable:$true] %s447_s22 }
  0x19   : > { %1193 = dma.hbm_to_vmem [thread:$0]  (!%p1590_p5), %s395_s28, 32, %s397_s26, [#allocation5]  }
  0x1a   : > { %s1492_s23 = smov [#allocation9]   ;;  %s1493_s6 = smov [#allocation12]  }
  0x1b   : > { %s423_s15 = sshll.u32 %s1492_s23, 4  ;;  %s449_s17 = sshll.u32 %s1493_s6, 4  ;;  %s424_s15 = int_to_ptr.vmem [resolvable:$true] %s423_s15  ;;  %s450_s17 = int_to_ptr.vmem [resolvable:$true] %s449_s17 }
  0x1c   : > { %1199 = dma.hbm_to_vmem [thread:$0]  (!%p1590_p5), %s422_s5, 32, %s424_s15, [#allocation8]  }
  0x1d   : > { %1205 = dma.hbm_to_vmem [thread:$0]  (!%p1590_p5), %s448_s22, 16, %s450_s17, [#allocation11]  }
  0x1e   : > { %495 = sbr.rel (%p1579_p3) target bundleno = 1786 (0x6fa), region = 72 }
  0x23   : > { %1466 = dma.done.wait (%p1206_p2), [#allocation3], 2048  }
  0x24   : > { %1468 = vsyncadd (%p1206_p2), [#allocation3], 4294965248 }
  0x25   : > { %1470 = dma.done.wait (%p1206_p2), [#allocation5], 96  }
  0x26   : > { %1472 = vsyncadd (%p1206_p2), [#allocation5], 4294967200 }
  0x27   : > { %1474 = dma.done.wait (%p1206_p2), [#allocation8], 64  }
  0x28   : > { %1476 = vsyncadd (%p1206_p2), [#allocation8], 4294967232 }
  0x29   : > { %1478 = dma.done.wait (%p1206_p2), [#allocation11], 528  }
  0x2a   : > { %1480 = vsyncadd (%p1206_p2), [#allocation11], 4294966768  ;;  %p582_p6 = scmp.lt.s32.totalorder %s1574_s29, 1  ;;  %v624_v0 = vld [vmem:[#allocation2 + $0x38] sm:$0xff]  ;;  %v623_v1 = vld [vmem:[#allocation2 + $0x30] sm:$0xff]  ;;  %vm647_vm0 = vcmask 261120  }
  0x2b   : > { %v620_v2 = vld [vmem:[#allocation2 + $0x18] sm:$0xff]  ;;  %684 = vmatpush.msra.mxu1 %v624_v0  ;;  %v622_v3 = vld [vmem:[#allocation2 + $0x28] sm:$0xff]  ;;  %v619_v4 = vld [vmem:[#allocation2 + $0x10] sm:$0xff]  ;;  %vm742_vm2 = vcmask 64512   ;;  %v1494_v61 = vmov 32.0  }
  0x2c   : > { %s1750_s29 = smov (!%p582_p6, %s1574_s29), 1  ;;  %663 = vmatpush.msra.mxu0 %v620_v2  ;;  %v618_v5 = vld [vmem:[#allocation2 + $0x8] sm:$0xff]  ;;  %v621_v10 = vld [vmem:[#allocation2 + $0x20] sm:$0xff]  ;;  %v628_v22 = vld [vmem:[#allocation2 + $0x58] sm:$0xff] }
  0x2d   : > { %s1643_s5 = sshll.u32 %s1750_s29, 3  ;;  %s592_s16 = scalar_lea.vmem %s1731_s2, %s1750_s29  ;;  %685 = vmatpush.msra.mxu1 %v623_v1  ;;  %v617_v12 = vld [vmem:[#allocation2] sm:$0xff]  ;;  %705 = vmatpush.msra.mxu2 %v628_v22  ;;  %v627_v28 = vld [vmem:[#allocation2 + $0x50] sm:$0xff]  ;;  %v626_v29 = vld [vmem:[#allocation2 + $0x48] sm:$0xff] }
  0x2e   : > { %s585_s20 = scalar_lea.vmem %s1729_s0, %s1643_s5  ;;  %s589_s21 = scalar_lea.vmem %s1730_s1, %s1643_s5  ;;  %664 = vmatpush.msra.mxu0 %v619_v4  ;;  %v1238_v9 = vld [vmem:[%s592_s16] ss:$0 sm:$0xff]  ;;  %v632_v39 = vld [vmem:[#allocation2 + $0x78] sm:$0xff]  ;;  %v631_v40 = vld [vmem:[#allocation2 + $0x70] sm:$0xff] }
  0x2f   : > { %s595_s22 = scalar_lea.vmem %s1732_s3, %s1750_s29  ;;  %v604_v6 = vld [vmem:[%s585_s20] sm:$0xff]  ;;  %686 = vmatpush.msra.mxu1 %v622_v3  ;;  %s599_s15 = scalar_lea.vmem %s1733_s4, %s1643_s5  ;;  %706 = vmatpush.msra.mxu2 %v627_v28  ;;  %v630_v41 = vld [vmem:[#allocation2 + $0x68] sm:$0xff] }
  0x30   : > { %v605_v7 = vld [vmem:[%s589_s21] sm:$0xff]  ;;  %665 = vmatpush.msra.mxu0 %v618_v5  ;;  %s603_s17 = scalar_lea.vmem %s1742_s13, %s1643_s5 }
  0x31   : > { %v606_v8 = vadd.f32 %v605_v7, %v604_v6  ;;  %v1239_v11 = vld [vmem:[%s595_s22] ss:$0 sm:$0xff]  ;;  %687 = vmatpush.msra.mxu1 %v621_v10  ;;  %707 = vmatpush.msra.mxu2 %v626_v29  ;;  %v638_v10 = vld [vmem:[%s1738_s9 + $0x10] sm:$0xff] }
  0x32   : > { %666 = vmatpush.msra.mxu0 %v617_v12  ;;  %v1665_v15 = vld [vmem:[#allocation4] sm:$0xf] }
  0x33   : > { %v611_v13 = vadd.f32 %v1238_v9, %v606_v8  ;;  %v671_v16 = vperm.slane %v1665_v15, 1  ;;  %v646_v17 = vperm.slane %v1665_v15, 0  ;;  %v645_v23 = vld [vmem:[%s599_s15] sm:$0xff]  ;;  %v692_v36 = vperm.slane %v1665_v15, 2  ;;  %v639_v9 = vld [vmem:[%s1738_s9 + $0x18] sm:$0xff] }
  0x34   : > { %vm740_vm1 = vcmp.gt.f32.partialorder %v645_v23, 0.5  ;;  %v625_v30 = vld [vmem:[#allocation2 + $0x40] sm:$0xff]  ;;  %806 = vmatpush.msrb.mxu0 %v632_v39  ;;  %v790_v56 = vperm.slane %v1665_v15, 3  ;;  %864 = vmatpush.msrb.mxu1 %v639_v9 }
  0x35   : > { %v1659_v14 = vadd.f32 %v1239_v11, %v611_v13  ;;  %708 = vmatpush.msra.mxu2 %v625_v30  ;;  %v629_v42 = vld [vmem:[#allocation2 + $0x60] sm:$0xff]  ;;  %v637_v11 = vld [vmem:[%s1738_s9 + $0x8] sm:$0xff]  ;;  %v643_v13 = vld [vmem:[%s1738_s9 + $0x38] sm:$0xff] }
  0x36   : > { %807 = vmatpush.msrb.mxu0 %v631_v40  ;;  %865 = vmatpush.msrb.mxu1 %v638_v10  ;;  %v636_v12 = vld [vmem:[%s1738_s9] sm:$0xff] }
  0x37   : > { %1145 = vmatmul.msk.f32.vlgmr.msra.gmra.mxu1 %vm647_vm0, %v1659_v14  ;;  %1144 = vmatmul.msk.f32.vlgmr.msra.gmra.mxu0 %vm647_vm0, %v1659_v14  ;;  %v634_v23 = vld [vmem:[#allocation6] sm:$0x3] }
  0x38   : > { %1146 = vmatmul.msk.f32.vlgmr.msra.gmra.mxu2 %vm647_vm0, %v1659_v14  ;;  %808 = vmatpush.msrb.mxu0 %v630_v41 }
  0x39   : > { %866 = vmatpush.msrb.mxu1 %v637_v11  ;;  %889 = vmatpush.msrb.mxu2 %v643_v13 }
  0x3a   : > { %809 = vmatpush.msrb.mxu0 %v629_v42 }
  0x3b   : > { %867 = vmatpush.msrb.mxu1 %v636_v12 }
  0xb4   : > { %v689_v18 = vpop.f32.mrf.mxu1  ;;  %v668_v19 = vpop.f32.mrf.mxu0 }
  0xb5   : > { %v690_v20 = vadd.f32 %v689_v18, %v671_v16  ;;  %v669_v21 = vadd.f32 %v668_v19, %v646_v17 }
  0xb7   : > { %1147 = vmatpush.xpose.msk.msra.mxu3 %vm647_vm0, %v690_v20 }
  0xba   : > { %1148 = vmatmul.msk.f32.vlgmr.msra.gmra.mxu3 %vm647_vm0, %v669_v21 }
  0xbb   : > { %v710_v37 = vpop.f32.mrf.mxu2 }
  0xbc   : > { %v711_v38 = vadd.f32 %v710_v37, %v692_v36 }
  0xbe   : > { %785 = vmatpush.msrb.mxu3 %v711_v38 }
 0x13d   : > { %v736_v24 = vpop.f32.mrf.mxu3 }
 0x13e   : > { %v739_v25 = vmul.f32 0.17677669, %v736_v24 }
 0x140   : > { %v741_v26 = vsel %vm740_vm1, -1e+09, %v739_v25  ;;  %v635_v25 = vld [vmem:[#allocation7] sm:$0x3] }
 0x141   : > { %v743_v27 = vsel %vm742_vm2, %v741_v26, -inf  ;;  %v846_v29 = vperm.slane %v635_v25, 0 }
 0x142   : > { %744 = vmax.xlane.f32.xlu0 %v743_v27 }
 0x1b5   : > { %v745_v31 = vpop.xlane.xlu0 %744 }
 0x1b6   : > { %v746_v32 = vsub.f32 %v741_v26, %v745_v31  ;;  %v844_v26 = vperm.slane %v634_v23, 0 }
 0x1b8   : > { %v747_v33 = vmul.f32 1.442695, %v746_v32  ;;  %v641_v32 = vld [vmem:[%s1738_s9 + $0x28] sm:$0xff] }
 0x1ba   : > { %1241 = vpow2.f32 %v747_v33  ;;  %v640_v33 = vld [vmem:[%s1738_s9 + $0x20] sm:$0xff] }
 0x1c0   : > { %v1242_v34 = vpop.eup %1241 }
 0x1c1   : > { %v749_v35 = vsel %vm742_vm2, %v1242_v34, 0.0 }
 0x1c2   : > { %750 = vadd.xlane.f32.xlu0 %v749_v35 }
 0x235   : > { %v751_v43 = vpop.xlane.xlu0 %750 }
 0x236   : > { %1243 = vrcp.f32 %v751_v43  ;;  %v763_v47 = vand.u32 2147483648, %v751_v43  ;;  %v761_v49 = vand.u32 2147483647, %v751_v43  ;;  %vm757_vm4 = vweird.f32 %v751_v43 }
 0x237   : > { %1245 = vrcp.f32 %v1494_v61 }
 0x238   : > { %v764_v51 = vor.u32 1.1754944e-38, %v763_v47  ;;  %vm762_vm6 = vcmp.eq.f32.partialorder %v761_v49, 8.507059e+37 }
 0x23c   : > { %v1244_v44 = vpop.eup %1243 }
 0x23d   : > { %v753_v45 = vmul.f32 %v1244_v44, %v751_v43  ;;  %vm758_vm3 = vweird.f32 %v1244_v44  ;;  %v1246_v62 = vpop.eup %1245 }
 0x23e   : > { %vm759_vm5 = vmor %vm757_vm4, %vm758_vm3  ;;  %v819_v63 = vmul.f32 32.0, %v1246_v62  ;;  %vm823_vm7 = vweird.f32 %v1246_v62 }
 0x23f   : > { %v754_v46 = vsub.f32 1.0, %v753_v45 }
 0x240   : > { %v820_v0 = vsub.f32 1.0, %v819_v63  ;;  %v921_v63 = vperm.slane %v634_v23, 1 }
 0x241   : > { %v755_v48 = vmul.f32 %v1244_v44, %v754_v46 }
 0x242   : > { %v821_v1 = vmul.f32 %v1246_v62, %v820_v0 }
 0x243   : > { %v756_v50 = vadd.f32 %v1244_v44, %v755_v48 }
 0x244   : > { %v822_v2 = vadd.f32 %v1246_v62, %v821_v1  ;;  %v923_v1 = vperm.slane %v635_v25, 1 }
 0x245   : > { %v760_v52 = vsel %vm759_vm5, %v1244_v44, %v756_v50  ;;  %v928_v50 = vld [vmem:[#allocation10 + $0x18] sm:$0xff] }
 0x246   : > { %v765_v53 = vsel %vm762_vm6, %v764_v51, %v760_v52  ;;  %v1685_v3 = vsel %vm823_vm7, %v1246_v62, %v822_v2  ;;  %948 = vmatpush.msra.mxu3 %v928_v50  ;;  %v927_v51 = vld [vmem:[#allocation10 + $0x10] sm:$0xff]  ;;  %v926_v52 = vld [vmem:[#allocation10 + $0x8] sm:$0xff] }
 0x247   : > { %v766_v54 = vmul.f32 %v1242_v34, %v765_v53  ;;  %v644_v34 = vld [vmem:[#allocation9] sm:$0x3]  ;;  %v925_v53 = vld [vmem:[#allocation10] sm:$0xff] }
 0x248   : > { %v848_v35 = vperm.slane %v644_v34, 0  ;;  %v873_v39 = vperm.slane %v644_v34, 1  ;;  %949 = vmatpush.msra.mxu3 %v927_v51 }
 0x249   : > { %1149 = vmatmul.msk.f32.vlgmr.msrb.gmra.mxu3 %vm742_vm2, %v766_v54 }
 0x24a   : > { %950 = vmatpush.msra.mxu3 %v926_v52 }
 0x24c   : > { %951 = vmatpush.msra.mxu3 %v925_v53 }
 0x2cc   : > { %v787_v55 = vpop.f32.mrf.mxu3 }
 0x2cd   : > { %1150 = vmatmul.msk.f32.vlgmr.msrb.gmra.mxu0 %vm647_vm0, %v787_v55 }
 0x34a   : > { %v811_v57 = vpop.f32.mrf.mxu0 }
 0x34b   : > { %v812_v58 = vadd.f32 %v811_v57, %v790_v56 }
 0x34d   : > { %v814_v59 = vadd.f32 %v812_v58, %v1659_v14  ;;  %v642_v14 = vld [vmem:[%s1738_s9 + $0x30] sm:$0xff] }
 0x34e   : > { %890 = vmatpush.msrb.mxu2 %v642_v14 }
 0x34f   : > { %v815_v60 = vsel %vm647_vm0, %v814_v59, 0.0 }
 0x350   : > { %816 = vadd.xlane.f32.xlu1 %v815_v60  ;;  %891 = vmatpush.msrb.mxu2 %v641_v32 }
 0x352   : > { %892 = vmatpush.msrb.mxu2 %v640_v33 }
 0x3c3   : > { %v817_v4 = vpop.xlane.xlu1 %816 }
 0x3c4   : > { %v825_v5 = vmul.f32 %v1685_v3, %v817_v4 }
 0x3c6   : > { %v826_v6 = vsub.f32 %v814_v59, %v825_v5 }
 0x3c8   : > { %v827_v7 = vmul.f32 %v826_v6, %v826_v6 }
 0x3ca   : > { %v828_v8 = vsel %vm647_vm0, %v827_v7, 0.0 }
 0x3cb   : > { %829 = vadd.xlane.f32.xlu1 %v828_v8 }
 0x43e   : > { %v830_v15 = vpop.xlane.xlu1 %829 }
 0x43f   : > { %v831_v16 = vmul.f32 %v830_v15, %v1685_v3 }
 0x441   : > { %v832_v17 = vadd.f32 1e-05, %v831_v16 }
 0x443   : > { %1247 = vrsqrt.f32 %v832_v17  ;;  %vm839_vm9 = vweird.f32 %v832_v17 }
 0x449   : > { %v1248_v18 = vpop.eup %1247 }
 0x44a   : > { %v834_v19 = vmul.f32 %v1248_v18, %v832_v17  ;;  %vm840_vm8 = vweird.f32 %v1248_v18 }
 0x44b   : > { %vm841_vm10 = vmor %vm839_vm9, %vm840_vm8 }
 0x44c   : > { %v835_v20 = vmul.f32 %v1248_v18, %v834_v19 }
 0x44e   : > { %v836_v21 = vmul.f32 0.5, %v835_v20 }
 0x450   : > { %v837_v22 = vsub.f32 1.5, %v836_v21 }
 0x452   : > { %v838_v24 = vmul.f32 %v1248_v18, %v837_v22 }
 0x454   : > { %v842_v27 = vsel %vm841_vm10, %v1248_v18, %v838_v24 }
 0x455   : > { %v843_v28 = vmul.f32 %v842_v27, %v826_v6 }
 0x457   : > { %v845_v30 = vmul.f32 %v844_v26, %v843_v28 }
 0x459   : > { %v847_v31 = vadd.f32 %v846_v29, %v845_v30 }
 0x45b   : > { %1151 = vmatmul.msk.f32.vlgmr.msrb.gmra.mxu1 %vm647_vm0, %v847_v31 }
 0x4d8   : > { %v869_v36 = vpop.f32.mrf.mxu1 }
 0x4d9   : > { %v870_v37 = vadd.f32 %v869_v36, %v848_v35 }
 0x4db   : > { %v872_v38 = vmax.f32 %v870_v37, 0.0 }
 0x4dd   : > { %1152 = vmatmul.msk.f32.vlgmr.msrb.gmra.mxu2 %vm647_vm0, %v872_v38 }
 0x560   : > { %v894_v40 = vpop.f32.mrf.mxu2 }
 0x561   : > { %v895_v41 = vadd.f32 %v894_v40, %v873_v39 }
 0x563   : > { %v897_v42 = vmax.f32 %v895_v41, 0.0 }
 0x565   : > { %v898_v43 = vadd.f32 %v897_v42, %v847_v31 }
 0x567   : > { %v899_v44 = vsel %vm647_vm0, %v898_v43, 0.0 }
 0x568   : > { %900 = vadd.xlane.f32.xlu2 %v899_v44 }
 0x5db   : > { %v901_v45 = vpop.xlane.xlu2 %900 }
 0x5dc   : > { %v902_v46 = vmul.f32 %v901_v45, %v1685_v3 }
 0x5de   : > { %v903_v47 = vsub.f32 %v898_v43, %v902_v46 }
 0x5e0   : > { %v904_v48 = vmul.f32 %v903_v47, %v903_v47 }
 0x5e2   : > { %v905_v49 = vsel %vm647_vm0, %v904_v48, 0.0 }
 0x5e3   : > { %906 = vadd.xlane.f32.xlu2 %v905_v49 }
 0x656   : > { %v907_v54 = vpop.xlane.xlu2 %906 }
 0x657   : > { %v908_v55 = vmul.f32 %v907_v54, %v1685_v3  ;;  %v1240_v3 = vld [vmem:[#allocation12] ss:$0 sm:$0xff] }
 0x659   : > { %v909_v56 = vadd.f32 1e-05, %v908_v55 }
 0x65b   : > { %1249 = vrsqrt.f32 %v909_v56  ;;  %vm916_vm12 = vweird.f32 %v909_v56 }
 0x661   : > { %v1250_v57 = vpop.eup %1249 }
 0x662   : > { %v911_v58 = vmul.f32 %v1250_v57, %v909_v56  ;;  %vm917_vm11 = vweird.f32 %v1250_v57 }
 0x663   : > { %vm918_vm13 = vmor %vm916_vm12, %vm917_vm11 }
 0x664   : > { %v912_v59 = vmul.f32 %v1250_v57, %v911_v58 }
 0x666   : > { %v913_v60 = vmul.f32 0.5, %v912_v59 }
 0x668   : > { %v914_v61 = vsub.f32 1.5, %v913_v60 }
 0x66a   : > { %v915_v62 = vmul.f32 %v1250_v57, %v914_v61 }
 0x66c   : > { %v919_v0 = vsel %vm918_vm13, %v1250_v57, %v915_v62 }
 0x66d   : > { %v920_v2 = vmul.f32 %v919_v0, %v903_v47 }
 0x66f   : > { %v922_v4 = vmul.f32 %v921_v63, %v920_v2 }
 0x671   : > { %v924_v5 = vadd.f32 %v923_v1, %v922_v4 }
 0x673   : > { %1153 = vmatmul.msk.f32.vlgmr.msra.gmra.mxu3 %vm647_vm0, %v924_v5 }
 0x6f6   : > { %v953_v6 = vpop.f32.mrf.mxu3 }
 0x6f7   : > { %v954_v7 = vadd.f32 %v1240_v3, %v953_v6 }
 0x6f9   : > { %956 = vst.msk [vmem:[%s603_s17] sm:$0xff] %vm647_vm0, %v954_v7 }
 0x6fa PF: > { %s27_s25 = sadd.s32 1, %s1483_s25  }
 0x6fb   : > { %p24_p7 = scmp.ge.s32.totalorder %s27_s25, 4  }
 0x6fd   :  { %26 = sbr.rel (!%p24_p7) target bundleno = 7 (0x7), region = 143 }
 0x702   :  { %976 = vsyncpa [#allocation3], 1 }
 0x703   :  { %978 = vsyncpa [#allocation3 + $0x1], 1 }
 0x704   :  { %979 = vsyncpa [#allocation5], 1 }
 0x705   :  { %980 = vsyncpa [#allocation8], 1 }
 0x706   :  { %981 = vsyncpa [#allocation11], 1 }

// kernel: history_dialogue_forward.21
= control target key start
LH: loop header
LB: loop body
LE: loop exit
PB: predicated region body
PF: predicated region fallthrough
CT: control target
= control target key end

     0   :  { %s1445_s0 = inlined_call_operand.vmem [shape: f32[2,8,32], index: 0, kind: input, shape index: {}]   ;;  %s1446_s1 = inlined_call_operand.vmem [shape: f32[2,8,32], index: 1, kind: input, shape index: {}]   ;;  %s1447_s2 = inlined_call_operand.vmem [shape: f32[2,8,32], index: 2, kind: input, shape index: {}]   ;;  %s1448_s3 = inlined_call_operand.vmem [shape: f32[2,8,1], index: 3, kind: input, shape index: {}]   ;;  %s1449_s4 = inlined_call_operand.vmem [shape: f32[96,32], index: 4, kind: input, shape index: {}]   ;;  %s1450_s5 = inlined_call_operand.vmem [shape: f32[1,32], index: 5, kind: input, shape index: {}]   ;;  %s1451_s6 = inlined_call_operand.vmem [shape: f32[96,32], index: 6, kind: input, shape index: {}]   ;;  %s1452_s7 = inlined_call_operand.vmem [shape: f32[1,32], index: 7, kind: input, shape index: {}]   ;;  %s1453_s8 = inlined_call_operand.vmem [shape: f32[96,32], index: 8, kind: input, shape index: {}]   ;;  %s1454_s9 = inlined_call_operand.vmem [shape: f32[1,32], index: 9, kind: input, shape index: {}]   ;;  %s1455_s10 = inlined_call_operand.vmem [shape: f32[96,32], index: 10, kind: input, shape index: {}]   ;;  %s1456_s11 = inlined_call_operand.vmem [shape: f32[1,32], index: 11, kind: input, shape index: {}]   ;;  %s1457_s12 = inlined_call_operand.vmem [shape: f32[32,32], index: 12, kind: input, shape index: {}]   ;;  %s1458_s13 = inlined_call_operand.vmem [shape: f32[1,32], index: 13, kind: input, shape index: {}]   ;;  %s1459_s14 = inlined_call_operand.hbm [shape: f32[2,8,32], index: 14, kind: output, shape index: {}]  }
   0x1   :  { %1469 = sst [smem:[#allocation10_spill]] %s1445_s0 }
   0x2   :  { %19 = vsyncpa [#allocation3], 0 }
   0x3   :  { %21 = vsyncpa [#allocation3 + $0x1], 0  ;;  %s1131_s29 = smov 0   ;;  %s1133_s30 = smov 0  }
   0x4   :  { %s1135_s15 = smov 0   ;;  %s1137_s16 = smov 0  }
   0x5 LB: > { %1470 = sst [smem:[#allocation5_spill]] %s1039_s29  ;;  %s1152_s17 = sadd.s32 4294967295, %s1051_s16   ;;  %s1051_s16 = sphi %s1137_s16, %s1482_s16   ;;  %s1047_s15 = sphi %s1135_s15, %s1484_s15   ;;  %s1043_s30 = sphi %s1133_s30, %s1486_s30   ;;  %s1039_s29 = sphi %s1131_s29, %s1485_s29  }
   0x6   : > { %1471 = sst [smem:[#allocation6_spill]] %s1047_s15  ;;  %s922_s18 = sadd.s32 4294967294, %s1051_s16  }
   0x7   : > { %s1156_s19 = sadd.s32 1, %s1051_s16   ;;  %s348_s20 = sadd.s32 1, %s1047_s15 }
   0x8   : > { %1472 = sst [smem:[#allocation7_spill]] %s1156_s19  ;;  %s345_s21 = ssub.s32 %s1051_s16, %s1156_s19 }
   0x9   : > { %p358_p0 = scmp.ne.s32.totalorder %s1047_s15, %s1043_s30  ;;  %p346_p1 = scmp.eq.s32.totalorder %s345_s21, 0 }
   0xa   : > { %p359_p2 = scmp.eq.s32.totalorder %s1152_s17, 1  ;;  %p364_p3 = scmp.ne.s32.totalorder %s1043_s30, %s1039_s29 }
   0xb   : > { %p365_p4 = scmp.eq.s32.totalorder %s922_s18, 1  ;;  %p925_p7 = scmp.ge.s32.totalorder %s1051_s16, 1 }
   0xc   : > { %s1167_s22 = scalar_select %p346_p1, %s1047_s15, %s348_s20  }
   0xd   : > { %p1169_p5 = por %p359_p2, %p358_p0  ;;  %p1173_p6 = por %p365_p4, %p364_p3 }
   0xe   : > { %1473 = sst [smem:[#allocation8_spill]] %s1167_s22  ;;  %p441_p8 = scmp.lt.s32.totalorder %s1051_s16, 3 }
   0xf   : > { %s1475_s24 = scalar_select %p1173_p6, 1, 0 }
  0x10   : > { %p442_p9 = pnand %p925_p7, %p441_p8 }
  0x11   : > { %1476 = sst [smem:[#allocation9_spill]] %s1475_s24  ;;  %p498_p10 = scmp.lt.s32.totalorder (!%p442_p9), %s1152_s17, 1 }
  0x12   : > { %445 = sbr.rel (%p442_p9) target bundleno = 1191 (0x4a7), region = 76  ;;  %s1477_s0 = sld [smem:[#allocation10_spill]] (!%p442_p9) }
  0x13   : > { %s1478_s25 = smov (!%p442_p9), 64  }
  0x17   : > { %v530_v0 = vld [vmem:[%s1449_s4 + $0x58] sm:$0xff]  ;;  %v529_v1 = vld [vmem:[%s1449_s4 + $0x50] sm:$0xff]  ;;  %s499_s18 = scalar_select %p498_p10, %s1152_s17, 1  ;;  %v528_v2 = vld [vmem:[%s1449_s4 + $0x48] sm:$0xff]  ;;  %vm535_vm0 = vcmask 1040384   ;;  %vm540_vm1 = vcmask 1046528  }
  0x18   : > { %569 = vmatpush.msra.mxu0 %v530_v0  ;;  %v527_v3 = vld [vmem:[%s1449_s4 + $0x40] sm:$0xff]  ;;  %v526_v6 = vld [vmem:[%s1449_s4 + $0x38] sm:$0xff]  ;;  %v525_v9 = vld [vmem:[%s1449_s4 + $0x30] sm:$0xff]  ;;  %vm547_vm2 = vcmask 1045504   ;;  %vm554_vm3 = vcmask 261120   ;;  %vm556_vm4 = vcmask 523264  }
  0x19   : > { %s1190_s22 = sshll.u32 %s499_s18, 3  ;;  %v524_v11 = vld [vmem:[%s1449_s4 + $0x28] sm:$0xff]  ;;  %v523_v21 = vld [vmem:[%s1449_s4 + $0x20] sm:$0xff]  ;;  %v522_v22 = vld [vmem:[%s1449_s4 + $0x18] sm:$0xff]  ;;  %vm561_vm5 = vcmask 785408  }
  0x1a   : > { %570 = vmatpush.msra.mxu0 %v529_v1  ;;  %s501_s27 = scalar_lea.vmem %s1477_s0, %s1190_s22  ;;  %s505_s29 = scalar_lea.vmem %s1446_s1, %s1190_s22  ;;  %v521_v23 = vld [vmem:[%s1449_s4 + $0x10] sm:$0xff]  ;;  %v520_v24 = vld [vmem:[%s1449_s4 + $0x8] sm:$0xff]  ;;  %v519_v25 = vld [vmem:[%s1449_s4] sm:$0xff] }
  0x1b   : > { %s509_s18 = scalar_lea.vmem %s1447_s2, %s1190_s22  ;;  %v514_v4 = vld [vmem:[%s501_s27] sm:$0xff]  ;;  %s1465_s27 = smov 64   ;;  %v597_v30 = vld [vmem:[%s1451_s6 + $0x58] sm:$0xff]  ;;  %v596_v31 = vld [vmem:[%s1451_s6 + $0x50] sm:$0xff] }
  0x1c   : > { %571 = vmatpush.msra.mxu0 %v528_v2  ;;  %v515_v5 = vld [vmem:[%s505_s29] sm:$0xff]  ;;  %s1467_s29 = smov 32   ;;  %630 = vmatpush.msra.mxu1 %v597_v30  ;;  %v595_v32 = vld [vmem:[%s1451_s6 + $0x48] sm:$0xff]  ;;  %v593_v34 = vld [vmem:[%s1451_s6 + $0x38] sm:$0xff]  ;;  %s513_s19 = scalar_lea.vmem %s1448_s3, %s1190_s22 }
  0x1d   : > { %v516_v7 = vadd.f32 %v515_v5, %v514_v4  ;;  %v517_v8 = vld [vmem:[%s509_s18] sm:$0xff]  ;;  %v592_v35 = vld [vmem:[%s1451_s6 + $0x30] sm:$0xff]  ;;  %v591_v37 = vld [vmem:[%s1451_s6 + $0x28] sm:$0xff]  ;;  %s1479_s18 = smov 32   ;;  %s495_s22 = sand.u32 1, %s1043_s30  }
  0x1e   : > { %572 = vmatpush.msra.mxu0 %v527_v3  ;;  %631 = vmatpush.msra.mxu1 %v596_v31  ;;  %v594_v33 = vld [vmem:[%s1451_s6 + $0x40] sm:$0xff]  ;;  %v589_v51 = vld [vmem:[%s1451_s6 + $0x18] sm:$0xff]  ;;  %v588_v52 = vld [vmem:[%s1451_s6 + $0x10] sm:$0xff]  ;;  %s926_s20 = sshll.u32 %s495_s22, 3 }
  0x1f   : > { %v1213_v10 = vadd.f32 %v517_v8, %v516_v7  ;;  %v984_v36 = vld [vmem:[%s1450_s5] ss:$0 sm:$0xff]  ;;  %v587_v53 = vld [vmem:[%s1451_s6 + $0x8] sm:$0xff]  ;;  %v659_v59 = vld [vmem:[%s1453_s8 + $0x58] sm:$0xff] }
  0x20   : > { %573 = vmatpush.msra.mxu0 %v526_v6  ;;  %632 = vmatpush.msra.mxu1 %v595_v32  ;;  %v590_v50 = vld [vmem:[%s1451_s6 + $0x20] sm:$0xff]  ;;  %v658_v60 = vld [vmem:[%s1453_s8 + $0x50] sm:$0xff]  ;;  %v657_v61 = vld [vmem:[%s1453_s8 + $0x48] sm:$0xff] }
  0x21   : > { %v533_v12 = vrot.slane %v1213_v10, 7  ;;  %v586_v54 = vld [vmem:[%s1451_s6] sm:$0xff]  ;;  %692 = vmatpush.msra.mxu2 %v659_v59  ;;  %v655_v63 = vld [vmem:[%s1453_s8 + $0x38] sm:$0xff]  ;;  %v654_v1 = vld [vmem:[%s1453_s8 + $0x30] sm:$0xff] }
  0x22   : > { %574 = vmatpush.msra.mxu0 %v525_v9  ;;  %633 = vmatpush.msra.mxu1 %v594_v33  ;;  %v656_v62 = vld [vmem:[%s1453_s8 + $0x40] sm:$0xff]  ;;  %v653_v2 = vld [vmem:[%s1453_s8 + $0x28] sm:$0xff]  ;;  %v716_v30 = vld [vmem:[%s1455_s10 + $0x38] sm:$0xff] }
  0x23   : > { %v536_v13 = vsel %vm535_vm0, 0.0, %v533_v12  ;;  %v537_v14 = vsel %vm535_vm0, %v533_v12, 0.0  ;;  %693 = vmatpush.msra.mxu2 %v658_v60  ;;  %v985_v0 = vld [vmem:[%s1452_s7] ss:$0 sm:$0xff]  ;;  %v715_v31 = vld [vmem:[%s1455_s10 + $0x30] sm:$0xff]  ;;  %v714_v32 = vld [vmem:[%s1455_s10 + $0x28] sm:$0xff] }
  0x24   : > { %575 = vmatpush.msra.mxu0 %v524_v11  ;;  %v541_v15 = vrot.slane %v536_v13, 1  ;;  %v542_v16 = vrot.slane %v537_v14, 1  ;;  %v548_v18 = vrot.slane %v536_v13, 2  ;;  %v549_v19 = vrot.slane %v537_v14, 2  ;;  %634 = vmatpush.msra.mxu1 %v593_v34  ;;  %v713_v33 = vld [vmem:[%s1455_s10 + $0x20] sm:$0xff]  ;;  %v712_v34 = vld [vmem:[%s1455_s10 + $0x18] sm:$0xff] }
  0x25   : > { %694 = vmatpush.msra.mxu2 %v657_v61  ;;  %v802_v59 = vld [vmem:[%s513_s19] sm:$0xff]  ;;  %v1055_v60 = vmov 0   ;;  %s497_s19 = scalar_lea.vmem [#allocation2], %s926_s20  ;;  %s1009_s20 = scalar_lea.hbm %s1459_s14, 16 }
  0x26   : > { %v543_v17 = vsel %vm540_vm1, %v541_v15, %v542_v16  ;;  %v550_v20 = vsel %vm547_vm2, %v548_v18, %v549_v19  ;;  %576 = vmatpush.msra.mxu0 %v523_v21  ;;  %635 = vmatpush.msra.mxu1 %v592_v35  ;;  %v651_v18 = vld [vmem:[%s1453_s8 + $0x18] sm:$0xff]  ;;  %v650_v19 = vld [vmem:[%s1453_s8 + $0x10] sm:$0xff]  ;;  %v648_v21 = vld [vmem:[%s1453_s8] sm:$0xff]  ;;  %v803_v61 = vsub.f32 1.0, %v802_v59  ;;  %s824_s26 = sshll.u32 %s497_s19, 4  ;;  %s825_s26 = int_to_ptr.vmem [resolvable:$true] %s824_s26 }
  0x27   : > { %544 = vrot.lane.b32.xlu0 %v543_v17, %s1467_s29  ;;  %695 = vmatpush.msra.mxu2 %v656_v62  ;;  %v652_v17 = vld [vmem:[%s1453_s8 + $0x20] sm:$0xff]  ;;  %v711_v35 = vld [vmem:[%s1455_s10 + $0x10] sm:$0xff] }
  0x28   : > { %577 = vmatpush.msra.mxu0 %v522_v22  ;;  %636 = vmatpush.msra.mxu1 %v591_v37  ;;  %v710_v37 = vld [vmem:[%s1455_s10 + $0x8] sm:$0xff]  ;;  %v987_v62 = vld [vmem:[%s1456_s11] ss:$0 sm:$0xff] }
  0x29   : > { %696 = vmatpush.msra.mxu2 %v655_v63  ;;  %982 = vset.pattern.permute.xlu2 %v1055_v60 }
  0x2a   : > { %578 = vmatpush.msra.mxu0 %v521_v23  ;;  %637 = vmatpush.msra.mxu1 %v590_v50  ;;  %v709_v50 = vld [vmem:[%s1455_s10] sm:$0xff] }
  0x2b   : > { %697 = vmatpush.msra.mxu2 %v654_v1  ;;  %983 = vset.pattern.permute.xlu0 %v1055_v60 }
  0x2c   : > { %579 = vmatpush.msra.mxu0 %v520_v24  ;;  %638 = vmatpush.msra.mxu1 %v589_v51  ;;  %v774_v51 = vld [vmem:[%s1457_s12 + $0x18] sm:$0xff] }
  0x2d   : > { %698 = vmatpush.msra.mxu2 %v653_v2 }
  0x2e   : > { %580 = vmatpush.msra.mxu0 %v519_v25  ;;  %639 = vmatpush.msra.mxu1 %v588_v52 }
  0x2f   : > { %551 = vrot.lane.b32.xlu0 %v550_v20, %s1465_s27  ;;  %699 = vmatpush.msra.mxu2 %v652_v17  ;;  %v649_v20 = vld [vmem:[%s1453_s8 + $0x8] sm:$0xff] }
  0x30   : > { %640 = vmatpush.msra.mxu1 %v587_v53  ;;  %794 = vmatpush.msrb.mxu0 %v774_v51 }
  0x31   : > { %700 = vmatpush.msra.mxu2 %v651_v18 }
  0x32   : > { %641 = vmatpush.msra.mxu1 %v586_v54 }
  0x33   : > { %701 = vmatpush.msra.mxu2 %v650_v19 }
  0x35   : > { %702 = vmatpush.msra.mxu2 %v649_v20 }
  0x37   : > { %703 = vmatpush.msra.mxu2 %v648_v21 }
  0x99   : > { %v545_v26 = vpop.permute.xlu0 %544 }
  0x9a   : > { %v555_v27 = vsel %vm554_vm3, %v536_v13, %v545_v26  ;;  %v720_v26 = vld [vmem:[%s1455_s10 + $0x58] sm:$0xff] }
  0x9b   : > { %753 = vmatpush.msra.mxu3 %v720_v26 }
  0xa1   : > { %v552_v28 = vpop.permute.xlu0 %551 }
  0xa2   : > { %v557_v29 = vsel %vm556_vm4, %v555_v27, %v552_v28  ;;  %v719_v27 = vld [vmem:[%s1455_s10 + $0x50] sm:$0xff]  ;;  %v718_v28 = vld [vmem:[%s1455_s10 + $0x48] sm:$0xff] }
  0xa3   : > { %931 = vmatmul.msk.f32.vlgmr.msra.gmra.mxu0 %vm561_vm5, %v557_v29  ;;  %754 = vmatpush.msra.mxu3 %v719_v27  ;;  %v717_v29 = vld [vmem:[%s1455_s10 + $0x40] sm:$0xff] }
  0xa5   : > { %755 = vmatpush.msra.mxu3 %v718_v28 }
  0xa7   : > { %756 = vmatpush.msra.mxu3 %v717_v29 }
  0xa9   : > { %757 = vmatpush.msra.mxu3 %v716_v30 }
  0xab   : > { %758 = vmatpush.msra.mxu3 %v715_v31 }
  0xad   : > { %759 = vmatpush.msra.mxu3 %v714_v32 }
  0xaf   : > { %760 = vmatpush.msra.mxu3 %v713_v33 }
  0xb1   : > { %761 = vmatpush.msra.mxu3 %v712_v34 }
  0xb3   : > { %762 = vmatpush.msra.mxu3 %v711_v35 }
  0xb5   : > { %763 = vmatpush.msra.mxu3 %v710_v37 }
  0xb7   : > { %764 = vmatpush.msra.mxu3 %v709_v50 }
 0x120   : > { %v582_v38 = vpop.f32.mrf.mxu0 }
 0x121   : > { %v583_v39 = vadd.f32 %v984_v36, %v582_v38  ;;  %v986_v36 = vld [vmem:[%s1454_s9] ss:$0 sm:$0xff] }
 0x123   : > { %v585_v40 = vmax.f32 %v583_v39, 0.0 }
 0x125   : > { %v600_v41 = vrot.slane %v585_v40, 7 }
 0x127   : > { %v602_v42 = vsel %vm535_vm0, 0.0, %v600_v41  ;;  %v603_v43 = vsel %vm535_vm0, %v600_v41, 0.0 }
 0x128   : > { %v607_v44 = vrot.slane %v603_v43, 1  ;;  %v606_v45 = vrot.slane %v602_v42, 1  ;;  %v612_v47 = vrot.slane %v602_v42, 2  ;;  %v613_v48 = vrot.slane %v603_v43, 2 }
 0x12a   : > { %v608_v46 = vsel %vm540_vm1, %v606_v45, %v607_v44  ;;  %v614_v49 = vsel %vm547_vm2, %v612_v47, %v613_v48 }
 0x12b   : > { %609 = vrot.lane.b32.xlu1 %v608_v46, %s1467_s29 }
 0x133   : > { %615 = vrot.lane.b32.xlu1 %v614_v49, %s1478_s25 }
 0x19d   : > { %v610_v55 = vpop.permute.xlu1 %609 }
 0x19e   : > { %v618_v56 = vsel %vm554_vm3, %v602_v42, %v610_v55 }
 0x1a5   : > { %v616_v57 = vpop.permute.xlu1 %615 }
 0x1a6   : > { %v619_v58 = vsel %vm556_vm4, %v618_v56, %v616_v57  ;;  %v773_v56 = vld [vmem:[%s1457_s12 + $0x10] sm:$0xff]  ;;  %v772_v57 = vld [vmem:[%s1457_s12 + $0x8] sm:$0xff] }
 0x1a7   : > { %932 = vmatmul.msk.f32.vlgmr.msra.gmra.mxu1 %vm561_vm5, %v619_v58  ;;  %795 = vmatpush.msrb.mxu0 %v773_v56  ;;  %v771_v58 = vld [vmem:[%s1457_s12] sm:$0xff] }
 0x1a9   : > { %796 = vmatpush.msrb.mxu0 %v772_v57 }
 0x1ab   : > { %797 = vmatpush.msrb.mxu0 %v771_v58 }
 0x224   : > { %v643_v3 = vpop.f32.mrf.mxu1 }
 0x225   : > { %v644_v4 = vadd.f32 %v985_v0, %v643_v3  ;;  %v988_v3 = vld [vmem:[%s1458_s13] ss:$0 sm:$0xff] }
 0x227   : > { %v646_v5 = vmax.f32 %v644_v4, 0.0 }
 0x229   : > { %v647_v6 = vadd.f32 %v646_v5, %v1213_v10 }
 0x22b   : > { %v662_v7 = vrot.slane %v647_v6, 7 }
 0x22d   : > { %v664_v8 = vsel %vm535_vm0, 0.0, %v662_v7  ;;  %v665_v9 = vsel %vm535_vm0, %v662_v7, 0.0 }
 0x22e   : > { %v668_v11 = vrot.slane %v664_v8, 1  ;;  %v669_v12 = vrot.slane %v665_v9, 1  ;;  %v674_v14 = vrot.slane %v664_v8, 2  ;;  %v675_v15 = vrot.slane %v665_v9, 2 }
 0x230   : > { %v670_v13 = vsel %vm540_vm1, %v668_v11, %v669_v12  ;;  %v676_v16 = vsel %vm547_vm2, %v674_v14, %v675_v15 }
 0x231   : > { %671 = vrot.lane.b32.xlu2 %v670_v13, %s1479_s18 }
 0x239   : > { %677 = vrot.lane.b32.xlu2 %v676_v16, %s1478_s25 }
 0x241   : > { %806 = vperm.xlu2 %982, %v803_v61  }
 0x28b   : > { %v672_v22 = vpop.permute.xlu2 %671 }
 0x28c   : > { %v680_v23 = vsel %vm554_vm3, %v664_v8, %v672_v22 }
 0x293   : > { %v678_v24 = vpop.permute.xlu2 %677 }
 0x294   : > { %v681_v25 = vsel %vm556_vm4, %v680_v23, %v678_v24 }
 0x295   : > { %933 = vmatmul.msk.f32.vlgmr.msra.gmra.mxu2 %vm561_vm5, %v681_v25 }
 0x29b   : > { %v807_v5 = vpop.permute.xlu2 %806 }
 0x318   : > { %v705_v38 = vpop.f32.mrf.mxu2 }
 0x319   : > { %v706_v39 = vadd.f32 %v986_v36, %v705_v38 }
 0x31b   : > { %v708_v40 = vmax.f32 %v706_v39, 0.0 }
 0x31d   : > { %v723_v41 = vrot.slane %v708_v40, 7 }
 0x31f   : > { %v725_v42 = vsel %vm535_vm0, 0.0, %v723_v41  ;;  %v726_v43 = vsel %vm535_vm0, %v723_v41, 0.0 }
 0x320   : > { %v729_v44 = vrot.slane %v725_v42, 1  ;;  %v730_v45 = vrot.slane %v726_v43, 1  ;;  %v735_v46 = vrot.slane %v725_v42, 2  ;;  %v736_v47 = vrot.slane %v726_v43, 2 }
 0x322   : > { %v737_v48 = vsel %vm547_vm2, %v735_v46, %v736_v47  ;;  %v731_v49 = vsel %vm540_vm1, %v729_v44, %v730_v45 }
 0x323   : > { %738 = vrot.lane.b32.xlu1 %v737_v48, %s1478_s25  ;;  %732 = vrot.lane.b32.xlu0 %v731_v49, %s1479_s18  ;;  %s937_s25 = sshll.u32 %s1152_s17, 3  ;;  %s812_s17 = scalar_lea.sflag [#allocation3], %s495_s22 }
 0x324   : > { %s822_s27 = scalar_lea.hbm %s1459_s14, %s937_s25 }
 0x325   : > { %s826_s0 = sshll.u32 %s822_s27, 4  ;;  %s827_s0 = int_to_ptr.hbm [resolvable:$true] %s826_s0 }
 0x326   : > { %s1003_s24 = sshra.s32 %s827_s0, 4  ;;  %s1004_s24 = int_to_ptr.hbm [resolvable:$true] %s1003_s24 }
 0x327   : > { %s1005_s28 = scalar_lea.hbm %s1004_s24, 8  ;;  %p1010_p0 = scmp.lt.s32.totalorder %s1004_s24, %s1459_s14 }
 0x328   : > { %p1006_p11 = scmp.ne.s32.totalorder %s1004_s24, %s1005_s28  ;;  %p1011_p1 = scmp.lt.s32.totalorder %s1009_s20, %s1005_s28 }
 0x32a   : > { %p1007_p12 = pnand %p1006_p11, %p1169_p5  ;;  %p1012_p2 = por %p1011_p1, %p1010_p0 }
 0x32c   : > { %p1008_p13 = pneg %p1007_p12 }
 0x32e   : > { %p1013_p3 = pnand %p1012_p2, %p1008_p13 }
 0x395   : > { %v739_v52 = vpop.permute.xlu1 %738  ;;  %v733_v53 = vpop.permute.xlu0 %732 }
 0x396   : > { %v741_v54 = vsel %vm554_vm3, %v725_v42, %v733_v53 }
 0x397   : > { %v742_v55 = vsel %vm556_vm4, %v741_v54, %v739_v52 }
 0x398   : > { %934 = vmatmul.msk.f32.vlgmr.msra.gmra.mxu3 %vm561_vm5, %v742_v55 }
 0x41b   : > { %v766_v63 = vpop.f32.mrf.mxu3 }
 0x41c   : > { %v767_v0 = vadd.f32 %v987_v62, %v766_v63 }
 0x41e   : > { %v769_v1 = vmax.f32 %v767_v0, 0.0 }
 0x420   : > { %v770_v2 = vadd.f32 %v769_v1, %v1213_v10 }
 0x422   : > { %935 = vmatmul.msk.f32.vlgmr.msrb.gmra.mxu0 %vm554_vm3, %v770_v2 }
 0x49f   : > { %v799_v4 = vpop.f32.mrf.mxu0 }
 0x4a0   : > { %v800_v10 = vadd.f32 %v988_v3, %v799_v4 }
 0x4a2   : > { %v809_v6 = vmul.f32 %v807_v5, %v800_v10 }
 0x4a4   : > { %810 = vst.msk [vmem:[%s497_s19] sm:$0xff] %vm554_vm3, %v809_v6 }
 0x4a5   : > { %1016 = shalt.err (!%p1013_p3)
}
 0x4a6   : > { %940 = dma.vmem_to_hbm [thread:$0]  (%p1169_p5), %s825_s26, 128, %s827_s0, %s812_s17  }
 0x4a7 PF: > { %s1480_s22 = sld [smem:[#allocation5_spill]]  ;;  %p946_p4 = scmp.ge.s32.totalorder %s1051_s16, 2 }
 0x4a9   : > { %p943_p7 = pnand %p946_p4, %p1173_p6 }
 0x4ab   : > { %p944_p8 = pneg %p943_p7 }
 0x4ad   : > { %s838_s27 = sand.u32 1, %s1480_s22  }
 0x4ae   : > { %s839_s19 = scalar_lea.sflag [#allocation3], %s838_s27 }
 0x4af   : > { %1034 = dma.done.wait (%p944_p8), %s839_s19, 128  }
 0x4b0   : > { %1036 = vsyncadd (%p944_p8), %s839_s19, 4294967168  ;;  %s1482_s16 = sld [smem:[#allocation7_spill]]  ;;  %s1485_s29 = smov %s1043_s30 }
 0x4b1   : > { %s1483_s24 = sld [smem:[#allocation6_spill]] }
 0x4b2   : > { %s1484_s15 = sld [smem:[#allocation8_spill]] }
 0x4b6   : > { %p24_p9 = scmp.ge.s32.totalorder %s1482_s16, 4  }
 0x4b7   : > { %s1486_s30 = smov %s1483_s24 }
 0x4b8   :  { %26 = sbr.rel (!%p24_p9) target bundleno = 5 (0x5), region = 120 }
 0x4bd   :  { %845 = vsyncpa [#allocation3], 1 }
 0x4be   :  { %847 = vsyncpa [#allocation3 + $0x1], 1 }

// kernel: history_dialogue_forward.20
= control target key start
LH: loop header
LB: loop body
LE: loop exit
PB: predicated region body
PF: predicated region fallthrough
CT: control target
= control target key end

     0   :  { %s767_s15 = smov 0   ;;  %s917_s0 = inlined_call_operand.vmem [shape: f32[2,8,32], index: 0, kind: input, shape index: {}]   ;;  %s918_s1 = inlined_call_operand.vmem [shape: f32[2,8,1], index: 1, kind: input, shape index: {}]   ;;  %s919_s2 = inlined_call_operand.vmem [shape: f32[96,32], index: 2, kind: input, shape index: {}]   ;;  %s920_s3 = inlined_call_operand.vmem [shape: f32[1,32], index: 3, kind: input, shape index: {}]   ;;  %s921_s4 = inlined_call_operand.vmem [shape: f32[2,32], index: 4, kind: input, shape index: {}]   ;;  %s922_s5 = inlined_call_operand.vmem [shape: f32[96,32], index: 5, kind: input, shape index: {}]   ;;  %s923_s6 = inlined_call_operand.vmem [shape: f32[1,32], index: 6, kind: input, shape index: {}]   ;;  %s924_s7 = inlined_call_operand.vmem [shape: f32[2,32], index: 7, kind: input, shape index: {}]   ;;  %s925_s8 = inlined_call_operand.vmem [shape: f32[32,1], index: 8, kind: input, shape index: {}]   ;;  %s926_s9 = inlined_call_operand.<no memory space> [shape: f32[1,1], index: 9, kind: input, shape index: {}]   ;;  %s927_s10 = inlined_call_operand.vmem [shape: f32[2,8,1], index: 10, kind: output, shape index: {}]  }
   0x1   :  { %v15_v0 = vstv %s926_s9 }
   0x2   :  { %16 = vst [vmem:[#allocation2] sm:$0x1] %v15_v0 }
   0x3 LB: > { %s665_s16 = sadd.s32 4294967295, %s704_s15   ;;  %p669_p0 = scmp.ge.s32.totalorder %s704_s15, 1  ;;  %s704_s15 = sphi %s767_s15, %s22_s15  }
   0x4   : > { %p322_p1 = scmp.lt.s32.totalorder %s704_s15, 3 }
   0x6   : > { %p323_p2 = pnand %p669_p0, %p322_p1 }
   0x7   : > { %p362_p3 = scmp.lt.s32.totalorder (!%p323_p2), %s665_s16, 1  ;;  %s706_s14 = smov (!%p323_p2), 32  }
   0x8   : > { %326 = sbr.rel (%p323_p2) target bundleno = 1186 (0x4a2), region = 60 }
   0xd   : > { %v386_v1 = vld [vmem:[%s919_s2 + $0x58] sm:$0xff]  ;;  %v385_v2 = vld [vmem:[%s919_s2 + $0x50] sm:$0xff]  ;;  %s929_s16 = smov (!%p362_p3, %s665_s16), 1  ;;  %v384_v3 = vld [vmem:[%s919_s2 + $0x48] sm:$0xff]  ;;  %vm391_vm0 = vcmask 1040384   ;;  %vm396_vm1 = vcmask 1046528  }
   0xe   : > { %425 = vmatpush.msra.mxu0 %v386_v1  ;;  %s784_s22 = sshll.u32 %s929_s16, 3  ;;  %v383_v4 = vld [vmem:[%s919_s2 + $0x40] sm:$0xff]  ;;  %v382_v6 = vld [vmem:[%s919_s2 + $0x38] sm:$0xff]  ;;  %v381_v8 = vld [vmem:[%s919_s2 + $0x30] sm:$0xff]  ;;  %vm403_vm2 = vcmask 1045504   ;;  %s707_s16 = smov 64  }
   0xf   : > { %s365_s27 = scalar_lea.vmem %s917_s0, %s784_s22  ;;  %v380_v13 = vld [vmem:[%s919_s2 + $0x28] sm:$0xff]  ;;  %v379_v18 = vld [vmem:[%s919_s2 + $0x20] sm:$0xff]  ;;  %v378_v19 = vld [vmem:[%s919_s2 + $0x18] sm:$0xff]  ;;  %vm410_vm3 = vcmask 261120   ;;  %vm412_vm4 = vcmask 523264   ;;  %vm417_vm5 = vcmask 785408   ;;  %s369_s13 = scalar_lea.vmem %s918_s1, %s784_s22 }
  0x10   : > { %426 = vmatpush.msra.mxu0 %v385_v2  ;;  %v374_v5 = vld [vmem:[%s365_s27] sm:$0xff]  ;;  %v377_v20 = vld [vmem:[%s919_s2 + $0x10] sm:$0xff]  ;;  %v376_v21 = vld [vmem:[%s919_s2 + $0x8] sm:$0xff]  ;;  %v708_v32 = vmov 32.0   ;;  %vm598_vm13 = vcmask 7168  }
  0x11   : > { %v389_v7 = vrot.slane %v374_v5, 7  ;;  %v375_v22 = vld [vmem:[%s919_s2] sm:$0xff]  ;;  %692 = vrcp.f32 %v708_v32  ;;  %v487_v48 = vld [vmem:[%s922_s5 + $0x58] sm:$0xff]  ;;  %v486_v49 = vld [vmem:[%s922_s5 + $0x50] sm:$0xff] }
  0x12   : > { %427 = vmatpush.msra.mxu0 %v384_v3  ;;  %v689_v27 = vld [vmem:[%s920_s3] ss:$0 sm:$0xff]  ;;  %520 = vmatpush.msra.mxu1 %v487_v48  ;;  %v485_v51 = vld [vmem:[%s922_s5 + $0x48] sm:$0xff]  ;;  %v483_v55 = vld [vmem:[%s922_s5 + $0x38] sm:$0xff] }
  0x13   : > { %v392_v9 = vsel %vm391_vm0, 0.0, %v389_v7  ;;  %v393_v10 = vsel %vm391_vm0, %v389_v7, 0.0  ;;  %v484_v53 = vld [vmem:[%s922_s5 + $0x40] sm:$0xff]  ;;  %v482_v58 = vld [vmem:[%s922_s5 + $0x30] sm:$0xff]  ;;  %v481_v61 = vld [vmem:[%s922_s5 + $0x28] sm:$0xff] }
  0x14   : > { %428 = vmatpush.msra.mxu0 %v383_v4  ;;  %v397_v11 = vrot.slane %v392_v9, 1  ;;  %v398_v12 = vrot.slane %v393_v10, 1  ;;  %v404_v15 = vrot.slane %v392_v9, 2  ;;  %v405_v16 = vrot.slane %v393_v10, 2  ;;  %521 = vmatpush.msra.mxu1 %v486_v49  ;;  %v442_v57 = vld [vmem:[%s921_s4] sm:$0x3] }
  0x15   : > { %v472_v60 = vperm.slane %v442_v57, 0  ;;  %v474_v0 = vperm.slane %v442_v57, 1  ;;  %v566_v32 = vld [vmem:[%s925_s8 + $0x10] sm:$0xff] }
  0x16   : > { %429 = vmatpush.msra.mxu0 %v382_v6  ;;  %v399_v14 = vsel %vm396_vm1, %v397_v11, %v398_v12  ;;  %v406_v17 = vsel %vm403_vm2, %v404_v15, %v405_v16  ;;  %522 = vmatpush.msra.mxu1 %v485_v51  ;;  %v480_v12 = vld [vmem:[%s922_s5 + $0x20] sm:$0xff]  ;;  %v477_v15 = vld [vmem:[%s922_s5 + $0x8] sm:$0xff] }
  0x17   : > { %400 = vrot.lane.b32.xlu0 %v399_v14, %s706_s14  ;;  %v693_v33 = vpop.eup %692  ;;  %v478_v14 = vld [vmem:[%s922_s5 + $0x10] sm:$0xff]  ;;  %v476_v16 = vld [vmem:[%s922_s5] sm:$0xff] }
  0x18   : > { %430 = vmatpush.msra.mxu0 %v381_v8  ;;  %v447_v34 = vmul.f32 32.0, %v693_v33  ;;  %vm451_vm6 = vweird.f32 %v693_v33  ;;  %523 = vmatpush.msra.mxu1 %v484_v53  ;;  %v595_v51 = vld [vmem:[%s369_s13] sm:$0xff] }
  0x19   : > { %v596_v53 = vsub.f32 1.0, %v595_v51 }
  0x1a   : > { %431 = vmatpush.msra.mxu0 %v380_v13  ;;  %v448_v35 = vsub.f32 1.0, %v447_v34  ;;  %524 = vmatpush.msra.mxu1 %v483_v55  ;;  %v479_v13 = vld [vmem:[%s922_s5 + $0x18] sm:$0xff]  ;;  %v564_v34 = vld [vmem:[%s925_s8] sm:$0xff] }
  0x1c   : > { %432 = vmatpush.msra.mxu0 %v379_v18  ;;  %v449_v36 = vmul.f32 %v693_v33, %v448_v35  ;;  %525 = vmatpush.msra.mxu1 %v482_v58 }
  0x1e   : > { %433 = vmatpush.msra.mxu0 %v378_v19  ;;  %v450_v37 = vadd.f32 %v693_v33, %v449_v36  ;;  %526 = vmatpush.msra.mxu1 %v481_v61 }
  0x1f   : > { %407 = vrot.lane.b32.xlu0 %v406_v17, %s707_s16 }
  0x20   : > { %434 = vmatpush.msra.mxu0 %v377_v20  ;;  %v830_v38 = vsel %vm451_vm6, %v693_v33, %v450_v37  ;;  %527 = vmatpush.msra.mxu1 %v480_v12  ;;  %v565_v33 = vld [vmem:[%s925_s8 + $0x8] sm:$0xff] }
  0x22   : > { %435 = vmatpush.msra.mxu0 %v376_v21  ;;  %528 = vmatpush.msra.mxu1 %v479_v13  ;;  %v690_v21 = vld [vmem:[%s923_s6] ss:$0 sm:$0xff] }
  0x24   : > { %436 = vmatpush.msra.mxu0 %v375_v22  ;;  %529 = vmatpush.msra.mxu1 %v478_v14 }
  0x26   : > { %530 = vmatpush.msra.mxu1 %v477_v15 }
  0x28   : > { %531 = vmatpush.msra.mxu1 %v476_v16 }
  0x89   : > { %v401_v23 = vpop.permute.xlu0 %400 }
  0x8a   : > { %v411_v24 = vsel %vm410_vm3, %v392_v9, %v401_v23 }
  0x91   : > { %v408_v25 = vpop.permute.xlu0 %407 }
  0x92   : > { %v413_v26 = vsel %vm412_vm4, %v411_v24, %v408_v25 }
  0x93   : > { %673 = vmatmul.msk.f32.vlgmr.msra.gmra.mxu0 %vm417_vm5, %v413_v26 }
 0x110   : > { %v438_v28 = vpop.f32.mrf.mxu0 }
 0x111   : > { %v439_v29 = vadd.f32 %v689_v27, %v438_v28 }
 0x113   : > { %v441_v30 = vmax.f32 %v439_v29, 0.0 }
 0x115   : > { %v443_v31 = vsel %vm410_vm3, %v441_v30, 0.0 }
 0x116   : > { %444 = vadd.xlane.f32.xlu1 %v443_v31  ;;  %v567_v31 = vld [vmem:[%s925_s8 + $0x18] sm:$0xff] }
 0x117   : > { %587 = vmatpush.msra.mxu2 %v567_v31 }
 0x119   : > { %588 = vmatpush.msra.mxu2 %v566_v32 }
 0x11b   : > { %589 = vmatpush.msra.mxu2 %v565_v33 }
 0x11d   : > { %590 = vmatpush.msra.mxu2 %v564_v34 }
 0x189   : > { %v445_v39 = vpop.xlane.xlu1 %444 }
 0x18a   : > { %v453_v40 = vmul.f32 %v830_v38, %v445_v39 }
 0x18c   : > { %v454_v41 = vsub.f32 %v441_v30, %v453_v40 }
 0x18e   : > { %v455_v42 = vmul.f32 %v454_v41, %v454_v41 }
 0x190   : > { %v456_v43 = vsel %vm410_vm3, %v455_v42, 0.0 }
 0x191   : > { %457 = vadd.xlane.f32.xlu1 %v456_v43 }
 0x204   : > { %v458_v44 = vpop.xlane.xlu1 %457 }
 0x205   : > { %v459_v45 = vmul.f32 %v458_v44, %v830_v38  ;;  %v537_v44 = vld [vmem:[%s924_s7] sm:$0x3] }
 0x206   : > { %v562_v48 = vperm.slane %v537_v44, 1 }
 0x207   : > { %v460_v46 = vadd.f32 1e-05, %v459_v45 }
 0x209   : > { %694 = vrsqrt.f32 %v460_v46  ;;  %vm467_vm8 = vweird.f32 %v460_v46 }
 0x20f   : > { %v695_v47 = vpop.eup %694 }
 0x210   : > { %v462_v50 = vmul.f32 %v695_v47, %v460_v46  ;;  %vm468_vm7 = vweird.f32 %v695_v47  ;;  %v560_v46 = vperm.slane %v537_v44, 0 }
 0x211   : > { %vm469_vm9 = vmor %vm467_vm8, %vm468_vm7 }
 0x212   : > { %v463_v52 = vmul.f32 %v695_v47, %v462_v50 }
 0x214   : > { %v464_v54 = vmul.f32 0.5, %v463_v52  ;;  %v691_v52 = vld [vmem:[#allocation2] ss:$0 sm:$0xff] }
 0x216   : > { %v465_v56 = vsub.f32 1.5, %v464_v54 }
 0x218   : > { %v466_v59 = vmul.f32 %v695_v47, %v465_v56 }
 0x21a   : > { %v470_v62 = vsel %vm469_vm9, %v695_v47, %v466_v59 }
 0x21b   : > { %v471_v63 = vmul.f32 %v470_v62, %v454_v41 }
 0x21d   : > { %v473_v1 = vmul.f32 %v472_v60, %v471_v63 }
 0x21f   : > { %v475_v2 = vadd.f32 %v474_v0, %v473_v1 }
 0x221   : > { %v490_v3 = vrot.slane %v475_v2, 7 }
 0x223   : > { %v492_v4 = vsel %vm391_vm0, 0.0, %v490_v3  ;;  %v493_v5 = vsel %vm391_vm0, %v490_v3, 0.0 }
 0x224   : > { %v496_v6 = vrot.slane %v492_v4, 1  ;;  %v497_v7 = vrot.slane %v493_v5, 1  ;;  %v502_v9 = vrot.slane %v492_v4, 2  ;;  %v503_v10 = vrot.slane %v493_v5, 2 }
 0x226   : > { %v498_v8 = vsel %vm396_vm1, %v496_v6, %v497_v7  ;;  %v504_v11 = vsel %vm403_vm2, %v502_v9, %v503_v10 }
 0x227   : > { %499 = vrot.lane.b32.xlu2 %v498_v8, %s706_s14 }
 0x22f   : > { %505 = vrot.lane.b32.xlu2 %v504_v11, %s707_s16  ;;  %s373_s16 = scalar_lea.vmem %s927_s10, %s784_s22 }
 0x281   : > { %v500_v17 = vpop.permute.xlu2 %499 }
 0x282   : > { %v508_v18 = vsel %vm410_vm3, %v492_v4, %v500_v17 }
 0x289   : > { %v506_v19 = vpop.permute.xlu2 %505 }
 0x28a   : > { %v509_v20 = vsel %vm412_vm4, %v508_v18, %v506_v19 }
 0x28b   : > { %674 = vmatmul.msk.f32.vlgmr.msra.gmra.mxu1 %vm417_vm5, %v509_v20 }
 0x308   : > { %v533_v22 = vpop.f32.mrf.mxu1 }
 0x309   : > { %v534_v23 = vadd.f32 %v690_v21, %v533_v22 }
 0x30b   : > { %v536_v24 = vmax.f32 %v534_v23, 0.0 }
 0x30d   : > { %v538_v25 = vsel %vm410_vm3, %v536_v24, 0.0 }
 0x30e   : > { %539 = vadd.xlane.f32.xlu0 %v538_v25 }
 0x381   : > { %v540_v26 = vpop.xlane.xlu0 %539 }
 0x382   : > { %v541_v27 = vmul.f32 %v540_v26, %v830_v38 }
 0x384   : > { %v542_v28 = vsub.f32 %v536_v24, %v541_v27 }
 0x386   : > { %v543_v29 = vmul.f32 %v542_v28, %v542_v28 }
 0x388   : > { %v544_v30 = vsel %vm410_vm3, %v543_v29, 0.0 }
 0x389   : > { %545 = vadd.xlane.f32.xlu1 %v544_v30 }
 0x3fc   : > { %v546_v35 = vpop.xlane.xlu1 %545 }
 0x3fd   : > { %v547_v36 = vmul.f32 %v546_v35, %v830_v38 }
 0x3ff   : > { %v548_v37 = vadd.f32 1e-05, %v547_v36 }
 0x401   : > { %696 = vrsqrt.f32 %v548_v37  ;;  %vm555_vm11 = vweird.f32 %v548_v37 }
 0x407   : > { %v697_v39 = vpop.eup %696 }
 0x408   : > { %v550_v40 = vmul.f32 %v697_v39, %v548_v37  ;;  %vm556_vm10 = vweird.f32 %v697_v39 }
 0x409   : > { %vm557_vm12 = vmor %vm555_vm11, %vm556_vm10 }
 0x40a   : > { %v551_v41 = vmul.f32 %v697_v39, %v550_v40 }
 0x40c   : > { %v552_v42 = vmul.f32 0.5, %v551_v41 }
 0x40e   : > { %v553_v43 = vsub.f32 1.5, %v552_v42 }
 0x410   : > { %v554_v45 = vmul.f32 %v697_v39, %v553_v43 }
 0x412   : > { %v558_v47 = vsel %vm557_vm12, %v697_v39, %v554_v45 }
 0x413   : > { %v559_v38 = vmul.f32 %v558_v47, %v542_v28 }
 0x415   : > { %v561_v49 = vmul.f32 %v560_v46, %v559_v38 }
 0x417   : > { %v563_v50 = vadd.f32 %v562_v48, %v561_v49 }
 0x419   : > { %675 = vmatmul.msk.f32.vlgmr.msra.gmra.mxu2 %vm410_vm3, %v563_v50 }
 0x49c   : > { %v592_v54 = vpop.f32.mrf.mxu2 }
 0x49d   : > { %v593_v55 = vadd.f32 %v691_v52, %v592_v54 }
 0x49f   : > { %v597_v56 = vmul.f32 %v596_v53, %v593_v55 }
 0x4a1   : > { %599 = vst.msk [vmem:[%s373_s16] sm:$0xff] %vm598_vm13, %v597_v56 }
 0x4a2 PF: > { %s22_s15 = sadd.s32 1, %s704_s15  }
 0x4a3   : > { %p19_p4 = scmp.ge.s32.totalorder %s22_s15, 4  }
 0x4a5   :  { %21 = sbr.rel (!%p19_p4) target bundleno = 3 (0x3), region = 93 }

</bundles_post_ra>
